<compile_context>
chip_gen: v7x
topology: tpu7x:2x2x1
jax: 0.10.0
libtpu: 0.0.40
codegen_flags: <defaults>
</compile_context>

<pallas_src>
import math
from functools import partial

import jax
import jax.numpy as jnp
from jax.experimental import pallas as pl
from jax.experimental.pallas import tpu as pltpu

LANE = 128  # TPU lane width; all output-channel / feature dims pad to this.


# ---------------------------------------------------------------------------
# The single fused kernel (one grid step = one block of `batch` images).
# ---------------------------------------------------------------------------
def _lenet_kernel(patches_ref, w1_ref, b1_ref, w2_ref, b2_ref,
                  wf1_ref, bf1_ref, wf2_ref, bf2_ref, wf3_ref, bf3_ref,
                  out_ref, h1_ref, h2_ref, *, batch):
    B = batch
    f32 = jnp.float32
    bf16 = jnp.bfloat16

    # ---- layer1: conv1 (5x5, pad=1) + maxpool 2x2 ---------------------------
    # One matmul per pool phase, M = B*256 (all images & pooled positions),
    # K = 32 (the 25 taps, zero-padded).  Pool = elementwise max of the four
    # phase results; bias added once after the max.
    w1 = w1_ref[...]                                         # (32, 128) bf16
    pooled1 = None
    for ph in range(4):
        c = jnp.dot(patches_ref[ph], w1, preferred_element_type=f32)
        pooled1 = c if pooled1 is None else jnp.maximum(pooled1, c)
    pooled1 = pooled1 + b1_ref[...]                          # (B*256, 128) f32

    # Rows are already ordered (b, row-parity, col-parity, u, v): store them
    # phase-split into scratch.  The v axis is padded 8 -> 16 (zeros) so the
    # conv2 windows below are plain slices; the pad only ever feeds the
    # discarded v >= 4 conv2 columns.
    h1_ref[:, :, :, :, 0:8, :] = pooled1.reshape(B, 2, 2, 8, 8, LANE)
    h1_ref[:, :, :, :, 8:16, :] = jnp.zeros((B, 2, 2, 8, 8, LANE), f32)

    # ---- layer2: conv2 (5x5) + maxpool 2x2 ----------------------------------
    # Per pool phase: 25 per-tap matmuls (M = B*32, K = 128) accumulated in
    # f32 -- no im2col concatenation is ever materialised in VMEM.
    pooled2 = None
    for a in range(2):
        for c2 in range(2):
            acc = None
            for i in range(5):
                for j in range(5):
                    pi, qi = (a + i) % 2, (a + i) // 2
                    pj, qj = (c2 + j) % 2, (c2 + j) // 2
                    slab = h1_ref[:, pi, pj, qi:qi + 4, qj:qj + 8, :]
                    lhs = slab.reshape(B * 32, LANE).astype(bf16)
                    contrib = jnp.dot(lhs, w2_ref[i * 5 + j],
                                      preferred_element_type=f32)
                    acc = contrib if acc is None else acc + contrib
            pooled2 = acc if pooled2 is None else jnp.maximum(pooled2, acc)
    pooled2 = pooled2 + b2_ref[...]                          # (B*32, 128) f32

    h2_ref[...] = pooled2.reshape(B, 32, LANE)

    # ---- layer3: fc1 -> fc2 -> fc3 (intermediates stay in VMEM/vregs) ------
    # PyTorch's (c, h, w) flatten order is folded into the fc1 weight rows;
    # here we just lane-concat the 16 valid (u, v) row-blocks of h2.
    pieces = [h2_ref[:, u * 8 + v, :] for u in range(4) for v in range(4)]
    flat = jnp.concatenate(pieces, axis=-1).astype(bf16)     # (B, 2048)
    h = jnp.dot(flat, wf1_ref[...], preferred_element_type=f32) + bf1_ref[...]
    h = jnp.dot(h.astype(bf16), wf2_ref[...],
                preferred_element_type=f32) + bf2_ref[...]
    h = jnp.dot(h.astype(bf16), wf3_ref[...],
                preferred_element_type=f32) + bf3_ref[...]
    out_ref[...] = h                                         # (B, 128) f32


# ---------------------------------------------------------------------------
# Wrapper-side input prep (tiny): conv1 im2col with taps as the K dim.
# ---------------------------------------------------------------------------
def _build_conv1_patches(x):
    """(n, 1, 28, 28) f32 -> (4, n*256, 32) bf16 conv1 im2col patches.

    dim0 = pool1 phase (a1, c1); dim1 row = b*256 + (r%2)*128 + (s%2)*64 +
    (r//2)*8 + (s//2) for pooled position (r, s); dim2 = the 25 taps
    (i*5 + j), zero-padded to 32.  Out-of-range positions are zero."""
    n = x.shape[0]
    xp = jnp.pad(x[:, 0], ((0, 0), (1, 1), (1, 1)))               # (n, 30, 30)
    taps = jnp.stack([xp[:, i:i + 26, j:j + 26]
                      for i in range(5) for j in range(5)], axis=-1)
    taps = jnp.pad(taps, ((0, 0), (0, 6), (0, 6), (0, 7)))        # (n,32,32,32)
    t = taps.reshape(n, 8, 2, 2, 8, 2, 2, 32)     # [b, u, pr, a1, v, pc, c1, t]
    t = jnp.transpose(t, (3, 6, 0, 2, 5, 1, 4, 7))  # [a1,c1, b, pr,pc, u,v, t]
    return t.reshape(4, n * 256, 32).astype(jnp.bfloat16)


# ---------------------------------------------------------------------------
# One-time weight preparation (hoisted out of the jitted forward).
# ---------------------------------------------------------------------------
def prepare_params(p):
    f32, bf16 = jnp.float32, jnp.bfloat16
    # conv1 (6,1,5,5) -> taps-as-K matrix (32, 128): rows = (i, j), cols = oc.
    w1 = jnp.transpose(p["w1"][:, 0], (1, 2, 0)).reshape(25, 6)
    w1 = jnp.pad(w1, ((0, 7), (0, LANE - 6))).astype(bf16)
    b1 = jnp.pad(p["b1"], (0, LANE - 6)).reshape(1, LANE).astype(f32)
    # conv2 (16,6,5,5) -> per-tap (25, 128, 128): [tap, cin, oc].
    w2 = jnp.transpose(p["w2"], (2, 3, 1, 0)).reshape(25, 6, 16)
    w2 = jnp.pad(w2, ((0, 0), (0, LANE - 6), (0, LANE - 16))).astype(bf16)
    b2 = jnp.pad(p["b2"], (0, LANE - 16)).reshape(1, LANE).astype(f32)
    # fc1 (120,256): fold PyTorch's (c,h,w) flatten order into rows (u,v,c).
    wf1 = p["wf1"].reshape(120, 16, 4, 4).transpose(2, 3, 1, 0)   # (4,4,16,120)
    wf1 = jnp.pad(wf1, ((0, 0), (0, 0), (0, LANE - 16), (0, LANE - 120)))
    wf1 = wf1.reshape(16 * LANE, LANE).astype(bf16)
    bf1 = jnp.pad(p["bf1"], (0, LANE - 120)).reshape(1, LANE).astype(f32)
    # fc2 / fc3: plain (in, out), zero-padded to 128.
    wf2 = jnp.pad(p["wf2"].T, ((0, LANE - 120), (0, LANE - 84))).astype(bf16)
    bf2 = jnp.pad(p["bf2"], (0, LANE - 84)).reshape(1, LANE).astype(f32)
    wf3 = jnp.pad(p["wf3"].T, ((0, LANE - 84), (0, LANE - 10))).astype(bf16)
    bf3 = jnp.pad(p["bf3"], (0, LANE - 10)).reshape(1, LANE).astype(f32)
    return dict(w1=w1, b1=b1, w2=w2, b2=b2, wf1=wf1, bf1=bf1,
                wf2=wf2, bf2=bf2, wf3=wf3, bf3=bf3)


# ---------------------------------------------------------------------------
# LeNet forward (matches the PyTorch module: no activation functions).
# ---------------------------------------------------------------------------
def lenet_forward(x, wp):
    n = x.shape[0]
    if n <= 8:
        bb, npad = n, n
    else:
        bb = 8
        npad = ((n + bb - 1) // bb) * bb
        if npad != n:
            x = jnp.pad(x, ((0, npad - n), (0, 0), (0, 0), (0, 0)))
    patches = _build_conv1_patches(x)                        # (4, npad*256, 32)

    out = pl.pallas_call(
        partial(_lenet_kernel, batch=bb),
        grid=(npad // bb,),
        in_specs=[
            pl.BlockSpec((4, bb * 256, 32), lambda g: (0, g, 0)),
            pl.BlockSpec((32, LANE), lambda g: (0, 0)),
            pl.BlockSpec((1, LANE), lambda g: (0, 0)),
            pl.BlockSpec((25, LANE, LANE), lambda g: (0, 0, 0)),
            pl.BlockSpec((1, LANE), lambda g: (0, 0)),
            pl.BlockSpec((16 * LANE, LANE), lambda g: (0, 0)),
            pl.BlockSpec((1, LANE), lambda g: (0, 0)),
            pl.BlockSpec((LANE, LANE), lambda g: (0, 0)),
            pl.BlockSpec((1, LANE), lambda g: (0, 0)),
            pl.BlockSpec((LANE, LANE), lambda g: (0, 0)),
            pl.BlockSpec((1, LANE), lambda g: (0, 0)),
        ],
        out_specs=pl.BlockSpec((bb, LANE), lambda g: (g, 0)),
        out_shape=jax.ShapeDtypeStruct((npad, LANE), jnp.float32),
        scratch_shapes=[
            pltpu.VMEM((bb, 2, 2, 8, 16, LANE), jnp.float32),   # phase-split h1
            pltpu.VMEM((bb, 32, LANE), jnp.float32),            # pooled h2
        ],
        compiler_params=pltpu.CompilerParams(
            dimension_semantics=("parallel",)),
    )(patches, wp["w1"], wp["b1"], wp["w2"], wp["b2"],
      wp["wf1"], wp["bf1"], wp["wf2"], wp["bf2"], wp["wf3"], wp["bf3"])
    return out[:n, :10]


# ---------------------------------------------------------------------------
# Params + pure-JAX reference (for a loose numerical self-check).
# ---------------------------------------------------------------------------
def init_params(key):
    def uni(k, shape, fan_in):
        bound = 1.0 / math.sqrt(fan_in)
        return jax.random.uniform(k, shape, jnp.float32, -bound, bound)

    ks = jax.random.split(key, 10)
    return {
        "w1": uni(ks[0], (6, 1, 5, 5), 25), "b1": uni(ks[1], (6,), 25),
        "w2": uni(ks[2], (16, 6, 5, 5), 150), "b2": uni(ks[3], (16,), 150),
        "wf1": uni(ks[4], (120, 256), 256), "bf1": uni(ks[5], (120,), 256),
        "wf2": uni(ks[6], (84, 120), 120), "bf2": uni(ks[7], (84,), 120),
        "wf3": uni(ks[8], (10, 84), 84), "bf3": uni(ks[9], (10,), 84),
    }


def lenet_reference(x, p):
    def conv(h, w, b, pad):
        out = jax.lax.conv_general_dilated(
            h, w, (1, 1), ((pad, pad), (pad, pad)),
            dimension_numbers=("NCHW", "OIHW", "NCHW"))
        return out + b[None, :, None, None]

    def pool(h):
        return jax.lax.reduce_window(h, -jnp.inf, jax.lax.max,
                                     (1, 1, 2, 2), (1, 1, 2, 2), "VALID")

    h = pool(conv(x, p["w1"], p["b1"], 1))
    h = pool(conv(h, p["w2"], p["b2"], 0))
    h = h.reshape(h.shape[0], -1)
    h = h @ p["wf1"].T + p["bf1"]
    h = h @ p["wf2"].T + p["bf2"]
    h = h @ p["wf3"].T + p["bf3"]
    return h


if __name__ == "__main__":
    key = jax.random.PRNGKey(0)
    k_x, k_p = jax.random.split(key)
    # MNIST-shaped input: fc1 in_features=256 forces 28x28 spatial size.
    x = jax.random.normal(k_x, (2, 1, 28, 28), dtype=jnp.float32)
    params = init_params(k_p)

    wp = prepare_params(params)          # one-time weight prep (outside jit)
    fwd = jax.jit(lenet_forward)
    out = jax.block_until_ready(fwd(x, wp))
    assert out.shape == (2, 10) and out.dtype == jnp.float32

    ref = jax.block_until_ready(lenet_reference(x, params))
    assert bool(jnp.allclose(out, ref, rtol=0.05, atol=0.1)), (
        "max abs err %f" % float(jnp.max(jnp.abs(out - ref))))
    print("KERNEL_OK")
</pallas_src>

<mosaic_0001>
module attributes {stable_mosaic.version = 11 : i64} {
  func.func @_lenet_kernel(%arg0: i32, %arg1: memref<4x512x32xbf16, #tpu.memory_space<vmem>>, %arg2: memref<32x128xbf16, #tpu.memory_space<vmem>>, %arg3: memref<1x128xf32, #tpu.memory_space<vmem>>, %arg4: memref<25x128x128xbf16, #tpu.memory_space<vmem>>, %arg5: memref<1x128xf32, #tpu.memory_space<vmem>>, %arg6: memref<2048x128xbf16, #tpu.memory_space<vmem>>, %arg7: memref<1x128xf32, #tpu.memory_space<vmem>>, %arg8: memref<128x128xbf16, #tpu.memory_space<vmem>>, %arg9: memref<1x128xf32, #tpu.memory_space<vmem>>, %arg10: memref<128x128xbf16, #tpu.memory_space<vmem>>, %arg11: memref<1x128xf32, #tpu.memory_space<vmem>>, %arg12: memref<2x128xf32, #tpu.memory_space<vmem>>, %arg13: memref<2x2x2x8x16x128xf32, #tpu.memory_space<vmem>>, %arg14: memref<2x32x128xf32, #tpu.memory_space<vmem>>) attributes {dimension_semantics = [#tpu.dimension_semantics<parallel>], iteration_bounds = array<i64: 1>, scalar_prefetch = 0 : i64, scratch_operands = 2 : i64, tpu.core_type = #tpu.core_type<tc>, window_params = [{transform_indices = @transform_0, window_bounds = array<i64: 4, 512, 32>}, {pipeline_mode = #tpu.pipeline_mode<synchronous>, transform_indices = @transform_1, window_bounds = array<i64: 32, 128>}, {pipeline_mode = #tpu.pipeline_mode<synchronous>, transform_indices = @transform_2, window_bounds = array<i64: 1, 128>}, {pipeline_mode = #tpu.pipeline_mode<synchronous>, transform_indices = @transform_3, window_bounds = array<i64: 25, 128, 128>}, {pipeline_mode = #tpu.pipeline_mode<synchronous>, transform_indices = @transform_4, window_bounds = array<i64: 1, 128>}, {pipeline_mode = #tpu.pipeline_mode<synchronous>, transform_indices = @transform_5, window_bounds = array<i64: 2048, 128>}, {pipeline_mode = #tpu.pipeline_mode<synchronous>, transform_indices = @transform_6, window_bounds = array<i64: 1, 128>}, {pipeline_mode = #tpu.pipeline_mode<synchronous>, transform_indices = @transform_7, window_bounds = array<i64: 128, 128>}, {pipeline_mode = #tpu.pipeline_mode<synchronous>, transform_indices = @transform_8, window_bounds = array<i64: 1, 128>}, {pipeline_mode = #tpu.pipeline_mode<synchronous>, transform_indices = @transform_9, window_bounds = array<i64: 128, 128>}, {pipeline_mode = #tpu.pipeline_mode<synchronous>, transform_indices = @transform_10, window_bounds = array<i64: 1, 128>}, {transform_indices = @transform_11, window_bounds = array<i64: 2, 128>}]} {
    %c0 = arith.constant 0 : index
    %c0_0 = arith.constant 0 : index
    %0 = vector.load %arg2[%c0, %c0_0] : memref<32x128xbf16, #tpu.memory_space<vmem>>, vector<32x128xbf16>
    %c0_1 = arith.constant 0 : index
    %c0_2 = arith.constant 0 : index
    %c0_3 = arith.constant 0 : index
    %1 = vector.load %arg1[%c0_1, %c0_2, %c0_3] : memref<4x512x32xbf16, #tpu.memory_space<vmem>>, vector<1x512x32xbf16>
    %2 = vector.shape_cast %1 : vector<1x512x32xbf16> to vector<512x32xbf16>
    %cst = arith.constant dense<0.000000e+00> : vector<512x128xf32>
    %3 = tpu.matmul %2, %0, %cst {dimension_numbers = #tpu.dot_dimension_numbers<[1], [0], [0], [1], [0, 0, 1, 1], [], []>} : vector<512x32xbf16>, vector<32x128xbf16>, vector<512x128xf32> -> vector<512x128xf32>
    %c1 = arith.constant 1 : index
    %c0_4 = arith.constant 0 : index
    %c0_5 = arith.constant 0 : index
    %4 = vector.load %arg1[%c1, %c0_4, %c0_5] : memref<4x512x32xbf16, #tpu.memory_space<vmem>>, vector<1x512x32xbf16>
    %5 = vector.shape_cast %4 : vector<1x512x32xbf16> to vector<512x32xbf16>
    %cst_6 = arith.constant dense<0.000000e+00> : vector<512x128xf32>
    %6 = tpu.matmul %5, %0, %cst_6 {dimension_numbers = #tpu.dot_dimension_numbers<[1], [0], [0], [1], [0, 0, 1, 1], [], []>} : vector<512x32xbf16>, vector<32x128xbf16>, vector<512x128xf32> -> vector<512x128xf32>
    %7 = arith.maximumf %3, %6 : vector<512x128xf32>
    %c2 = arith.constant 2 : index
    %c0_7 = arith.constant 0 : index
    %c0_8 = arith.constant 0 : index
    %8 = vector.load %arg1[%c2, %c0_7, %c0_8] : memref<4x512x32xbf16, #tpu.memory_space<vmem>>, vector<1x512x32xbf16>
    %9 = vector.shape_cast %8 : vector<1x512x32xbf16> to vector<512x32xbf16>
    %cst_9 = arith.constant dense<0.000000e+00> : vector<512x128xf32>
    %10 = tpu.matmul %9, %0, %cst_9 {dimension_numbers = #tpu.dot_dimension_numbers<[1], [0], [0], [1], [0, 0, 1, 1], [], []>} : vector<512x32xbf16>, vector<32x128xbf16>, vector<512x128xf32> -> vector<512x128xf32>
    %11 = arith.maximumf %7, %10 : vector<512x128xf32>
    %c3 = arith.constant 3 : index
    %c0_10 = arith.constant 0 : index
    %c0_11 = arith.constant 0 : index
    %12 = vector.load %arg1[%c3, %c0_10, %c0_11] : memref<4x512x32xbf16, #tpu.memory_space<vmem>>, vector<1x512x32xbf16>
    %13 = vector.shape_cast %12 : vector<1x512x32xbf16> to vector<512x32xbf16>
    %cst_12 = arith.constant dense<0.000000e+00> : vector<512x128xf32>
    %14 = tpu.matmul %13, %0, %cst_12 {dimension_numbers = #tpu.dot_dimension_numbers<[1], [0], [0], [1], [0, 0, 1, 1], [], []>} : vector<512x32xbf16>, vector<32x128xbf16>, vector<512x128xf32> -> vector<512x128xf32>
    %15 = arith.maximumf %11, %14 : vector<512x128xf32>
    %c0_13 = arith.constant 0 : index
    %c0_14 = arith.constant 0 : index
    %16 = vector.load %arg3[%c0_13, %c0_14] : memref<1x128xf32, #tpu.memory_space<vmem>>, vector<1x128xf32>
    %17 = vector.broadcast %16 : vector<1x128xf32> to vector<512x128xf32>
    %18 = arith.addf %15, %17 : vector<512x128xf32>
    %19 = vector.shape_cast %18 : vector<512x128xf32> to vector<2x2x2x8x8x128xf32>
    %c0_15 = arith.constant 0 : index
    %c0_16 = arith.constant 0 : index
    %c0_17 = arith.constant 0 : index
    %c0_18 = arith.constant 0 : index
    %c0_19 = arith.constant 0 : index
    %c0_20 = arith.constant 0 : index
    %20 = vector.load %arg13[%c0_15, %c0_16, %c0_17, %c0_18, %c0_19, %c0_20] : memref<2x2x2x8x16x128xf32, #tpu.memory_space<vmem>>, vector<2x2x2x8x8x128xf32>
    tpu.vector_store %arg13[%c0_15, %c0_16, %c0_17, %c0_18, %c0_19, %c0_20], %19 {strides = array<i32>} : memref<2x2x2x8x16x128xf32, #tpu.memory_space<vmem>>, vector<2x2x2x8x8x128xf32>,
    %cst_21 = arith.constant 0.000000e+00 : f32
    %21 = vector.broadcast %cst_21 : f32 to vector<2x2x2x8x8x128xf32>
    %c0_22 = arith.constant 0 : index
    %c0_23 = arith.constant 0 : index
    %c0_24 = arith.constant 0 : index
    %c0_25 = arith.constant 0 : index
    %c8 = arith.constant 8 : index
    %c0_26 = arith.constant 0 : index
    %22 = vector.load %arg13[%c0_22, %c0_23, %c0_24, %c0_25, %c8, %c0_26] : memref<2x2x2x8x16x128xf32, #tpu.memory_space<vmem>>, vector<2x2x2x8x8x128xf32>
    tpu.vector_store %arg13[%c0_22, %c0_23, %c0_24, %c0_25, %c8, %c0_26], %21 {strides = array<i32>} : memref<2x2x2x8x16x128xf32, #tpu.memory_space<vmem>>, vector<2x2x2x8x8x128xf32>,
    %c0_27 = arith.constant 0 : index
    %c0_28 = arith.constant 0 : index
    %c0_29 = arith.constant 0 : index
    %c0_30 = arith.constant 0 : index
    %c0_31 = arith.constant 0 : index
    %c0_32 = arith.constant 0 : index
    %23 = vector.load %arg13[%c0_27, %c0_28, %c0_29, %c0_30, %c0_31, %c0_32] : memref<2x2x2x8x16x128xf32, #tpu.memory_space<vmem>>, vector<2x1x1x4x8x128xf32>
    %24 = vector.shape_cast %23 : vector<2x1x1x4x8x128xf32> to vector<2x4x8x128xf32>
    %25 = vector.shape_cast %24 : vector<2x4x8x128xf32> to vector<64x128xf32>
    %26 = arith.truncf %25 : vector<64x128xf32> to vector<64x128xbf16>
    %c0_33 = arith.constant 0 : index
    %c0_34 = arith.constant 0 : index
    %c0_35 = arith.constant 0 : index
    %27 = vector.load %arg4[%c0_33, %c0_34, %c0_35] : memref<25x128x128xbf16, #tpu.memory_space<vmem>>, vector<1x128x128xbf16>
    %28 = vector.shape_cast %27 : vector<1x128x128xbf16> to vector<128x128xbf16>
    %cst_36 = arith.constant dense<0.000000e+00> : vector<64x128xf32>
    %29 = tpu.matmul %26, %28, %cst_36 {dimension_numbers = #tpu.dot_dimension_numbers<[1], [0], [0], [1], [0, 0, 1, 1], [], []>} : vector<64x128xbf16>, vector<128x128xbf16>, vector<64x128xf32> -> vector<64x128xf32>
    %c0_37 = arith.constant 0 : index
    %c0_38 = arith.constant 0 : index
    %c1_39 = arith.constant 1 : index
    %c0_40 = arith.constant 0 : index
    %c0_41 = arith.constant 0 : index
    %c0_42 = arith.constant 0 : index
    %30 = vector.load %arg13[%c0_37, %c0_38, %c1_39, %c0_40, %c0_41, %c0_42] : memref<2x2x2x8x16x128xf32, #tpu.memory_space<vmem>>, vector<2x1x1x4x8x128xf32>
    %31 = vector.shape_cast %30 : vector<2x1x1x4x8x128xf32> to vector<2x4x8x128xf32>
    %32 = vector.shape_cast %31 : vector<2x4x8x128xf32> to vector<64x128xf32>
    %33 = arith.truncf %32 : vector<64x128xf32> to vector<64x128xbf16>
    %c1_43 = arith.constant 1 : index
    %c0_44 = arith.constant 0 : index
    %c0_45 = arith.constant 0 : index
    %34 = vector.load %arg4[%c1_43, %c0_44, %c0_45] : memref<25x128x128xbf16, #tpu.memory_space<vmem>>, vector<1x128x128xbf16>
    %35 = vector.shape_cast %34 : vector<1x128x128xbf16> to vector<128x128xbf16>
    %cst_46 = arith.constant dense<0.000000e+00> : vector<64x128xf32>
    %36 = tpu.matmul %33, %35, %cst_46 {dimension_numbers = #tpu.dot_dimension_numbers<[1], [0], [0], [1], [0, 0, 1, 1], [], []>} : vector<64x128xbf16>, vector<128x128xbf16>, vector<64x128xf32> -> vector<64x128xf32>
    %37 = arith.addf %29, %36 : vector<64x128xf32>
    %c0_47 = arith.constant 0 : index
    %c0_48 = arith.constant 0 : index
    %c0_49 = arith.constant 0 : index
    %c0_50 = arith.constant 0 : index
    %c1_51 = arith.constant 1 : index
    %c0_52 = arith.constant 0 : index
    %38 = vector.load %arg13[%c0_47, %c0_48, %c0_49, %c0_50, %c1_51, %c0_52] : memref<2x2x2x8x16x128xf32, #tpu.memory_space<vmem>>, vector<2x1x1x4x8x128xf32>
    %39 = vector.shape_cast %38 : vector<2x1x1x4x8x128xf32> to vector<2x4x8x128xf32>
    %40 = vector.shape_cast %39 : vector<2x4x8x128xf32> to vector<64x128xf32>
    %41 = arith.truncf %40 : vector<64x128xf32> to vector<64x128xbf16>
    %c2_53 = arith.constant 2 : index
    %c0_54 = arith.constant 0 : index
    %c0_55 = arith.constant 0 : index
    %42 = vector.load %arg4[%c2_53, %c0_54, %c0_55] : memref<25x128x128xbf16, #tpu.memory_space<vmem>>, vector<1x128x128xbf16>
    %43 = vector.shape_cast %42 : vector<1x128x128xbf16> to vector<128x128xbf16>
    %cst_56 = arith.constant dense<0.000000e+00> : vector<64x128xf32>
    %44 = tpu.matmul %41, %43, %cst_56 {dimension_numbers = #tpu.dot_dimension_numbers<[1], [0], [0], [1], [0, 0, 1, 1], [], []>} : vector<64x128xbf16>, vector<128x128xbf16>, vector<64x128xf32> -> vector<64x128xf32>
    %45 = arith.addf %37, %44 : vector<64x128xf32>
    %c0_57 = arith.constant 0 : index
    %c0_58 = arith.constant 0 : index
    %c1_59 = arith.constant 1 : index
    %c0_60 = arith.constant 0 : index
    %c1_61 = arith.constant 1 : index
    %c0_62 = arith.constant 0 : index
    %46 = vector.load %arg13[%c0_57, %c0_58, %c1_59, %c0_60, %c1_61, %c0_62] : memref<2x2x2x8x16x128xf32, #tpu.memory_space<vmem>>, vector<2x1x1x4x8x128xf32>
    %47 = vector.shape_cast %46 : vector<2x1x1x4x8x128xf32> to vector<2x4x8x128xf32>
    %48 = vector.shape_cast %47 : vector<2x4x8x128xf32> to vector<64x128xf32>
    %49 = arith.truncf %48 : vector<64x128xf32> to vector<64x128xbf16>
    %c3_63 = arith.constant 3 : index
    %c0_64 = arith.constant 0 : index
    %c0_65 = arith.constant 0 : index
    %50 = vector.load %arg4[%c3_63, %c0_64, %c0_65] : memref<25x128x128xbf16, #tpu.memory_space<vmem>>, vector<1x128x128xbf16>
    %51 = vector.shape_cast %50 : vector<1x128x128xbf16> to vector<128x128xbf16>
    %cst_66 = arith.constant dense<0.000000e+00> : vector<64x128xf32>
    %52 = tpu.matmul %49, %51, %cst_66 {dimension_numbers = #tpu.dot_dimension_numbers<[1], [0], [0], [1], [0, 0, 1, 1], [], []>} : vector<64x128xbf16>, vector<128x128xbf16>, vector<64x128xf32> -> vector<64x128xf32>
    %53 = arith.addf %45, %52 : vector<64x128xf32>
    %c0_67 = arith.constant 0 : index
    %c0_68 = arith.constant 0 : index
    %c0_69 = arith.constant 0 : index
    %c0_70 = arith.constant 0 : index
    %c2_71 = arith.constant 2 : index
    %c0_72 = arith.constant 0 : index
    %54 = vector.load %arg13[%c0_67, %c0_68, %c0_69, %c0_70, %c2_71, %c0_72] : memref<2x2x2x8x16x128xf32, #tpu.memory_space<vmem>>, vector<2x1x1x4x8x128xf32>
    %55 = vector.shape_cast %54 : vector<2x1x1x4x8x128xf32> to vector<2x4x8x128xf32>
    %56 = vector.shape_cast %55 : vector<2x4x8x128xf32> to vector<64x128xf32>
    %57 = arith.truncf %56 : vector<64x128xf32> to vector<64x128xbf16>
    %c4 = arith.constant 4 : index
    %c0_73 = arith.constant 0 : index
    %c0_74 = arith.constant 0 : index
    %58 = vector.load %arg4[%c4, %c0_73, %c0_74] : memref<25x128x128xbf16, #tpu.memory_space<vmem>>, vector<1x128x128xbf16>
    %59 = vector.shape_cast %58 : vector<1x128x128xbf16> to vector<128x128xbf16>
    %cst_75 = arith.constant dense<0.000000e+00> : vector<64x128xf32>
    %60 = tpu.matmul %57, %59, %cst_75 {dimension_numbers = #tpu.dot_dimension_numbers<[1], [0], [0], [1], [0, 0, 1, 1], [], []>} : vector<64x128xbf16>, vector<128x128xbf16>, vector<64x128xf32> -> vector<64x128xf32>
    %61 = arith.addf %53, %60 : vector<64x128xf32>
    %c0_76 = arith.constant 0 : index
    %c1_77 = arith.constant 1 : index
    %c0_78 = arith.constant 0 : index
    %c0_79 = arith.constant 0 : index
    %c0_80 = arith.constant 0 : index
    %c0_81 = arith.constant 0 : index
    %62 = vector.load %arg13[%c0_76, %c1_77, %c0_78, %c0_79, %c0_80, %c0_81] : memref<2x2x2x8x16x128xf32, #tpu.memory_space<vmem>>, vector<2x1x1x4x8x128xf32>
    %63 = vector.shape_cast %62 : vector<2x1x1x4x8x128xf32> to vector<2x4x8x128xf32>
    %64 = vector.shape_cast %63 : vector<2x4x8x128xf32> to vector<64x128xf32>
    %65 = arith.truncf %64 : vector<64x128xf32> to vector<64x128xbf16>
    %c5 = arith.constant 5 : index
    %c0_82 = arith.constant 0 : index
    %c0_83 = arith.constant 0 : index
    %66 = vector.load %arg4[%c5, %c0_82, %c0_83] : memref<25x128x128xbf16, #tpu.memory_space<vmem>>, vector<1x128x128xbf16>
    %67 = vector.shape_cast %66 : vector<1x128x128xbf16> to vector<128x128xbf16>
    %cst_84 = arith.constant dense<0.000000e+00> : vector<64x128xf32>
    %68 = tpu.matmul %65, %67, %cst_84 {dimension_numbers = #tpu.dot_dimension_numbers<[1], [0], [0], [1], [0, 0, 1, 1], [], []>} : vector<64x128xbf16>, vector<128x128xbf16>, vector<64x128xf32> -> vector<64x128xf32>
    %69 = arith.addf %61, %68 : vector<64x128xf32>
    %c0_85 = arith.constant 0 : index
    %c1_86 = arith.constant 1 : index
    %c1_87 = arith.constant 1 : index
    %c0_88 = arith.constant 0 : index
    %c0_89 = arith.constant 0 : index
    %c0_90 = arith.constant 0 : index
    %70 = vector.load %arg13[%c0_85, %c1_86, %c1_87, %c0_88, %c0_89, %c0_90] : memref<2x2x2x8x16x128xf32, #tpu.memory_space<vmem>>, vector<2x1x1x4x8x128xf32>
    %71 = vector.shape_cast %70 : vector<2x1x1x4x8x128xf32> to vector<2x4x8x128xf32>
    %72 = vector.shape_cast %71 : vector<2x4x8x128xf32> to vector<64x128xf32>
    %73 = arith.truncf %72 : vector<64x128xf32> to vector<64x128xbf16>
    %c6 = arith.constant 6 : index
    %c0_91 = arith.constant 0 : index
    %c0_92 = arith.constant 0 : index
    %74 = vector.load %arg4[%c6, %c0_91, %c0_92] : memref<25x128x128xbf16, #tpu.memory_space<vmem>>, vector<1x128x128xbf16>
    %75 = vector.shape_cast %74 : vector<1x128x128xbf16> to vector<128x128xbf16>
    %cst_93 = arith.constant dense<0.000000e+00> : vector<64x128xf32>
    %76 = tpu.matmul %73, %75, %cst_93 {dimension_numbers = #tpu.dot_dimension_numbers<[1], [0], [0], [1], [0, 0, 1, 1], [], []>} : vector<64x128xbf16>, vector<128x128xbf16>, vector<64x128xf32> -> vector<64x128xf32>
    %77 = arith.addf %69, %76 : vector<64x128xf32>
    %c0_94 = arith.constant 0 : index
    %c1_95 = arith.constant 1 : index
    %c0_96 = arith.constant 0 : index
    %c0_97 = arith.constant 0 : index
    %c1_98 = arith.constant 1 : index
    %c0_99 = arith.constant 0 : index
    %78 = vector.load %arg13[%c0_94, %c1_95, %c0_96, %c0_97, %c1_98, %c0_99] : memref<2x2x2x8x16x128xf32, #tpu.memory_space<vmem>>, vector<2x1x1x4x8x128xf32>
    %79 = vector.shape_cast %78 : vector<2x1x1x4x8x128xf32> to vector<2x4x8x128xf32>
    %80 = vector.shape_cast %79 : vector<2x4x8x128xf32> to vector<64x128xf32>
    %81 = arith.truncf %80 : vector<64x128xf32> to vector<64x128xbf16>
    %c7 = arith.constant 7 : index
    %c0_100 = arith.constant 0 : index
    %c0_101 = arith.constant 0 : index
    %82 = vector.load %arg4[%c7, %c0_100, %c0_101] : memref<25x128x128xbf16, #tpu.memory_space<vmem>>, vector<1x128x128xbf16>
    %83 = vector.shape_cast %82 : vector<1x128x128xbf16> to vector<128x128xbf16>
    %cst_102 = arith.constant dense<0.000000e+00> : vector<64x128xf32>
    %84 = tpu.matmul %81, %83, %cst_102 {dimension_numbers = #tpu.dot_dimension_numbers<[1], [0], [0], [1], [0, 0, 1, 1], [], []>} : vector<64x128xbf16>, vector<128x128xbf16>, vector<64x128xf32> -> vector<64x128xf32>
    %85 = arith.addf %77, %84 : vector<64x128xf32>
    %c0_103 = arith.constant 0 : index
    %c1_104 = arith.constant 1 : index
    %c1_105 = arith.constant 1 : index
    %c0_106 = arith.constant 0 : index
    %c1_107 = arith.constant 1 : index
    %c0_108 = arith.constant 0 : index
    %86 = vector.load %arg13[%c0_103, %c1_104, %c1_105, %c0_106, %c1_107, %c0_108] : memref<2x2x2x8x16x128xf32, #tpu.memory_space<vmem>>, vector<2x1x1x4x8x128xf32>
    %87 = vector.shape_cast %86 : vector<2x1x1x4x8x128xf32> to vector<2x4x8x128xf32>
    %88 = vector.shape_cast %87 : vector<2x4x8x128xf32> to vector<64x128xf32>
    %89 = arith.truncf %88 : vector<64x128xf32> to vector<64x128xbf16>
    %c8_109 = arith.constant 8 : index
    %c0_110 = arith.constant 0 : index
    %c0_111 = arith.constant 0 : index
    %90 = vector.load %arg4[%c8_109, %c0_110, %c0_111] : memref<25x128x128xbf16, #tpu.memory_space<vmem>>, vector<1x128x128xbf16>
    %91 = vector.shape_cast %90 : vector<1x128x128xbf16> to vector<128x128xbf16>
    %cst_112 = arith.constant dense<0.000000e+00> : vector<64x128xf32>
    %92 = tpu.matmul %89, %91, %cst_112 {dimension_numbers = #tpu.dot_dimension_numbers<[1], [0], [0], [1], [0, 0, 1, 1], [], []>} : vector<64x128xbf16>, vector<128x128xbf16>, vector<64x128xf32> -> vector<64x128xf32>
    %93 = arith.addf %85, %92 : vector<64x128xf32>
    %c0_113 = arith.constant 0 : index
    %c1_114 = arith.constant 1 : index
    %c0_115 = arith.constant 0 : index
    %c0_116 = arith.constant 0 : index
    %c2_117 = arith.constant 2 : index
    %c0_118 = arith.constant 0 : index
    %94 = vector.load %arg13[%c0_113, %c1_114, %c0_115, %c0_116, %c2_117, %c0_118] : memref<2x2x2x8x16x128xf32, #tpu.memory_space<vmem>>, vector<2x1x1x4x8x128xf32>
    %95 = vector.shape_cast %94 : vector<2x1x1x4x8x128xf32> to vector<2x4x8x128xf32>
    %96 = vector.shape_cast %95 : vector<2x4x8x128xf32> to vector<64x128xf32>
    %97 = arith.truncf %96 : vector<64x128xf32> to vector<64x128xbf16>
    %c9 = arith.constant 9 : index
    %c0_119 = arith.constant 0 : index
    %c0_120 = arith.constant 0 : index
    %98 = vector.load %arg4[%c9, %c0_119, %c0_120] : memref<25x128x128xbf16, #tpu.memory_space<vmem>>, vector<1x128x128xbf16>
    %99 = vector.shape_cast %98 : vector<1x128x128xbf16> to vector<128x128xbf16>
    %cst_121 = arith.constant dense<0.000000e+00> : vector<64x128xf32>
    %100 = tpu.matmul %97, %99, %cst_121 {dimension_numbers = #tpu.dot_dimension_numbers<[1], [0], [0], [1], [0, 0, 1, 1], [], []>} : vector<64x128xbf16>, vector<128x128xbf16>, vector<64x128xf32> -> vector<64x128xf32>
    %101 = arith.addf %93, %100 : vector<64x128xf32>
    %c0_122 = arith.constant 0 : index
    %c0_123 = arith.constant 0 : index
    %c0_124 = arith.constant 0 : index
    %c1_125 = arith.constant 1 : index
    %c0_126 = arith.constant 0 : index
    %c0_127 = arith.constant 0 : index
    %102 = vector.load %arg13[%c0_122, %c0_123, %c0_124, %c1_125, %c0_126, %c0_127] : memref<2x2x2x8x16x128xf32, #tpu.memory_space<vmem>>, vector<2x1x1x4x8x128xf32>
    %103 = vector.shape_cast %102 : vector<2x1x1x4x8x128xf32> to vector<2x4x8x128xf32>
    %104 = vector.shape_cast %103 : vector<2x4x8x128xf32> to vector<64x128xf32>
    %105 = arith.truncf %104 : vector<64x128xf32> to vector<64x128xbf16>
    %c10 = arith.constant 10 : index
    %c0_128 = arith.constant 0 : index
    %c0_129 = arith.constant 0 : index
    %106 = vector.load %arg4[%c10, %c0_128, %c0_129] : memref<25x128x128xbf16, #tpu.memory_space<vmem>>, vector<1x128x128xbf16>
    %107 = vector.shape_cast %106 : vector<1x128x128xbf16> to vector<128x128xbf16>
    %cst_130 = arith.constant dense<0.000000e+00> : vector<64x128xf32>
    %108 = tpu.matmul %105, %107, %cst_130 {dimension_numbers = #tpu.dot_dimension_numbers<[1], [0], [0], [1], [0, 0, 1, 1], [], []>} : vector<64x128xbf16>, vector<128x128xbf16>, vector<64x128xf32> -> vector<64x128xf32>
    %109 = arith.addf %101, %108 : vector<64x128xf32>
    %c0_131 = arith.constant 0 : index
    %c0_132 = arith.constant 0 : index
    %c1_133 = arith.constant 1 : index
    %c1_134 = arith.constant 1 : index
    %c0_135 = arith.constant 0 : index
    %c0_136 = arith.constant 0 : index
    %110 = vector.load %arg13[%c0_131, %c0_132, %c1_133, %c1_134, %c0_135, %c0_136] : memref<2x2x2x8x16x128xf32, #tpu.memory_space<vmem>>, vector<2x1x1x4x8x128xf32>
    %111 = vector.shape_cast %110 : vector<2x1x1x4x8x128xf32> to vector<2x4x8x128xf32>
    %112 = vector.shape_cast %111 : vector<2x4x8x128xf32> to vector<64x128xf32>
    %113 = arith.truncf %112 : vector<64x128xf32> to vector<64x128xbf16>
    %c11 = arith.constant 11 : index
    %c0_137 = arith.constant 0 : index
    %c0_138 = arith.constant 0 : index
    %114 = vector.load %arg4[%c11, %c0_137, %c0_138] : memref<25x128x128xbf16, #tpu.memory_space<vmem>>, vector<1x128x128xbf16>
    %115 = vector.shape_cast %114 : vector<1x128x128xbf16> to vector<128x128xbf16>
    %cst_139 = arith.constant dense<0.000000e+00> : vector<64x128xf32>
    %116 = tpu.matmul %113, %115, %cst_139 {dimension_numbers = #tpu.dot_dimension_numbers<[1], [0], [0], [1], [0, 0, 1, 1], [], []>} : vector<64x128xbf16>, vector<128x128xbf16>, vector<64x128xf32> -> vector<64x128xf32>
    %117 = arith.addf %109, %116 : vector<64x128xf32>
    %c0_140 = arith.constant 0 : index
    %c0_141 = arith.constant 0 : index
    %c0_142 = arith.constant 0 : index
    %c1_143 = arith.constant 1 : index
    %c1_144 = arith.constant 1 : index
    %c0_145 = arith.constant 0 : index
    %118 = vector.load %arg13[%c0_140, %c0_141, %c0_142, %c1_143, %c1_144, %c0_145] : memref<2x2x2x8x16x128xf32, #tpu.memory_space<vmem>>, vector<2x1x1x4x8x128xf32>
    %119 = vector.shape_cast %118 : vector<2x1x1x4x8x128xf32> to vector<2x4x8x128xf32>
    %120 = vector.shape_cast %119 : vector<2x4x8x128xf32> to vector<64x128xf32>
    %121 = arith.truncf %120 : vector<64x128xf32> to vector<64x128xbf16>
    %c12 = arith.constant 12 : index
    %c0_146 = arith.constant 0 : index
    %c0_147 = arith.constant 0 : index
    %122 = vector.load %arg4[%c12, %c0_146, %c0_147] : memref<25x128x128xbf16, #tpu.memory_space<vmem>>, vector<1x128x128xbf16>
    %123 = vector.shape_cast %122 : vector<1x128x128xbf16> to vector<128x128xbf16>
    %cst_148 = arith.constant dense<0.000000e+00> : vector<64x128xf32>
    %124 = tpu.matmul %121, %123, %cst_148 {dimension_numbers = #tpu.dot_dimension_numbers<[1], [0], [0], [1], [0, 0, 1, 1], [], []>} : vector<64x128xbf16>, vector<128x128xbf16>, vector<64x128xf32> -> vector<64x128xf32>
    %125 = arith.addf %117, %124 : vector<64x128xf32>
    %c0_149 = arith.constant 0 : index
    %c0_150 = arith.constant 0 : index
    %c1_151 = arith.constant 1 : index
    %c1_152 = arith.constant 1 : index
    %c1_153 = arith.constant 1 : index
    %c0_154 = arith.constant 0 : index
    %126 = vector.load %arg13[%c0_149, %c0_150, %c1_151, %c1_152, %c1_153, %c0_154] : memref<2x2x2x8x16x128xf32, #tpu.memory_space<vmem>>, vector<2x1x1x4x8x128xf32>
    %127 = vector.shape_cast %126 : vector<2x1x1x4x8x128xf32> to vector<2x4x8x128xf32>
    %128 = vector.shape_cast %127 : vector<2x4x8x128xf32> to vector<64x128xf32>
    %129 = arith.truncf %128 : vector<64x128xf32> to vector<64x128xbf16>
    %c13 = arith.constant 13 : index
    %c0_155 = arith.constant 0 : index
    %c0_156 = arith.constant 0 : index
    %130 = vector.load %arg4[%c13, %c0_155, %c0_156] : memref<25x128x128xbf16, #tpu.memory_space<vmem>>, vector<1x128x128xbf16>
    %131 = vector.shape_cast %130 : vector<1x128x128xbf16> to vector<128x128xbf16>
    %cst_157 = arith.constant dense<0.000000e+00> : vector<64x128xf32>
    %132 = tpu.matmul %129, %131, %cst_157 {dimension_numbers = #tpu.dot_dimension_numbers<[1], [0], [0], [1], [0, 0, 1, 1], [], []>} : vector<64x128xbf16>, vector<128x128xbf16>, vector<64x128xf32> -> vector<64x128xf32>
    %133 = arith.addf %125, %132 : vector<64x128xf32>
    %c0_158 = arith.constant 0 : index
    %c0_159 = arith.constant 0 : index
    %c0_160 = arith.constant 0 : index
    %c1_161 = arith.constant 1 : index
    %c2_162 = arith.constant 2 : index
    %c0_163 = arith.constant 0 : index
    %134 = vector.load %arg13[%c0_158, %c0_159, %c0_160, %c1_161, %c2_162, %c0_163] : memref<2x2x2x8x16x128xf32, #tpu.memory_space<vmem>>, vector<2x1x1x4x8x128xf32>
    %135 = vector.shape_cast %134 : vector<2x1x1x4x8x128xf32> to vector<2x4x8x128xf32>
    %136 = vector.shape_cast %135 : vector<2x4x8x128xf32> to vector<64x128xf32>
    %137 = arith.truncf %136 : vector<64x128xf32> to vector<64x128xbf16>
    %c14 = arith.constant 14 : index
    %c0_164 = arith.constant 0 : index
    %c0_165 = arith.constant 0 : index
    %138 = vector.load %arg4[%c14, %c0_164, %c0_165] : memref<25x128x128xbf16, #tpu.memory_space<vmem>>, vector<1x128x128xbf16>
    %139 = vector.shape_cast %138 : vector<1x128x128xbf16> to vector<128x128xbf16>
    %cst_166 = arith.constant dense<0.000000e+00> : vector<64x128xf32>
    %140 = tpu.matmul %137, %139, %cst_166 {dimension_numbers = #tpu.dot_dimension_numbers<[1], [0], [0], [1], [0, 0, 1, 1], [], []>} : vector<64x128xbf16>, vector<128x128xbf16>, vector<64x128xf32> -> vector<64x128xf32>
    %141 = arith.addf %133, %140 : vector<64x128xf32>
    %c0_167 = arith.constant 0 : index
    %c1_168 = arith.constant 1 : index
    %c0_169 = arith.constant 0 : index
    %c1_170 = arith.constant 1 : index
    %c0_171 = arith.constant 0 : index
    %c0_172 = arith.constant 0 : index
    %142 = vector.load %arg13[%c0_167, %c1_168, %c0_169, %c1_170, %c0_171, %c0_172] : memref<2x2x2x8x16x128xf32, #tpu.memory_space<vmem>>, vector<2x1x1x4x8x128xf32>
    %143 = vector.shape_cast %142 : vector<2x1x1x4x8x128xf32> to vector<2x4x8x128xf32>
    %144 = vector.shape_cast %143 : vector<2x4x8x128xf32> to vector<64x128xf32>
    %145 = arith.truncf %144 : vector<64x128xf32> to vector<64x128xbf16>
    %c15 = arith.constant 15 : index
    %c0_173 = arith.constant 0 : index
    %c0_174 = arith.constant 0 : index
    %146 = vector.load %arg4[%c15, %c0_173, %c0_174] : memref<25x128x128xbf16, #tpu.memory_space<vmem>>, vector<1x128x128xbf16>
    %147 = vector.shape_cast %146 : vector<1x128x128xbf16> to vector<128x128xbf16>
    %cst_175 = arith.constant dense<0.000000e+00> : vector<64x128xf32>
    %148 = tpu.matmul %145, %147, %cst_175 {dimension_numbers = #tpu.dot_dimension_numbers<[1], [0], [0], [1], [0, 0, 1, 1], [], []>} : vector<64x128xbf16>, vector<128x128xbf16>, vector<64x128xf32> -> vector<64x128xf32>
    %149 = arith.addf %141, %148 : vector<64x128xf32>
    %c0_176 = arith.constant 0 : index
    %c1_177 = arith.constant 1 : index
    %c1_178 = arith.constant 1 : index
    %c1_179 = arith.constant 1 : index
    %c0_180 = arith.constant 0 : index
    %c0_181 = arith.constant 0 : index
    %150 = vector.load %arg13[%c0_176, %c1_177, %c1_178, %c1_179, %c0_180, %c0_181] : memref<2x2x2x8x16x128xf32, #tpu.memory_space<vmem>>, vector<2x1x1x4x8x128xf32>
    %151 = vector.shape_cast %150 : vector<2x1x1x4x8x128xf32> to vector<2x4x8x128xf32>
    %152 = vector.shape_cast %151 : vector<2x4x8x128xf32> to vector<64x128xf32>
    %153 = arith.truncf %152 : vector<64x128xf32> to vector<64x128xbf16>
    %c16 = arith.constant 16 : index
    %c0_182 = arith.constant 0 : index
    %c0_183 = arith.constant 0 : index
    %154 = vector.load %arg4[%c16, %c0_182, %c0_183] : memref<25x128x128xbf16, #tpu.memory_space<vmem>>, vector<1x128x128xbf16>
    %155 = vector.shape_cast %154 : vector<1x128x128xbf16> to vector<128x128xbf16>
    %cst_184 = arith.constant dense<0.000000e+00> : vector<64x128xf32>
    %156 = tpu.matmul %153, %155, %cst_184 {dimension_numbers = #tpu.dot_dimension_numbers<[1], [0], [0], [1], [0, 0, 1, 1], [], []>} : vector<64x128xbf16>, vector<128x128xbf16>, vector<64x128xf32> -> vector<64x128xf32>
    %157 = arith.addf %149, %156 : vector<64x128xf32>
    %c0_185 = arith.constant 0 : index
    %c1_186 = arith.constant 1 : index
    %c0_187 = arith.constant 0 : index
    %c1_188 = arith.constant 1 : index
    %c1_189 = arith.constant 1 : index
    %c0_190 = arith.constant 0 : index
    %158 = vector.load %arg13[%c0_185, %c1_186, %c0_187, %c1_188, %c1_189, %c0_190] : memref<2x2x2x8x16x128xf32, #tpu.memory_space<vmem>>, vector<2x1x1x4x8x128xf32>
    %159 = vector.shape_cast %158 : vector<2x1x1x4x8x128xf32> to vector<2x4x8x128xf32>
    %160 = vector.shape_cast %159 : vector<2x4x8x128xf32> to vector<64x128xf32>
    %161 = arith.truncf %160 : vector<64x128xf32> to vector<64x128xbf16>
    %c17 = arith.constant 17 : index
    %c0_191 = arith.constant 0 : index
    %c0_192 = arith.constant 0 : index
    %162 = vector.load %arg4[%c17, %c0_191, %c0_192] : memref<25x128x128xbf16, #tpu.memory_space<vmem>>, vector<1x128x128xbf16>
    %163 = vector.shape_cast %162 : vector<1x128x128xbf16> to vector<128x128xbf16>
    %cst_193 = arith.constant dense<0.000000e+00> : vector<64x128xf32>
    %164 = tpu.matmul %161, %163, %cst_193 {dimension_numbers = #tpu.dot_dimension_numbers<[1], [0], [0], [1], [0, 0, 1, 1], [], []>} : vector<64x128xbf16>, vector<128x128xbf16>, vector<64x128xf32> -> vector<64x128xf32>
    %165 = arith.addf %157, %164 : vector<64x128xf32>
    %c0_194 = arith.constant 0 : index
    %c1_195 = arith.constant 1 : index
    %c1_196 = arith.constant 1 : index
    %c1_197 = arith.constant 1 : index
    %c1_198 = arith.constant 1 : index
    %c0_199 = arith.constant 0 : index
    %166 = vector.load %arg13[%c0_194, %c1_195, %c1_196, %c1_197, %c1_198, %c0_199] : memref<2x2x2x8x16x128xf32, #tpu.memory_space<vmem>>, vector<2x1x1x4x8x128xf32>
    %167 = vector.shape_cast %166 : vector<2x1x1x4x8x128xf32> to vector<2x4x8x128xf32>
    %168 = vector.shape_cast %167 : vector<2x4x8x128xf32> to vector<64x128xf32>
    %169 = arith.truncf %168 : vector<64x128xf32> to vector<64x128xbf16>
    %c18 = arith.constant 18 : index
    %c0_200 = arith.constant 0 : index
    %c0_201 = arith.constant 0 : index
    %170 = vector.load %arg4[%c18, %c0_200, %c0_201] : memref<25x128x128xbf16, #tpu.memory_space<vmem>>, vector<1x128x128xbf16>
    %171 = vector.shape_cast %170 : vector<1x128x128xbf16> to vector<128x128xbf16>
    %cst_202 = arith.constant dense<0.000000e+00> : vector<64x128xf32>
    %172 = tpu.matmul %169, %171, %cst_202 {dimension_numbers = #tpu.dot_dimension_numbers<[1], [0], [0], [1], [0, 0, 1, 1], [], []>} : vector<64x128xbf16>, vector<128x128xbf16>, vector<64x128xf32> -> vector<64x128xf32>
    %173 = arith.addf %165, %172 : vector<64x128xf32>
    %c0_203 = arith.constant 0 : index
    %c1_204 = arith.constant 1 : index
    %c0_205 = arith.constant 0 : index
    %c1_206 = arith.constant 1 : index
    %c2_207 = arith.constant 2 : index
    %c0_208 = arith.constant 0 : index
    %174 = vector.load %arg13[%c0_203, %c1_204, %c0_205, %c1_206, %c2_207, %c0_208] : memref<2x2x2x8x16x128xf32, #tpu.memory_space<vmem>>, vector<2x1x1x4x8x128xf32>
    %175 = vector.shape_cast %174 : vector<2x1x1x4x8x128xf32> to vector<2x4x8x128xf32>
    %176 = vector.shape_cast %175 : vector<2x4x8x128xf32> to vector<64x128xf32>
    %177 = arith.truncf %176 : vector<64x128xf32> to vector<64x128xbf16>
    %c19 = arith.constant 19 : index
    %c0_209 = arith.constant 0 : index
    %c0_210 = arith.constant 0 : index
    %178 = vector.load %arg4[%c19, %c0_209, %c0_210] : memref<25x128x128xbf16, #tpu.memory_space<vmem>>, vector<1x128x128xbf16>
    %179 = vector.shape_cast %178 : vector<1x128x128xbf16> to vector<128x128xbf16>
    %cst_211 = arith.constant dense<0.000000e+00> : vector<64x128xf32>
    %180 = tpu.matmul %177, %179, %cst_211 {dimension_numbers = #tpu.dot_dimension_numbers<[1], [0], [0], [1], [0, 0, 1, 1], [], []>} : vector<64x128xbf16>, vector<128x128xbf16>, vector<64x128xf32> -> vector<64x128xf32>
    %181 = arith.addf %173, %180 : vector<64x128xf32>
    %c0_212 = arith.constant 0 : index
    %c0_213 = arith.constant 0 : index
    %c0_214 = arith.constant 0 : index
    %c2_215 = arith.constant 2 : index
    %c0_216 = arith.constant 0 : index
    %c0_217 = arith.constant 0 : index
    %182 = vector.load %arg13[%c0_212, %c0_213, %c0_214, %c2_215, %c0_216, %c0_217] : memref<2x2x2x8x16x128xf32, #tpu.memory_space<vmem>>, vector<2x1x1x4x8x128xf32>
    %183 = vector.shape_cast %182 : vector<2x1x1x4x8x128xf32> to vector<2x4x8x128xf32>
    %184 = vector.shape_cast %183 : vector<2x4x8x128xf32> to vector<64x128xf32>
    %185 = arith.truncf %184 : vector<64x128xf32> to vector<64x128xbf16>
    %c20 = arith.constant 20 : index
    %c0_218 = arith.constant 0 : index
    %c0_219 = arith.constant 0 : index
    %186 = vector.load %arg4[%c20, %c0_218, %c0_219] : memref<25x128x128xbf16, #tpu.memory_space<vmem>>, vector<1x128x128xbf16>
    %187 = vector.shape_cast %186 : vector<1x128x128xbf16> to vector<128x128xbf16>
    %cst_220 = arith.constant dense<0.000000e+00> : vector<64x128xf32>
    %188 = tpu.matmul %185, %187, %cst_220 {dimension_numbers = #tpu.dot_dimension_numbers<[1], [0], [0], [1], [0, 0, 1, 1], [], []>} : vector<64x128xbf16>, vector<128x128xbf16>, vector<64x128xf32> -> vector<64x128xf32>
    %189 = arith.addf %181, %188 : vector<64x128xf32>
    %c0_221 = arith.constant 0 : index
    %c0_222 = arith.constant 0 : index
    %c1_223 = arith.constant 1 : index
    %c2_224 = arith.constant 2 : index
    %c0_225 = arith.constant 0 : index
    %c0_226 = arith.constant 0 : index
    %190 = vector.load %arg13[%c0_221, %c0_222, %c1_223, %c2_224, %c0_225, %c0_226] : memref<2x2x2x8x16x128xf32, #tpu.memory_space<vmem>>, vector<2x1x1x4x8x128xf32>
    %191 = vector.shape_cast %190 : vector<2x1x1x4x8x128xf32> to vector<2x4x8x128xf32>
    %192 = vector.shape_cast %191 : vector<2x4x8x128xf32> to vector<64x128xf32>
    %193 = arith.truncf %192 : vector<64x128xf32> to vector<64x128xbf16>
    %c21 = arith.constant 21 : index
    %c0_227 = arith.constant 0 : index
    %c0_228 = arith.constant 0 : index
    %194 = vector.load %arg4[%c21, %c0_227, %c0_228] : memref<25x128x128xbf16, #tpu.memory_space<vmem>>, vector<1x128x128xbf16>
    %195 = vector.shape_cast %194 : vector<1x128x128xbf16> to vector<128x128xbf16>
    %cst_229 = arith.constant dense<0.000000e+00> : vector<64x128xf32>
    %196 = tpu.matmul %193, %195, %cst_229 {dimension_numbers = #tpu.dot_dimension_numbers<[1], [0], [0], [1], [0, 0, 1, 1], [], []>} : vector<64x128xbf16>, vector<128x128xbf16>, vector<64x128xf32> -> vector<64x128xf32>
    %197 = arith.addf %189, %196 : vector<64x128xf32>
    %c0_230 = arith.constant 0 : index
    %c0_231 = arith.constant 0 : index
    %c0_232 = arith.constant 0 : index
    %c2_233 = arith.constant 2 : index
    %c1_234 = arith.constant 1 : index
    %c0_235 = arith.constant 0 : index
    %198 = vector.load %arg13[%c0_230, %c0_231, %c0_232, %c2_233, %c1_234, %c0_235] : memref<2x2x2x8x16x128xf32, #tpu.memory_space<vmem>>, vector<2x1x1x4x8x128xf32>
    %199 = vector.shape_cast %198 : vector<2x1x1x4x8x128xf32> to vector<2x4x8x128xf32>
    %200 = vector.shape_cast %199 : vector<2x4x8x128xf32> to vector<64x128xf32>
    %201 = arith.truncf %200 : vector<64x128xf32> to vector<64x128xbf16>
    %c22 = arith.constant 22 : index
    %c0_236 = arith.constant 0 : index
    %c0_237 = arith.constant 0 : index
    %202 = vector.load %arg4[%c22, %c0_236, %c0_237] : memref<25x128x128xbf16, #tpu.memory_space<vmem>>, vector<1x128x128xbf16>
    %203 = vector.shape_cast %202 : vector<1x128x128xbf16> to vector<128x128xbf16>
    %cst_238 = arith.constant dense<0.000000e+00> : vector<64x128xf32>
    %204 = tpu.matmul %201, %203, %cst_238 {dimension_numbers = #tpu.dot_dimension_numbers<[1], [0], [0], [1], [0, 0, 1, 1], [], []>} : vector<64x128xbf16>, vector<128x128xbf16>, vector<64x128xf32> -> vector<64x128xf32>
    %205 = arith.addf %197, %204 : vector<64x128xf32>
    %c0_239 = arith.constant 0 : index
    %c0_240 = arith.constant 0 : index
    %c1_241 = arith.constant 1 : index
    %c2_242 = arith.constant 2 : index
    %c1_243 = arith.constant 1 : index
    %c0_244 = arith.constant 0 : index
    %206 = vector.load %arg13[%c0_239, %c0_240, %c1_241, %c2_242, %c1_243, %c0_244] : memref<2x2x2x8x16x128xf32, #tpu.memory_space<vmem>>, vector<2x1x1x4x8x128xf32>
    %207 = vector.shape_cast %206 : vector<2x1x1x4x8x128xf32> to vector<2x4x8x128xf32>
    %208 = vector.shape_cast %207 : vector<2x4x8x128xf32> to vector<64x128xf32>
    %209 = arith.truncf %208 : vector<64x128xf32> to vector<64x128xbf16>
    %c23 = arith.constant 23 : index
    %c0_245 = arith.constant 0 : index
    %c0_246 = arith.constant 0 : index
    %210 = vector.load %arg4[%c23, %c0_245, %c0_246] : memref<25x128x128xbf16, #tpu.memory_space<vmem>>, vector<1x128x128xbf16>
    %211 = vector.shape_cast %210 : vector<1x128x128xbf16> to vector<128x128xbf16>
    %cst_247 = arith.constant dense<0.000000e+00> : vector<64x128xf32>
    %212 = tpu.matmul %209, %211, %cst_247 {dimension_numbers = #tpu.dot_dimension_numbers<[1], [0], [0], [1], [0, 0, 1, 1], [], []>} : vector<64x128xbf16>, vector<128x128xbf16>, vector<64x128xf32> -> vector<64x128xf32>
    %213 = arith.addf %205, %212 : vector<64x128xf32>
    %c0_248 = arith.constant 0 : index
    %c0_249 = arith.constant 0 : index
    %c0_250 = arith.constant 0 : index
    %c2_251 = arith.constant 2 : index
    %c2_252 = arith.constant 2 : index
    %c0_253 = arith.constant 0 : index
    %214 = vector.load %arg13[%c0_248, %c0_249, %c0_250, %c2_251, %c2_252, %c0_253] : memref<2x2x2x8x16x128xf32, #tpu.memory_space<vmem>>, vector<2x1x1x4x8x128xf32>
    %215 = vector.shape_cast %214 : vector<2x1x1x4x8x128xf32> to vector<2x4x8x128xf32>
    %216 = vector.shape_cast %215 : vector<2x4x8x128xf32> to vector<64x128xf32>
    %217 = arith.truncf %216 : vector<64x128xf32> to vector<64x128xbf16>
    %c24 = arith.constant 24 : index
    %c0_254 = arith.constant 0 : index
    %c0_255 = arith.constant 0 : index
    %218 = vector.load %arg4[%c24, %c0_254, %c0_255] : memref<25x128x128xbf16, #tpu.memory_space<vmem>>, vector<1x128x128xbf16>
    %219 = vector.shape_cast %218 : vector<1x128x128xbf16> to vector<128x128xbf16>
    %cst_256 = arith.constant dense<0.000000e+00> : vector<64x128xf32>
    %220 = tpu.matmul %217, %219, %cst_256 {dimension_numbers = #tpu.dot_dimension_numbers<[1], [0], [0], [1], [0, 0, 1, 1], [], []>} : vector<64x128xbf16>, vector<128x128xbf16>, vector<64x128xf32> -> vector<64x128xf32>
    %221 = arith.addf %213, %220 : vector<64x128xf32>
    %c0_257 = arith.constant 0 : index
    %c0_258 = arith.constant 0 : index
    %c1_259 = arith.constant 1 : index
    %c0_260 = arith.constant 0 : index
    %c0_261 = arith.constant 0 : index
    %c0_262 = arith.constant 0 : index
    %222 = vector.load %arg13[%c0_257, %c0_258, %c1_259, %c0_260, %c0_261, %c0_262] : memref<2x2x2x8x16x128xf32, #tpu.memory_space<vmem>>, vector<2x1x1x4x8x128xf32>
    %223 = vector.shape_cast %222 : vector<2x1x1x4x8x128xf32> to vector<2x4x8x128xf32>
    %224 = vector.shape_cast %223 : vector<2x4x8x128xf32> to vector<64x128xf32>
    %225 = arith.truncf %224 : vector<64x128xf32> to vector<64x128xbf16>
    %c0_263 = arith.constant 0 : index
    %c0_264 = arith.constant 0 : index
    %c0_265 = arith.constant 0 : index
    %226 = vector.load %arg4[%c0_263, %c0_264, %c0_265] : memref<25x128x128xbf16, #tpu.memory_space<vmem>>, vector<1x128x128xbf16>
    %227 = vector.shape_cast %226 : vector<1x128x128xbf16> to vector<128x128xbf16>
    %cst_266 = arith.constant dense<0.000000e+00> : vector<64x128xf32>
    %228 = tpu.matmul %225, %227, %cst_266 {dimension_numbers = #tpu.dot_dimension_numbers<[1], [0], [0], [1], [0, 0, 1, 1], [], []>} : vector<64x128xbf16>, vector<128x128xbf16>, vector<64x128xf32> -> vector<64x128xf32>
    %c0_267 = arith.constant 0 : index
    %c0_268 = arith.constant 0 : index
    %c0_269 = arith.constant 0 : index
    %c0_270 = arith.constant 0 : index
    %c1_271 = arith.constant 1 : index
    %c0_272 = arith.constant 0 : index
    %229 = vector.load %arg13[%c0_267, %c0_268, %c0_269, %c0_270, %c1_271, %c0_272] : memref<2x2x2x8x16x128xf32, #tpu.memory_space<vmem>>, vector<2x1x1x4x8x128xf32>
    %230 = vector.shape_cast %229 : vector<2x1x1x4x8x128xf32> to vector<2x4x8x128xf32>
    %231 = vector.shape_cast %230 : vector<2x4x8x128xf32> to vector<64x128xf32>
    %232 = arith.truncf %231 : vector<64x128xf32> to vector<64x128xbf16>
    %c1_273 = arith.constant 1 : index
    %c0_274 = arith.constant 0 : index
    %c0_275 = arith.constant 0 : index
    %233 = vector.load %arg4[%c1_273, %c0_274, %c0_275] : memref<25x128x128xbf16, #tpu.memory_space<vmem>>, vector<1x128x128xbf16>
    %234 = vector.shape_cast %233 : vector<1x128x128xbf16> to vector<128x128xbf16>
    %cst_276 = arith.constant dense<0.000000e+00> : vector<64x128xf32>
    %235 = tpu.matmul %232, %234, %cst_276 {dimension_numbers = #tpu.dot_dimension_numbers<[1], [0], [0], [1], [0, 0, 1, 1], [], []>} : vector<64x128xbf16>, vector<128x128xbf16>, vector<64x128xf32> -> vector<64x128xf32>
    %236 = arith.addf %228, %235 : vector<64x128xf32>
    %c0_277 = arith.constant 0 : index
    %c0_278 = arith.constant 0 : index
    %c1_279 = arith.constant 1 : index
    %c0_280 = arith.constant 0 : index
    %c1_281 = arith.constant 1 : index
    %c0_282 = arith.constant 0 : index
    %237 = vector.load %arg13[%c0_277, %c0_278, %c1_279, %c0_280, %c1_281, %c0_282] : memref<2x2x2x8x16x128xf32, #tpu.memory_space<vmem>>, vector<2x1x1x4x8x128xf32>
    %238 = vector.shape_cast %237 : vector<2x1x1x4x8x128xf32> to vector<2x4x8x128xf32>
    %239 = vector.shape_cast %238 : vector<2x4x8x128xf32> to vector<64x128xf32>
    %240 = arith.truncf %239 : vector<64x128xf32> to vector<64x128xbf16>
    %c2_283 = arith.constant 2 : index
    %c0_284 = arith.constant 0 : index
    %c0_285 = arith.constant 0 : index
    %241 = vector.load %arg4[%c2_283, %c0_284, %c0_285] : memref<25x128x128xbf16, #tpu.memory_space<vmem>>, vector<1x128x128xbf16>
    %242 = vector.shape_cast %241 : vector<1x128x128xbf16> to vector<128x128xbf16>
    %cst_286 = arith.constant dense<0.000000e+00> : vector<64x128xf32>
    %243 = tpu.matmul %240, %242, %cst_286 {dimension_numbers = #tpu.dot_dimension_numbers<[1], [0], [0], [1], [0, 0, 1, 1], [], []>} : vector<64x128xbf16>, vector<128x128xbf16>, vector<64x128xf32> -> vector<64x128xf32>
    %244 = arith.addf %236, %243 : vector<64x128xf32>
    %c0_287 = arith.constant 0 : index
    %c0_288 = arith.constant 0 : index
    %c0_289 = arith.constant 0 : index
    %c0_290 = arith.constant 0 : index
    %c2_291 = arith.constant 2 : index
    %c0_292 = arith.constant 0 : index
    %245 = vector.load %arg13[%c0_287, %c0_288, %c0_289, %c0_290, %c2_291, %c0_292] : memref<2x2x2x8x16x128xf32, #tpu.memory_space<vmem>>, vector<2x1x1x4x8x128xf32>
    %246 = vector.shape_cast %245 : vector<2x1x1x4x8x128xf32> to vector<2x4x8x128xf32>
    %247 = vector.shape_cast %246 : vector<2x4x8x128xf32> to vector<64x128xf32>
    %248 = arith.truncf %247 : vector<64x128xf32> to vector<64x128xbf16>
    %c3_293 = arith.constant 3 : index
    %c0_294 = arith.constant 0 : index
    %c0_295 = arith.constant 0 : index
    %249 = vector.load %arg4[%c3_293, %c0_294, %c0_295] : memref<25x128x128xbf16, #tpu.memory_space<vmem>>, vector<1x128x128xbf16>
    %250 = vector.shape_cast %249 : vector<1x128x128xbf16> to vector<128x128xbf16>
    %cst_296 = arith.constant dense<0.000000e+00> : vector<64x128xf32>
    %251 = tpu.matmul %248, %250, %cst_296 {dimension_numbers = #tpu.dot_dimension_numbers<[1], [0], [0], [1], [0, 0, 1, 1], [], []>} : vector<64x128xbf16>, vector<128x128xbf16>, vector<64x128xf32> -> vector<64x128xf32>
    %252 = arith.addf %244, %251 : vector<64x128xf32>
    %c0_297 = arith.constant 0 : index
    %c0_298 = arith.constant 0 : index
    %c1_299 = arith.constant 1 : index
    %c0_300 = arith.constant 0 : index
    %c2_301 = arith.constant 2 : index
    %c0_302 = arith.constant 0 : index
    %253 = vector.load %arg13[%c0_297, %c0_298, %c1_299, %c0_300, %c2_301, %c0_302] : memref<2x2x2x8x16x128xf32, #tpu.memory_space<vmem>>, vector<2x1x1x4x8x128xf32>
    %254 = vector.shape_cast %253 : vector<2x1x1x4x8x128xf32> to vector<2x4x8x128xf32>
    %255 = vector.shape_cast %254 : vector<2x4x8x128xf32> to vector<64x128xf32>
    %256 = arith.truncf %255 : vector<64x128xf32> to vector<64x128xbf16>
    %c4_303 = arith.constant 4 : index
    %c0_304 = arith.constant 0 : index
    %c0_305 = arith.constant 0 : index
    %257 = vector.load %arg4[%c4_303, %c0_304, %c0_305] : memref<25x128x128xbf16, #tpu.memory_space<vmem>>, vector<1x128x128xbf16>
    %258 = vector.shape_cast %257 : vector<1x128x128xbf16> to vector<128x128xbf16>
    %cst_306 = arith.constant dense<0.000000e+00> : vector<64x128xf32>
    %259 = tpu.matmul %256, %258, %cst_306 {dimension_numbers = #tpu.dot_dimension_numbers<[1], [0], [0], [1], [0, 0, 1, 1], [], []>} : vector<64x128xbf16>, vector<128x128xbf16>, vector<64x128xf32> -> vector<64x128xf32>
    %260 = arith.addf %252, %259 : vector<64x128xf32>
    %c0_307 = arith.constant 0 : index
    %c1_308 = arith.constant 1 : index
    %c1_309 = arith.constant 1 : index
    %c0_310 = arith.constant 0 : index
    %c0_311 = arith.constant 0 : index
    %c0_312 = arith.constant 0 : index
    %261 = vector.load %arg13[%c0_307, %c1_308, %c1_309, %c0_310, %c0_311, %c0_312] : memref<2x2x2x8x16x128xf32, #tpu.memory_space<vmem>>, vector<2x1x1x4x8x128xf32>
    %262 = vector.shape_cast %261 : vector<2x1x1x4x8x128xf32> to vector<2x4x8x128xf32>
    %263 = vector.shape_cast %262 : vector<2x4x8x128xf32> to vector<64x128xf32>
    %264 = arith.truncf %263 : vector<64x128xf32> to vector<64x128xbf16>
    %c5_313 = arith.constant 5 : index
    %c0_314 = arith.constant 0 : index
    %c0_315 = arith.constant 0 : index
    %265 = vector.load %arg4[%c5_313, %c0_314, %c0_315] : memref<25x128x128xbf16, #tpu.memory_space<vmem>>, vector<1x128x128xbf16>
    %266 = vector.shape_cast %265 : vector<1x128x128xbf16> to vector<128x128xbf16>
    %cst_316 = arith.constant dense<0.000000e+00> : vector<64x128xf32>
    %267 = tpu.matmul %264, %266, %cst_316 {dimension_numbers = #tpu.dot_dimension_numbers<[1], [0], [0], [1], [0, 0, 1, 1], [], []>} : vector<64x128xbf16>, vector<128x128xbf16>, vector<64x128xf32> -> vector<64x128xf32>
    %268 = arith.addf %260, %267 : vector<64x128xf32>
    %c0_317 = arith.constant 0 : index
    %c1_318 = arith.constant 1 : index
    %c0_319 = arith.constant 0 : index
    %c0_320 = arith.constant 0 : index
    %c1_321 = arith.constant 1 : index
    %c0_322 = arith.constant 0 : index
    %269 = vector.load %arg13[%c0_317, %c1_318, %c0_319, %c0_320, %c1_321, %c0_322] : memref<2x2x2x8x16x128xf32, #tpu.memory_space<vmem>>, vector<2x1x1x4x8x128xf32>
    %270 = vector.shape_cast %269 : vector<2x1x1x4x8x128xf32> to vector<2x4x8x128xf32>
    %271 = vector.shape_cast %270 : vector<2x4x8x128xf32> to vector<64x128xf32>
    %272 = arith.truncf %271 : vector<64x128xf32> to vector<64x128xbf16>
    %c6_323 = arith.constant 6 : index
    %c0_324 = arith.constant 0 : index
    %c0_325 = arith.constant 0 : index
    %273 = vector.load %arg4[%c6_323, %c0_324, %c0_325] : memref<25x128x128xbf16, #tpu.memory_space<vmem>>, vector<1x128x128xbf16>
    %274 = vector.shape_cast %273 : vector<1x128x128xbf16> to vector<128x128xbf16>
    %cst_326 = arith.constant dense<0.000000e+00> : vector<64x128xf32>
    %275 = tpu.matmul %272, %274, %cst_326 {dimension_numbers = #tpu.dot_dimension_numbers<[1], [0], [0], [1], [0, 0, 1, 1], [], []>} : vector<64x128xbf16>, vector<128x128xbf16>, vector<64x128xf32> -> vector<64x128xf32>
    %276 = arith.addf %268, %275 : vector<64x128xf32>
    %c0_327 = arith.constant 0 : index
    %c1_328 = arith.constant 1 : index
    %c1_329 = arith.constant 1 : index
    %c0_330 = arith.constant 0 : index
    %c1_331 = arith.constant 1 : index
    %c0_332 = arith.constant 0 : index
    %277 = vector.load %arg13[%c0_327, %c1_328, %c1_329, %c0_330, %c1_331, %c0_332] : memref<2x2x2x8x16x128xf32, #tpu.memory_space<vmem>>, vector<2x1x1x4x8x128xf32>
    %278 = vector.shape_cast %277 : vector<2x1x1x4x8x128xf32> to vector<2x4x8x128xf32>
    %279 = vector.shape_cast %278 : vector<2x4x8x128xf32> to vector<64x128xf32>
    %280 = arith.truncf %279 : vector<64x128xf32> to vector<64x128xbf16>
    %c7_333 = arith.constant 7 : index
    %c0_334 = arith.constant 0 : index
    %c0_335 = arith.constant 0 : index
    %281 = vector.load %arg4[%c7_333, %c0_334, %c0_335] : memref<25x128x128xbf16, #tpu.memory_space<vmem>>, vector<1x128x128xbf16>
    %282 = vector.shape_cast %281 : vector<1x128x128xbf16> to vector<128x128xbf16>
    %cst_336 = arith.constant dense<0.000000e+00> : vector<64x128xf32>
    %283 = tpu.matmul %280, %282, %cst_336 {dimension_numbers = #tpu.dot_dimension_numbers<[1], [0], [0], [1], [0, 0, 1, 1], [], []>} : vector<64x128xbf16>, vector<128x128xbf16>, vector<64x128xf32> -> vector<64x128xf32>
    %284 = arith.addf %276, %283 : vector<64x128xf32>
    %c0_337 = arith.constant 0 : index
    %c1_338 = arith.constant 1 : index
    %c0_339 = arith.constant 0 : index
    %c0_340 = arith.constant 0 : index
    %c2_341 = arith.constant 2 : index
    %c0_342 = arith.constant 0 : index
    %285 = vector.load %arg13[%c0_337, %c1_338, %c0_339, %c0_340, %c2_341, %c0_342] : memref<2x2x2x8x16x128xf32, #tpu.memory_space<vmem>>, vector<2x1x1x4x8x128xf32>
    %286 = vector.shape_cast %285 : vector<2x1x1x4x8x128xf32> to vector<2x4x8x128xf32>
    %287 = vector.shape_cast %286 : vector<2x4x8x128xf32> to vector<64x128xf32>
    %288 = arith.truncf %287 : vector<64x128xf32> to vector<64x128xbf16>
    %c8_343 = arith.constant 8 : index
    %c0_344 = arith.constant 0 : index
    %c0_345 = arith.constant 0 : index
    %289 = vector.load %arg4[%c8_343, %c0_344, %c0_345] : memref<25x128x128xbf16, #tpu.memory_space<vmem>>, vector<1x128x128xbf16>
    %290 = vector.shape_cast %289 : vector<1x128x128xbf16> to vector<128x128xbf16>
    %cst_346 = arith.constant dense<0.000000e+00> : vector<64x128xf32>
    %291 = tpu.matmul %288, %290, %cst_346 {dimension_numbers = #tpu.dot_dimension_numbers<[1], [0], [0], [1], [0, 0, 1, 1], [], []>} : vector<64x128xbf16>, vector<128x128xbf16>, vector<64x128xf32> -> vector<64x128xf32>
    %292 = arith.addf %284, %291 : vector<64x128xf32>
    %c0_347 = arith.constant 0 : index
    %c1_348 = arith.constant 1 : index
    %c1_349 = arith.constant 1 : index
    %c0_350 = arith.constant 0 : index
    %c2_351 = arith.constant 2 : index
    %c0_352 = arith.constant 0 : index
    %293 = vector.load %arg13[%c0_347, %c1_348, %c1_349, %c0_350, %c2_351, %c0_352] : memref<2x2x2x8x16x128xf32, #tpu.memory_space<vmem>>, vector<2x1x1x4x8x128xf32>
    %294 = vector.shape_cast %293 : vector<2x1x1x4x8x128xf32> to vector<2x4x8x128xf32>
    %295 = vector.shape_cast %294 : vector<2x4x8x128xf32> to vector<64x128xf32>
    %296 = arith.truncf %295 : vector<64x128xf32> to vector<64x128xbf16>
    %c9_353 = arith.constant 9 : index
    %c0_354 = arith.constant 0 : index
    %c0_355 = arith.constant 0 : index
    %297 = vector.load %arg4[%c9_353, %c0_354, %c0_355] : memref<25x128x128xbf16, #tpu.memory_space<vmem>>, vector<1x128x128xbf16>
    %298 = vector.shape_cast %297 : vector<1x128x128xbf16> to vector<128x128xbf16>
    %cst_356 = arith.constant dense<0.000000e+00> : vector<64x128xf32>
    %299 = tpu.matmul %296, %298, %cst_356 {dimension_numbers = #tpu.dot_dimension_numbers<[1], [0], [0], [1], [0, 0, 1, 1], [], []>} : vector<64x128xbf16>, vector<128x128xbf16>, vector<64x128xf32> -> vector<64x128xf32>
    %300 = arith.addf %292, %299 : vector<64x128xf32>
    %c0_357 = arith.constant 0 : index
    %c0_358 = arith.constant 0 : index
    %c1_359 = arith.constant 1 : index
    %c1_360 = arith.constant 1 : index
    %c0_361 = arith.constant 0 : index
    %c0_362 = arith.constant 0 : index
    %301 = vector.load %arg13[%c0_357, %c0_358, %c1_359, %c1_360, %c0_361, %c0_362] : memref<2x2x2x8x16x128xf32, #tpu.memory_space<vmem>>, vector<2x1x1x4x8x128xf32>
    %302 = vector.shape_cast %301 : vector<2x1x1x4x8x128xf32> to vector<2x4x8x128xf32>
    %303 = vector.shape_cast %302 : vector<2x4x8x128xf32> to vector<64x128xf32>
    %304 = arith.truncf %303 : vector<64x128xf32> to vector<64x128xbf16>
    %c10_363 = arith.constant 10 : index
    %c0_364 = arith.constant 0 : index
    %c0_365 = arith.constant 0 : index
    %305 = vector.load %arg4[%c10_363, %c0_364, %c0_365] : memref<25x128x128xbf16, #tpu.memory_space<vmem>>, vector<1x128x128xbf16>
    %306 = vector.shape_cast %305 : vector<1x128x128xbf16> to vector<128x128xbf16>
    %cst_366 = arith.constant dense<0.000000e+00> : vector<64x128xf32>
    %307 = tpu.matmul %304, %306, %cst_366 {dimension_numbers = #tpu.dot_dimension_numbers<[1], [0], [0], [1], [0, 0, 1, 1], [], []>} : vector<64x128xbf16>, vector<128x128xbf16>, vector<64x128xf32> -> vector<64x128xf32>
    %308 = arith.addf %300, %307 : vector<64x128xf32>
    %c0_367 = arith.constant 0 : index
    %c0_368 = arith.constant 0 : index
    %c0_369 = arith.constant 0 : index
    %c1_370 = arith.constant 1 : index
    %c1_371 = arith.constant 1 : index
    %c0_372 = arith.constant 0 : index
    %309 = vector.load %arg13[%c0_367, %c0_368, %c0_369, %c1_370, %c1_371, %c0_372] : memref<2x2x2x8x16x128xf32, #tpu.memory_space<vmem>>, vector<2x1x1x4x8x128xf32>
    %310 = vector.shape_cast %309 : vector<2x1x1x4x8x128xf32> to vector<2x4x8x128xf32>
    %311 = vector.shape_cast %310 : vector<2x4x8x128xf32> to vector<64x128xf32>
    %312 = arith.truncf %311 : vector<64x128xf32> to vector<64x128xbf16>
    %c11_373 = arith.constant 11 : index
    %c0_374 = arith.constant 0 : index
    %c0_375 = arith.constant 0 : index
    %313 = vector.load %arg4[%c11_373, %c0_374, %c0_375] : memref<25x128x128xbf16, #tpu.memory_space<vmem>>, vector<1x128x128xbf16>
    %314 = vector.shape_cast %313 : vector<1x128x128xbf16> to vector<128x128xbf16>
    %cst_376 = arith.constant dense<0.000000e+00> : vector<64x128xf32>
    %315 = tpu.matmul %312, %314, %cst_376 {dimension_numbers = #tpu.dot_dimension_numbers<[1], [0], [0], [1], [0, 0, 1, 1], [], []>} : vector<64x128xbf16>, vector<128x128xbf16>, vector<64x128xf32> -> vector<64x128xf32>
    %316 = arith.addf %308, %315 : vector<64x128xf32>
    %c0_377 = arith.constant 0 : index
    %c0_378 = arith.constant 0 : index
    %c1_379 = arith.constant 1 : index
    %c1_380 = arith.constant 1 : index
    %c1_381 = arith.constant 1 : index
    %c0_382 = arith.constant 0 : index
    %317 = vector.load %arg13[%c0_377, %c0_378, %c1_379, %c1_380, %c1_381, %c0_382] : memref<2x2x2x8x16x128xf32, #tpu.memory_space<vmem>>, vector<2x1x1x4x8x128xf32>
    %318 = vector.shape_cast %317 : vector<2x1x1x4x8x128xf32> to vector<2x4x8x128xf32>
    %319 = vector.shape_cast %318 : vector<2x4x8x128xf32> to vector<64x128xf32>
    %320 = arith.truncf %319 : vector<64x128xf32> to vector<64x128xbf16>
    %c12_383 = arith.constant 12 : index
    %c0_384 = arith.constant 0 : index
    %c0_385 = arith.constant 0 : index
    %321 = vector.load %arg4[%c12_383, %c0_384, %c0_385] : memref<25x128x128xbf16, #tpu.memory_space<vmem>>, vector<1x128x128xbf16>
    %322 = vector.shape_cast %321 : vector<1x128x128xbf16> to vector<128x128xbf16>
    %cst_386 = arith.constant dense<0.000000e+00> : vector<64x128xf32>
    %323 = tpu.matmul %320, %322, %cst_386 {dimension_numbers = #tpu.dot_dimension_numbers<[1], [0], [0], [1], [0, 0, 1, 1], [], []>} : vector<64x128xbf16>, vector<128x128xbf16>, vector<64x128xf32> -> vector<64x128xf32>
    %324 = arith.addf %316, %323 : vector<64x128xf32>
    %c0_387 = arith.constant 0 : index
    %c0_388 = arith.constant 0 : index
    %c0_389 = arith.constant 0 : index
    %c1_390 = arith.constant 1 : index
    %c2_391 = arith.constant 2 : index
    %c0_392 = arith.constant 0 : index
    %325 = vector.load %arg13[%c0_387, %c0_388, %c0_389, %c1_390, %c2_391, %c0_392] : memref<2x2x2x8x16x128xf32, #tpu.memory_space<vmem>>, vector<2x1x1x4x8x128xf32>
    %326 = vector.shape_cast %325 : vector<2x1x1x4x8x128xf32> to vector<2x4x8x128xf32>
    %327 = vector.shape_cast %326 : vector<2x4x8x128xf32> to vector<64x128xf32>
    %328 = arith.truncf %327 : vector<64x128xf32> to vector<64x128xbf16>
    %c13_393 = arith.constant 13 : index
    %c0_394 = arith.constant 0 : index
    %c0_395 = arith.constant 0 : index
    %329 = vector.load %arg4[%c13_393, %c0_394, %c0_395] : memref<25x128x128xbf16, #tpu.memory_space<vmem>>, vector<1x128x128xbf16>
    %330 = vector.shape_cast %329 : vector<1x128x128xbf16> to vector<128x128xbf16>
    %cst_396 = arith.constant dense<0.000000e+00> : vector<64x128xf32>
    %331 = tpu.matmul %328, %330, %cst_396 {dimension_numbers = #tpu.dot_dimension_numbers<[1], [0], [0], [1], [0, 0, 1, 1], [], []>} : vector<64x128xbf16>, vector<128x128xbf16>, vector<64x128xf32> -> vector<64x128xf32>
    %332 = arith.addf %324, %331 : vector<64x128xf32>
    %c0_397 = arith.constant 0 : index
    %c0_398 = arith.constant 0 : index
    %c1_399 = arith.constant 1 : index
    %c1_400 = arith.constant 1 : index
    %c2_401 = arith.constant 2 : index
    %c0_402 = arith.constant 0 : index
    %333 = vector.load %arg13[%c0_397, %c0_398, %c1_399, %c1_400, %c2_401, %c0_402] : memref<2x2x2x8x16x128xf32, #tpu.memory_space<vmem>>, vector<2x1x1x4x8x128xf32>
    %334 = vector.shape_cast %333 : vector<2x1x1x4x8x128xf32> to vector<2x4x8x128xf32>
    %335 = vector.shape_cast %334 : vector<2x4x8x128xf32> to vector<64x128xf32>
    %336 = arith.truncf %335 : vector<64x128xf32> to vector<64x128xbf16>
    %c14_403 = arith.constant 14 : index
    %c0_404 = arith.constant 0 : index
    %c0_405 = arith.constant 0 : index
    %337 = vector.load %arg4[%c14_403, %c0_404, %c0_405] : memref<25x128x128xbf16, #tpu.memory_space<vmem>>, vector<1x128x128xbf16>
    %338 = vector.shape_cast %337 : vector<1x128x128xbf16> to vector<128x128xbf16>
    %cst_406 = arith.constant dense<0.000000e+00> : vector<64x128xf32>
    %339 = tpu.matmul %336, %338, %cst_406 {dimension_numbers = #tpu.dot_dimension_numbers<[1], [0], [0], [1], [0, 0, 1, 1], [], []>} : vector<64x128xbf16>, vector<128x128xbf16>, vector<64x128xf32> -> vector<64x128xf32>
    %340 = arith.addf %332, %339 : vector<64x128xf32>
    %c0_407 = arith.constant 0 : index
    %c1_408 = arith.constant 1 : index
    %c1_409 = arith.constant 1 : index
    %c1_410 = arith.constant 1 : index
    %c0_411 = arith.constant 0 : index
    %c0_412 = arith.constant 0 : index
    %341 = vector.load %arg13[%c0_407, %c1_408, %c1_409, %c1_410, %c0_411, %c0_412] : memref<2x2x2x8x16x128xf32, #tpu.memory_space<vmem>>, vector<2x1x1x4x8x128xf32>
    %342 = vector.shape_cast %341 : vector<2x1x1x4x8x128xf32> to vector<2x4x8x128xf32>
    %343 = vector.shape_cast %342 : vector<2x4x8x128xf32> to vector<64x128xf32>
    %344 = arith.truncf %343 : vector<64x128xf32> to vector<64x128xbf16>
    %c15_413 = arith.constant 15 : index
    %c0_414 = arith.constant 0 : index
    %c0_415 = arith.constant 0 : index
    %345 = vector.load %arg4[%c15_413, %c0_414, %c0_415] : memref<25x128x128xbf16, #tpu.memory_space<vmem>>, vector<1x128x128xbf16>
    %346 = vector.shape_cast %345 : vector<1x128x128xbf16> to vector<128x128xbf16>
    %cst_416 = arith.constant dense<0.000000e+00> : vector<64x128xf32>
    %347 = tpu.matmul %344, %346, %cst_416 {dimension_numbers = #tpu.dot_dimension_numbers<[1], [0], [0], [1], [0, 0, 1, 1], [], []>} : vector<64x128xbf16>, vector<128x128xbf16>, vector<64x128xf32> -> vector<64x128xf32>
    %348 = arith.addf %340, %347 : vector<64x128xf32>
    %c0_417 = arith.constant 0 : index
    %c1_418 = arith.constant 1 : index
    %c0_419 = arith.constant 0 : index
    %c1_420 = arith.constant 1 : index
    %c1_421 = arith.constant 1 : index
    %c0_422 = arith.constant 0 : index
    %349 = vector.load %arg13[%c0_417, %c1_418, %c0_419, %c1_420, %c1_421, %c0_422] : memref<2x2x2x8x16x128xf32, #tpu.memory_space<vmem>>, vector<2x1x1x4x8x128xf32>
    %350 = vector.shape_cast %349 : vector<2x1x1x4x8x128xf32> to vector<2x4x8x128xf32>
    %351 = vector.shape_cast %350 : vector<2x4x8x128xf32> to vector<64x128xf32>
    %352 = arith.truncf %351 : vector<64x128xf32> to vector<64x128xbf16>
    %c16_423 = arith.constant 16 : index
    %c0_424 = arith.constant 0 : index
    %c0_425 = arith.constant 0 : index
    %353 = vector.load %arg4[%c16_423, %c0_424, %c0_425] : memref<25x128x128xbf16, #tpu.memory_space<vmem>>, vector<1x128x128xbf16>
    %354 = vector.shape_cast %353 : vector<1x128x128xbf16> to vector<128x128xbf16>
    %cst_426 = arith.constant dense<0.000000e+00> : vector<64x128xf32>
    %355 = tpu.matmul %352, %354, %cst_426 {dimension_numbers = #tpu.dot_dimension_numbers<[1], [0], [0], [1], [0, 0, 1, 1], [], []>} : vector<64x128xbf16>, vector<128x128xbf16>, vector<64x128xf32> -> vector<64x128xf32>
    %356 = arith.addf %348, %355 : vector<64x128xf32>
    %c0_427 = arith.constant 0 : index
    %c1_428 = arith.constant 1 : index
    %c1_429 = arith.constant 1 : index
    %c1_430 = arith.constant 1 : index
    %c1_431 = arith.constant 1 : index
    %c0_432 = arith.constant 0 : index
    %357 = vector.load %arg13[%c0_427, %c1_428, %c1_429, %c1_430, %c1_431, %c0_432] : memref<2x2x2x8x16x128xf32, #tpu.memory_space<vmem>>, vector<2x1x1x4x8x128xf32>
    %358 = vector.shape_cast %357 : vector<2x1x1x4x8x128xf32> to vector<2x4x8x128xf32>
    %359 = vector.shape_cast %358 : vector<2x4x8x128xf32> to vector<64x128xf32>
    %360 = arith.truncf %359 : vector<64x128xf32> to vector<64x128xbf16>
    %c17_433 = arith.constant 17 : index
    %c0_434 = arith.constant 0 : index
    %c0_435 = arith.constant 0 : index
    %361 = vector.load %arg4[%c17_433, %c0_434, %c0_435] : memref<25x128x128xbf16, #tpu.memory_space<vmem>>, vector<1x128x128xbf16>
    %362 = vector.shape_cast %361 : vector<1x128x128xbf16> to vector<128x128xbf16>
    %cst_436 = arith.constant dense<0.000000e+00> : vector<64x128xf32>
    %363 = tpu.matmul %360, %362, %cst_436 {dimension_numbers = #tpu.dot_dimension_numbers<[1], [0], [0], [1], [0, 0, 1, 1], [], []>} : vector<64x128xbf16>, vector<128x128xbf16>, vector<64x128xf32> -> vector<64x128xf32>
    %364 = arith.addf %356, %363 : vector<64x128xf32>
    %c0_437 = arith.constant 0 : index
    %c1_438 = arith.constant 1 : index
    %c0_439 = arith.constant 0 : index
    %c1_440 = arith.constant 1 : index
    %c2_441 = arith.constant 2 : index
    %c0_442 = arith.constant 0 : index
    %365 = vector.load %arg13[%c0_437, %c1_438, %c0_439, %c1_440, %c2_441, %c0_442] : memref<2x2x2x8x16x128xf32, #tpu.memory_space<vmem>>, vector<2x1x1x4x8x128xf32>
    %366 = vector.shape_cast %365 : vector<2x1x1x4x8x128xf32> to vector<2x4x8x128xf32>
    %367 = vector.shape_cast %366 : vector<2x4x8x128xf32> to vector<64x128xf32>
    %368 = arith.truncf %367 : vector<64x128xf32> to vector<64x128xbf16>
    %c18_443 = arith.constant 18 : index
    %c0_444 = arith.constant 0 : index
    %c0_445 = arith.constant 0 : index
    %369 = vector.load %arg4[%c18_443, %c0_444, %c0_445] : memref<25x128x128xbf16, #tpu.memory_space<vmem>>, vector<1x128x128xbf16>
    %370 = vector.shape_cast %369 : vector<1x128x128xbf16> to vector<128x128xbf16>
    %cst_446 = arith.constant dense<0.000000e+00> : vector<64x128xf32>
    %371 = tpu.matmul %368, %370, %cst_446 {dimension_numbers = #tpu.dot_dimension_numbers<[1], [0], [0], [1], [0, 0, 1, 1], [], []>} : vector<64x128xbf16>, vector<128x128xbf16>, vector<64x128xf32> -> vector<64x128xf32>
    %372 = arith.addf %364, %371 : vector<64x128xf32>
    %c0_447 = arith.constant 0 : index
    %c1_448 = arith.constant 1 : index
    %c1_449 = arith.constant 1 : index
    %c1_450 = arith.constant 1 : index
    %c2_451 = arith.constant 2 : index
    %c0_452 = arith.constant 0 : index
    %373 = vector.load %arg13[%c0_447, %c1_448, %c1_449, %c1_450, %c2_451, %c0_452] : memref<2x2x2x8x16x128xf32, #tpu.memory_space<vmem>>, vector<2x1x1x4x8x128xf32>
    %374 = vector.shape_cast %373 : vector<2x1x1x4x8x128xf32> to vector<2x4x8x128xf32>
    %375 = vector.shape_cast %374 : vector<2x4x8x128xf32> to vector<64x128xf32>
    %376 = arith.truncf %375 : vector<64x128xf32> to vector<64x128xbf16>
    %c19_453 = arith.constant 19 : index
    %c0_454 = arith.constant 0 : index
    %c0_455 = arith.constant 0 : index
    %377 = vector.load %arg4[%c19_453, %c0_454, %c0_455] : memref<25x128x128xbf16, #tpu.memory_space<vmem>>, vector<1x128x128xbf16>
    %378 = vector.shape_cast %377 : vector<1x128x128xbf16> to vector<128x128xbf16>
    %cst_456 = arith.constant dense<0.000000e+00> : vector<64x128xf32>
    %379 = tpu.matmul %376, %378, %cst_456 {dimension_numbers = #tpu.dot_dimension_numbers<[1], [0], [0], [1], [0, 0, 1, 1], [], []>} : vector<64x128xbf16>, vector<128x128xbf16>, vector<64x128xf32> -> vector<64x128xf32>
    %380 = arith.addf %372, %379 : vector<64x128xf32>
    %c0_457 = arith.constant 0 : index
    %c0_458 = arith.constant 0 : index
    %c1_459 = arith.constant 1 : index
    %c2_460 = arith.constant 2 : index
    %c0_461 = arith.constant 0 : index
    %c0_462 = arith.constant 0 : index
    %381 = vector.load %arg13[%c0_457, %c0_458, %c1_459, %c2_460, %c0_461, %c0_462] : memref<2x2x2x8x16x128xf32, #tpu.memory_space<vmem>>, vector<2x1x1x4x8x128xf32>
    %382 = vector.shape_cast %381 : vector<2x1x1x4x8x128xf32> to vector<2x4x8x128xf32>
    %383 = vector.shape_cast %382 : vector<2x4x8x128xf32> to vector<64x128xf32>
    %384 = arith.truncf %383 : vector<64x128xf32> to vector<64x128xbf16>
    %c20_463 = arith.constant 20 : index
    %c0_464 = arith.constant 0 : index
    %c0_465 = arith.constant 0 : index
    %385 = vector.load %arg4[%c20_463, %c0_464, %c0_465] : memref<25x128x128xbf16, #tpu.memory_space<vmem>>, vector<1x128x128xbf16>
    %386 = vector.shape_cast %385 : vector<1x128x128xbf16> to vector<128x128xbf16>
    %cst_466 = arith.constant dense<0.000000e+00> : vector<64x128xf32>
    %387 = tpu.matmul %384, %386, %cst_466 {dimension_numbers = #tpu.dot_dimension_numbers<[1], [0], [0], [1], [0, 0, 1, 1], [], []>} : vector<64x128xbf16>, vector<128x128xbf16>, vector<64x128xf32> -> vector<64x128xf32>
    %388 = arith.addf %380, %387 : vector<64x128xf32>
    %c0_467 = arith.constant 0 : index
    %c0_468 = arith.constant 0 : index
    %c0_469 = arith.constant 0 : index
    %c2_470 = arith.constant 2 : index
    %c1_471 = arith.constant 1 : index
    %c0_472 = arith.constant 0 : index
    %389 = vector.load %arg13[%c0_467, %c0_468, %c0_469, %c2_470, %c1_471, %c0_472] : memref<2x2x2x8x16x128xf32, #tpu.memory_space<vmem>>, vector<2x1x1x4x8x128xf32>
    %390 = vector.shape_cast %389 : vector<2x1x1x4x8x128xf32> to vector<2x4x8x128xf32>
    %391 = vector.shape_cast %390 : vector<2x4x8x128xf32> to vector<64x128xf32>
    %392 = arith.truncf %391 : vector<64x128xf32> to vector<64x128xbf16>
    %c21_473 = arith.constant 21 : index
    %c0_474 = arith.constant 0 : index
    %c0_475 = arith.constant 0 : index
    %393 = vector.load %arg4[%c21_473, %c0_474, %c0_475] : memref<25x128x128xbf16, #tpu.memory_space<vmem>>, vector<1x128x128xbf16>
    %394 = vector.shape_cast %393 : vector<1x128x128xbf16> to vector<128x128xbf16>
    %cst_476 = arith.constant dense<0.000000e+00> : vector<64x128xf32>
    %395 = tpu.matmul %392, %394, %cst_476 {dimension_numbers = #tpu.dot_dimension_numbers<[1], [0], [0], [1], [0, 0, 1, 1], [], []>} : vector<64x128xbf16>, vector<128x128xbf16>, vector<64x128xf32> -> vector<64x128xf32>
    %396 = arith.addf %388, %395 : vector<64x128xf32>
    %c0_477 = arith.constant 0 : index
    %c0_478 = arith.constant 0 : index
    %c1_479 = arith.constant 1 : index
    %c2_480 = arith.constant 2 : index
    %c1_481 = arith.constant 1 : index
    %c0_482 = arith.constant 0 : index
    %397 = vector.load %arg13[%c0_477, %c0_478, %c1_479, %c2_480, %c1_481, %c0_482] : memref<2x2x2x8x16x128xf32, #tpu.memory_space<vmem>>, vector<2x1x1x4x8x128xf32>
    %398 = vector.shape_cast %397 : vector<2x1x1x4x8x128xf32> to vector<2x4x8x128xf32>
    %399 = vector.shape_cast %398 : vector<2x4x8x128xf32> to vector<64x128xf32>
    %400 = arith.truncf %399 : vector<64x128xf32> to vector<64x128xbf16>
    %c22_483 = arith.constant 22 : index
    %c0_484 = arith.constant 0 : index
    %c0_485 = arith.constant 0 : index
    %401 = vector.load %arg4[%c22_483, %c0_484, %c0_485] : memref<25x128x128xbf16, #tpu.memory_space<vmem>>, vector<1x128x128xbf16>
    %402 = vector.shape_cast %401 : vector<1x128x128xbf16> to vector<128x128xbf16>
    %cst_486 = arith.constant dense<0.000000e+00> : vector<64x128xf32>
    %403 = tpu.matmul %400, %402, %cst_486 {dimension_numbers = #tpu.dot_dimension_numbers<[1], [0], [0], [1], [0, 0, 1, 1], [], []>} : vector<64x128xbf16>, vector<128x128xbf16>, vector<64x128xf32> -> vector<64x128xf32>
    %404 = arith.addf %396, %403 : vector<64x128xf32>
    %c0_487 = arith.constant 0 : index
    %c0_488 = arith.constant 0 : index
    %c0_489 = arith.constant 0 : index
    %c2_490 = arith.constant 2 : index
    %c2_491 = arith.constant 2 : index
    %c0_492 = arith.constant 0 : index
    %405 = vector.load %arg13[%c0_487, %c0_488, %c0_489, %c2_490, %c2_491, %c0_492] : memref<2x2x2x8x16x128xf32, #tpu.memory_space<vmem>>, vector<2x1x1x4x8x128xf32>
    %406 = vector.shape_cast %405 : vector<2x1x1x4x8x128xf32> to vector<2x4x8x128xf32>
    %407 = vector.shape_cast %406 : vector<2x4x8x128xf32> to vector<64x128xf32>
    %408 = arith.truncf %407 : vector<64x128xf32> to vector<64x128xbf16>
    %c23_493 = arith.constant 23 : index
    %c0_494 = arith.constant 0 : index
    %c0_495 = arith.constant 0 : index
    %409 = vector.load %arg4[%c23_493, %c0_494, %c0_495] : memref<25x128x128xbf16, #tpu.memory_space<vmem>>, vector<1x128x128xbf16>
    %410 = vector.shape_cast %409 : vector<1x128x128xbf16> to vector<128x128xbf16>
    %cst_496 = arith.constant dense<0.000000e+00> : vector<64x128xf32>
    %411 = tpu.matmul %408, %410, %cst_496 {dimension_numbers = #tpu.dot_dimension_numbers<[1], [0], [0], [1], [0, 0, 1, 1], [], []>} : vector<64x128xbf16>, vector<128x128xbf16>, vector<64x128xf32> -> vector<64x128xf32>
    %412 = arith.addf %404, %411 : vector<64x128xf32>
    %c0_497 = arith.constant 0 : index
    %c0_498 = arith.constant 0 : index
    %c1_499 = arith.constant 1 : index
    %c2_500 = arith.constant 2 : index
    %c2_501 = arith.constant 2 : index
    %c0_502 = arith.constant 0 : index
    %413 = vector.load %arg13[%c0_497, %c0_498, %c1_499, %c2_500, %c2_501, %c0_502] : memref<2x2x2x8x16x128xf32, #tpu.memory_space<vmem>>, vector<2x1x1x4x8x128xf32>
    %414 = vector.shape_cast %413 : vector<2x1x1x4x8x128xf32> to vector<2x4x8x128xf32>
    %415 = vector.shape_cast %414 : vector<2x4x8x128xf32> to vector<64x128xf32>
    %416 = arith.truncf %415 : vector<64x128xf32> to vector<64x128xbf16>
    %c24_503 = arith.constant 24 : index
    %c0_504 = arith.constant 0 : index
    %c0_505 = arith.constant 0 : index
    %417 = vector.load %arg4[%c24_503, %c0_504, %c0_505] : memref<25x128x128xbf16, #tpu.memory_space<vmem>>, vector<1x128x128xbf16>
    %418 = vector.shape_cast %417 : vector<1x128x128xbf16> to vector<128x128xbf16>
    %cst_506 = arith.constant dense<0.000000e+00> : vector<64x128xf32>
    %419 = tpu.matmul %416, %418, %cst_506 {dimension_numbers = #tpu.dot_dimension_numbers<[1], [0], [0], [1], [0, 0, 1, 1], [], []>} : vector<64x128xbf16>, vector<128x128xbf16>, vector<64x128xf32> -> vector<64x128xf32>
    %420 = arith.addf %412, %419 : vector<64x128xf32>
    %421 = arith.maximumf %221, %420 : vector<64x128xf32>
    %c0_507 = arith.constant 0 : index
    %c1_508 = arith.constant 1 : index
    %c0_509 = arith.constant 0 : index
    %c0_510 = arith.constant 0 : index
    %c0_511 = arith.constant 0 : index
    %c0_512 = arith.constant 0 : index
    %422 = vector.load %arg13[%c0_507, %c1_508, %c0_509, %c0_510, %c0_511, %c0_512] : memref<2x2x2x8x16x128xf32, #tpu.memory_space<vmem>>, vector<2x1x1x4x8x128xf32>
    %423 = vector.shape_cast %422 : vector<2x1x1x4x8x128xf32> to vector<2x4x8x128xf32>
    %424 = vector.shape_cast %423 : vector<2x4x8x128xf32> to vector<64x128xf32>
    %425 = arith.truncf %424 : vector<64x128xf32> to vector<64x128xbf16>
    %c0_513 = arith.constant 0 : index
    %c0_514 = arith.constant 0 : index
    %c0_515 = arith.constant 0 : index
    %426 = vector.load %arg4[%c0_513, %c0_514, %c0_515] : memref<25x128x128xbf16, #tpu.memory_space<vmem>>, vector<1x128x128xbf16>
    %427 = vector.shape_cast %426 : vector<1x128x128xbf16> to vector<128x128xbf16>
    %cst_516 = arith.constant dense<0.000000e+00> : vector<64x128xf32>
    %428 = tpu.matmul %425, %427, %cst_516 {dimension_numbers = #tpu.dot_dimension_numbers<[1], [0], [0], [1], [0, 0, 1, 1], [], []>} : vector<64x128xbf16>, vector<128x128xbf16>, vector<64x128xf32> -> vector<64x128xf32>
    %c0_517 = arith.constant 0 : index
    %c1_518 = arith.constant 1 : index
    %c1_519 = arith.constant 1 : index
    %c0_520 = arith.constant 0 : index
    %c0_521 = arith.constant 0 : index
    %c0_522 = arith.constant 0 : index
    %429 = vector.load %arg13[%c0_517, %c1_518, %c1_519, %c0_520, %c0_521, %c0_522] : memref<2x2x2x8x16x128xf32, #tpu.memory_space<vmem>>, vector<2x1x1x4x8x128xf32>
    %430 = vector.shape_cast %429 : vector<2x1x1x4x8x128xf32> to vector<2x4x8x128xf32>
    %431 = vector.shape_cast %430 : vector<2x4x8x128xf32> to vector<64x128xf32>
    %432 = arith.truncf %431 : vector<64x128xf32> to vector<64x128xbf16>
    %c1_523 = arith.constant 1 : index
    %c0_524 = arith.constant 0 : index
    %c0_525 = arith.constant 0 : index
    %433 = vector.load %arg4[%c1_523, %c0_524, %c0_525] : memref<25x128x128xbf16, #tpu.memory_space<vmem>>, vector<1x128x128xbf16>
    %434 = vector.shape_cast %433 : vector<1x128x128xbf16> to vector<128x128xbf16>
    %cst_526 = arith.constant dense<0.000000e+00> : vector<64x128xf32>
    %435 = tpu.matmul %432, %434, %cst_526 {dimension_numbers = #tpu.dot_dimension_numbers<[1], [0], [0], [1], [0, 0, 1, 1], [], []>} : vector<64x128xbf16>, vector<128x128xbf16>, vector<64x128xf32> -> vector<64x128xf32>
    %436 = arith.addf %428, %435 : vector<64x128xf32>
    %c0_527 = arith.constant 0 : index
    %c1_528 = arith.constant 1 : index
    %c0_529 = arith.constant 0 : index
    %c0_530 = arith.constant 0 : index
    %c1_531 = arith.constant 1 : index
    %c0_532 = arith.constant 0 : index
    %437 = vector.load %arg13[%c0_527, %c1_528, %c0_529, %c0_530, %c1_531, %c0_532] : memref<2x2x2x8x16x128xf32, #tpu.memory_space<vmem>>, vector<2x1x1x4x8x128xf32>
    %438 = vector.shape_cast %437 : vector<2x1x1x4x8x128xf32> to vector<2x4x8x128xf32>
    %439 = vector.shape_cast %438 : vector<2x4x8x128xf32> to vector<64x128xf32>
    %440 = arith.truncf %439 : vector<64x128xf32> to vector<64x128xbf16>
    %c2_533 = arith.constant 2 : index
    %c0_534 = arith.constant 0 : index
    %c0_535 = arith.constant 0 : index
    %441 = vector.load %arg4[%c2_533, %c0_534, %c0_535] : memref<25x128x128xbf16, #tpu.memory_space<vmem>>, vector<1x128x128xbf16>
    %442 = vector.shape_cast %441 : vector<1x128x128xbf16> to vector<128x128xbf16>
    %cst_536 = arith.constant dense<0.000000e+00> : vector<64x128xf32>
    %443 = tpu.matmul %440, %442, %cst_536 {dimension_numbers = #tpu.dot_dimension_numbers<[1], [0], [0], [1], [0, 0, 1, 1], [], []>} : vector<64x128xbf16>, vector<128x128xbf16>, vector<64x128xf32> -> vector<64x128xf32>
    %444 = arith.addf %436, %443 : vector<64x128xf32>
    %c0_537 = arith.constant 0 : index
    %c1_538 = arith.constant 1 : index
    %c1_539 = arith.constant 1 : index
    %c0_540 = arith.constant 0 : index
    %c1_541 = arith.constant 1 : index
    %c0_542 = arith.constant 0 : index
    %445 = vector.load %arg13[%c0_537, %c1_538, %c1_539, %c0_540, %c1_541, %c0_542] : memref<2x2x2x8x16x128xf32, #tpu.memory_space<vmem>>, vector<2x1x1x4x8x128xf32>
    %446 = vector.shape_cast %445 : vector<2x1x1x4x8x128xf32> to vector<2x4x8x128xf32>
    %447 = vector.shape_cast %446 : vector<2x4x8x128xf32> to vector<64x128xf32>
    %448 = arith.truncf %447 : vector<64x128xf32> to vector<64x128xbf16>
    %c3_543 = arith.constant 3 : index
    %c0_544 = arith.constant 0 : index
    %c0_545 = arith.constant 0 : index
    %449 = vector.load %arg4[%c3_543, %c0_544, %c0_545] : memref<25x128x128xbf16, #tpu.memory_space<vmem>>, vector<1x128x128xbf16>
    %450 = vector.shape_cast %449 : vector<1x128x128xbf16> to vector<128x128xbf16>
    %cst_546 = arith.constant dense<0.000000e+00> : vector<64x128xf32>
    %451 = tpu.matmul %448, %450, %cst_546 {dimension_numbers = #tpu.dot_dimension_numbers<[1], [0], [0], [1], [0, 0, 1, 1], [], []>} : vector<64x128xbf16>, vector<128x128xbf16>, vector<64x128xf32> -> vector<64x128xf32>
    %452 = arith.addf %444, %451 : vector<64x128xf32>
    %c0_547 = arith.constant 0 : index
    %c1_548 = arith.constant 1 : index
    %c0_549 = arith.constant 0 : index
    %c0_550 = arith.constant 0 : index
    %c2_551 = arith.constant 2 : index
    %c0_552 = arith.constant 0 : index
    %453 = vector.load %arg13[%c0_547, %c1_548, %c0_549, %c0_550, %c2_551, %c0_552] : memref<2x2x2x8x16x128xf32, #tpu.memory_space<vmem>>, vector<2x1x1x4x8x128xf32>
    %454 = vector.shape_cast %453 : vector<2x1x1x4x8x128xf32> to vector<2x4x8x128xf32>
    %455 = vector.shape_cast %454 : vector<2x4x8x128xf32> to vector<64x128xf32>
    %456 = arith.truncf %455 : vector<64x128xf32> to vector<64x128xbf16>
    %c4_553 = arith.constant 4 : index
    %c0_554 = arith.constant 0 : index
    %c0_555 = arith.constant 0 : index
    %457 = vector.load %arg4[%c4_553, %c0_554, %c0_555] : memref<25x128x128xbf16, #tpu.memory_space<vmem>>, vector<1x128x128xbf16>
    %458 = vector.shape_cast %457 : vector<1x128x128xbf16> to vector<128x128xbf16>
    %cst_556 = arith.constant dense<0.000000e+00> : vector<64x128xf32>
    %459 = tpu.matmul %456, %458, %cst_556 {dimension_numbers = #tpu.dot_dimension_numbers<[1], [0], [0], [1], [0, 0, 1, 1], [], []>} : vector<64x128xbf16>, vector<128x128xbf16>, vector<64x128xf32> -> vector<64x128xf32>
    %460 = arith.addf %452, %459 : vector<64x128xf32>
    %c0_557 = arith.constant 0 : index
    %c0_558 = arith.constant 0 : index
    %c0_559 = arith.constant 0 : index
    %c1_560 = arith.constant 1 : index
    %c0_561 = arith.constant 0 : index
    %c0_562 = arith.constant 0 : index
    %461 = vector.load %arg13[%c0_557, %c0_558, %c0_559, %c1_560, %c0_561, %c0_562] : memref<2x2x2x8x16x128xf32, #tpu.memory_space<vmem>>, vector<2x1x1x4x8x128xf32>
    %462 = vector.shape_cast %461 : vector<2x1x1x4x8x128xf32> to vector<2x4x8x128xf32>
    %463 = vector.shape_cast %462 : vector<2x4x8x128xf32> to vector<64x128xf32>
    %464 = arith.truncf %463 : vector<64x128xf32> to vector<64x128xbf16>
    %c5_563 = arith.constant 5 : index
    %c0_564 = arith.constant 0 : index
    %c0_565 = arith.constant 0 : index
    %465 = vector.load %arg4[%c5_563, %c0_564, %c0_565] : memref<25x128x128xbf16, #tpu.memory_space<vmem>>, vector<1x128x128xbf16>
    %466 = vector.shape_cast %465 : vector<1x128x128xbf16> to vector<128x128xbf16>
    %cst_566 = arith.constant dense<0.000000e+00> : vector<64x128xf32>
    %467 = tpu.matmul %464, %466, %cst_566 {dimension_numbers = #tpu.dot_dimension_numbers<[1], [0], [0], [1], [0, 0, 1, 1], [], []>} : vector<64x128xbf16>, vector<128x128xbf16>, vector<64x128xf32> -> vector<64x128xf32>
    %468 = arith.addf %460, %467 : vector<64x128xf32>
    %c0_567 = arith.constant 0 : index
    %c0_568 = arith.constant 0 : index
    %c1_569 = arith.constant 1 : index
    %c1_570 = arith.constant 1 : index
    %c0_571 = arith.constant 0 : index
    %c0_572 = arith.constant 0 : index
    %469 = vector.load %arg13[%c0_567, %c0_568, %c1_569, %c1_570, %c0_571, %c0_572] : memref<2x2x2x8x16x128xf32, #tpu.memory_space<vmem>>, vector<2x1x1x4x8x128xf32>
    %470 = vector.shape_cast %469 : vector<2x1x1x4x8x128xf32> to vector<2x4x8x128xf32>
    %471 = vector.shape_cast %470 : vector<2x4x8x128xf32> to vector<64x128xf32>
    %472 = arith.truncf %471 : vector<64x128xf32> to vector<64x128xbf16>
    %c6_573 = arith.constant 6 : index
    %c0_574 = arith.constant 0 : index
    %c0_575 = arith.constant 0 : index
    %473 = vector.load %arg4[%c6_573, %c0_574, %c0_575] : memref<25x128x128xbf16, #tpu.memory_space<vmem>>, vector<1x128x128xbf16>
    %474 = vector.shape_cast %473 : vector<1x128x128xbf16> to vector<128x128xbf16>
    %cst_576 = arith.constant dense<0.000000e+00> : vector<64x128xf32>
    %475 = tpu.matmul %472, %474, %cst_576 {dimension_numbers = #tpu.dot_dimension_numbers<[1], [0], [0], [1], [0, 0, 1, 1], [], []>} : vector<64x128xbf16>, vector<128x128xbf16>, vector<64x128xf32> -> vector<64x128xf32>
    %476 = arith.addf %468, %475 : vector<64x128xf32>
    %c0_577 = arith.constant 0 : index
    %c0_578 = arith.constant 0 : index
    %c0_579 = arith.constant 0 : index
    %c1_580 = arith.constant 1 : index
    %c1_581 = arith.constant 1 : index
    %c0_582 = arith.constant 0 : index
    %477 = vector.load %arg13[%c0_577, %c0_578, %c0_579, %c1_580, %c1_581, %c0_582] : memref<2x2x2x8x16x128xf32, #tpu.memory_space<vmem>>, vector<2x1x1x4x8x128xf32>
    %478 = vector.shape_cast %477 : vector<2x1x1x4x8x128xf32> to vector<2x4x8x128xf32>
    %479 = vector.shape_cast %478 : vector<2x4x8x128xf32> to vector<64x128xf32>
    %480 = arith.truncf %479 : vector<64x128xf32> to vector<64x128xbf16>
    %c7_583 = arith.constant 7 : index
    %c0_584 = arith.constant 0 : index
    %c0_585 = arith.constant 0 : index
    %481 = vector.load %arg4[%c7_583, %c0_584, %c0_585] : memref<25x128x128xbf16, #tpu.memory_space<vmem>>, vector<1x128x128xbf16>
    %482 = vector.shape_cast %481 : vector<1x128x128xbf16> to vector<128x128xbf16>
    %cst_586 = arith.constant dense<0.000000e+00> : vector<64x128xf32>
    %483 = tpu.matmul %480, %482, %cst_586 {dimension_numbers = #tpu.dot_dimension_numbers<[1], [0], [0], [1], [0, 0, 1, 1], [], []>} : vector<64x128xbf16>, vector<128x128xbf16>, vector<64x128xf32> -> vector<64x128xf32>
    %484 = arith.addf %476, %483 : vector<64x128xf32>
    %c0_587 = arith.constant 0 : index
    %c0_588 = arith.constant 0 : index
    %c1_589 = arith.constant 1 : index
    %c1_590 = arith.constant 1 : index
    %c1_591 = arith.constant 1 : index
    %c0_592 = arith.constant 0 : index
    %485 = vector.load %arg13[%c0_587, %c0_588, %c1_589, %c1_590, %c1_591, %c0_592] : memref<2x2x2x8x16x128xf32, #tpu.memory_space<vmem>>, vector<2x1x1x4x8x128xf32>
    %486 = vector.shape_cast %485 : vector<2x1x1x4x8x128xf32> to vector<2x4x8x128xf32>
    %487 = vector.shape_cast %486 : vector<2x4x8x128xf32> to vector<64x128xf32>
    %488 = arith.truncf %487 : vector<64x128xf32> to vector<64x128xbf16>
    %c8_593 = arith.constant 8 : index
    %c0_594 = arith.constant 0 : index
    %c0_595 = arith.constant 0 : index
    %489 = vector.load %arg4[%c8_593, %c0_594, %c0_595] : memref<25x128x128xbf16, #tpu.memory_space<vmem>>, vector<1x128x128xbf16>
    %490 = vector.shape_cast %489 : vector<1x128x128xbf16> to vector<128x128xbf16>
    %cst_596 = arith.constant dense<0.000000e+00> : vector<64x128xf32>
    %491 = tpu.matmul %488, %490, %cst_596 {dimension_numbers = #tpu.dot_dimension_numbers<[1], [0], [0], [1], [0, 0, 1, 1], [], []>} : vector<64x128xbf16>, vector<128x128xbf16>, vector<64x128xf32> -> vector<64x128xf32>
    %492 = arith.addf %484, %491 : vector<64x128xf32>
    %c0_597 = arith.constant 0 : index
    %c0_598 = arith.constant 0 : index
    %c0_599 = arith.constant 0 : index
    %c1_600 = arith.constant 1 : index
    %c2_601 = arith.constant 2 : index
    %c0_602 = arith.constant 0 : index
    %493 = vector.load %arg13[%c0_597, %c0_598, %c0_599, %c1_600, %c2_601, %c0_602] : memref<2x2x2x8x16x128xf32, #tpu.memory_space<vmem>>, vector<2x1x1x4x8x128xf32>
    %494 = vector.shape_cast %493 : vector<2x1x1x4x8x128xf32> to vector<2x4x8x128xf32>
    %495 = vector.shape_cast %494 : vector<2x4x8x128xf32> to vector<64x128xf32>
    %496 = arith.truncf %495 : vector<64x128xf32> to vector<64x128xbf16>
    %c9_603 = arith.constant 9 : index
    %c0_604 = arith.constant 0 : index
    %c0_605 = arith.constant 0 : index
    %497 = vector.load %arg4[%c9_603, %c0_604, %c0_605] : memref<25x128x128xbf16, #tpu.memory_space<vmem>>, vector<1x128x128xbf16>
    %498 = vector.shape_cast %497 : vector<1x128x128xbf16> to vector<128x128xbf16>
    %cst_606 = arith.constant dense<0.000000e+00> : vector<64x128xf32>
    %499 = tpu.matmul %496, %498, %cst_606 {dimension_numbers = #tpu.dot_dimension_numbers<[1], [0], [0], [1], [0, 0, 1, 1], [], []>} : vector<64x128xbf16>, vector<128x128xbf16>, vector<64x128xf32> -> vector<64x128xf32>
    %500 = arith.addf %492, %499 : vector<64x128xf32>
    %c0_607 = arith.constant 0 : index
    %c1_608 = arith.constant 1 : index
    %c0_609 = arith.constant 0 : index
    %c1_610 = arith.constant 1 : index
    %c0_611 = arith.constant 0 : index
    %c0_612 = arith.constant 0 : index
    %501 = vector.load %arg13[%c0_607, %c1_608, %c0_609, %c1_610, %c0_611, %c0_612] : memref<2x2x2x8x16x128xf32, #tpu.memory_space<vmem>>, vector<2x1x1x4x8x128xf32>
    %502 = vector.shape_cast %501 : vector<2x1x1x4x8x128xf32> to vector<2x4x8x128xf32>
    %503 = vector.shape_cast %502 : vector<2x4x8x128xf32> to vector<64x128xf32>
    %504 = arith.truncf %503 : vector<64x128xf32> to vector<64x128xbf16>
    %c10_613 = arith.constant 10 : index
    %c0_614 = arith.constant 0 : index
    %c0_615 = arith.constant 0 : index
    %505 = vector.load %arg4[%c10_613, %c0_614, %c0_615] : memref<25x128x128xbf16, #tpu.memory_space<vmem>>, vector<1x128x128xbf16>
    %506 = vector.shape_cast %505 : vector<1x128x128xbf16> to vector<128x128xbf16>
    %cst_616 = arith.constant dense<0.000000e+00> : vector<64x128xf32>
    %507 = tpu.matmul %504, %506, %cst_616 {dimension_numbers = #tpu.dot_dimension_numbers<[1], [0], [0], [1], [0, 0, 1, 1], [], []>} : vector<64x128xbf16>, vector<128x128xbf16>, vector<64x128xf32> -> vector<64x128xf32>
    %508 = arith.addf %500, %507 : vector<64x128xf32>
    %c0_617 = arith.constant 0 : index
    %c1_618 = arith.constant 1 : index
    %c1_619 = arith.constant 1 : index
    %c1_620 = arith.constant 1 : index
    %c0_621 = arith.constant 0 : index
    %c0_622 = arith.constant 0 : index
    %509 = vector.load %arg13[%c0_617, %c1_618, %c1_619, %c1_620, %c0_621, %c0_622] : memref<2x2x2x8x16x128xf32, #tpu.memory_space<vmem>>, vector<2x1x1x4x8x128xf32>
    %510 = vector.shape_cast %509 : vector<2x1x1x4x8x128xf32> to vector<2x4x8x128xf32>
    %511 = vector.shape_cast %510 : vector<2x4x8x128xf32> to vector<64x128xf32>
    %512 = arith.truncf %511 : vector<64x128xf32> to vector<64x128xbf16>
    %c11_623 = arith.constant 11 : index
    %c0_624 = arith.constant 0 : index
    %c0_625 = arith.constant 0 : index
    %513 = vector.load %arg4[%c11_623, %c0_624, %c0_625] : memref<25x128x128xbf16, #tpu.memory_space<vmem>>, vector<1x128x128xbf16>
    %514 = vector.shape_cast %513 : vector<1x128x128xbf16> to vector<128x128xbf16>
    %cst_626 = arith.constant dense<0.000000e+00> : vector<64x128xf32>
    %515 = tpu.matmul %512, %514, %cst_626 {dimension_numbers = #tpu.dot_dimension_numbers<[1], [0], [0], [1], [0, 0, 1, 1], [], []>} : vector<64x128xbf16>, vector<128x128xbf16>, vector<64x128xf32> -> vector<64x128xf32>
    %516 = arith.addf %508, %515 : vector<64x128xf32>
    %c0_627 = arith.constant 0 : index
    %c1_628 = arith.constant 1 : index
    %c0_629 = arith.constant 0 : index
    %c1_630 = arith.constant 1 : index
    %c1_631 = arith.constant 1 : index
    %c0_632 = arith.constant 0 : index
    %517 = vector.load %arg13[%c0_627, %c1_628, %c0_629, %c1_630, %c1_631, %c0_632] : memref<2x2x2x8x16x128xf32, #tpu.memory_space<vmem>>, vector<2x1x1x4x8x128xf32>
    %518 = vector.shape_cast %517 : vector<2x1x1x4x8x128xf32> to vector<2x4x8x128xf32>
    %519 = vector.shape_cast %518 : vector<2x4x8x128xf32> to vector<64x128xf32>
    %520 = arith.truncf %519 : vector<64x128xf32> to vector<64x128xbf16>
    %c12_633 = arith.constant 12 : index
    %c0_634 = arith.constant 0 : index
    %c0_635 = arith.constant 0 : index
    %521 = vector.load %arg4[%c12_633, %c0_634, %c0_635] : memref<25x128x128xbf16, #tpu.memory_space<vmem>>, vector<1x128x128xbf16>
    %522 = vector.shape_cast %521 : vector<1x128x128xbf16> to vector<128x128xbf16>
    %cst_636 = arith.constant dense<0.000000e+00> : vector<64x128xf32>
    %523 = tpu.matmul %520, %522, %cst_636 {dimension_numbers = #tpu.dot_dimension_numbers<[1], [0], [0], [1], [0, 0, 1, 1], [], []>} : vector<64x128xbf16>, vector<128x128xbf16>, vector<64x128xf32> -> vector<64x128xf32>
    %524 = arith.addf %516, %523 : vector<64x128xf32>
    %c0_637 = arith.constant 0 : index
    %c1_638 = arith.constant 1 : index
    %c1_639 = arith.constant 1 : index
    %c1_640 = arith.constant 1 : index
    %c1_641 = arith.constant 1 : index
    %c0_642 = arith.constant 0 : index
    %525 = vector.load %arg13[%c0_637, %c1_638, %c1_639, %c1_640, %c1_641, %c0_642] : memref<2x2x2x8x16x128xf32, #tpu.memory_space<vmem>>, vector<2x1x1x4x8x128xf32>
    %526 = vector.shape_cast %525 : vector<2x1x1x4x8x128xf32> to vector<2x4x8x128xf32>
    %527 = vector.shape_cast %526 : vector<2x4x8x128xf32> to vector<64x128xf32>
    %528 = arith.truncf %527 : vector<64x128xf32> to vector<64x128xbf16>
    %c13_643 = arith.constant 13 : index
    %c0_644 = arith.constant 0 : index
    %c0_645 = arith.constant 0 : index
    %529 = vector.load %arg4[%c13_643, %c0_644, %c0_645] : memref<25x128x128xbf16, #tpu.memory_space<vmem>>, vector<1x128x128xbf16>
    %530 = vector.shape_cast %529 : vector<1x128x128xbf16> to vector<128x128xbf16>
    %cst_646 = arith.constant dense<0.000000e+00> : vector<64x128xf32>
    %531 = tpu.matmul %528, %530, %cst_646 {dimension_numbers = #tpu.dot_dimension_numbers<[1], [0], [0], [1], [0, 0, 1, 1], [], []>} : vector<64x128xbf16>, vector<128x128xbf16>, vector<64x128xf32> -> vector<64x128xf32>
    %532 = arith.addf %524, %531 : vector<64x128xf32>
    %c0_647 = arith.constant 0 : index
    %c1_648 = arith.constant 1 : index
    %c0_649 = arith.constant 0 : index
    %c1_650 = arith.constant 1 : index
    %c2_651 = arith.constant 2 : index
    %c0_652 = arith.constant 0 : index
    %533 = vector.load %arg13[%c0_647, %c1_648, %c0_649, %c1_650, %c2_651, %c0_652] : memref<2x2x2x8x16x128xf32, #tpu.memory_space<vmem>>, vector<2x1x1x4x8x128xf32>
    %534 = vector.shape_cast %533 : vector<2x1x1x4x8x128xf32> to vector<2x4x8x128xf32>
    %535 = vector.shape_cast %534 : vector<2x4x8x128xf32> to vector<64x128xf32>
    %536 = arith.truncf %535 : vector<64x128xf32> to vector<64x128xbf16>
    %c14_653 = arith.constant 14 : index
    %c0_654 = arith.constant 0 : index
    %c0_655 = arith.constant 0 : index
    %537 = vector.load %arg4[%c14_653, %c0_654, %c0_655] : memref<25x128x128xbf16, #tpu.memory_space<vmem>>, vector<1x128x128xbf16>
    %538 = vector.shape_cast %537 : vector<1x128x128xbf16> to vector<128x128xbf16>
    %cst_656 = arith.constant dense<0.000000e+00> : vector<64x128xf32>
    %539 = tpu.matmul %536, %538, %cst_656 {dimension_numbers = #tpu.dot_dimension_numbers<[1], [0], [0], [1], [0, 0, 1, 1], [], []>} : vector<64x128xbf16>, vector<128x128xbf16>, vector<64x128xf32> -> vector<64x128xf32>
    %540 = arith.addf %532, %539 : vector<64x128xf32>
    %c0_657 = arith.constant 0 : index
    %c0_658 = arith.constant 0 : index
    %c0_659 = arith.constant 0 : index
    %c2_660 = arith.constant 2 : index
    %c0_661 = arith.constant 0 : index
    %c0_662 = arith.constant 0 : index
    %541 = vector.load %arg13[%c0_657, %c0_658, %c0_659, %c2_660, %c0_661, %c0_662] : memref<2x2x2x8x16x128xf32, #tpu.memory_space<vmem>>, vector<2x1x1x4x8x128xf32>
    %542 = vector.shape_cast %541 : vector<2x1x1x4x8x128xf32> to vector<2x4x8x128xf32>
    %543 = vector.shape_cast %542 : vector<2x4x8x128xf32> to vector<64x128xf32>
    %544 = arith.truncf %543 : vector<64x128xf32> to vector<64x128xbf16>
    %c15_663 = arith.constant 15 : index
    %c0_664 = arith.constant 0 : index
    %c0_665 = arith.constant 0 : index
    %545 = vector.load %arg4[%c15_663, %c0_664, %c0_665] : memref<25x128x128xbf16, #tpu.memory_space<vmem>>, vector<1x128x128xbf16>
    %546 = vector.shape_cast %545 : vector<1x128x128xbf16> to vector<128x128xbf16>
    %cst_666 = arith.constant dense<0.000000e+00> : vector<64x128xf32>
    %547 = tpu.matmul %544, %546, %cst_666 {dimension_numbers = #tpu.dot_dimension_numbers<[1], [0], [0], [1], [0, 0, 1, 1], [], []>} : vector<64x128xbf16>, vector<128x128xbf16>, vector<64x128xf32> -> vector<64x128xf32>
    %548 = arith.addf %540, %547 : vector<64x128xf32>
    %c0_667 = arith.constant 0 : index
    %c0_668 = arith.constant 0 : index
    %c1_669 = arith.constant 1 : index
    %c2_670 = arith.constant 2 : index
    %c0_671 = arith.constant 0 : index
    %c0_672 = arith.constant 0 : index
    %549 = vector.load %arg13[%c0_667, %c0_668, %c1_669, %c2_670, %c0_671, %c0_672] : memref<2x2x2x8x16x128xf32, #tpu.memory_space<vmem>>, vector<2x1x1x4x8x128xf32>
    %550 = vector.shape_cast %549 : vector<2x1x1x4x8x128xf32> to vector<2x4x8x128xf32>
    %551 = vector.shape_cast %550 : vector<2x4x8x128xf32> to vector<64x128xf32>
    %552 = arith.truncf %551 : vector<64x128xf32> to vector<64x128xbf16>
    %c16_673 = arith.constant 16 : index
    %c0_674 = arith.constant 0 : index
    %c0_675 = arith.constant 0 : index
    %553 = vector.load %arg4[%c16_673, %c0_674, %c0_675] : memref<25x128x128xbf16, #tpu.memory_space<vmem>>, vector<1x128x128xbf16>
    %554 = vector.shape_cast %553 : vector<1x128x128xbf16> to vector<128x128xbf16>
    %cst_676 = arith.constant dense<0.000000e+00> : vector<64x128xf32>
    %555 = tpu.matmul %552, %554, %cst_676 {dimension_numbers = #tpu.dot_dimension_numbers<[1], [0], [0], [1], [0, 0, 1, 1], [], []>} : vector<64x128xbf16>, vector<128x128xbf16>, vector<64x128xf32> -> vector<64x128xf32>
    %556 = arith.addf %548, %555 : vector<64x128xf32>
    %c0_677 = arith.constant 0 : index
    %c0_678 = arith.constant 0 : index
    %c0_679 = arith.constant 0 : index
    %c2_680 = arith.constant 2 : index
    %c1_681 = arith.constant 1 : index
    %c0_682 = arith.constant 0 : index
    %557 = vector.load %arg13[%c0_677, %c0_678, %c0_679, %c2_680, %c1_681, %c0_682] : memref<2x2x2x8x16x128xf32, #tpu.memory_space<vmem>>, vector<2x1x1x4x8x128xf32>
    %558 = vector.shape_cast %557 : vector<2x1x1x4x8x128xf32> to vector<2x4x8x128xf32>
    %559 = vector.shape_cast %558 : vector<2x4x8x128xf32> to vector<64x128xf32>
    %560 = arith.truncf %559 : vector<64x128xf32> to vector<64x128xbf16>
    %c17_683 = arith.constant 17 : index
    %c0_684 = arith.constant 0 : index
    %c0_685 = arith.constant 0 : index
    %561 = vector.load %arg4[%c17_683, %c0_684, %c0_685] : memref<25x128x128xbf16, #tpu.memory_space<vmem>>, vector<1x128x128xbf16>
    %562 = vector.shape_cast %561 : vector<1x128x128xbf16> to vector<128x128xbf16>
    %cst_686 = arith.constant dense<0.000000e+00> : vector<64x128xf32>
    %563 = tpu.matmul %560, %562, %cst_686 {dimension_numbers = #tpu.dot_dimension_numbers<[1], [0], [0], [1], [0, 0, 1, 1], [], []>} : vector<64x128xbf16>, vector<128x128xbf16>, vector<64x128xf32> -> vector<64x128xf32>
    %564 = arith.addf %556, %563 : vector<64x128xf32>
    %c0_687 = arith.constant 0 : index
    %c0_688 = arith.constant 0 : index
    %c1_689 = arith.constant 1 : index
    %c2_690 = arith.constant 2 : index
    %c1_691 = arith.constant 1 : index
    %c0_692 = arith.constant 0 : index
    %565 = vector.load %arg13[%c0_687, %c0_688, %c1_689, %c2_690, %c1_691, %c0_692] : memref<2x2x2x8x16x128xf32, #tpu.memory_space<vmem>>, vector<2x1x1x4x8x128xf32>
    %566 = vector.shape_cast %565 : vector<2x1x1x4x8x128xf32> to vector<2x4x8x128xf32>
    %567 = vector.shape_cast %566 : vector<2x4x8x128xf32> to vector<64x128xf32>
    %568 = arith.truncf %567 : vector<64x128xf32> to vector<64x128xbf16>
    %c18_693 = arith.constant 18 : index
    %c0_694 = arith.constant 0 : index
    %c0_695 = arith.constant 0 : index
    %569 = vector.load %arg4[%c18_693, %c0_694, %c0_695] : memref<25x128x128xbf16, #tpu.memory_space<vmem>>, vector<1x128x128xbf16>
    %570 = vector.shape_cast %569 : vector<1x128x128xbf16> to vector<128x128xbf16>
    %cst_696 = arith.constant dense<0.000000e+00> : vector<64x128xf32>
    %571 = tpu.matmul %568, %570, %cst_696 {dimension_numbers = #tpu.dot_dimension_numbers<[1], [0], [0], [1], [0, 0, 1, 1], [], []>} : vector<64x128xbf16>, vector<128x128xbf16>, vector<64x128xf32> -> vector<64x128xf32>
    %572 = arith.addf %564, %571 : vector<64x128xf32>
    %c0_697 = arith.constant 0 : index
    %c0_698 = arith.constant 0 : index
    %c0_699 = arith.constant 0 : index
    %c2_700 = arith.constant 2 : index
    %c2_701 = arith.constant 2 : index
    %c0_702 = arith.constant 0 : index
    %573 = vector.load %arg13[%c0_697, %c0_698, %c0_699, %c2_700, %c2_701, %c0_702] : memref<2x2x2x8x16x128xf32, #tpu.memory_space<vmem>>, vector<2x1x1x4x8x128xf32>
    %574 = vector.shape_cast %573 : vector<2x1x1x4x8x128xf32> to vector<2x4x8x128xf32>
    %575 = vector.shape_cast %574 : vector<2x4x8x128xf32> to vector<64x128xf32>
    %576 = arith.truncf %575 : vector<64x128xf32> to vector<64x128xbf16>
    %c19_703 = arith.constant 19 : index
    %c0_704 = arith.constant 0 : index
    %c0_705 = arith.constant 0 : index
    %577 = vector.load %arg4[%c19_703, %c0_704, %c0_705] : memref<25x128x128xbf16, #tpu.memory_space<vmem>>, vector<1x128x128xbf16>
    %578 = vector.shape_cast %577 : vector<1x128x128xbf16> to vector<128x128xbf16>
    %cst_706 = arith.constant dense<0.000000e+00> : vector<64x128xf32>
    %579 = tpu.matmul %576, %578, %cst_706 {dimension_numbers = #tpu.dot_dimension_numbers<[1], [0], [0], [1], [0, 0, 1, 1], [], []>} : vector<64x128xbf16>, vector<128x128xbf16>, vector<64x128xf32> -> vector<64x128xf32>
    %580 = arith.addf %572, %579 : vector<64x128xf32>
    %c0_707 = arith.constant 0 : index
    %c1_708 = arith.constant 1 : index
    %c0_709 = arith.constant 0 : index
    %c2_710 = arith.constant 2 : index
    %c0_711 = arith.constant 0 : index
    %c0_712 = arith.constant 0 : index
    %581 = vector.load %arg13[%c0_707, %c1_708, %c0_709, %c2_710, %c0_711, %c0_712] : memref<2x2x2x8x16x128xf32, #tpu.memory_space<vmem>>, vector<2x1x1x4x8x128xf32>
    %582 = vector.shape_cast %581 : vector<2x1x1x4x8x128xf32> to vector<2x4x8x128xf32>
    %583 = vector.shape_cast %582 : vector<2x4x8x128xf32> to vector<64x128xf32>
    %584 = arith.truncf %583 : vector<64x128xf32> to vector<64x128xbf16>
    %c20_713 = arith.constant 20 : index
    %c0_714 = arith.constant 0 : index
    %c0_715 = arith.constant 0 : index
    %585 = vector.load %arg4[%c20_713, %c0_714, %c0_715] : memref<25x128x128xbf16, #tpu.memory_space<vmem>>, vector<1x128x128xbf16>
    %586 = vector.shape_cast %585 : vector<1x128x128xbf16> to vector<128x128xbf16>
    %cst_716 = arith.constant dense<0.000000e+00> : vector<64x128xf32>
    %587 = tpu.matmul %584, %586, %cst_716 {dimension_numbers = #tpu.dot_dimension_numbers<[1], [0], [0], [1], [0, 0, 1, 1], [], []>} : vector<64x128xbf16>, vector<128x128xbf16>, vector<64x128xf32> -> vector<64x128xf32>
    %588 = arith.addf %580, %587 : vector<64x128xf32>
    %c0_717 = arith.constant 0 : index
    %c1_718 = arith.constant 1 : index
    %c1_719 = arith.constant 1 : index
    %c2_720 = arith.constant 2 : index
    %c0_721 = arith.constant 0 : index
    %c0_722 = arith.constant 0 : index
    %589 = vector.load %arg13[%c0_717, %c1_718, %c1_719, %c2_720, %c0_721, %c0_722] : memref<2x2x2x8x16x128xf32, #tpu.memory_space<vmem>>, vector<2x1x1x4x8x128xf32>
    %590 = vector.shape_cast %589 : vector<2x1x1x4x8x128xf32> to vector<2x4x8x128xf32>
    %591 = vector.shape_cast %590 : vector<2x4x8x128xf32> to vector<64x128xf32>
    %592 = arith.truncf %591 : vector<64x128xf32> to vector<64x128xbf16>
    %c21_723 = arith.constant 21 : index
    %c0_724 = arith.constant 0 : index
    %c0_725 = arith.constant 0 : index
    %593 = vector.load %arg4[%c21_723, %c0_724, %c0_725] : memref<25x128x128xbf16, #tpu.memory_space<vmem>>, vector<1x128x128xbf16>
    %594 = vector.shape_cast %593 : vector<1x128x128xbf16> to vector<128x128xbf16>
    %cst_726 = arith.constant dense<0.000000e+00> : vector<64x128xf32>
    %595 = tpu.matmul %592, %594, %cst_726 {dimension_numbers = #tpu.dot_dimension_numbers<[1], [0], [0], [1], [0, 0, 1, 1], [], []>} : vector<64x128xbf16>, vector<128x128xbf16>, vector<64x128xf32> -> vector<64x128xf32>
    %596 = arith.addf %588, %595 : vector<64x128xf32>
    %c0_727 = arith.constant 0 : index
    %c1_728 = arith.constant 1 : index
    %c0_729 = arith.constant 0 : index
    %c2_730 = arith.constant 2 : index
    %c1_731 = arith.constant 1 : index
    %c0_732 = arith.constant 0 : index
    %597 = vector.load %arg13[%c0_727, %c1_728, %c0_729, %c2_730, %c1_731, %c0_732] : memref<2x2x2x8x16x128xf32, #tpu.memory_space<vmem>>, vector<2x1x1x4x8x128xf32>
    %598 = vector.shape_cast %597 : vector<2x1x1x4x8x128xf32> to vector<2x4x8x128xf32>
    %599 = vector.shape_cast %598 : vector<2x4x8x128xf32> to vector<64x128xf32>
    %600 = arith.truncf %599 : vector<64x128xf32> to vector<64x128xbf16>
    %c22_733 = arith.constant 22 : index
    %c0_734 = arith.constant 0 : index
    %c0_735 = arith.constant 0 : index
    %601 = vector.load %arg4[%c22_733, %c0_734, %c0_735] : memref<25x128x128xbf16, #tpu.memory_space<vmem>>, vector<1x128x128xbf16>
    %602 = vector.shape_cast %601 : vector<1x128x128xbf16> to vector<128x128xbf16>
    %cst_736 = arith.constant dense<0.000000e+00> : vector<64x128xf32>
    %603 = tpu.matmul %600, %602, %cst_736 {dimension_numbers = #tpu.dot_dimension_numbers<[1], [0], [0], [1], [0, 0, 1, 1], [], []>} : vector<64x128xbf16>, vector<128x128xbf16>, vector<64x128xf32> -> vector<64x128xf32>
    %604 = arith.addf %596, %603 : vector<64x128xf32>
    %c0_737 = arith.constant 0 : index
    %c1_738 = arith.constant 1 : index
    %c1_739 = arith.constant 1 : index
    %c2_740 = arith.constant 2 : index
    %c1_741 = arith.constant 1 : index
    %c0_742 = arith.constant 0 : index
    %605 = vector.load %arg13[%c0_737, %c1_738, %c1_739, %c2_740, %c1_741, %c0_742] : memref<2x2x2x8x16x128xf32, #tpu.memory_space<vmem>>, vector<2x1x1x4x8x128xf32>
    %606 = vector.shape_cast %605 : vector<2x1x1x4x8x128xf32> to vector<2x4x8x128xf32>
    %607 = vector.shape_cast %606 : vector<2x4x8x128xf32> to vector<64x128xf32>
    %608 = arith.truncf %607 : vector<64x128xf32> to vector<64x128xbf16>
    %c23_743 = arith.constant 23 : index
    %c0_744 = arith.constant 0 : index
    %c0_745 = arith.constant 0 : index
    %609 = vector.load %arg4[%c23_743, %c0_744, %c0_745] : memref<25x128x128xbf16, #tpu.memory_space<vmem>>, vector<1x128x128xbf16>
    %610 = vector.shape_cast %609 : vector<1x128x128xbf16> to vector<128x128xbf16>
    %cst_746 = arith.constant dense<0.000000e+00> : vector<64x128xf32>
    %611 = tpu.matmul %608, %610, %cst_746 {dimension_numbers = #tpu.dot_dimension_numbers<[1], [0], [0], [1], [0, 0, 1, 1], [], []>} : vector<64x128xbf16>, vector<128x128xbf16>, vector<64x128xf32> -> vector<64x128xf32>
    %612 = arith.addf %604, %611 : vector<64x128xf32>
    %c0_747 = arith.constant 0 : index
    %c1_748 = arith.constant 1 : index
    %c0_749 = arith.constant 0 : index
    %c2_750 = arith.constant 2 : index
    %c2_751 = arith.constant 2 : index
    %c0_752 = arith.constant 0 : index
    %613 = vector.load %arg13[%c0_747, %c1_748, %c0_749, %c2_750, %c2_751, %c0_752] : memref<2x2x2x8x16x128xf32, #tpu.memory_space<vmem>>, vector<2x1x1x4x8x128xf32>
    %614 = vector.shape_cast %613 : vector<2x1x1x4x8x128xf32> to vector<2x4x8x128xf32>
    %615 = vector.shape_cast %614 : vector<2x4x8x128xf32> to vector<64x128xf32>
    %616 = arith.truncf %615 : vector<64x128xf32> to vector<64x128xbf16>
    %c24_753 = arith.constant 24 : index
    %c0_754 = arith.constant 0 : index
    %c0_755 = arith.constant 0 : index
    %617 = vector.load %arg4[%c24_753, %c0_754, %c0_755] : memref<25x128x128xbf16, #tpu.memory_space<vmem>>, vector<1x128x128xbf16>
    %618 = vector.shape_cast %617 : vector<1x128x128xbf16> to vector<128x128xbf16>
    %cst_756 = arith.constant dense<0.000000e+00> : vector<64x128xf32>
    %619 = tpu.matmul %616, %618, %cst_756 {dimension_numbers = #tpu.dot_dimension_numbers<[1], [0], [0], [1], [0, 0, 1, 1], [], []>} : vector<64x128xbf16>, vector<128x128xbf16>, vector<64x128xf32> -> vector<64x128xf32>
    %620 = arith.addf %612, %619 : vector<64x128xf32>
    %621 = arith.maximumf %421, %620 : vector<64x128xf32>
    %c0_757 = arith.constant 0 : index
    %c1_758 = arith.constant 1 : index
    %c1_759 = arith.constant 1 : index
    %c0_760 = arith.constant 0 : index
    %c0_761 = arith.constant 0 : index
    %c0_762 = arith.constant 0 : index
    %622 = vector.load %arg13[%c0_757, %c1_758, %c1_759, %c0_760, %c0_761, %c0_762] : memref<2x2x2x8x16x128xf32, #tpu.memory_space<vmem>>, vector<2x1x1x4x8x128xf32>
    %623 = vector.shape_cast %622 : vector<2x1x1x4x8x128xf32> to vector<2x4x8x128xf32>
    %624 = vector.shape_cast %623 : vector<2x4x8x128xf32> to vector<64x128xf32>
    %625 = arith.truncf %624 : vector<64x128xf32> to vector<64x128xbf16>
    %c0_763 = arith.constant 0 : index
    %c0_764 = arith.constant 0 : index
    %c0_765 = arith.constant 0 : index
    %626 = vector.load %arg4[%c0_763, %c0_764, %c0_765] : memref<25x128x128xbf16, #tpu.memory_space<vmem>>, vector<1x128x128xbf16>
    %627 = vector.shape_cast %626 : vector<1x128x128xbf16> to vector<128x128xbf16>
    %cst_766 = arith.constant dense<0.000000e+00> : vector<64x128xf32>
    %628 = tpu.matmul %625, %627, %cst_766 {dimension_numbers = #tpu.dot_dimension_numbers<[1], [0], [0], [1], [0, 0, 1, 1], [], []>} : vector<64x128xbf16>, vector<128x128xbf16>, vector<64x128xf32> -> vector<64x128xf32>
    %c0_767 = arith.constant 0 : index
    %c1_768 = arith.constant 1 : index
    %c0_769 = arith.constant 0 : index
    %c0_770 = arith.constant 0 : index
    %c1_771 = arith.constant 1 : index
    %c0_772 = arith.constant 0 : index
    %629 = vector.load %arg13[%c0_767, %c1_768, %c0_769, %c0_770, %c1_771, %c0_772] : memref<2x2x2x8x16x128xf32, #tpu.memory_space<vmem>>, vector<2x1x1x4x8x128xf32>
    %630 = vector.shape_cast %629 : vector<2x1x1x4x8x128xf32> to vector<2x4x8x128xf32>
    %631 = vector.shape_cast %630 : vector<2x4x8x128xf32> to vector<64x128xf32>
    %632 = arith.truncf %631 : vector<64x128xf32> to vector<64x128xbf16>
    %c1_773 = arith.constant 1 : index
    %c0_774 = arith.constant 0 : index
    %c0_775 = arith.constant 0 : index
    %633 = vector.load %arg4[%c1_773, %c0_774, %c0_775] : memref<25x128x128xbf16, #tpu.memory_space<vmem>>, vector<1x128x128xbf16>
    %634 = vector.shape_cast %633 : vector<1x128x128xbf16> to vector<128x128xbf16>
    %cst_776 = arith.constant dense<0.000000e+00> : vector<64x128xf32>
    %635 = tpu.matmul %632, %634, %cst_776 {dimension_numbers = #tpu.dot_dimension_numbers<[1], [0], [0], [1], [0, 0, 1, 1], [], []>} : vector<64x128xbf16>, vector<128x128xbf16>, vector<64x128xf32> -> vector<64x128xf32>
    %636 = arith.addf %628, %635 : vector<64x128xf32>
    %c0_777 = arith.constant 0 : index
    %c1_778 = arith.constant 1 : index
    %c1_779 = arith.constant 1 : index
    %c0_780 = arith.constant 0 : index
    %c1_781 = arith.constant 1 : index
    %c0_782 = arith.constant 0 : index
    %637 = vector.load %arg13[%c0_777, %c1_778, %c1_779, %c0_780, %c1_781, %c0_782] : memref<2x2x2x8x16x128xf32, #tpu.memory_space<vmem>>, vector<2x1x1x4x8x128xf32>
    %638 = vector.shape_cast %637 : vector<2x1x1x4x8x128xf32> to vector<2x4x8x128xf32>
    %639 = vector.shape_cast %638 : vector<2x4x8x128xf32> to vector<64x128xf32>
    %640 = arith.truncf %639 : vector<64x128xf32> to vector<64x128xbf16>
    %c2_783 = arith.constant 2 : index
    %c0_784 = arith.constant 0 : index
    %c0_785 = arith.constant 0 : index
    %641 = vector.load %arg4[%c2_783, %c0_784, %c0_785] : memref<25x128x128xbf16, #tpu.memory_space<vmem>>, vector<1x128x128xbf16>
    %642 = vector.shape_cast %641 : vector<1x128x128xbf16> to vector<128x128xbf16>
    %cst_786 = arith.constant dense<0.000000e+00> : vector<64x128xf32>
    %643 = tpu.matmul %640, %642, %cst_786 {dimension_numbers = #tpu.dot_dimension_numbers<[1], [0], [0], [1], [0, 0, 1, 1], [], []>} : vector<64x128xbf16>, vector<128x128xbf16>, vector<64x128xf32> -> vector<64x128xf32>
    %644 = arith.addf %636, %643 : vector<64x128xf32>
    %c0_787 = arith.constant 0 : index
    %c1_788 = arith.constant 1 : index
    %c0_789 = arith.constant 0 : index
    %c0_790 = arith.constant 0 : index
    %c2_791 = arith.constant 2 : index
    %c0_792 = arith.constant 0 : index
    %645 = vector.load %arg13[%c0_787, %c1_788, %c0_789, %c0_790, %c2_791, %c0_792] : memref<2x2x2x8x16x128xf32, #tpu.memory_space<vmem>>, vector<2x1x1x4x8x128xf32>
    %646 = vector.shape_cast %645 : vector<2x1x1x4x8x128xf32> to vector<2x4x8x128xf32>
    %647 = vector.shape_cast %646 : vector<2x4x8x128xf32> to vector<64x128xf32>
    %648 = arith.truncf %647 : vector<64x128xf32> to vector<64x128xbf16>
    %c3_793 = arith.constant 3 : index
    %c0_794 = arith.constant 0 : index
    %c0_795 = arith.constant 0 : index
    %649 = vector.load %arg4[%c3_793, %c0_794, %c0_795] : memref<25x128x128xbf16, #tpu.memory_space<vmem>>, vector<1x128x128xbf16>
    %650 = vector.shape_cast %649 : vector<1x128x128xbf16> to vector<128x128xbf16>
    %cst_796 = arith.constant dense<0.000000e+00> : vector<64x128xf32>
    %651 = tpu.matmul %648, %650, %cst_796 {dimension_numbers = #tpu.dot_dimension_numbers<[1], [0], [0], [1], [0, 0, 1, 1], [], []>} : vector<64x128xbf16>, vector<128x128xbf16>, vector<64x128xf32> -> vector<64x128xf32>
    %652 = arith.addf %644, %651 : vector<64x128xf32>
    %c0_797 = arith.constant 0 : index
    %c1_798 = arith.constant 1 : index
    %c1_799 = arith.constant 1 : index
    %c0_800 = arith.constant 0 : index
    %c2_801 = arith.constant 2 : index
    %c0_802 = arith.constant 0 : index
    %653 = vector.load %arg13[%c0_797, %c1_798, %c1_799, %c0_800, %c2_801, %c0_802] : memref<2x2x2x8x16x128xf32, #tpu.memory_space<vmem>>, vector<2x1x1x4x8x128xf32>
    %654 = vector.shape_cast %653 : vector<2x1x1x4x8x128xf32> to vector<2x4x8x128xf32>
    %655 = vector.shape_cast %654 : vector<2x4x8x128xf32> to vector<64x128xf32>
    %656 = arith.truncf %655 : vector<64x128xf32> to vector<64x128xbf16>
    %c4_803 = arith.constant 4 : index
    %c0_804 = arith.constant 0 : index
    %c0_805 = arith.constant 0 : index
    %657 = vector.load %arg4[%c4_803, %c0_804, %c0_805] : memref<25x128x128xbf16, #tpu.memory_space<vmem>>, vector<1x128x128xbf16>
    %658 = vector.shape_cast %657 : vector<1x128x128xbf16> to vector<128x128xbf16>
    %cst_806 = arith.constant dense<0.000000e+00> : vector<64x128xf32>
    %659 = tpu.matmul %656, %658, %cst_806 {dimension_numbers = #tpu.dot_dimension_numbers<[1], [0], [0], [1], [0, 0, 1, 1], [], []>} : vector<64x128xbf16>, vector<128x128xbf16>, vector<64x128xf32> -> vector<64x128xf32>
    %660 = arith.addf %652, %659 : vector<64x128xf32>
    %c0_807 = arith.constant 0 : index
    %c0_808 = arith.constant 0 : index
    %c1_809 = arith.constant 1 : index
    %c1_810 = arith.constant 1 : index
    %c0_811 = arith.constant 0 : index
    %c0_812 = arith.constant 0 : index
    %661 = vector.load %arg13[%c0_807, %c0_808, %c1_809, %c1_810, %c0_811, %c0_812] : memref<2x2x2x8x16x128xf32, #tpu.memory_space<vmem>>, vector<2x1x1x4x8x128xf32>
    %662 = vector.shape_cast %661 : vector<2x1x1x4x8x128xf32> to vector<2x4x8x128xf32>
    %663 = vector.shape_cast %662 : vector<2x4x8x128xf32> to vector<64x128xf32>
    %664 = arith.truncf %663 : vector<64x128xf32> to vector<64x128xbf16>
    %c5_813 = arith.constant 5 : index
    %c0_814 = arith.constant 0 : index
    %c0_815 = arith.constant 0 : index
    %665 = vector.load %arg4[%c5_813, %c0_814, %c0_815] : memref<25x128x128xbf16, #tpu.memory_space<vmem>>, vector<1x128x128xbf16>
    %666 = vector.shape_cast %665 : vector<1x128x128xbf16> to vector<128x128xbf16>
    %cst_816 = arith.constant dense<0.000000e+00> : vector<64x128xf32>
    %667 = tpu.matmul %664, %666, %cst_816 {dimension_numbers = #tpu.dot_dimension_numbers<[1], [0], [0], [1], [0, 0, 1, 1], [], []>} : vector<64x128xbf16>, vector<128x128xbf16>, vector<64x128xf32> -> vector<64x128xf32>
    %668 = arith.addf %660, %667 : vector<64x128xf32>
    %c0_817 = arith.constant 0 : index
    %c0_818 = arith.constant 0 : index
    %c0_819 = arith.constant 0 : index
    %c1_820 = arith.constant 1 : index
    %c1_821 = arith.constant 1 : index
    %c0_822 = arith.constant 0 : index
    %669 = vector.load %arg13[%c0_817, %c0_818, %c0_819, %c1_820, %c1_821, %c0_822] : memref<2x2x2x8x16x128xf32, #tpu.memory_space<vmem>>, vector<2x1x1x4x8x128xf32>
    %670 = vector.shape_cast %669 : vector<2x1x1x4x8x128xf32> to vector<2x4x8x128xf32>
    %671 = vector.shape_cast %670 : vector<2x4x8x128xf32> to vector<64x128xf32>
    %672 = arith.truncf %671 : vector<64x128xf32> to vector<64x128xbf16>
    %c6_823 = arith.constant 6 : index
    %c0_824 = arith.constant 0 : index
    %c0_825 = arith.constant 0 : index
    %673 = vector.load %arg4[%c6_823, %c0_824, %c0_825] : memref<25x128x128xbf16, #tpu.memory_space<vmem>>, vector<1x128x128xbf16>
    %674 = vector.shape_cast %673 : vector<1x128x128xbf16> to vector<128x128xbf16>
    %cst_826 = arith.constant dense<0.000000e+00> : vector<64x128xf32>
    %675 = tpu.matmul %672, %674, %cst_826 {dimension_numbers = #tpu.dot_dimension_numbers<[1], [0], [0], [1], [0, 0, 1, 1], [], []>} : vector<64x128xbf16>, vector<128x128xbf16>, vector<64x128xf32> -> vector<64x128xf32>
    %676 = arith.addf %668, %675 : vector<64x128xf32>
    %c0_827 = arith.constant 0 : index
    %c0_828 = arith.constant 0 : index
    %c1_829 = arith.constant 1 : index
    %c1_830 = arith.constant 1 : index
    %c1_831 = arith.constant 1 : index
    %c0_832 = arith.constant 0 : index
    %677 = vector.load %arg13[%c0_827, %c0_828, %c1_829, %c1_830, %c1_831, %c0_832] : memref<2x2x2x8x16x128xf32, #tpu.memory_space<vmem>>, vector<2x1x1x4x8x128xf32>
    %678 = vector.shape_cast %677 : vector<2x1x1x4x8x128xf32> to vector<2x4x8x128xf32>
    %679 = vector.shape_cast %678 : vector<2x4x8x128xf32> to vector<64x128xf32>
    %680 = arith.truncf %679 : vector<64x128xf32> to vector<64x128xbf16>
    %c7_833 = arith.constant 7 : index
    %c0_834 = arith.constant 0 : index
    %c0_835 = arith.constant 0 : index
    %681 = vector.load %arg4[%c7_833, %c0_834, %c0_835] : memref<25x128x128xbf16, #tpu.memory_space<vmem>>, vector<1x128x128xbf16>
    %682 = vector.shape_cast %681 : vector<1x128x128xbf16> to vector<128x128xbf16>
    %cst_836 = arith.constant dense<0.000000e+00> : vector<64x128xf32>
    %683 = tpu.matmul %680, %682, %cst_836 {dimension_numbers = #tpu.dot_dimension_numbers<[1], [0], [0], [1], [0, 0, 1, 1], [], []>} : vector<64x128xbf16>, vector<128x128xbf16>, vector<64x128xf32> -> vector<64x128xf32>
    %684 = arith.addf %676, %683 : vector<64x128xf32>
    %c0_837 = arith.constant 0 : index
    %c0_838 = arith.constant 0 : index
    %c0_839 = arith.constant 0 : index
    %c1_840 = arith.constant 1 : index
    %c2_841 = arith.constant 2 : index
    %c0_842 = arith.constant 0 : index
    %685 = vector.load %arg13[%c0_837, %c0_838, %c0_839, %c1_840, %c2_841, %c0_842] : memref<2x2x2x8x16x128xf32, #tpu.memory_space<vmem>>, vector<2x1x1x4x8x128xf32>
    %686 = vector.shape_cast %685 : vector<2x1x1x4x8x128xf32> to vector<2x4x8x128xf32>
    %687 = vector.shape_cast %686 : vector<2x4x8x128xf32> to vector<64x128xf32>
    %688 = arith.truncf %687 : vector<64x128xf32> to vector<64x128xbf16>
    %c8_843 = arith.constant 8 : index
    %c0_844 = arith.constant 0 : index
    %c0_845 = arith.constant 0 : index
    %689 = vector.load %arg4[%c8_843, %c0_844, %c0_845] : memref<25x128x128xbf16, #tpu.memory_space<vmem>>, vector<1x128x128xbf16>
    %690 = vector.shape_cast %689 : vector<1x128x128xbf16> to vector<128x128xbf16>
    %cst_846 = arith.constant dense<0.000000e+00> : vector<64x128xf32>
    %691 = tpu.matmul %688, %690, %cst_846 {dimension_numbers = #tpu.dot_dimension_numbers<[1], [0], [0], [1], [0, 0, 1, 1], [], []>} : vector<64x128xbf16>, vector<128x128xbf16>, vector<64x128xf32> -> vector<64x128xf32>
    %692 = arith.addf %684, %691 : vector<64x128xf32>
    %c0_847 = arith.constant 0 : index
    %c0_848 = arith.constant 0 : index
    %c1_849 = arith.constant 1 : index
    %c1_850 = arith.constant 1 : index
    %c2_851 = arith.constant 2 : index
    %c0_852 = arith.constant 0 : index
    %693 = vector.load %arg13[%c0_847, %c0_848, %c1_849, %c1_850, %c2_851, %c0_852] : memref<2x2x2x8x16x128xf32, #tpu.memory_space<vmem>>, vector<2x1x1x4x8x128xf32>
    %694 = vector.shape_cast %693 : vector<2x1x1x4x8x128xf32> to vector<2x4x8x128xf32>
    %695 = vector.shape_cast %694 : vector<2x4x8x128xf32> to vector<64x128xf32>
    %696 = arith.truncf %695 : vector<64x128xf32> to vector<64x128xbf16>
    %c9_853 = arith.constant 9 : index
    %c0_854 = arith.constant 0 : index
    %c0_855 = arith.constant 0 : index
    %697 = vector.load %arg4[%c9_853, %c0_854, %c0_855] : memref<25x128x128xbf16, #tpu.memory_space<vmem>>, vector<1x128x128xbf16>
    %698 = vector.shape_cast %697 : vector<1x128x128xbf16> to vector<128x128xbf16>
    %cst_856 = arith.constant dense<0.000000e+00> : vector<64x128xf32>
    %699 = tpu.matmul %696, %698, %cst_856 {dimension_numbers = #tpu.dot_dimension_numbers<[1], [0], [0], [1], [0, 0, 1, 1], [], []>} : vector<64x128xbf16>, vector<128x128xbf16>, vector<64x128xf32> -> vector<64x128xf32>
    %700 = arith.addf %692, %699 : vector<64x128xf32>
    %c0_857 = arith.constant 0 : index
    %c1_858 = arith.constant 1 : index
    %c1_859 = arith.constant 1 : index
    %c1_860 = arith.constant 1 : index
    %c0_861 = arith.constant 0 : index
    %c0_862 = arith.constant 0 : index
    %701 = vector.load %arg13[%c0_857, %c1_858, %c1_859, %c1_860, %c0_861, %c0_862] : memref<2x2x2x8x16x128xf32, #tpu.memory_space<vmem>>, vector<2x1x1x4x8x128xf32>
    %702 = vector.shape_cast %701 : vector<2x1x1x4x8x128xf32> to vector<2x4x8x128xf32>
    %703 = vector.shape_cast %702 : vector<2x4x8x128xf32> to vector<64x128xf32>
    %704 = arith.truncf %703 : vector<64x128xf32> to vector<64x128xbf16>
    %c10_863 = arith.constant 10 : index
    %c0_864 = arith.constant 0 : index
    %c0_865 = arith.constant 0 : index
    %705 = vector.load %arg4[%c10_863, %c0_864, %c0_865] : memref<25x128x128xbf16, #tpu.memory_space<vmem>>, vector<1x128x128xbf16>
    %706 = vector.shape_cast %705 : vector<1x128x128xbf16> to vector<128x128xbf16>
    %cst_866 = arith.constant dense<0.000000e+00> : vector<64x128xf32>
    %707 = tpu.matmul %704, %706, %cst_866 {dimension_numbers = #tpu.dot_dimension_numbers<[1], [0], [0], [1], [0, 0, 1, 1], [], []>} : vector<64x128xbf16>, vector<128x128xbf16>, vector<64x128xf32> -> vector<64x128xf32>
    %708 = arith.addf %700, %707 : vector<64x128xf32>
    %c0_867 = arith.constant 0 : index
    %c1_868 = arith.constant 1 : index
    %c0_869 = arith.constant 0 : index
    %c1_870 = arith.constant 1 : index
    %c1_871 = arith.constant 1 : index
    %c0_872 = arith.constant 0 : index
    %709 = vector.load %arg13[%c0_867, %c1_868, %c0_869, %c1_870, %c1_871, %c0_872] : memref<2x2x2x8x16x128xf32, #tpu.memory_space<vmem>>, vector<2x1x1x4x8x128xf32>
    %710 = vector.shape_cast %709 : vector<2x1x1x4x8x128xf32> to vector<2x4x8x128xf32>
    %711 = vector.shape_cast %710 : vector<2x4x8x128xf32> to vector<64x128xf32>
    %712 = arith.truncf %711 : vector<64x128xf32> to vector<64x128xbf16>
    %c11_873 = arith.constant 11 : index
    %c0_874 = arith.constant 0 : index
    %c0_875 = arith.constant 0 : index
    %713 = vector.load %arg4[%c11_873, %c0_874, %c0_875] : memref<25x128x128xbf16, #tpu.memory_space<vmem>>, vector<1x128x128xbf16>
    %714 = vector.shape_cast %713 : vector<1x128x128xbf16> to vector<128x128xbf16>
    %cst_876 = arith.constant dense<0.000000e+00> : vector<64x128xf32>
    %715 = tpu.matmul %712, %714, %cst_876 {dimension_numbers = #tpu.dot_dimension_numbers<[1], [0], [0], [1], [0, 0, 1, 1], [], []>} : vector<64x128xbf16>, vector<128x128xbf16>, vector<64x128xf32> -> vector<64x128xf32>
    %716 = arith.addf %708, %715 : vector<64x128xf32>
    %c0_877 = arith.constant 0 : index
    %c1_878 = arith.constant 1 : index
    %c1_879 = arith.constant 1 : index
    %c1_880 = arith.constant 1 : index
    %c1_881 = arith.constant 1 : index
    %c0_882 = arith.constant 0 : index
    %717 = vector.load %arg13[%c0_877, %c1_878, %c1_879, %c1_880, %c1_881, %c0_882] : memref<2x2x2x8x16x128xf32, #tpu.memory_space<vmem>>, vector<2x1x1x4x8x128xf32>
    %718 = vector.shape_cast %717 : vector<2x1x1x4x8x128xf32> to vector<2x4x8x128xf32>
    %719 = vector.shape_cast %718 : vector<2x4x8x128xf32> to vector<64x128xf32>
    %720 = arith.truncf %719 : vector<64x128xf32> to vector<64x128xbf16>
    %c12_883 = arith.constant 12 : index
    %c0_884 = arith.constant 0 : index
    %c0_885 = arith.constant 0 : index
    %721 = vector.load %arg4[%c12_883, %c0_884, %c0_885] : memref<25x128x128xbf16, #tpu.memory_space<vmem>>, vector<1x128x128xbf16>
    %722 = vector.shape_cast %721 : vector<1x128x128xbf16> to vector<128x128xbf16>
    %cst_886 = arith.constant dense<0.000000e+00> : vector<64x128xf32>
    %723 = tpu.matmul %720, %722, %cst_886 {dimension_numbers = #tpu.dot_dimension_numbers<[1], [0], [0], [1], [0, 0, 1, 1], [], []>} : vector<64x128xbf16>, vector<128x128xbf16>, vector<64x128xf32> -> vector<64x128xf32>
    %724 = arith.addf %716, %723 : vector<64x128xf32>
    %c0_887 = arith.constant 0 : index
    %c1_888 = arith.constant 1 : index
    %c0_889 = arith.constant 0 : index
    %c1_890 = arith.constant 1 : index
    %c2_891 = arith.constant 2 : index
    %c0_892 = arith.constant 0 : index
    %725 = vector.load %arg13[%c0_887, %c1_888, %c0_889, %c1_890, %c2_891, %c0_892] : memref<2x2x2x8x16x128xf32, #tpu.memory_space<vmem>>, vector<2x1x1x4x8x128xf32>
    %726 = vector.shape_cast %725 : vector<2x1x1x4x8x128xf32> to vector<2x4x8x128xf32>
    %727 = vector.shape_cast %726 : vector<2x4x8x128xf32> to vector<64x128xf32>
    %728 = arith.truncf %727 : vector<64x128xf32> to vector<64x128xbf16>
    %c13_893 = arith.constant 13 : index
    %c0_894 = arith.constant 0 : index
    %c0_895 = arith.constant 0 : index
    %729 = vector.load %arg4[%c13_893, %c0_894, %c0_895] : memref<25x128x128xbf16, #tpu.memory_space<vmem>>, vector<1x128x128xbf16>
    %730 = vector.shape_cast %729 : vector<1x128x128xbf16> to vector<128x128xbf16>
    %cst_896 = arith.constant dense<0.000000e+00> : vector<64x128xf32>
    %731 = tpu.matmul %728, %730, %cst_896 {dimension_numbers = #tpu.dot_dimension_numbers<[1], [0], [0], [1], [0, 0, 1, 1], [], []>} : vector<64x128xbf16>, vector<128x128xbf16>, vector<64x128xf32> -> vector<64x128xf32>
    %732 = arith.addf %724, %731 : vector<64x128xf32>
    %c0_897 = arith.constant 0 : index
    %c1_898 = arith.constant 1 : index
    %c1_899 = arith.constant 1 : index
    %c1_900 = arith.constant 1 : index
    %c2_901 = arith.constant 2 : index
    %c0_902 = arith.constant 0 : index
    %733 = vector.load %arg13[%c0_897, %c1_898, %c1_899, %c1_900, %c2_901, %c0_902] : memref<2x2x2x8x16x128xf32, #tpu.memory_space<vmem>>, vector<2x1x1x4x8x128xf32>
    %734 = vector.shape_cast %733 : vector<2x1x1x4x8x128xf32> to vector<2x4x8x128xf32>
    %735 = vector.shape_cast %734 : vector<2x4x8x128xf32> to vector<64x128xf32>
    %736 = arith.truncf %735 : vector<64x128xf32> to vector<64x128xbf16>
    %c14_903 = arith.constant 14 : index
    %c0_904 = arith.constant 0 : index
    %c0_905 = arith.constant 0 : index
    %737 = vector.load %arg4[%c14_903, %c0_904, %c0_905] : memref<25x128x128xbf16, #tpu.memory_space<vmem>>, vector<1x128x128xbf16>
    %738 = vector.shape_cast %737 : vector<1x128x128xbf16> to vector<128x128xbf16>
    %cst_906 = arith.constant dense<0.000000e+00> : vector<64x128xf32>
    %739 = tpu.matmul %736, %738, %cst_906 {dimension_numbers = #tpu.dot_dimension_numbers<[1], [0], [0], [1], [0, 0, 1, 1], [], []>} : vector<64x128xbf16>, vector<128x128xbf16>, vector<64x128xf32> -> vector<64x128xf32>
    %740 = arith.addf %732, %739 : vector<64x128xf32>
    %c0_907 = arith.constant 0 : index
    %c0_908 = arith.constant 0 : index
    %c1_909 = arith.constant 1 : index
    %c2_910 = arith.constant 2 : index
    %c0_911 = arith.constant 0 : index
    %c0_912 = arith.constant 0 : index
    %741 = vector.load %arg13[%c0_907, %c0_908, %c1_909, %c2_910, %c0_911, %c0_912] : memref<2x2x2x8x16x128xf32, #tpu.memory_space<vmem>>, vector<2x1x1x4x8x128xf32>
    %742 = vector.shape_cast %741 : vector<2x1x1x4x8x128xf32> to vector<2x4x8x128xf32>
    %743 = vector.shape_cast %742 : vector<2x4x8x128xf32> to vector<64x128xf32>
    %744 = arith.truncf %743 : vector<64x128xf32> to vector<64x128xbf16>
    %c15_913 = arith.constant 15 : index
    %c0_914 = arith.constant 0 : index
    %c0_915 = arith.constant 0 : index
    %745 = vector.load %arg4[%c15_913, %c0_914, %c0_915] : memref<25x128x128xbf16, #tpu.memory_space<vmem>>, vector<1x128x128xbf16>
    %746 = vector.shape_cast %745 : vector<1x128x128xbf16> to vector<128x128xbf16>
    %cst_916 = arith.constant dense<0.000000e+00> : vector<64x128xf32>
    %747 = tpu.matmul %744, %746, %cst_916 {dimension_numbers = #tpu.dot_dimension_numbers<[1], [0], [0], [1], [0, 0, 1, 1], [], []>} : vector<64x128xbf16>, vector<128x128xbf16>, vector<64x128xf32> -> vector<64x128xf32>
    %748 = arith.addf %740, %747 : vector<64x128xf32>
    %c0_917 = arith.constant 0 : index
    %c0_918 = arith.constant 0 : index
    %c0_919 = arith.constant 0 : index
    %c2_920 = arith.constant 2 : index
    %c1_921 = arith.constant 1 : index
    %c0_922 = arith.constant 0 : index
    %749 = vector.load %arg13[%c0_917, %c0_918, %c0_919, %c2_920, %c1_921, %c0_922] : memref<2x2x2x8x16x128xf32, #tpu.memory_space<vmem>>, vector<2x1x1x4x8x128xf32>
    %750 = vector.shape_cast %749 : vector<2x1x1x4x8x128xf32> to vector<2x4x8x128xf32>
    %751 = vector.shape_cast %750 : vector<2x4x8x128xf32> to vector<64x128xf32>
    %752 = arith.truncf %751 : vector<64x128xf32> to vector<64x128xbf16>
    %c16_923 = arith.constant 16 : index
    %c0_924 = arith.constant 0 : index
    %c0_925 = arith.constant 0 : index
    %753 = vector.load %arg4[%c16_923, %c0_924, %c0_925] : memref<25x128x128xbf16, #tpu.memory_space<vmem>>, vector<1x128x128xbf16>
    %754 = vector.shape_cast %753 : vector<1x128x128xbf16> to vector<128x128xbf16>
    %cst_926 = arith.constant dense<0.000000e+00> : vector<64x128xf32>
    %755 = tpu.matmul %752, %754, %cst_926 {dimension_numbers = #tpu.dot_dimension_numbers<[1], [0], [0], [1], [0, 0, 1, 1], [], []>} : vector<64x128xbf16>, vector<128x128xbf16>, vector<64x128xf32> -> vector<64x128xf32>
    %756 = arith.addf %748, %755 : vector<64x128xf32>
    %c0_927 = arith.constant 0 : index
    %c0_928 = arith.constant 0 : index
    %c1_929 = arith.constant 1 : index
    %c2_930 = arith.constant 2 : index
    %c1_931 = arith.constant 1 : index
    %c0_932 = arith.constant 0 : index
    %757 = vector.load %arg13[%c0_927, %c0_928, %c1_929, %c2_930, %c1_931, %c0_932] : memref<2x2x2x8x16x128xf32, #tpu.memory_space<vmem>>, vector<2x1x1x4x8x128xf32>
    %758 = vector.shape_cast %757 : vector<2x1x1x4x8x128xf32> to vector<2x4x8x128xf32>
    %759 = vector.shape_cast %758 : vector<2x4x8x128xf32> to vector<64x128xf32>
    %760 = arith.truncf %759 : vector<64x128xf32> to vector<64x128xbf16>
    %c17_933 = arith.constant 17 : index
    %c0_934 = arith.constant 0 : index
    %c0_935 = arith.constant 0 : index
    %761 = vector.load %arg4[%c17_933, %c0_934, %c0_935] : memref<25x128x128xbf16, #tpu.memory_space<vmem>>, vector<1x128x128xbf16>
    %762 = vector.shape_cast %761 : vector<1x128x128xbf16> to vector<128x128xbf16>
    %cst_936 = arith.constant dense<0.000000e+00> : vector<64x128xf32>
    %763 = tpu.matmul %760, %762, %cst_936 {dimension_numbers = #tpu.dot_dimension_numbers<[1], [0], [0], [1], [0, 0, 1, 1], [], []>} : vector<64x128xbf16>, vector<128x128xbf16>, vector<64x128xf32> -> vector<64x128xf32>
    %764 = arith.addf %756, %763 : vector<64x128xf32>
    %c0_937 = arith.constant 0 : index
    %c0_938 = arith.constant 0 : index
    %c0_939 = arith.constant 0 : index
    %c2_940 = arith.constant 2 : index
    %c2_941 = arith.constant 2 : index
    %c0_942 = arith.constant 0 : index
    %765 = vector.load %arg13[%c0_937, %c0_938, %c0_939, %c2_940, %c2_941, %c0_942] : memref<2x2x2x8x16x128xf32, #tpu.memory_space<vmem>>, vector<2x1x1x4x8x128xf32>
    %766 = vector.shape_cast %765 : vector<2x1x1x4x8x128xf32> to vector<2x4x8x128xf32>
    %767 = vector.shape_cast %766 : vector<2x4x8x128xf32> to vector<64x128xf32>
    %768 = arith.truncf %767 : vector<64x128xf32> to vector<64x128xbf16>
    %c18_943 = arith.constant 18 : index
    %c0_944 = arith.constant 0 : index
    %c0_945 = arith.constant 0 : index
    %769 = vector.load %arg4[%c18_943, %c0_944, %c0_945] : memref<25x128x128xbf16, #tpu.memory_space<vmem>>, vector<1x128x128xbf16>
    %770 = vector.shape_cast %769 : vector<1x128x128xbf16> to vector<128x128xbf16>
    %cst_946 = arith.constant dense<0.000000e+00> : vector<64x128xf32>
    %771 = tpu.matmul %768, %770, %cst_946 {dimension_numbers = #tpu.dot_dimension_numbers<[1], [0], [0], [1], [0, 0, 1, 1], [], []>} : vector<64x128xbf16>, vector<128x128xbf16>, vector<64x128xf32> -> vector<64x128xf32>
    %772 = arith.addf %764, %771 : vector<64x128xf32>
    %c0_947 = arith.constant 0 : index
    %c0_948 = arith.constant 0 : index
    %c1_949 = arith.constant 1 : index
    %c2_950 = arith.constant 2 : index
    %c2_951 = arith.constant 2 : index
    %c0_952 = arith.constant 0 : index
    %773 = vector.load %arg13[%c0_947, %c0_948, %c1_949, %c2_950, %c2_951, %c0_952] : memref<2x2x2x8x16x128xf32, #tpu.memory_space<vmem>>, vector<2x1x1x4x8x128xf32>
    %774 = vector.shape_cast %773 : vector<2x1x1x4x8x128xf32> to vector<2x4x8x128xf32>
    %775 = vector.shape_cast %774 : vector<2x4x8x128xf32> to vector<64x128xf32>
    %776 = arith.truncf %775 : vector<64x128xf32> to vector<64x128xbf16>
    %c19_953 = arith.constant 19 : index
    %c0_954 = arith.constant 0 : index
    %c0_955 = arith.constant 0 : index
    %777 = vector.load %arg4[%c19_953, %c0_954, %c0_955] : memref<25x128x128xbf16, #tpu.memory_space<vmem>>, vector<1x128x128xbf16>
    %778 = vector.shape_cast %777 : vector<1x128x128xbf16> to vector<128x128xbf16>
    %cst_956 = arith.constant dense<0.000000e+00> : vector<64x128xf32>
    %779 = tpu.matmul %776, %778, %cst_956 {dimension_numbers = #tpu.dot_dimension_numbers<[1], [0], [0], [1], [0, 0, 1, 1], [], []>} : vector<64x128xbf16>, vector<128x128xbf16>, vector<64x128xf32> -> vector<64x128xf32>
    %780 = arith.addf %772, %779 : vector<64x128xf32>
    %c0_957 = arith.constant 0 : index
    %c1_958 = arith.constant 1 : index
    %c1_959 = arith.constant 1 : index
    %c2_960 = arith.constant 2 : index
    %c0_961 = arith.constant 0 : index
    %c0_962 = arith.constant 0 : index
    %781 = vector.load %arg13[%c0_957, %c1_958, %c1_959, %c2_960, %c0_961, %c0_962] : memref<2x2x2x8x16x128xf32, #tpu.memory_space<vmem>>, vector<2x1x1x4x8x128xf32>
    %782 = vector.shape_cast %781 : vector<2x1x1x4x8x128xf32> to vector<2x4x8x128xf32>
    %783 = vector.shape_cast %782 : vector<2x4x8x128xf32> to vector<64x128xf32>
    %784 = arith.truncf %783 : vector<64x128xf32> to vector<64x128xbf16>
    %c20_963 = arith.constant 20 : index
    %c0_964 = arith.constant 0 : index
    %c0_965 = arith.constant 0 : index
    %785 = vector.load %arg4[%c20_963, %c0_964, %c0_965] : memref<25x128x128xbf16, #tpu.memory_space<vmem>>, vector<1x128x128xbf16>
    %786 = vector.shape_cast %785 : vector<1x128x128xbf16> to vector<128x128xbf16>
    %cst_966 = arith.constant dense<0.000000e+00> : vector<64x128xf32>
    %787 = tpu.matmul %784, %786, %cst_966 {dimension_numbers = #tpu.dot_dimension_numbers<[1], [0], [0], [1], [0, 0, 1, 1], [], []>} : vector<64x128xbf16>, vector<128x128xbf16>, vector<64x128xf32> -> vector<64x128xf32>
    %788 = arith.addf %780, %787 : vector<64x128xf32>
    %c0_967 = arith.constant 0 : index
    %c1_968 = arith.constant 1 : index
    %c0_969 = arith.constant 0 : index
    %c2_970 = arith.constant 2 : index
    %c1_971 = arith.constant 1 : index
    %c0_972 = arith.constant 0 : index
    %789 = vector.load %arg13[%c0_967, %c1_968, %c0_969, %c2_970, %c1_971, %c0_972] : memref<2x2x2x8x16x128xf32, #tpu.memory_space<vmem>>, vector<2x1x1x4x8x128xf32>
    %790 = vector.shape_cast %789 : vector<2x1x1x4x8x128xf32> to vector<2x4x8x128xf32>
    %791 = vector.shape_cast %790 : vector<2x4x8x128xf32> to vector<64x128xf32>
    %792 = arith.truncf %791 : vector<64x128xf32> to vector<64x128xbf16>
    %c21_973 = arith.constant 21 : index
    %c0_974 = arith.constant 0 : index
    %c0_975 = arith.constant 0 : index
    %793 = vector.load %arg4[%c21_973, %c0_974, %c0_975] : memref<25x128x128xbf16, #tpu.memory_space<vmem>>, vector<1x128x128xbf16>
    %794 = vector.shape_cast %793 : vector<1x128x128xbf16> to vector<128x128xbf16>
    %cst_976 = arith.constant dense<0.000000e+00> : vector<64x128xf32>
    %795 = tpu.matmul %792, %794, %cst_976 {dimension_numbers = #tpu.dot_dimension_numbers<[1], [0], [0], [1], [0, 0, 1, 1], [], []>} : vector<64x128xbf16>, vector<128x128xbf16>, vector<64x128xf32> -> vector<64x128xf32>
    %796 = arith.addf %788, %795 : vector<64x128xf32>
    %c0_977 = arith.constant 0 : index
    %c1_978 = arith.constant 1 : index
    %c1_979 = arith.constant 1 : index
    %c2_980 = arith.constant 2 : index
    %c1_981 = arith.constant 1 : index
    %c0_982 = arith.constant 0 : index
    %797 = vector.load %arg13[%c0_977, %c1_978, %c1_979, %c2_980, %c1_981, %c0_982] : memref<2x2x2x8x16x128xf32, #tpu.memory_space<vmem>>, vector<2x1x1x4x8x128xf32>
    %798 = vector.shape_cast %797 : vector<2x1x1x4x8x128xf32> to vector<2x4x8x128xf32>
    %799 = vector.shape_cast %798 : vector<2x4x8x128xf32> to vector<64x128xf32>
    %800 = arith.truncf %799 : vector<64x128xf32> to vector<64x128xbf16>
    %c22_983 = arith.constant 22 : index
    %c0_984 = arith.constant 0 : index
    %c0_985 = arith.constant 0 : index
    %801 = vector.load %arg4[%c22_983, %c0_984, %c0_985] : memref<25x128x128xbf16, #tpu.memory_space<vmem>>, vector<1x128x128xbf16>
    %802 = vector.shape_cast %801 : vector<1x128x128xbf16> to vector<128x128xbf16>
    %cst_986 = arith.constant dense<0.000000e+00> : vector<64x128xf32>
    %803 = tpu.matmul %800, %802, %cst_986 {dimension_numbers = #tpu.dot_dimension_numbers<[1], [0], [0], [1], [0, 0, 1, 1], [], []>} : vector<64x128xbf16>, vector<128x128xbf16>, vector<64x128xf32> -> vector<64x128xf32>
    %804 = arith.addf %796, %803 : vector<64x128xf32>
    %c0_987 = arith.constant 0 : index
    %c1_988 = arith.constant 1 : index
    %c0_989 = arith.constant 0 : index
    %c2_990 = arith.constant 2 : index
    %c2_991 = arith.constant 2 : index
    %c0_992 = arith.constant 0 : index
    %805 = vector.load %arg13[%c0_987, %c1_988, %c0_989, %c2_990, %c2_991, %c0_992] : memref<2x2x2x8x16x128xf32, #tpu.memory_space<vmem>>, vector<2x1x1x4x8x128xf32>
    %806 = vector.shape_cast %805 : vector<2x1x1x4x8x128xf32> to vector<2x4x8x128xf32>
    %807 = vector.shape_cast %806 : vector<2x4x8x128xf32> to vector<64x128xf32>
    %808 = arith.truncf %807 : vector<64x128xf32> to vector<64x128xbf16>
    %c23_993 = arith.constant 23 : index
    %c0_994 = arith.constant 0 : index
    %c0_995 = arith.constant 0 : index
    %809 = vector.load %arg4[%c23_993, %c0_994, %c0_995] : memref<25x128x128xbf16, #tpu.memory_space<vmem>>, vector<1x128x128xbf16>
    %810 = vector.shape_cast %809 : vector<1x128x128xbf16> to vector<128x128xbf16>
    %cst_996 = arith.constant dense<0.000000e+00> : vector<64x128xf32>
    %811 = tpu.matmul %808, %810, %cst_996 {dimension_numbers = #tpu.dot_dimension_numbers<[1], [0], [0], [1], [0, 0, 1, 1], [], []>} : vector<64x128xbf16>, vector<128x128xbf16>, vector<64x128xf32> -> vector<64x128xf32>
    %812 = arith.addf %804, %811 : vector<64x128xf32>
    %c0_997 = arith.constant 0 : index
    %c1_998 = arith.constant 1 : index
    %c1_999 = arith.constant 1 : index
    %c2_1000 = arith.constant 2 : index
    %c2_1001 = arith.constant 2 : index
    %c0_1002 = arith.constant 0 : index
    %813 = vector.load %arg13[%c0_997, %c1_998, %c1_999, %c2_1000, %c2_1001, %c0_1002] : memref<2x2x2x8x16x128xf32, #tpu.memory_space<vmem>>, vector<2x1x1x4x8x128xf32>
    %814 = vector.shape_cast %813 : vector<2x1x1x4x8x128xf32> to vector<2x4x8x128xf32>
    %815 = vector.shape_cast %814 : vector<2x4x8x128xf32> to vector<64x128xf32>
    %816 = arith.truncf %815 : vector<64x128xf32> to vector<64x128xbf16>
    %c24_1003 = arith.constant 24 : index
    %c0_1004 = arith.constant 0 : index
    %c0_1005 = arith.constant 0 : index
    %817 = vector.load %arg4[%c24_1003, %c0_1004, %c0_1005] : memref<25x128x128xbf16, #tpu.memory_space<vmem>>, vector<1x128x128xbf16>
    %818 = vector.shape_cast %817 : vector<1x128x128xbf16> to vector<128x128xbf16>
    %cst_1006 = arith.constant dense<0.000000e+00> : vector<64x128xf32>
    %819 = tpu.matmul %816, %818, %cst_1006 {dimension_numbers = #tpu.dot_dimension_numbers<[1], [0], [0], [1], [0, 0, 1, 1], [], []>} : vector<64x128xbf16>, vector<128x128xbf16>, vector<64x128xf32> -> vector<64x128xf32>
    %820 = arith.addf %812, %819 : vector<64x128xf32>
    %821 = arith.maximumf %621, %820 : vector<64x128xf32>
    %c0_1007 = arith.constant 0 : index
    %c0_1008 = arith.constant 0 : index
    %822 = vector.load %arg5[%c0_1007, %c0_1008] : memref<1x128xf32, #tpu.memory_space<vmem>>, vector<1x128xf32>
    %823 = vector.broadcast %822 : vector<1x128xf32> to vector<64x128xf32>
    %824 = arith.addf %821, %823 : vector<64x128xf32>
    %825 = vector.shape_cast %824 : vector<64x128xf32> to vector<2x32x128xf32>
    %c0_1009 = arith.constant 0 : index
    %c0_1010 = arith.constant 0 : index
    %c0_1011 = arith.constant 0 : index
    %826 = vector.load %arg14[%c0_1009, %c0_1010, %c0_1011] : memref<2x32x128xf32, #tpu.memory_space<vmem>>, vector<2x32x128xf32>
    tpu.vector_store %arg14[%c0_1009, %c0_1010, %c0_1011], %825 {strides = array<i32>} : memref<2x32x128xf32, #tpu.memory_space<vmem>>, vector<2x32x128xf32>,
    %c0_1012 = arith.constant 0 : index
    %c0_1013 = arith.constant 0 : index
    %c0_1014 = arith.constant 0 : index
    %827 = vector.load %arg14[%c0_1012, %c0_1013, %c0_1014] : memref<2x32x128xf32, #tpu.memory_space<vmem>>, vector<2x1x128xf32>
    %828 = vector.shape_cast %827 : vector<2x1x128xf32> to vector<2x128xf32>
    %c0_1015 = arith.constant 0 : index
    %c1_1016 = arith.constant 1 : index
    %c0_1017 = arith.constant 0 : index
    %829 = vector.load %arg14[%c0_1015, %c1_1016, %c0_1017] : memref<2x32x128xf32, #tpu.memory_space<vmem>>, vector<2x1x128xf32>
    %830 = vector.shape_cast %829 : vector<2x1x128xf32> to vector<2x128xf32>
    %c0_1018 = arith.constant 0 : index
    %c2_1019 = arith.constant 2 : index
    %c0_1020 = arith.constant 0 : index
    %831 = vector.load %arg14[%c0_1018, %c2_1019, %c0_1020] : memref<2x32x128xf32, #tpu.memory_space<vmem>>, vector<2x1x128xf32>
    %832 = vector.shape_cast %831 : vector<2x1x128xf32> to vector<2x128xf32>
    %c0_1021 = arith.constant 0 : index
    %c3_1022 = arith.constant 3 : index
    %c0_1023 = arith.constant 0 : index
    %833 = vector.load %arg14[%c0_1021, %c3_1022, %c0_1023] : memref<2x32x128xf32, #tpu.memory_space<vmem>>, vector<2x1x128xf32>
    %834 = vector.shape_cast %833 : vector<2x1x128xf32> to vector<2x128xf32>
    %c0_1024 = arith.constant 0 : index
    %c8_1025 = arith.constant 8 : index
    %c0_1026 = arith.constant 0 : index
    %835 = vector.load %arg14[%c0_1024, %c8_1025, %c0_1026] : memref<2x32x128xf32, #tpu.memory_space<vmem>>, vector<2x1x128xf32>
    %836 = vector.shape_cast %835 : vector<2x1x128xf32> to vector<2x128xf32>
    %c0_1027 = arith.constant 0 : index
    %c9_1028 = arith.constant 9 : index
    %c0_1029 = arith.constant 0 : index
    %837 = vector.load %arg14[%c0_1027, %c9_1028, %c0_1029] : memref<2x32x128xf32, #tpu.memory_space<vmem>>, vector<2x1x128xf32>
    %838 = vector.shape_cast %837 : vector<2x1x128xf32> to vector<2x128xf32>
    %c0_1030 = arith.constant 0 : index
    %c10_1031 = arith.constant 10 : index
    %c0_1032 = arith.constant 0 : index
    %839 = vector.load %arg14[%c0_1030, %c10_1031, %c0_1032] : memref<2x32x128xf32, #tpu.memory_space<vmem>>, vector<2x1x128xf32>
    %840 = vector.shape_cast %839 : vector<2x1x128xf32> to vector<2x128xf32>
    %c0_1033 = arith.constant 0 : index
    %c11_1034 = arith.constant 11 : index
    %c0_1035 = arith.constant 0 : index
    %841 = vector.load %arg14[%c0_1033, %c11_1034, %c0_1035] : memref<2x32x128xf32, #tpu.memory_space<vmem>>, vector<2x1x128xf32>
    %842 = vector.shape_cast %841 : vector<2x1x128xf32> to vector<2x128xf32>
    %c0_1036 = arith.constant 0 : index
    %c16_1037 = arith.constant 16 : index
    %c0_1038 = arith.constant 0 : index
    %843 = vector.load %arg14[%c0_1036, %c16_1037, %c0_1038] : memref<2x32x128xf32, #tpu.memory_space<vmem>>, vector<2x1x128xf32>
    %844 = vector.shape_cast %843 : vector<2x1x128xf32> to vector<2x128xf32>
    %c0_1039 = arith.constant 0 : index
    %c17_1040 = arith.constant 17 : index
    %c0_1041 = arith.constant 0 : index
    %845 = vector.load %arg14[%c0_1039, %c17_1040, %c0_1041] : memref<2x32x128xf32, #tpu.memory_space<vmem>>, vector<2x1x128xf32>
    %846 = vector.shape_cast %845 : vector<2x1x128xf32> to vector<2x128xf32>
    %c0_1042 = arith.constant 0 : index
    %c18_1043 = arith.constant 18 : index
    %c0_1044 = arith.constant 0 : index
    %847 = vector.load %arg14[%c0_1042, %c18_1043, %c0_1044] : memref<2x32x128xf32, #tpu.memory_space<vmem>>, vector<2x1x128xf32>
    %848 = vector.shape_cast %847 : vector<2x1x128xf32> to vector<2x128xf32>
    %c0_1045 = arith.constant 0 : index
    %c19_1046 = arith.constant 19 : index
    %c0_1047 = arith.constant 0 : index
    %849 = vector.load %arg14[%c0_1045, %c19_1046, %c0_1047] : memref<2x32x128xf32, #tpu.memory_space<vmem>>, vector<2x1x128xf32>
    %850 = vector.shape_cast %849 : vector<2x1x128xf32> to vector<2x128xf32>
    %c0_1048 = arith.constant 0 : index
    %c24_1049 = arith.constant 24 : index
    %c0_1050 = arith.constant 0 : index
    %851 = vector.load %arg14[%c0_1048, %c24_1049, %c0_1050] : memref<2x32x128xf32, #tpu.memory_space<vmem>>, vector<2x1x128xf32>
    %852 = vector.shape_cast %851 : vector<2x1x128xf32> to vector<2x128xf32>
    %c0_1051 = arith.constant 0 : index
    %c25 = arith.constant 25 : index
    %c0_1052 = arith.constant 0 : index
    %853 = vector.load %arg14[%c0_1051, %c25, %c0_1052] : memref<2x32x128xf32, #tpu.memory_space<vmem>>, vector<2x1x128xf32>
    %854 = vector.shape_cast %853 : vector<2x1x128xf32> to vector<2x128xf32>
    %c0_1053 = arith.constant 0 : index
    %c26 = arith.constant 26 : index
    %c0_1054 = arith.constant 0 : index
    %855 = vector.load %arg14[%c0_1053, %c26, %c0_1054] : memref<2x32x128xf32, #tpu.memory_space<vmem>>, vector<2x1x128xf32>
    %856 = vector.shape_cast %855 : vector<2x1x128xf32> to vector<2x128xf32>
    %c0_1055 = arith.constant 0 : index
    %c27 = arith.constant 27 : index
    %c0_1056 = arith.constant 0 : index
    %857 = vector.load %arg14[%c0_1055, %c27, %c0_1056] : memref<2x32x128xf32, #tpu.memory_space<vmem>>, vector<2x1x128xf32>
    %858 = vector.shape_cast %857 : vector<2x1x128xf32> to vector<2x128xf32>
    %859 = tpu.concatenate %828, %830, %832, %834, %836, %838, %840, %842, %844, %846, %848, %850, %852, %854, %856, %858 in 1 : vector<2x128xf32>, vector<2x128xf32>, vector<2x128xf32>, vector<2x128xf32>, vector<2x128xf32>, vector<2x128xf32>, vector<2x128xf32>, vector<2x128xf32>, vector<2x128xf32>, vector<2x128xf32>, vector<2x128xf32>, vector<2x128xf32>, vector<2x128xf32>, vector<2x128xf32>, vector<2x128xf32>, vector<2x128xf32> -> vector<2x2048xf32>
    %860 = arith.truncf %859 : vector<2x2048xf32> to vector<2x2048xbf16>
    %c0_1057 = arith.constant 0 : index
    %c0_1058 = arith.constant 0 : index
    %861 = vector.load %arg6[%c0_1057, %c0_1058] : memref<2048x128xbf16, #tpu.memory_space<vmem>>, vector<2048x128xbf16>
    %cst_1059 = arith.constant dense<0.000000e+00> : vector<2x128xf32>
    %862 = tpu.matmul %860, %861, %cst_1059 {dimension_numbers = #tpu.dot_dimension_numbers<[1], [0], [0], [1], [0, 0, 1, 1], [], []>} : vector<2x2048xbf16>, vector<2048x128xbf16>, vector<2x128xf32> -> vector<2x128xf32>
    %c0_1060 = arith.constant 0 : index
    %c0_1061 = arith.constant 0 : index
    %863 = vector.load %arg7[%c0_1060, %c0_1061] : memref<1x128xf32, #tpu.memory_space<vmem>>, vector<1x128xf32>
    %864 = vector.broadcast %863 : vector<1x128xf32> to vector<2x128xf32>
    %865 = arith.addf %862, %864 : vector<2x128xf32>
    %866 = arith.truncf %865 : vector<2x128xf32> to vector<2x128xbf16>
    %c0_1062 = arith.constant 0 : index
    %c0_1063 = arith.constant 0 : index
    %867 = vector.load %arg8[%c0_1062, %c0_1063] : memref<128x128xbf16, #tpu.memory_space<vmem>>, vector<128x128xbf16>
    %cst_1064 = arith.constant dense<0.000000e+00> : vector<2x128xf32>
    %868 = tpu.matmul %866, %867, %cst_1064 {dimension_numbers = #tpu.dot_dimension_numbers<[1], [0], [0], [1], [0, 0, 1, 1], [], []>} : vector<2x128xbf16>, vector<128x128xbf16>, vector<2x128xf32> -> vector<2x128xf32>
    %c0_1065 = arith.constant 0 : index
    %c0_1066 = arith.constant 0 : index
    %869 = vector.load %arg9[%c0_1065, %c0_1066] : memref<1x128xf32, #tpu.memory_space<vmem>>, vector<1x128xf32>
    %870 = vector.broadcast %869 : vector<1x128xf32> to vector<2x128xf32>
    %871 = arith.addf %868, %870 : vector<2x128xf32>
    %872 = arith.truncf %871 : vector<2x128xf32> to vector<2x128xbf16>
    %c0_1067 = arith.constant 0 : index
    %c0_1068 = arith.constant 0 : index
    %873 = vector.load %arg10[%c0_1067, %c0_1068] : memref<128x128xbf16, #tpu.memory_space<vmem>>, vector<128x128xbf16>
    %cst_1069 = arith.constant dense<0.000000e+00> : vector<2x128xf32>
    %874 = tpu.matmul %872, %873, %cst_1069 {dimension_numbers = #tpu.dot_dimension_numbers<[1], [0], [0], [1], [0, 0, 1, 1], [], []>} : vector<2x128xbf16>, vector<128x128xbf16>, vector<2x128xf32> -> vector<2x128xf32>
    %c0_1070 = arith.constant 0 : index
    %c0_1071 = arith.constant 0 : index
    %875 = vector.load %arg11[%c0_1070, %c0_1071] : memref<1x128xf32, #tpu.memory_space<vmem>>, vector<1x128xf32>
    %876 = vector.broadcast %875 : vector<1x128xf32> to vector<2x128xf32>
    %877 = arith.addf %874, %876 : vector<2x128xf32>
    %c0_1072 = arith.constant 0 : index
    %c0_1073 = arith.constant 0 : index
    %878 = vector.load %arg12[%c0_1072, %c0_1073] : memref<2x128xf32, #tpu.memory_space<vmem>>, vector<2x128xf32>
    tpu.vector_store %arg12[%c0_1072, %c0_1073], %877 {strides = array<i32>} : memref<2x128xf32, #tpu.memory_space<vmem>>, vector<2x128xf32>,
    return
  }
  func.func @transform_0(%arg0: i32) -> (i32, i32, i32) {
    %c0_i32 = arith.constant 0 : i32
    %c0_i32_0 = arith.constant 0 : i32
    %c0_i32_1 = arith.constant 0 : i32
    return %c0_i32, %arg0, %c0_i32_0 : i32, i32, i32
  }
  func.func @transform_1(%arg0: i32) -> (i32, i32) {
    %c0_i32 = arith.constant 0 : i32
    %c0_i32_0 = arith.constant 0 : i32
    %c0_i32_1 = arith.constant 0 : i32
    return %c0_i32, %c0_i32_0 : i32, i32
  }
  func.func @transform_2(%arg0: i32) -> (i32, i32) {
    %c0_i32 = arith.constant 0 : i32
    %c0_i32_0 = arith.constant 0 : i32
    %c0_i32_1 = arith.constant 0 : i32
    return %c0_i32, %c0_i32_0 : i32, i32
  }
  func.func @transform_3(%arg0: i32) -> (i32, i32, i32) {
    %c0_i32 = arith.constant 0 : i32
    %c0_i32_0 = arith.constant 0 : i32
    %c0_i32_1 = arith.constant 0 : i32
    %c0_i32_2 = arith.constant 0 : i32
    return %c0_i32, %c0_i32_0, %c0_i32_1 : i32, i32, i32
  }
  func.func @transform_4(%arg0: i32) -> (i32, i32) {
    %c0_i32 = arith.constant 0 : i32
    %c0_i32_0 = arith.constant 0 : i32
    %c0_i32_1 = arith.constant 0 : i32
    return %c0_i32, %c0_i32_0 : i32, i32
  }
  func.func @transform_5(%arg0: i32) -> (i32, i32) {
    %c0_i32 = arith.constant 0 : i32
    %c0_i32_0 = arith.constant 0 : i32
    %c0_i32_1 = arith.constant 0 : i32
    return %c0_i32, %c0_i32_0 : i32, i32
  }
  func.func @transform_6(%arg0: i32) -> (i32, i32) {
    %c0_i32 = arith.constant 0 : i32
    %c0_i32_0 = arith.constant 0 : i32
    %c0_i32_1 = arith.constant 0 : i32
    return %c0_i32, %c0_i32_0 : i32, i32
  }
  func.func @transform_7(%arg0: i32) -> (i32, i32) {
    %c0_i32 = arith.constant 0 : i32
    %c0_i32_0 = arith.constant 0 : i32
    %c0_i32_1 = arith.constant 0 : i32
    return %c0_i32, %c0_i32_0 : i32, i32
  }
  func.func @transform_8(%arg0: i32) -> (i32, i32) {
    %c0_i32 = arith.constant 0 : i32
    %c0_i32_0 = arith.constant 0 : i32
    %c0_i32_1 = arith.constant 0 : i32
    return %c0_i32, %c0_i32_0 : i32, i32
  }
  func.func @transform_9(%arg0: i32) -> (i32, i32) {
    %c0_i32 = arith.constant 0 : i32
    %c0_i32_0 = arith.constant 0 : i32
    %c0_i32_1 = arith.constant 0 : i32
    return %c0_i32, %c0_i32_0 : i32, i32
  }
  func.func @transform_10(%arg0: i32) -> (i32, i32) {
    %c0_i32 = arith.constant 0 : i32
    %c0_i32_0 = arith.constant 0 : i32
    %c0_i32_1 = arith.constant 0 : i32
    return %c0_i32, %c0_i32_0 : i32, i32
  }
  func.func @transform_11(%arg0: i32) -> (i32, i32) {
    %c0_i32 = arith.constant 0 : i32
    %c0_i32_0 = arith.constant 0 : i32
    return %arg0, %c0_i32 : i32, i32
  }
}

</mosaic_0001>

<bundles_post_ra>
// kernel: lenet_forward.1
= control target key start
LH: loop header
LB: loop body
LE: loop exit
PB: predicated region body
PF: predicated region fallthrough
CT: control target
= control target key end

     0   :  { %vm280_vm0 = vcmask 261120   ;;  %s24420_s0 = inlined_call_operand.vmem [shape: bf16[4,512,32], index: 0, kind: input, shape index: {}]   ;;  %s24421_s1 = inlined_call_operand.vmem [shape: bf16[32,128], index: 1, kind: input, shape index: {}]   ;;  %s24422_s2 = inlined_call_operand.vmem [shape: f32[1,128], index: 2, kind: input, shape index: {}]   ;;  %s24423_s3 = inlined_call_operand.vmem [shape: bf16[25,128,128], index: 3, kind: input, shape index: {}]   ;;  %s24424_s4 = inlined_call_operand.vmem [shape: f32[1,128], index: 4, kind: input, shape index: {}]   ;;  %s24425_s5 = inlined_call_operand.vmem [shape: bf16[2048,128], index: 5, kind: input, shape index: {}]   ;;  %s24426_s6 = inlined_call_operand.vmem [shape: f32[1,128], index: 6, kind: input, shape index: {}]   ;;  %s24427_s7 = inlined_call_operand.vmem [shape: bf16[128,128], index: 7, kind: input, shape index: {}]   ;;  %s24428_s8 = inlined_call_operand.vmem [shape: f32[1,128], index: 8, kind: input, shape index: {}]   ;;  %s24429_s9 = inlined_call_operand.vmem [shape: bf16[128,128], index: 9, kind: input, shape index: {}]   ;;  %s24430_s10 = inlined_call_operand.vmem [shape: f32[1,128], index: 10, kind: input, shape index: {}]   ;;  %s24431_s11 = inlined_call_operand.hbm [shape: f32[2,128], index: 11, kind: output, shape index: {}]  }
   0x1   :  { %v20152_v0 = vld [vmem:[%s24421_s1] sm:$0xff]   ;;  %v20153_v1 = vld [vmem:[%s24421_s1 + $0x8] sm:$0xff]   ;;  %v20158_v6 = vld [vmem:[%s24420_s0 + $0x10] sm:$0xff]  }
   0x2   :  { %16669 = vmatprep.subr.bf16.mxu0 %v20152_v0  ;;  %16737 = vmatprep.subr.bf16.mxu1 %v20152_v0  ;;  %v20154_v2 = vld [vmem:[%s24420_s0] sm:$0xff]   ;;  %v20156_v4 = vld [vmem:[%s24420_s0 + $0x8] sm:$0xff]   ;;  %v20159_v7 = vld [vmem:[%s24420_s0 + $0x110] sm:$0xff]  }
   0x3   :  { %16670 = vmatpush3.bf16.msra.mxu0 %v20152_v0  ;;  %16738 = vmatpush3.bf16.msra.mxu1 %v20152_v0  ;;  %v20155_v3 = vld [vmem:[%s24420_s0 + $0x100] sm:$0xff]   ;;  %v20157_v5 = vld [vmem:[%s24420_s0 + $0x108] sm:$0xff]   ;;  %v20160_v8 = vld [vmem:[%s24420_s0 + $0x18] sm:$0xff]  }
   0x4   :  { %16671 = vmatprep.subr.bf16.mxu0 %v20153_v1  ;;  %16739 = vmatprep.subr.bf16.mxu1 %v20153_v1  ;;  %v20161_v9 = vld [vmem:[%s24420_s0 + $0x118] sm:$0xff]   ;;  %v20162_v10 = vld [vmem:[%s24420_s0 + $0x20] sm:$0xff]   ;;  %v20164_v12 = vld [vmem:[%s24420_s0 + $0x28] sm:$0xff]  }
   0x5   :  { %16673 = vmatprep.mubr.msk.bf16.mxu0 %vm280_vm0, %v20154_v2  ;;  %16741 = vmatprep.mubr.msk.bf16.mxu1 %vm280_vm0, %v20155_v3  ;;  %v20163_v11 = vld [vmem:[%s24420_s0 + $0x120] sm:$0xff]   ;;  %v20165_v13 = vld [vmem:[%s24420_s0 + $0x128] sm:$0xff]   ;;  %v20166_v14 = vld [vmem:[%s24420_s0 + $0x30] sm:$0xff]  }
   0x6   :  { %v20167_v15 = vld [vmem:[%s24420_s0 + $0x130] sm:$0xff]   ;;  %v20168_v16 = vld [vmem:[%s24420_s0 + $0x38] sm:$0xff]   ;;  %v20170_v18 = vld [vmem:[%s24420_s0 + $0x40] sm:$0xff]  }
   0x7   :  { %16672 = vmatpush3.bf16.msra.mxu0 %v20153_v1  ;;  %16740 = vmatpush3.bf16.msra.mxu1 %v20153_v1  ;;  %v20169_v17 = vld [vmem:[%s24420_s0 + $0x138] sm:$0xff]   ;;  %v20171_v19 = vld [vmem:[%s24420_s0 + $0x140] sm:$0xff]   ;;  %v20172_v20 = vld [vmem:[%s24420_s0 + $0x48] sm:$0xff]  }
   0x8   :  { %16805 = vmatprep.subr.bf16.mxu0 %v20152_v0  ;;  %16873 = vmatprep.subr.bf16.mxu1 %v20152_v0  ;;  %v20173_v21 = vld [vmem:[%s24420_s0 + $0x148] sm:$0xff]   ;;  %v20174_v22 = vld [vmem:[%s24420_s0 + $0x50] sm:$0xff]   ;;  %v20176_v24 = vld [vmem:[%s24420_s0 + $0x58] sm:$0xff]  }
   0x9   :  { %v20175_v23 = vld [vmem:[%s24420_s0 + $0x150] sm:$0xff]   ;;  %v20177_v25 = vld [vmem:[%s24420_s0 + $0x158] sm:$0xff]   ;;  %v20178_v26 = vld [vmem:[%s24420_s0 + $0x60] sm:$0xff]  }
   0xa   :  { %16674 = vmatmul.mubr.msk.bf16.vlgmr.msra.gmra.mrb[0].mxu0 %vm280_vm0, %v20156_v4  ;;  %16742 = vmatmul.mubr.msk.bf16.vlgmr.msra.gmra.mrb[0].mxu1 %vm280_vm0, %v20157_v5  ;;  %v20179_v27 = vld [vmem:[%s24420_s0 + $0x160] sm:$0xff]   ;;  %v20180_v28 = vld [vmem:[%s24420_s0 + $0x68] sm:$0xff]   ;;  %v20182_v30 = vld [vmem:[%s24420_s0 + $0x70] sm:$0xff]  }
   0xb   :  { %16806 = vmatpush3.bf16.msra.mxu0 %v20152_v0  ;;  %16874 = vmatpush3.bf16.msra.mxu1 %v20152_v0  ;;  %v20181_v29 = vld [vmem:[%s24420_s0 + $0x168] sm:$0xff]   ;;  %v20183_v31 = vld [vmem:[%s24420_s0 + $0x170] sm:$0xff]   ;;  %v20184_v32 = vld [vmem:[%s24420_s0 + $0x78] sm:$0xff]  }
   0xc   :  { %16677 = vmatprep.mubr.msk.bf16.mxu0 %vm280_vm0, %v20158_v6  ;;  %16745 = vmatprep.mubr.msk.bf16.mxu1 %vm280_vm0, %v20159_v7  ;;  %v20185_v33 = vld [vmem:[%s24420_s0 + $0x178] sm:$0xff]   ;;  %v20186_v34 = vld [vmem:[%s24420_s0 + $0x80] sm:$0xff]   ;;  %v20188_v36 = vld [vmem:[%s24420_s0 + $0x88] sm:$0xff]  }
   0xd   :  { %16807 = vmatprep.subr.bf16.mxu0 %v20153_v1  ;;  %16875 = vmatprep.subr.bf16.mxu1 %v20153_v1  ;;  %v20187_v35 = vld [vmem:[%s24420_s0 + $0x180] sm:$0xff]   ;;  %v20189_v37 = vld [vmem:[%s24420_s0 + $0x188] sm:$0xff]   ;;  %v20190_v38 = vld [vmem:[%s24420_s0 + $0x90] sm:$0xff]  }
   0xe   :  { %v20191_v39 = vld [vmem:[%s24420_s0 + $0x190] sm:$0xff]   ;;  %v20192_v40 = vld [vmem:[%s24420_s0 + $0x98] sm:$0xff]   ;;  %v20194_v42 = vld [vmem:[%s24420_s0 + $0xa0] sm:$0xff]  }
   0xf   :  { %16808 = vmatpush3.bf16.msra.mxu0 %v20153_v1  ;;  %16876 = vmatpush3.bf16.msra.mxu1 %v20153_v1  ;;  %v20193_v41 = vld [vmem:[%s24420_s0 + $0x198] sm:$0xff]   ;;  %v20195_v43 = vld [vmem:[%s24420_s0 + $0x1a0] sm:$0xff]   ;;  %v20196_v44 = vld [vmem:[%s24420_s0 + $0xa8] sm:$0xff]  }
  0x10   :  { %v20197_v45 = vld [vmem:[%s24420_s0 + $0x1a8] sm:$0xff]   ;;  %v20198_v46 = vld [vmem:[%s24420_s0 + $0xb0] sm:$0xff]   ;;  %v20200_v48 = vld [vmem:[%s24420_s0 + $0xb8] sm:$0xff]  }
  0x11   :  { %v20199_v47 = vld [vmem:[%s24420_s0 + $0x1b0] sm:$0xff]   ;;  %v20201_v49 = vld [vmem:[%s24420_s0 + $0x1b8] sm:$0xff]   ;;  %v20202_v50 = vld [vmem:[%s24420_s0 + $0xc0] sm:$0xff]  }
  0x12   :  { %16678 = vmatmul.mubr.msk.bf16.gmra.mrb[4].mxu0 %vm280_vm0, %v20160_v8  ;;  %16746 = vmatmul.mubr.msk.bf16.gmra.mrb[4].mxu1 %vm280_vm0, %v20161_v9  ;;  %v20203_v51 = vld [vmem:[%s24420_s0 + $0x1c0] sm:$0xff]   ;;  %v20204_v52 = vld [vmem:[%s24420_s0 + $0xc8] sm:$0xff]   ;;  %v20206_v54 = vld [vmem:[%s24420_s0 + $0xd0] sm:$0xff]  }
  0x13   :  { %16681 = vmatprep.mubr.msk.bf16.mxu0 %vm280_vm0, %v20162_v10  ;;  %16749 = vmatprep.mubr.msk.bf16.mxu1 %vm280_vm0, %v20163_v11  ;;  %v20205_v53 = vld [vmem:[%s24420_s0 + $0x1c8] sm:$0xff]   ;;  %v20207_v55 = vld [vmem:[%s24420_s0 + $0x1d0] sm:$0xff]   ;;  %v20208_v56 = vld [vmem:[%s24420_s0 + $0xd8] sm:$0xff]  }
  0x14   :  { %v20209_v57 = vld [vmem:[%s24420_s0 + $0x1d8] sm:$0xff]   ;;  %v20210_v58 = vld [vmem:[%s24420_s0 + $0xe0] sm:$0xff]   ;;  %v20212_v60 = vld [vmem:[%s24420_s0 + $0xe8] sm:$0xff]  }
  0x15   :  { %v20211_v59 = vld [vmem:[%s24420_s0 + $0x1e0] sm:$0xff]   ;;  %v20213_v61 = vld [vmem:[%s24420_s0 + $0x1e8] sm:$0xff]   ;;  %v20214_v62 = vld [vmem:[%s24420_s0 + $0xf0] sm:$0xff]  }
  0x16   :  { %v20215_v63 = vld [vmem:[%s24420_s0 + $0x1f0] sm:$0xff]   ;;  %v20216_v0 = vld [vmem:[%s24420_s0 + $0xf8] sm:$0xff]   ;;  %v20218_v2 = vld [vmem:[%s24420_s0 + $0x200] sm:$0xff]  }
  0x17   :  { %v20217_v1 = vld [vmem:[%s24420_s0 + $0x1f8] sm:$0xff]   ;;  %v20219_v3 = vld [vmem:[%s24420_s0 + $0x300] sm:$0xff]   ;;  %v20220_v4 = vld [vmem:[%s24420_s0 + $0x208] sm:$0xff]  }
  0x18   :  { %v20221_v5 = vld [vmem:[%s24420_s0 + $0x308] sm:$0xff]   ;;  %v20222_v6 = vld [vmem:[%s24420_s0 + $0x210] sm:$0xff]   ;;  %v20224_v8 = vld [vmem:[%s24420_s0 + $0x218] sm:$0xff]  }
  0x19   :  { %v20223_v7 = vld [vmem:[%s24420_s0 + $0x310] sm:$0xff]   ;;  %v20225_v9 = vld [vmem:[%s24420_s0 + $0x318] sm:$0xff]   ;;  %v20226_v10 = vld [vmem:[%s24420_s0 + $0x220] sm:$0xff]  }
  0x1a   :  { %16682 = vmatmul.mubr.msk.bf16.gmra.mrb[8].mxu0 %vm280_vm0, %v20164_v12  ;;  %16750 = vmatmul.mubr.msk.bf16.gmra.mrb[8].mxu1 %vm280_vm0, %v20165_v13  ;;  %v20227_v11 = vld [vmem:[%s24420_s0 + $0x320] sm:$0xff]   ;;  %v20228_v12 = vld [vmem:[%s24420_s0 + $0x228] sm:$0xff]  }
  0x1b   :  { %16685 = vmatprep.mubr.msk.bf16.mxu0 %vm280_vm0, %v20166_v14  ;;  %16753 = vmatprep.mubr.msk.bf16.mxu1 %vm280_vm0, %v20167_v15  ;;  %v20229_v13 = vld [vmem:[%s24420_s0 + $0x328] sm:$0xff]   ;;  %v20230_v14 = vld [vmem:[%s24420_s0 + $0x230] sm:$0xff]  }
  0x1c   :  { %v20231_v15 = vld [vmem:[%s24420_s0 + $0x330] sm:$0xff]  }
  0x22   :  { %16686 = vmatmul.mubr.msk.bf16.gmra.mrb[12].mxu0 %vm280_vm0, %v20168_v16  ;;  %16754 = vmatmul.mubr.msk.bf16.gmra.mrb[12].mxu1 %vm280_vm0, %v20169_v17  ;;  %v20232_v16 = vld [vmem:[%s24420_s0 + $0x238] sm:$0xff]  }
  0x23   :  { %16689 = vmatprep.mubr.msk.bf16.mxu0 %vm280_vm0, %v20170_v18  ;;  %16757 = vmatprep.mubr.msk.bf16.mxu1 %vm280_vm0, %v20171_v19  ;;  %v20233_v17 = vld [vmem:[%s24420_s0 + $0x338] sm:$0xff]   ;;  %v20234_v18 = vld [vmem:[%s24420_s0 + $0x240] sm:$0xff]  }
  0x24   :  { %v20235_v19 = vld [vmem:[%s24420_s0 + $0x340] sm:$0xff]  }
  0x2a   :  { %16690 = vmatmul.mubr.msk.bf16.gmra.mrb[16].mxu0 %vm280_vm0, %v20172_v20  ;;  %16758 = vmatmul.mubr.msk.bf16.gmra.mrb[16].mxu1 %vm280_vm0, %v20173_v21  ;;  %v20236_v20 = vld [vmem:[%s24420_s0 + $0x248] sm:$0xff]  }
  0x2b   :  { %16693 = vmatprep.mubr.msk.bf16.mxu0 %vm280_vm0, %v20174_v22  ;;  %16761 = vmatprep.mubr.msk.bf16.mxu1 %vm280_vm0, %v20175_v23  ;;  %v20237_v21 = vld [vmem:[%s24420_s0 + $0x348] sm:$0xff]   ;;  %v20238_v22 = vld [vmem:[%s24420_s0 + $0x250] sm:$0xff]  }
  0x2c   :  { %v20239_v23 = vld [vmem:[%s24420_s0 + $0x350] sm:$0xff]  }
  0x32   :  { %16694 = vmatmul.mubr.msk.bf16.gmra.mrb[20].mxu0 %vm280_vm0, %v20176_v24  ;;  %16762 = vmatmul.mubr.msk.bf16.gmra.mrb[20].mxu1 %vm280_vm0, %v20177_v25  ;;  %v20282_v24 = vld [vmem:[%s24423_s3 + $0x40] sm:$0xff]   ;;  %v20240_v25 = vld [vmem:[%s24420_s0 + $0x258] sm:$0xff]  }
  0x33   :  { %16697 = vmatprep.mubr.msk.bf16.mxu0 %vm280_vm0, %v20178_v26  ;;  %16765 = vmatprep.mubr.msk.bf16.mxu1 %vm280_vm0, %v20179_v27  ;;  %v20241_v26 = vld [vmem:[%s24420_s0 + $0x358] sm:$0xff]   ;;  %v20242_v27 = vld [vmem:[%s24420_s0 + $0x260] sm:$0xff]  }
  0x34   :  { %16941 = vmatprep.subr.bf16.mxu0 %v20282_v24  ;;  %17541 = vmatprep.subr.bf16.mxu1 %v20282_v24 }
  0x3a   :  { %16698 = vmatmul.mubr.msk.bf16.gmra.mrb[24].mxu0 %vm280_vm0, %v20180_v28  ;;  %16766 = vmatmul.mubr.msk.bf16.gmra.mrb[24].mxu1 %vm280_vm0, %v20181_v29  ;;  %v20243_v28 = vld [vmem:[%s24420_s0 + $0x360] sm:$0xff]   ;;  %v20244_v29 = vld [vmem:[%s24420_s0 + $0x268] sm:$0xff]  }
  0x3b   :  { %16701 = vmatprep.mubr.msk.bf16.mxu0 %vm280_vm0, %v20182_v30  ;;  %16769 = vmatprep.mubr.msk.bf16.mxu1 %vm280_vm0, %v20183_v31  ;;  %v20245_v30 = vld [vmem:[%s24420_s0 + $0x368] sm:$0xff]   ;;  %v20246_v31 = vld [vmem:[%s24420_s0 + $0x270] sm:$0xff]  }
  0x42   :  { %16702 = vmatmul.mubr.msk.bf16.gmra.mrb[28].mxu0 %vm280_vm0, %v20184_v32  ;;  %16770 = vmatmul.mubr.msk.bf16.gmra.mrb[28].mxu1 %vm280_vm0, %v20185_v33  ;;  %v20247_v32 = vld [vmem:[%s24420_s0 + $0x370] sm:$0xff]   ;;  %v20283_v33 = vld [vmem:[%s24423_s3 + $0x48] sm:$0xff]  }
  0x43   :  { %16705 = vmatprep.mubr.msk.bf16.mxu0 %vm280_vm0, %v20186_v34  ;;  %16773 = vmatprep.mubr.msk.bf16.mxu1 %vm280_vm0, %v20187_v35  ;;  %v20248_v34 = vld [vmem:[%s24420_s0 + $0x278] sm:$0xff]  }
  0x44   :  { %v20249_v35 = vld [vmem:[%s24420_s0 + $0x378] sm:$0xff]  }
  0x4a   :  { %16706 = vmatmul.mubr.msk.bf16.gmra.mrb[32].mxu0 %vm280_vm0, %v20188_v36  ;;  %16774 = vmatmul.mubr.msk.bf16.gmra.mrb[32].mxu1 %vm280_vm0, %v20189_v37  ;;  %v20250_v36 = vld [vmem:[%s24420_s0 + $0x280] sm:$0xff]  }
  0x4b   :  { %16709 = vmatprep.mubr.msk.bf16.mxu0 %vm280_vm0, %v20190_v38  ;;  %16777 = vmatprep.mubr.msk.bf16.mxu1 %vm280_vm0, %v20191_v39  ;;  %v20251_v37 = vld [vmem:[%s24420_s0 + $0x380] sm:$0xff]   ;;  %v20252_v38 = vld [vmem:[%s24420_s0 + $0x288] sm:$0xff]  }
  0x4c   :  { %v20253_v39 = vld [vmem:[%s24420_s0 + $0x388] sm:$0xff]  }
  0x52   :  { %16710 = vmatmul.mubr.msk.bf16.gmra.mrb[36].mxu0 %vm280_vm0, %v20192_v40  ;;  %16778 = vmatmul.mubr.msk.bf16.gmra.mrb[36].mxu1 %vm280_vm0, %v20193_v41  ;;  %v20254_v40 = vld [vmem:[%s24420_s0 + $0x290] sm:$0xff]  }
  0x53   :  { %16713 = vmatprep.mubr.msk.bf16.mxu0 %vm280_vm0, %v20194_v42  ;;  %16781 = vmatprep.mubr.msk.bf16.mxu1 %vm280_vm0, %v20195_v43  ;;  %v20255_v41 = vld [vmem:[%s24420_s0 + $0x390] sm:$0xff]   ;;  %v20256_v43 = vld [vmem:[%s24420_s0 + $0x298] sm:$0xff]  }
  0x54   :  { %v20284_v42 = vld [vmem:[%s24423_s3 + $0x50] sm:$0xff]  }
  0x5a   :  { %16714 = vmatmul.mubr.msk.bf16.gmra.mrb[40].mxu0 %vm280_vm0, %v20196_v44  ;;  %16782 = vmatmul.mubr.msk.bf16.gmra.mrb[40].mxu1 %vm280_vm0, %v20197_v45  ;;  %v20257_v44 = vld [vmem:[%s24420_s0 + $0x398] sm:$0xff]   ;;  %v20258_v45 = vld [vmem:[%s24420_s0 + $0x2a0] sm:$0xff]  }
  0x5b   :  { %16717 = vmatprep.mubr.msk.bf16.mxu0 %vm280_vm0, %v20198_v46  ;;  %16785 = vmatprep.mubr.msk.bf16.mxu1 %vm280_vm0, %v20199_v47  ;;  %v20259_v46 = vld [vmem:[%s24420_s0 + $0x3a0] sm:$0xff]   ;;  %v20260_v47 = vld [vmem:[%s24420_s0 + $0x2a8] sm:$0xff]  }
  0x62   :  { %16718 = vmatmul.mubr.msk.bf16.gmra.mrb[44].mxu0 %vm280_vm0, %v20200_v48  ;;  %16786 = vmatmul.mubr.msk.bf16.gmra.mrb[44].mxu1 %vm280_vm0, %v20201_v49  ;;  %v20261_v48 = vld [vmem:[%s24420_s0 + $0x3a8] sm:$0xff]   ;;  %v20262_v49 = vld [vmem:[%s24420_s0 + $0x2b0] sm:$0xff]  }
  0x63   :  { %16721 = vmatprep.mubr.msk.bf16.mxu0 %vm280_vm0, %v20202_v50  ;;  %16789 = vmatprep.mubr.msk.bf16.mxu1 %vm280_vm0, %v20203_v51  ;;  %v20264_v50 = vld [vmem:[%s24420_s0 + $0x3b0] sm:$0xff]   ;;  %v20285_v51 = vld [vmem:[%s24423_s3 + $0x58] sm:$0xff]  }
  0x6a   :  { %16722 = vmatmul.mubr.msk.bf16.gmra.mrb[48].mxu0 %vm280_vm0, %v20204_v52  ;;  %16790 = vmatmul.mubr.msk.bf16.gmra.mrb[48].mxu1 %vm280_vm0, %v20205_v53  ;;  %v20263_v52 = vld [vmem:[%s24420_s0 + $0x2b8] sm:$0xff]  }
  0x6b   :  { %16725 = vmatprep.mubr.msk.bf16.mxu0 %vm280_vm0, %v20206_v54  ;;  %16793 = vmatprep.mubr.msk.bf16.mxu1 %vm280_vm0, %v20207_v55  ;;  %v20265_v53 = vld [vmem:[%s24420_s0 + $0x3b8] sm:$0xff]  }
  0x72   :  { %16726 = vmatmul.mubr.msk.bf16.gmra.mrb[52].mxu0 %vm280_vm0, %v20208_v56  ;;  %16794 = vmatmul.mubr.msk.bf16.gmra.mrb[52].mxu1 %vm280_vm0, %v20209_v57  ;;  %v20266_v56 = vld [vmem:[%s24420_s0 + $0x2c0] sm:$0xff]  }
  0x73   :  { %16729 = vmatprep.mubr.msk.bf16.mxu0 %vm280_vm0, %v20210_v58  ;;  %16797 = vmatprep.mubr.msk.bf16.mxu1 %vm280_vm0, %v20211_v59  ;;  %v20268_v57 = vld [vmem:[%s24420_s0 + $0x3c0] sm:$0xff]  }
  0x7a   :  { %16730 = vmatmul.mubr.msk.bf16.gmra.mrb[56].mxu0 %vm280_vm0, %v20212_v60  ;;  %16798 = vmatmul.mubr.msk.bf16.gmra.mrb[56].mxu1 %vm280_vm0, %v20213_v61 }
  0x7b   :  { %16733 = vmatprep.mubr.msk.bf16.mxu0 %vm280_vm0, %v20214_v62  ;;  %16801 = vmatprep.mubr.msk.bf16.mxu1 %vm280_vm0, %v20215_v63 }
  0x82   :  { %16734 = vmatmul.mubr.msk.bf16.gmra.mrb[60].mxu0 %vm280_vm0, %v20216_v0  ;;  %16802 = vmatmul.mubr.msk.bf16.gmra.mrb[60].mxu1 %vm280_vm0, %v20217_v1 }
  0x83   :  { %16809 = vmatprep.mubr.msk.bf16.mxu0 %vm280_vm0, %v20218_v2  ;;  %16877 = vmatprep.mubr.msk.bf16.mxu1 %vm280_vm0, %v20219_v3  ;;  %v21410_v3 = vld [vmem:[%s24423_s3 + $0x60] sm:$0xff]  }
  0x8a   :  { %16810 = vmatmul.mubr.msk.bf16.vlgmr.msra.gmra.mrb[64].mxu0 %vm280_vm0, %v20220_v4  ;;  %16878 = vmatmul.mubr.msk.bf16.vlgmr.msra.gmra.mrb[64].mxu1 %vm280_vm0, %v20221_v5  ;;  %v21421_v5 = vld [vmem:[%s24420_s0 + $0x2c8] sm:$0xff]  }
  0x8b   :  { %16813 = vmatprep.mubr.msk.bf16.mxu0 %vm280_vm0, %v20222_v6  ;;  %16881 = vmatprep.mubr.msk.bf16.mxu1 %vm280_vm0, %v20223_v7  ;;  %v21426_v6 = vld [vmem:[%s24420_s0 + $0x3c8] sm:$0xff]  }
  0x8c   :  { %16942 = vmatpush3.bf16.msra.mxu0 %v20282_v24  ;;  %17542 = vmatpush3.bf16.msra.mxu1 %v20282_v24  ;;  %v21432_v7 = vld [vmem:[%s24423_s3 + $0x68] sm:$0xff]   ;;  %v20289_v24 = vld [vmem:[%s24423_s3 + $0x78] sm:$0xff]  }
  0x8d   :  { %16943 = vmatprep.subr.bf16.mxu0 %v20283_v33  ;;  %17543 = vmatprep.subr.bf16.mxu1 %v20283_v33 }
  0x90   :  { %16944 = vmatpush3.bf16.msra.mxu0 %v20283_v33  ;;  %17544 = vmatpush3.bf16.msra.mxu1 %v20283_v33 }
  0x91   :  { %16945 = vmatprep.subr.bf16.mxu0 %v20284_v42  ;;  %17545 = vmatprep.subr.bf16.mxu1 %v20284_v42 }
  0x92   :  { %16814 = vmatmul.mubr.msk.bf16.gmra.mrb[68].mxu0 %vm280_vm0, %v20224_v8  ;;  %16882 = vmatmul.mubr.msk.bf16.gmra.mrb[68].mxu1 %vm280_vm0, %v20225_v9  ;;  %v20852_v8 = vmov 0.0  }
  0x93   :  { %16817 = vmatprep.mubr.msk.bf16.mxu0 %vm280_vm0, %v20226_v10  ;;  %16885 = vmatprep.mubr.msk.bf16.mxu1 %vm280_vm0, %v20227_v11  ;;  %2823 = vst [vmem:[#allocation2 + $0x8] sm:$0xff] %v20852_v8  ;;  %2824 = vst [vmem:[#allocation2 + $0x18] sm:$0xff] %v20852_v8  ;;  %v20270_v11 = vld [vmem:[%s24420_s0 + $0x2d0] sm:$0xff]  }
  0x94   :  { %16946 = vmatpush3.bf16.msra.mxu0 %v20284_v42  ;;  %17546 = vmatpush3.bf16.msra.mxu1 %v20284_v42  ;;  %2825 = vst [vmem:[#allocation2 + $0x28] sm:$0xff] %v20852_v8  ;;  %2826 = vst [vmem:[#allocation2 + $0x38] sm:$0xff] %v20852_v8 }
  0x95   :  { %16947 = vmatprep.subr.bf16.mxu0 %v20285_v51  ;;  %17547 = vmatprep.subr.bf16.mxu1 %v20285_v51  ;;  %2827 = vst [vmem:[#allocation2 + $0x48] sm:$0xff] %v20852_v8  ;;  %2828 = vst [vmem:[#allocation2 + $0x58] sm:$0xff] %v20852_v8 }
  0x96   :  { %2831 = vst [vmem:[#allocation2 + $0x88] sm:$0xff] %v20852_v8  ;;  %2832 = vst [vmem:[#allocation2 + $0x98] sm:$0xff] %v20852_v8 }
  0x97   :  { %2833 = vst [vmem:[#allocation2 + $0xa8] sm:$0xff] %v20852_v8  ;;  %2834 = vst [vmem:[#allocation2 + $0xb8] sm:$0xff] %v20852_v8 }
  0x98   :  { %16948 = vmatpush3.bf16.msra.mxu0 %v20285_v51  ;;  %17548 = vmatpush3.bf16.msra.mxu1 %v20285_v51  ;;  %2835 = vst [vmem:[#allocation2 + $0xc8] sm:$0xff] %v20852_v8  ;;  %2836 = vst [vmem:[#allocation2 + $0xd8] sm:$0xff] %v20852_v8 }
  0x99   :  { %17549 = vmatprep.subr.bf16.mxu1 %v21410_v3  ;;  %16949 = vmatprep.subr.bf16.mxu0 %v21410_v3  ;;  %2839 = vst [vmem:[#allocation2 + $0x108] sm:$0xff] %v20852_v8  ;;  %2840 = vst [vmem:[#allocation2 + $0x118] sm:$0xff] %v20852_v8 }
  0x9a   :  { %16818 = vmatmul.mubr.msk.bf16.gmra.mrb[72].mxu0 %vm280_vm0, %v20228_v12  ;;  %16886 = vmatmul.mubr.msk.bf16.gmra.mrb[72].mxu1 %vm280_vm0, %v20229_v13  ;;  %2841 = vst [vmem:[#allocation2 + $0x128] sm:$0xff] %v20852_v8  ;;  %2842 = vst [vmem:[#allocation2 + $0x138] sm:$0xff] %v20852_v8  ;;  %v20272_v12 = vld [vmem:[%s24420_s0 + $0x3d0] sm:$0xff]  }
  0x9b   :  { %16821 = vmatprep.mubr.msk.bf16.mxu0 %vm280_vm0, %v20230_v14  ;;  %16889 = vmatprep.mubr.msk.bf16.mxu1 %vm280_vm0, %v20231_v15  ;;  %2843 = vst [vmem:[#allocation2 + $0x148] sm:$0xff] %v20852_v8  ;;  %2844 = vst [vmem:[#allocation2 + $0x158] sm:$0xff] %v20852_v8 }
  0x9c   :  { %2847 = vst [vmem:[#allocation2 + $0x188] sm:$0xff] %v20852_v8  ;;  %2848 = vst [vmem:[#allocation2 + $0x198] sm:$0xff] %v20852_v8  ;;  %17550 = vmatpush3.bf16.msra.mxu1 %v21410_v3  ;;  %16950 = vmatpush3.bf16.msra.mxu0 %v21410_v3 }
  0x9d   :  { %2849 = vst [vmem:[#allocation2 + $0x1a8] sm:$0xff] %v20852_v8  ;;  %2850 = vst [vmem:[#allocation2 + $0x1b8] sm:$0xff] %v20852_v8  ;;  %17551 = vmatprep.subr.bf16.mxu1 %v21432_v7  ;;  %16951 = vmatprep.subr.bf16.mxu0 %v21432_v7 }
  0x9e   :  { %2851 = vst [vmem:[#allocation2 + $0x1c8] sm:$0xff] %v20852_v8  ;;  %2852 = vst [vmem:[#allocation2 + $0x1d8] sm:$0xff] %v20852_v8 }
  0x9f   :  { %2855 = vst [vmem:[#allocation2 + $0x208] sm:$0xff] %v20852_v8  ;;  %2856 = vst [vmem:[#allocation2 + $0x218] sm:$0xff] %v20852_v8 }
  0xa0   :  { %2857 = vst [vmem:[#allocation2 + $0x228] sm:$0xff] %v20852_v8  ;;  %2858 = vst [vmem:[#allocation2 + $0x238] sm:$0xff] %v20852_v8  ;;  %17552 = vmatpush3.bf16.msra.mxu1 %v21432_v7  ;;  %16952 = vmatpush3.bf16.msra.mxu0 %v21432_v7 }
  0xa1   :  { %2859 = vst [vmem:[#allocation2 + $0x248] sm:$0xff] %v20852_v8  ;;  %2860 = vst [vmem:[#allocation2 + $0x258] sm:$0xff] %v20852_v8 }
  0xa2   :  { %16822 = vmatmul.mubr.msk.bf16.gmra.mrb[76].mxu0 %vm280_vm0, %v20232_v16  ;;  %16890 = vmatmul.mubr.msk.bf16.gmra.mrb[76].mxu1 %vm280_vm0, %v20233_v17  ;;  %2863 = vst [vmem:[#allocation2 + $0x288] sm:$0xff] %v20852_v8  ;;  %2864 = vst [vmem:[#allocation2 + $0x298] sm:$0xff] %v20852_v8 }
  0xa3   :  { %16825 = vmatprep.mubr.msk.bf16.mxu0 %vm280_vm0, %v20234_v18  ;;  %16893 = vmatprep.mubr.msk.bf16.mxu1 %vm280_vm0, %v20235_v19  ;;  %2865 = vst [vmem:[#allocation2 + $0x2a8] sm:$0xff] %v20852_v8  ;;  %2866 = vst [vmem:[#allocation2 + $0x2b8] sm:$0xff] %v20852_v8 }
  0xa4   :  { %2867 = vst [vmem:[#allocation2 + $0x2c8] sm:$0xff] %v20852_v8  ;;  %2868 = vst [vmem:[#allocation2 + $0x2d8] sm:$0xff] %v20852_v8 }
  0xa5   :  { %2871 = vst [vmem:[#allocation2 + $0x308] sm:$0xff] %v20852_v8  ;;  %2872 = vst [vmem:[#allocation2 + $0x318] sm:$0xff] %v20852_v8 }
  0xa6   :  { %2873 = vst [vmem:[#allocation2 + $0x328] sm:$0xff] %v20852_v8  ;;  %2874 = vst [vmem:[#allocation2 + $0x338] sm:$0xff] %v20852_v8 }
  0xa7   :  { %2875 = vst [vmem:[#allocation2 + $0x348] sm:$0xff] %v20852_v8  ;;  %2876 = vst [vmem:[#allocation2 + $0x358] sm:$0xff] %v20852_v8 }
  0xa8   :  { %2879 = vst [vmem:[#allocation2 + $0x388] sm:$0xff] %v20852_v8  ;;  %2880 = vst [vmem:[#allocation2 + $0x398] sm:$0xff] %v20852_v8 }
  0xa9   :  { %2881 = vst [vmem:[#allocation2 + $0x3a8] sm:$0xff] %v20852_v8  ;;  %2882 = vst [vmem:[#allocation2 + $0x3b8] sm:$0xff] %v20852_v8 }
  0xaa   :  { %16826 = vmatmul.mubr.msk.bf16.gmra.mrb[80].mxu0 %vm280_vm0, %v20236_v20  ;;  %16894 = vmatmul.mubr.msk.bf16.gmra.mrb[80].mxu1 %vm280_vm0, %v20237_v21  ;;  %2883 = vst [vmem:[#allocation2 + $0x3c8] sm:$0xff] %v20852_v8  ;;  %2884 = vst [vmem:[#allocation2 + $0x3d8] sm:$0xff] %v20852_v8  ;;  %v20288_v20 = vld [vmem:[%s24423_s3 + $0x70] sm:$0xff]  }
  0xab   :  { %16829 = vmatprep.mubr.msk.bf16.mxu0 %vm280_vm0, %v20238_v22  ;;  %16897 = vmatprep.mubr.msk.bf16.mxu1 %vm280_vm0, %v20239_v23  ;;  %v20271_v22 = vld [vmem:[%s24420_s0 + $0x2d8] sm:$0xff]  }
  0xac   :  { %v20273_v23 = vld [vmem:[%s24420_s0 + $0x3d8] sm:$0xff]   ;;  %17553 = vmatprep.subr.bf16.mxu1 %v20288_v20  ;;  %16953 = vmatprep.subr.bf16.mxu0 %v20288_v20 }
  0xad   :  { %17554 = vmatpush3.bf16.msra.mxu1 %v20288_v20  ;;  %16954 = vmatpush3.bf16.msra.mxu0 %v20288_v20 }
  0xae   :  { %17555 = vmatprep.subr.bf16.mxu1 %v20289_v24  ;;  %16955 = vmatprep.subr.bf16.mxu0 %v20289_v24 }
  0xb1   :  { %17556 = vmatpush3.bf16.msra.mxu1 %v20289_v24  ;;  %16956 = vmatpush3.bf16.msra.mxu0 %v20289_v24 }
  0xb2   :  { %16830 = vmatmul.mubr.msk.bf16.gmra.mrb[84].mxu0 %vm280_vm0, %v20240_v25  ;;  %16898 = vmatmul.mubr.msk.bf16.gmra.mrb[84].mxu1 %vm280_vm0, %v20241_v26 }
  0xb3   :  { %16833 = vmatprep.mubr.msk.bf16.mxu0 %vm280_vm0, %v20242_v27  ;;  %16901 = vmatprep.mubr.msk.bf16.mxu1 %vm280_vm0, %v20243_v28  ;;  %v20274_v27 = vld [vmem:[%s24420_s0 + $0x2e0] sm:$0xff]  }
  0xb4   :  { %v20276_v28 = vld [vmem:[%s24420_s0 + $0x3e0] sm:$0xff]  }
  0xba   :  { %16834 = vmatmul.mubr.msk.bf16.gmra.mrb[88].mxu0 %vm280_vm0, %v20244_v29  ;;  %16902 = vmatmul.mubr.msk.bf16.gmra.mrb[88].mxu1 %vm280_vm0, %v20245_v30 }
  0xbb   :  { %16837 = vmatprep.mubr.msk.bf16.mxu0 %vm280_vm0, %v20246_v31  ;;  %16905 = vmatprep.mubr.msk.bf16.mxu1 %vm280_vm0, %v20247_v32 }
  0xc2   :  { %16838 = vmatmul.mubr.msk.bf16.gmra.mrb[92].mxu0 %vm280_vm0, %v20248_v34  ;;  %16906 = vmatmul.mubr.msk.bf16.gmra.mrb[92].mxu1 %vm280_vm0, %v20249_v35 }
  0xc3   :  { %16841 = vmatprep.mubr.msk.bf16.mxu0 %vm280_vm0, %v20250_v36  ;;  %16909 = vmatprep.mubr.msk.bf16.mxu1 %vm280_vm0, %v20251_v37 }
  0xca   :  { %16842 = vmatmul.mubr.msk.bf16.gmra.mrb[96].mxu0 %vm280_vm0, %v20252_v38  ;;  %16910 = vmatmul.mubr.msk.bf16.gmra.mrb[96].mxu1 %vm280_vm0, %v20253_v39  ;;  %v20275_v39 = vld [vmem:[%s24420_s0 + $0x2e8] sm:$0xff]  }
  0xcb   :  { %16845 = vmatprep.mubr.msk.bf16.mxu0 %vm280_vm0, %v20254_v40  ;;  %16913 = vmatprep.mubr.msk.bf16.mxu1 %vm280_vm0, %v20255_v41  ;;  %v20277_v40 = vld [vmem:[%s24420_s0 + $0x3e8] sm:$0xff]  }
  0xd2   :  { %16846 = vmatmul.mubr.msk.bf16.gmra.mrb[100].mxu0 %vm280_vm0, %v20256_v43  ;;  %16914 = vmatmul.mubr.msk.bf16.gmra.mrb[100].mxu1 %vm280_vm0, %v20257_v44  ;;  %v20278_v43 = vld [vmem:[%s24420_s0 + $0x2f0] sm:$0xff]  }
  0xd3   :  { %16849 = vmatprep.mubr.msk.bf16.mxu0 %vm280_vm0, %v20258_v45  ;;  %16917 = vmatprep.mubr.msk.bf16.mxu1 %vm280_vm0, %v20259_v46  ;;  %v20280_v44 = vld [vmem:[%s24420_s0 + $0x3f0] sm:$0xff]  }
  0xda   :  { %16850 = vmatmul.mubr.msk.bf16.gmra.mrb[104].mxu0 %vm280_vm0, %v20260_v47  ;;  %16918 = vmatmul.mubr.msk.bf16.gmra.mrb[104].mxu1 %vm280_vm0, %v20261_v48 }
  0xdb   :  { %16853 = vmatprep.mubr.msk.bf16.mxu0 %vm280_vm0, %v20262_v49  ;;  %16921 = vmatprep.mubr.msk.bf16.mxu1 %vm280_vm0, %v20264_v50 }
  0xdd   :  { %v21379_v54 = vpop.f32.mrb[0].mxu0  ;;  %v21381_v55 = vpop.f32.mrb[0].mxu1 }
  0xde   :  { %v21391_v59 = vpop.f32.mrb[1].mxu0  ;;  %v21393_v60 = vpop.f32.mrb[1].mxu1 }
  0xdf   :  { %v21397_v62 = vpop.f32.mrb[2].mxu0  ;;  %v21399_v63 = vpop.f32.mrb[2].mxu1 }
  0xe0   :  { %v21403_v1 = vpop.f32.mrb[3].mxu0  ;;  %v21405_v2 = vpop.f32.mrb[3].mxu1 }
  0xe2   :  { %16854 = vmatmul.mubr.msk.bf16.gmra.mrb[108].mxu0 %vm280_vm0, %v20263_v52  ;;  %16922 = vmatmul.mubr.msk.bf16.gmra.mrb[108].mxu1 %vm280_vm0, %v20265_v53  ;;  %v20279_v53 = vld [vmem:[%s24420_s0 + $0x2f8] sm:$0xff]  }
  0xe3   :  { %16857 = vmatprep.mubr.msk.bf16.mxu0 %vm280_vm0, %v20266_v56  ;;  %16925 = vmatprep.mubr.msk.bf16.mxu1 %vm280_vm0, %v20268_v57  ;;  %v20281_v56 = vld [vmem:[%s24420_s0 + $0x3f8] sm:$0xff]  }
  0xe5   :  { %v16679_v9 = vpop.f32.mrb[4].mxu0  ;;  %v16747_v10 = vpop.f32.mrb[4].mxu1 }
  0xe6   :  { %v21443_v13 = vpop.f32.mrb[5].mxu0  ;;  %v21445_v14 = vpop.f32.mrb[5].mxu1 }
  0xe7   :  { %v16680_v16 = vpop.f32.mrb[6].mxu0  ;;  %v16748_v17 = vpop.f32.mrb[6].mxu1 }
  0xe8   :  { %v21451_v18 = vpop.f32.mrb[7].mxu0  ;;  %v21453_v19 = vpop.f32.mrb[7].mxu1 }
  0xea   :  { %16858 = vmatmul.mubr.msk.bf16.gmra.mrb[112].mxu0 %vm280_vm0, %v21421_v5  ;;  %16926 = vmatmul.mubr.msk.bf16.gmra.mrb[112].mxu1 %vm280_vm0, %v21426_v6 }
  0xeb   :  { %16861 = vmatprep.mubr.msk.bf16.mxu0 %vm280_vm0, %v20270_v11  ;;  %16929 = vmatprep.mubr.msk.bf16.mxu1 %vm280_vm0, %v20272_v12 }
  0xed   :  { %v21477_v25 = vpop.f32.mrb[8].mxu0  ;;  %v21479_v26 = vpop.f32.mrb[8].mxu1 }
  0xee   :  { %v21489_v30 = vpop.f32.mrb[9].mxu0  ;;  %v21491_v31 = vpop.f32.mrb[9].mxu1 }
  0xef   :  { %v21495_v33 = vpop.f32.mrb[10].mxu0  ;;  %v21497_v34 = vpop.f32.mrb[10].mxu1 }
  0xf0   :  { %v21501_v36 = vpop.f32.mrb[11].mxu0  ;;  %v21503_v37 = vpop.f32.mrb[11].mxu1 }
  0xf2   :  { %16862 = vmatmul.mubr.msk.bf16.gmra.mrb[116].mxu0 %vm280_vm0, %v20271_v22  ;;  %16930 = vmatmul.mubr.msk.bf16.gmra.mrb[116].mxu1 %vm280_vm0, %v20273_v23 }
  0xf3   :  { %16865 = vmatprep.mubr.msk.bf16.mxu0 %vm280_vm0, %v20274_v27  ;;  %16933 = vmatprep.mubr.msk.bf16.mxu1 %vm280_vm0, %v20276_v28 }
  0xf5   :  { %v16687_v41 = vpop.f32.mrb[12].mxu0  ;;  %v16755_v42 = vpop.f32.mrb[12].mxu1 }
  0xf6   :  { %v21523_v45 = vpop.f32.mrb[13].mxu0  ;;  %v21525_v46 = vpop.f32.mrb[13].mxu1 }
  0xf7   :  { %v16688_v48 = vpop.f32.mrb[14].mxu0  ;;  %v16756_v49 = vpop.f32.mrb[14].mxu1 }
  0xf8   :  { %v21529_v50 = vpop.f32.mrb[15].mxu0  ;;  %v21531_v51 = vpop.f32.mrb[15].mxu1 }
  0xfa   :  { %16866 = vmatmul.mubr.msk.bf16.gmra.mrb[120].mxu0 %vm280_vm0, %v20275_v39  ;;  %16934 = vmatmul.mubr.msk.bf16.gmra.mrb[120].mxu1 %vm280_vm0, %v20277_v40 }
  0xfb   :  { %16869 = vmatprep.mubr.msk.bf16.mxu0 %vm280_vm0, %v20278_v43  ;;  %16937 = vmatprep.mubr.msk.bf16.mxu1 %vm280_vm0, %v20280_v44 }
  0xfd   :  { %v21545_v57 = vpop.f32.mrb[16].mxu0  ;;  %v21547_v3 = vpop.f32.mrb[16].mxu1 }
  0xfe   :  { %v21551_v6 = vpop.f32.mrb[17].mxu0  ;;  %v21553_v7 = vpop.f32.mrb[17].mxu1 }
  0xff   :  { %v21557_v9 = vpop.f32.mrb[18].mxu0  ;;  %v21559_v10 = vpop.f32.mrb[18].mxu1 }
 0x100   :  { %v21563_v12 = vpop.f32.mrb[19].mxu0  ;;  %v21565_v16 = vpop.f32.mrb[19].mxu1 }
 0x102   :  { %16870 = vmatmul.mubr.msk.bf16.gmra.mrb[124].mxu0 %vm280_vm0, %v20279_v53  ;;  %16938 = vmatmul.mubr.msk.bf16.gmra.mrb[124].mxu1 %vm280_vm0, %v20281_v56 }
 0x105   :  { %v16695_v20 = vpop.f32.mrb[20].mxu0  ;;  %v16763_v22 = vpop.f32.mrb[20].mxu1 }
 0x106   :  { %v21571_v23 = vpop.f32.mrb[21].mxu0  ;;  %v21573_v24 = vpop.f32.mrb[21].mxu1 }
 0x107   :  { %v16696_v28 = vpop.f32.mrb[22].mxu0  ;;  %v16764_v39 = vpop.f32.mrb[22].mxu1 }
 0x108   :  { %v21577_v40 = vpop.f32.mrb[23].mxu0  ;;  %v21579_v41 = vpop.f32.mrb[23].mxu1  ;;  %v21616_v28 = vld [vmem:[%s24423_s3] sm:$0xff]  }
 0x109   :  { %17565 = vmatprep.subr.bf16.mxu1 %v21616_v28  ;;  %16965 = vmatprep.subr.bf16.mxu0 %v21616_v28 }
 0x10d   :  { %v21583_v43 = vpop.f32.mrb[24].mxu0  ;;  %v21585_v44 = vpop.f32.mrb[24].mxu1 }
 0x10e   :  { %v21589_v49 = vpop.f32.mrb[25].mxu0  ;;  %v21591_v53 = vpop.f32.mrb[25].mxu1 }
 0x10f   :  { %v21595_v20 = vpop.f32.mrb[26].mxu0  ;;  %v21597_v22 = vpop.f32.mrb[26].mxu1 }
 0x110   :  { %v21601_v39 = vpop.f32.mrb[27].mxu0  ;;  %v21603_v42 = vpop.f32.mrb[27].mxu1 }
 0x115   :  { %v16703_v27 = vpop.f32.mrb[28].mxu0  ;;  %v16771_v17 = vpop.f32.mrb[28].mxu1 }
 0x116   :  { %v21607_v11 = vpop.f32.mrb[29].mxu0  ;;  %v21609_v8 = vpop.f32.mrb[29].mxu1 }
 0x117   :  { %v16704_v5 = vpop.f32.mrb[30].mxu0  ;;  %v16772_v52 = vpop.f32.mrb[30].mxu1 }
 0x118   :  { %v21618_v47 = vpop.f32.mrb[31].mxu0  ;;  %v21620_v38 = vpop.f32.mrb[31].mxu1 }
 0x119   :  { %24548 = vst [vmem:[#allocation7_spill] sm:$0xff] %v21618_v47  ;;  %24549 = vst [vmem:[#allocation8_spill] sm:$0xff] %v21620_v38 }
 0x11d   :  { %v21626_v27 = vpop.f32.mrb[32].mxu0  ;;  %v21628_v5 = vpop.f32.mrb[32].mxu1 }
 0x11e   :  { %24550 = vst [vmem:[#allocation9_spill] sm:$0xff] %v21626_v27  ;;  %24551 = vst [vmem:[#allocation10_spill] sm:$0xff] %v21628_v5  ;;  %v21632_v56 = vpop.f32.mrb[33].mxu0  ;;  %v21634_v48 = vpop.f32.mrb[33].mxu1 }
 0x11f   :  { %24552 = vst [vmem:[#allocation11_spill] sm:$0xff] %v21632_v56  ;;  %24553 = vst [vmem:[#allocation12_spill] sm:$0xff] %v21634_v48  ;;  %v21638_v32 = vpop.f32.mrb[34].mxu0  ;;  %v21640_v17 = vpop.f32.mrb[34].mxu1 }
 0x120   :  { %24554 = vst [vmem:[#allocation13_spill] sm:$0xff] %v21638_v32  ;;  %24555 = vst [vmem:[#allocation14_spill] sm:$0xff] %v21640_v17  ;;  %v21644_v21 = vpop.f32.mrb[35].mxu0  ;;  %v21646_v15 = vpop.f32.mrb[35].mxu1 }
 0x121   :  { %24556 = vst [vmem:[#allocation15_spill] sm:$0xff] %v21644_v21  ;;  %24557 = vst [vmem:[#allocation16_spill] sm:$0xff] %v21646_v15 }
 0x125   :  { %v16711_v4 = vpop.f32.mrb[36].mxu0  ;;  %v16779_v0 = vpop.f32.mrb[36].mxu1 }
 0x126   :  { %v21650_v61 = vpop.f32.mrb[37].mxu0  ;;  %v21652_v58 = vpop.f32.mrb[37].mxu1 }
 0x127   :  { %24558 = vst [vmem:[#allocation17_spill] sm:$0xff] %v21650_v61  ;;  %24559 = vst [vmem:[#allocation18_spill] sm:$0xff] %v21652_v58  ;;  %v16712_v48 = vpop.f32.mrb[38].mxu0  ;;  %v16780_v56 = vpop.f32.mrb[38].mxu1 }
 0x128   :  { %v21656_v5 = vpop.f32.mrb[39].mxu0  ;;  %v21658_v29 = vpop.f32.mrb[39].mxu1 }
 0x129   :  { %24560 = vst [vmem:[#allocation19_spill] sm:$0xff] %v21656_v5  ;;  %24561 = vst [vmem:[#allocation20_spill] sm:$0xff] %v21658_v29 }
 0x12d   :  { %v21662_v32 = vpop.f32.mrb[40].mxu0  ;;  %v21664_v4 = vpop.f32.mrb[40].mxu1 }
 0x12e   :  { %24562 = vst [vmem:[#allocation21_spill] sm:$0xff] %v21662_v32  ;;  %24563 = vst [vmem:[#allocation22_spill] sm:$0xff] %v21664_v4  ;;  %v21668_v52 = vpop.f32.mrb[41].mxu0  ;;  %v21670_v15 = vpop.f32.mrb[41].mxu1 }
 0x12f   :  { %24564 = vst [vmem:[#allocation23_spill] sm:$0xff] %v21668_v52  ;;  %24565 = vst [vmem:[#allocation24_spill] sm:$0xff] %v21670_v15  ;;  %v21674_v56 = vpop.f32.mrb[42].mxu0  ;;  %v21676_v35 = vpop.f32.mrb[42].mxu1 }
 0x130   :  { %24566 = vst [vmem:[#allocation25_spill] sm:$0xff] %v21674_v56  ;;  %24567 = vst [vmem:[#allocation26_spill] sm:$0xff] %v21676_v35  ;;  %v21680_v29 = vpop.f32.mrb[43].mxu0  ;;  %v21682_v5 = vpop.f32.mrb[43].mxu1 }
 0x131   :  { %24568 = vst [vmem:[#allocation27_spill] sm:$0xff] %v21680_v29  ;;  %24569 = vst [vmem:[#allocation28_spill] sm:$0xff] %v21682_v5 }
 0x135   :  { %v16719_v4 = vpop.f32.mrb[44].mxu0  ;;  %v16787_v32 = vpop.f32.mrb[44].mxu1 }
 0x136   :  { %v21686_v58 = vpop.f32.mrb[45].mxu0  ;;  %v21688_v61 = vpop.f32.mrb[45].mxu1 }
 0x137   :  { %24570 = vst [vmem:[#allocation29_spill] sm:$0xff] %v21686_v58  ;;  %24571 = vst [vmem:[#allocation30_spill] sm:$0xff] %v21688_v61  ;;  %v16720_v15 = vpop.f32.mrb[46].mxu0  ;;  %v16788_v52 = vpop.f32.mrb[46].mxu1 }
 0x138   :  { %v21692_v21 = vpop.f32.mrb[47].mxu0  ;;  %v21694_v17 = vpop.f32.mrb[47].mxu1 }
 0x139   :  { %24572 = vst [vmem:[#allocation31_spill] sm:$0xff] %v21692_v21  ;;  %24573 = vst [vmem:[#allocation32_spill] sm:$0xff] %v21694_v17 }
 0x13d   :  { %v21698_v56 = vpop.f32.mrb[48].mxu0  ;;  %v21700_v4 = vpop.f32.mrb[48].mxu1 }
 0x13e   :  { %24574 = vst [vmem:[#allocation33_spill] sm:$0xff] %v21698_v56  ;;  %24575 = vst [vmem:[#allocation34_spill] sm:$0xff] %v21700_v4  ;;  %v21704_v0 = vpop.f32.mrb[49].mxu0  ;;  %v21706_v5 = vpop.f32.mrb[49].mxu1 }
 0x13f   :  { %24576 = vst [vmem:[#allocation35_spill] sm:$0xff] %v21704_v0  ;;  %24577 = vst [vmem:[#allocation36_spill] sm:$0xff] %v21706_v5  ;;  %v21710_v52 = vpop.f32.mrb[50].mxu0  ;;  %v21712_v48 = vpop.f32.mrb[50].mxu1 }
 0x140   :  { %24578 = vst [vmem:[#allocation37_spill] sm:$0xff] %v21710_v52  ;;  %24579 = vst [vmem:[#allocation38_spill] sm:$0xff] %v21712_v48  ;;  %v21716_v17 = vpop.f32.mrb[51].mxu0  ;;  %v21718_v21 = vpop.f32.mrb[51].mxu1 }
 0x141   :  { %24580 = vst [vmem:[#allocation39_spill] sm:$0xff] %v21716_v17  ;;  %24581 = vst [vmem:[#allocation40_spill] sm:$0xff] %v21718_v21 }
 0x145   :  { %v16727_v4 = vpop.f32.mrb[52].mxu0  ;;  %v16795_v56 = vpop.f32.mrb[52].mxu1 }
 0x146   :  { %v21722_v61 = vpop.f32.mrb[53].mxu0  ;;  %v21724_v58 = vpop.f32.mrb[53].mxu1 }
 0x147   :  { %24582 = vst [vmem:[#allocation41_spill] sm:$0xff] %v21722_v61  ;;  %24583 = vst [vmem:[#allocation42_spill] sm:$0xff] %v21724_v58  ;;  %v16728_v5 = vpop.f32.mrb[54].mxu0  ;;  %v16796_v0 = vpop.f32.mrb[54].mxu1 }
 0x148   :  { %v21728_v29 = vpop.f32.mrb[55].mxu0  ;;  %v21730_v35 = vpop.f32.mrb[55].mxu1 }
 0x149   :  { %24584 = vst [vmem:[#allocation43_spill] sm:$0xff] %v21728_v29  ;;  %24585 = vst [vmem:[#allocation44_spill] sm:$0xff] %v21730_v35 }
 0x14d   :  { %v21734_v52 = vpop.f32.mrb[56].mxu0  ;;  %v21736_v4 = vpop.f32.mrb[56].mxu1 }
 0x14e   :  { %24586 = vst [vmem:[#allocation45_spill] sm:$0xff] %v21734_v52  ;;  %24587 = vst [vmem:[#allocation46_spill] sm:$0xff] %v21736_v4  ;;  %v21740_v32 = vpop.f32.mrb[57].mxu0  ;;  %v21742_v21 = vpop.f32.mrb[57].mxu1 }
 0x14f   :  { %24588 = vst [vmem:[#allocation47_spill] sm:$0xff] %v21740_v32  ;;  %24589 = vst [vmem:[#allocation48_spill] sm:$0xff] %v21742_v21  ;;  %v21746_v0 = vpop.f32.mrb[58].mxu0  ;;  %v21748_v15 = vpop.f32.mrb[58].mxu1 }
 0x150   :  { %24590 = vst [vmem:[#allocation49_spill] sm:$0xff] %v21746_v0  ;;  %24591 = vst [vmem:[#allocation50_spill] sm:$0xff] %v21748_v15  ;;  %v21752_v35 = vpop.f32.mrb[59].mxu0  ;;  %v21754_v29 = vpop.f32.mrb[59].mxu1 }
 0x151   :  { %24592 = vst [vmem:[#allocation51_spill] sm:$0xff] %v21752_v35  ;;  %24593 = vst [vmem:[#allocation52_spill] sm:$0xff] %v21754_v29 }
 0x155   :  { %v16735_v4 = vpop.f32.mrb[60].mxu0  ;;  %v16803_v52 = vpop.f32.mrb[60].mxu1 }
 0x156   :  { %v21758_v58 = vpop.f32.mrb[61].mxu0  ;;  %v21760_v61 = vpop.f32.mrb[61].mxu1  ;;  %v21773_v52 = vld [vmem:[%s24422_s2] ss:$0 sm:$0xff]  ;;  %v24598_v4 = vmax.f32 %v21379_v54, %v21381_v55  ;;  %v24601_v54 = vmax.f32 %v21403_v1, %v21405_v2 }
 0x157   :  { %24594 = vst [vmem:[#allocation53_spill] sm:$0xff] %v21758_v58  ;;  %24595 = vst [vmem:[#allocation54_spill] sm:$0xff] %v21760_v61  ;;  %v16736_v21 = vpop.f32.mrb[62].mxu0  ;;  %v16804_v32 = vpop.f32.mrb[62].mxu1  ;;  %v24599_v61 = vmax.f32 %v21391_v59, %v21393_v60 }
 0x158   :  { %v21764_v17 = vpop.f32.mrb[63].mxu0  ;;  %v21766_v48 = vpop.f32.mrb[63].mxu1 }
 0x159   :  { %24596 = vst [vmem:[#allocation55_spill] sm:$0xff] %v21764_v17  ;;  %24597 = vst [vmem:[#allocation56_spill] sm:$0xff] %v21766_v48  ;;  %v24600_v48 = vmax.f32 %v21397_v62, %v21399_v63 }
 0x15d   :  { %v16811_v0 = vpop.f32.mrb[64].mxu0  ;;  %v16879_v56 = vpop.f32.mrb[64].mxu1 }
 0x15e   :  { %v1952_v5 = vmax.f32 %v24598_v4, %v16811_v0  ;;  %v1695_v21 = vpop.f32.mrb[65].mxu0  ;;  %v2369_v32 = vpop.f32.mrb[65].mxu1 }
 0x15f   :  { %v1950_v58 = vmax.f32 %v24599_v61, %v1695_v21  ;;  %v16812_v29 = vpop.f32.mrb[66].mxu0  ;;  %v16880_v35 = vpop.f32.mrb[66].mxu1 }
 0x160   :  { %v2626_v15 = vmax.f32 %v1952_v5, %v16879_v56  ;;  %v1953_v17 = vmax.f32 %v24600_v48, %v16812_v29  ;;  %v1698_v27 = vpop.f32.mrb[67].mxu0  ;;  %v2372_v38 = vpop.f32.mrb[67].mxu1  ;;  %v24602_v29 = vmax.f32 %v21443_v13, %v21445_v14  ;;  %v24603_v56 = vmax.f32 %v21451_v18, %v21453_v19 }
 0x161   :  { %v2624_v47 = vmax.f32 %v1950_v58, %v2369_v32  ;;  %v1951_v55 = vmax.f32 %v24601_v54, %v1698_v27  ;;  %v24605_v18 = vmax.f32 %v21489_v30, %v21491_v31  ;;  %v24607_v31 = vmax.f32 %v21501_v36, %v21503_v37  ;;  %v20292_v36 = vld [vmem:[%s24423_s3 + $0x10] sm:$0xff]  }
 0x162   :  { %v2697_v0 = vadd.f32 %v21773_v52, %v2626_v15  ;;  %v2627_v4 = vmax.f32 %v1953_v17, %v16880_v35 }
 0x163   :  { %v21789_v59 = vadd.f32 %v21773_v52, %v2624_v47  ;;  %v2625_v60 = vmax.f32 %v1951_v55, %v2372_v38 }
 0x164   :  { %2761 = vst [vmem:[#allocation2 + $0x20] sm:$0xff] %v2697_v0  ;;  %v2698_v61 = vadd.f32 %v21773_v52, %v2627_v4  ;;  %v24604_v0 = vmax.f32 %v21477_v25, %v21479_v26 }
 0x165   :  { %2759 = vst [vmem:[#allocation2] sm:$0xff] %v21789_v59  ;;  %v21794_v62 = vadd.f32 %v21773_v52, %v2625_v60  ;;  %v16815_v58 = vpop.f32.mrb[68].mxu0  ;;  %v16883_v63 = vpop.f32.mrb[68].mxu1 }
 0x166   :  { %2762 = vst [vmem:[#allocation2 + $0x30] sm:$0xff] %v2698_v61  ;;  %v1711_v1 = vpop.f32.mrb[69].mxu0  ;;  %v2385_v2 = vpop.f32.mrb[69].mxu1 }
 0x167   :  { %2760 = vst [vmem:[#allocation2 + $0x10] sm:$0xff] %v21794_v62  ;;  %v1954_v35 = vmax.f32 %v24602_v29, %v1711_v1  ;;  %v16816_v38 = vpop.f32.mrb[70].mxu0  ;;  %v16884_v47 = vpop.f32.mrb[70].mxu1  ;;  %v2895_v17 = vpack.c.bf16 %v21794_v62, %v21789_v59 }
 0x168   :  { %v1714_v27 = vpop.f32.mrb[71].mxu0  ;;  %v2388_v48 = vpop.f32.mrb[71].mxu1  ;;  %v24606_v47 = vmax.f32 %v21495_v33, %v21497_v34 }
 0x169   :  { %v2628_v15 = vmax.f32 %v1954_v35, %v2385_v2  ;;  %v1955_v5 = vmax.f32 %v24603_v56, %v1714_v27 }
 0x16b   :  { %v2699_v21 = vadd.f32 %v21773_v52, %v2628_v15  ;;  %v2629_v32 = vmax.f32 %v1955_v5, %v2388_v48  ;;  %v3173_v35 = vld [vmem:[#allocation2 + $0x21] sm:$0xff]  ;;  %v20291_v15 = vld [vmem:[%s24423_s3 + $0x8] sm:$0xff]  }
 0x16c   :  { %v3171_v58 = vld [vmem:[#allocation2 + $0x1] sm:$0xff] }
 0x16d   :  { %2763 = vst [vmem:[#allocation2 + $0x40] sm:$0xff] %v2699_v21  ;;  %v2700_v54 = vadd.f32 %v21773_v52, %v2629_v32  ;;  %v16819_v13 = vpop.f32.mrb[72].mxu0  ;;  %v16887_v14 = vpop.f32.mrb[72].mxu1  ;;  %v3174_v55 = vld [vmem:[#allocation2 + $0x31] sm:$0xff] }
 0x16e   :  { %v1960_v4 = vmax.f32 %v24604_v0, %v16819_v13  ;;  %v1727_v60 = vpop.f32.mrb[73].mxu0  ;;  %v2401_v61 = vpop.f32.mrb[73].mxu1  ;;  %v3172_v63 = vld [vmem:[#allocation2 + $0x11] sm:$0xff]  ;;  %v21818_v48 = vpack.c.bf16 %v3174_v55, %v3173_v35  ;;  %v24609_v35 = vmax.f32 %v21529_v50, %v21531_v51 }
 0x16f   :  { %2764 = vst [vmem:[#allocation2 + $0x50] sm:$0xff] %v2700_v54  ;;  %v1958_v19 = vmax.f32 %v24605_v18, %v1727_v60  ;;  %v16820_v1 = vpop.f32.mrb[74].mxu0  ;;  %v16888_v2 = vpop.f32.mrb[74].mxu1  ;;  %v21813_v29 = vpack.c.bf16 %v3172_v63, %v3171_v58  ;;  %v20293_v18 = vld [vmem:[%s24423_s3 + $0x18] sm:$0xff]  }
 0x170   :  { %v2634_v38 = vmax.f32 %v1960_v4, %v16887_v14  ;;  %v1961_v25 = vmax.f32 %v24606_v47, %v16820_v1  ;;  %v1730_v26 = vpop.f32.mrb[75].mxu0  ;;  %v2404_v27 = vpop.f32.mrb[75].mxu1  ;;  %v24608_v4 = vmax.f32 %v21523_v45, %v21525_v46  ;;  %v20294_v47 = vld [vmem:[%s24423_s3 + $0x20] sm:$0xff]  }
 0x171   :  { %v2632_v30 = vmax.f32 %v1958_v19, %v2401_v61  ;;  %v1959_v56 = vmax.f32 %v24607_v31, %v1730_v26  ;;  %17557 = vmatprep.mubr.bf16.mxu1 %v21813_v29  ;;  %v24610_v26 = vmax.f32 %v21545_v57, %v21547_v3  ;;  %v20295_v57 = vld [vmem:[%s24423_s3 + $0x28] sm:$0xff]  }
 0x172   :  { %v2705_v5 = vadd.f32 %v21773_v52, %v2634_v38  ;;  %v2635_v21 = vmax.f32 %v1961_v25, %v16888_v2  ;;  %17558 = vmatmul.mubr.bf16.vlgmr.msra.gmra.mrb[128].mxu1 %v21818_v48 }
 0x173   :  { %v2703_v33 = vadd.f32 %v21773_v52, %v2632_v30  ;;  %v2633_v34 = vmax.f32 %v1959_v56, %v2404_v27  ;;  %17566 = vmatpush3.bf16.msra.mxu1 %v21616_v28 }
 0x174   :  { %2769 = vst [vmem:[#allocation2 + $0xa0] sm:$0xff] %v2705_v5  ;;  %v2706_v32 = vadd.f32 %v21773_v52, %v2635_v21  ;;  %17567 = vmatprep.subr.bf16.mxu1 %v20291_v15 }
 0x175   :  { %2767 = vst [vmem:[#allocation2 + $0x80] sm:$0xff] %v2703_v33  ;;  %v2704_v37 = vadd.f32 %v21773_v52, %v2633_v34  ;;  %v16823_v54 = vpop.f32.mrb[76].mxu0  ;;  %v16891_v13 = vpop.f32.mrb[76].mxu1  ;;  %v24612_v34 = vmax.f32 %v21557_v9, %v21559_v10 }
 0x176   :  { %2770 = vst [vmem:[#allocation2 + $0xb0] sm:$0xff] %v2706_v32  ;;  %v1743_v14 = vpop.f32.mrb[77].mxu0  ;;  %v2417_v55 = vpop.f32.mrb[77].mxu1  ;;  %v21836_v0 = vpack.c.bf16 %v2706_v32, %v2705_v5 }
 0x177   :  { %2768 = vst [vmem:[#allocation2 + $0x90] sm:$0xff] %v2704_v37  ;;  %v1962_v60 = vmax.f32 %v24608_v4, %v1743_v14  ;;  %v16824_v61 = vpop.f32.mrb[78].mxu0  ;;  %v16892_v58 = vpop.f32.mrb[78].mxu1  ;;  %v21841_v63 = vpack.c.bf16 %v2704_v37, %v2703_v33  ;;  %17568 = vmatpush3.bf16.msra.mxu1 %v20291_v15 }
 0x178   :  { %v1746_v19 = vpop.f32.mrb[79].mxu0  ;;  %v2420_v1 = vpop.f32.mrb[79].mxu1  ;;  %17569 = vmatprep.subr.bf16.mxu1 %v20292_v36 }
 0x179   :  { %v2636_v2 = vmax.f32 %v1962_v60, %v2417_v55  ;;  %v1963_v38 = vmax.f32 %v24609_v35, %v1746_v19  ;;  %16957 = vmatprep.mubr.bf16.mxu0 %v21841_v63  ;;  %v20296_v55 = vld [vmem:[%s24423_s3 + $0x30] sm:$0xff]  }
 0x17a   :  { %16958 = vmatmul.mubr.bf16.vlgmr.msra.gmra.mrb[128].mxu0 %v21836_v0 }
 0x17b   :  { %v2707_v45 = vadd.f32 %v21773_v52, %v2636_v2  ;;  %v2637_v46 = vmax.f32 %v1963_v38, %v2420_v1  ;;  %17570 = vmatpush3.bf16.msra.mxu1 %v20292_v36  ;;  %16966 = vmatpush3.bf16.msra.mxu0 %v21616_v28  ;;  %v24611_v28 = vmax.f32 %v21551_v6, %v21553_v7  ;;  %v20297_v2 = vld [vmem:[%s24423_s3 + $0x38] sm:$0xff]  }
 0x17c   :  { %17571 = vmatprep.subr.bf16.mxu1 %v20293_v18  ;;  %16967 = vmatprep.subr.bf16.mxu0 %v20291_v15  ;;  %v24613_v6 = vmax.f32 %v21563_v12, %v21565_v16 }
 0x17d   :  { %2771 = vst [vmem:[#allocation2 + $0xc0] sm:$0xff] %v2707_v45  ;;  %v2708_v50 = vadd.f32 %v21773_v52, %v2637_v46  ;;  %v16827_v51 = vpop.f32.mrb[80].mxu0  ;;  %v16895_v25 = vpop.f32.mrb[80].mxu1  ;;  %v24615_v46 = vmax.f32 %v21577_v40, %v21579_v41  ;;  %v24616_v40 = vmax.f32 %v21583_v43, %v21585_v44  ;;  %v24619_v44 = vmax.f32 %v21601_v39, %v21603_v42 }
 0x17e   :  { %v1968_v27 = vmax.f32 %v24610_v26, %v16827_v51  ;;  %v1759_v30 = vpop.f32.mrb[81].mxu0  ;;  %v2433_v31 = vpop.f32.mrb[81].mxu1  ;;  %v21892_v51 = vld [vmem:[%s24423_s3 + $0x80] sm:$0xff]   ;;  %v24620_v39 = vmax.f32 %v21607_v11, %v21609_v8 }
 0x17f   :  { %2772 = vst [vmem:[#allocation2 + $0xd0] sm:$0xff] %v2708_v50  ;;  %v1966_v56 = vmax.f32 %v24611_v28, %v1759_v30  ;;  %v16828_v5 = vpop.f32.mrb[82].mxu0  ;;  %v16896_v21 = vpop.f32.mrb[82].mxu1  ;;  %17572 = vmatpush3.bf16.msra.mxu1 %v20293_v18  ;;  %16968 = vmatpush3.bf16.msra.mxu0 %v20291_v15 }
 0x180   :  { %v2642_v33 = vmax.f32 %v1968_v27, %v16895_v25  ;;  %v1969_v32 = vmax.f32 %v24612_v34, %v16828_v5  ;;  %v1762_v37 = vpop.f32.mrb[83].mxu0  ;;  %v2436_v54 = vpop.f32.mrb[83].mxu1  ;;  %17573 = vmatprep.subr.bf16.mxu1 %v20294_v47  ;;  %16969 = vmatprep.subr.bf16.mxu0 %v20292_v36 }
 0x181   :  { %v2640_v3 = vmax.f32 %v1966_v56, %v2433_v31  ;;  %v1967_v7 = vmax.f32 %v24613_v6, %v1762_v37 }
 0x182   :  { %v2713_v15 = vadd.f32 %v21773_v52, %v2642_v33  ;;  %v2643_v13 = vmax.f32 %v1969_v32, %v16896_v21  ;;  %v24618_v21 = vmax.f32 %v21595_v20, %v21597_v22 }
 0x183   :  { %v2711_v14 = vadd.f32 %v21773_v52, %v2640_v3  ;;  %v2641_v9 = vmax.f32 %v1967_v7, %v2436_v54  ;;  %17574 = vmatpush3.bf16.msra.mxu1 %v20294_v47  ;;  %16970 = vmatpush3.bf16.msra.mxu0 %v20292_v36  ;;  %v24614_v36 = vmax.f32 %v21571_v23, %v21573_v24 }
 0x184   :  { %2777 = vst [vmem:[#allocation2 + $0x120] sm:$0xff] %v2713_v15  ;;  %v2714_v10 = vadd.f32 %v21773_v52, %v2643_v13  ;;  %17575 = vmatprep.subr.bf16.mxu1 %v20295_v57  ;;  %16971 = vmatprep.subr.bf16.mxu0 %v20293_v18 }
 0x185   :  { %2775 = vst [vmem:[#allocation2 + $0x100] sm:$0xff] %v2711_v14  ;;  %v2712_v12 = vadd.f32 %v21773_v52, %v2641_v9  ;;  %v16831_v16 = vpop.f32.mrb[84].mxu0  ;;  %v16899_v4 = vpop.f32.mrb[84].mxu1 }
 0x186   :  { %2778 = vst [vmem:[#allocation2 + $0x130] sm:$0xff] %v2714_v10  ;;  %v1775_v60 = vpop.f32.mrb[85].mxu0  ;;  %v2449_v61 = vpop.f32.mrb[85].mxu1  ;;  %v24622_v16 = vld [vmem:[#allocation8_spill] sm:$0xff] }
 0x187   :  { %2776 = vst [vmem:[#allocation2 + $0x110] sm:$0xff] %v2712_v12  ;;  %v1970_v58 = vmax.f32 %v24614_v36, %v1775_v60  ;;  %v16832_v19 = vpop.f32.mrb[86].mxu0  ;;  %v16900_v1 = vpop.f32.mrb[86].mxu1  ;;  %17576 = vmatpush3.bf16.msra.mxu1 %v20295_v57  ;;  %16972 = vmatpush3.bf16.msra.mxu0 %v20293_v18  ;;  %v24621_v12 = vld [vmem:[#allocation7_spill] sm:$0xff] }
 0x188   :  { %v1778_v35 = vpop.f32.mrb[87].mxu0  ;;  %v2452_v38 = vpop.f32.mrb[87].mxu1  ;;  %17577 = vmatprep.subr.bf16.mxu1 %v20296_v55  ;;  %16973 = vmatprep.subr.bf16.mxu0 %v20294_v47  ;;  %v24623_v4 = vmax.f32 %v24621_v12, %v24622_v16  ;;  %v24624_v19 = vld [vmem:[#allocation9_spill] sm:$0xff]  ;;  %v24625_v1 = vld [vmem:[#allocation10_spill] sm:$0xff]  ;;  %v24640_v12 = vld [vmem:[#allocation20_spill] sm:$0xff] }
 0x189   :  { %v2644_v45 = vmax.f32 %v1970_v58, %v2449_v61  ;;  %v1971_v50 = vmax.f32 %v24615_v46, %v1778_v35  ;;  %v24627_v46 = vld [vmem:[#allocation11_spill] sm:$0xff] }
 0x18b   :  { %v2715_v23 = vadd.f32 %v21773_v52, %v2644_v45  ;;  %v2645_v24 = vmax.f32 %v1971_v50, %v2452_v38  ;;  %17578 = vmatpush3.bf16.msra.mxu1 %v20296_v55  ;;  %16974 = vmatpush3.bf16.msra.mxu0 %v20294_v47  ;;  %v24617_v47 = vmax.f32 %v21589_v49, %v21591_v53  ;;  %v24628_v50 = vld [vmem:[#allocation12_spill] sm:$0xff] }
 0x18c   :  { %17579 = vmatprep.subr.bf16.mxu1 %v20297_v2  ;;  %16975 = vmatprep.subr.bf16.mxu0 %v20295_v57 }
 0x18d   :  { %2779 = vst [vmem:[#allocation2 + $0x140] sm:$0xff] %v2715_v23  ;;  %v2716_v18 = vadd.f32 %v21773_v52, %v2645_v24  ;;  %v16835_v25 = vpop.f32.mrb[88].mxu0  ;;  %v16903_v26 = vpop.f32.mrb[88].mxu1  ;;  %v24629_v23 = vmax.f32 %v24627_v46, %v24628_v50 }
 0x18e   :  { %v1976_v41 = vmax.f32 %v24616_v40, %v16835_v25  ;;  %v1791_v27 = vpop.f32.mrb[89].mxu0  ;;  %v2465_v30 = vpop.f32.mrb[89].mxu1  ;;  %v24630_v40 = vld [vmem:[#allocation13_spill] sm:$0xff] }
 0x18f   :  { %2780 = vst [vmem:[#allocation2 + $0x150] sm:$0xff] %v2716_v18  ;;  %v1974_v31 = vmax.f32 %v24617_v47, %v1791_v27  ;;  %v16836_v28 = vpop.f32.mrb[90].mxu0  ;;  %v16904_v56 = vpop.f32.mrb[90].mxu1  ;;  %17580 = vmatpush3.bf16.msra.mxu1 %v20297_v2  ;;  %16976 = vmatpush3.bf16.msra.mxu0 %v20295_v57 }
 0x190   :  { %v2650_v5 = vmax.f32 %v1976_v41, %v16903_v26  ;;  %v1977_v33 = vmax.f32 %v24618_v21, %v16836_v28  ;;  %v1794_v34 = vpop.f32.mrb[91].mxu0  ;;  %v2468_v32 = vpop.f32.mrb[91].mxu1  ;;  %17589 = vmatprep.subr.bf16.mxu1 %v21892_v51  ;;  %16977 = vmatprep.subr.bf16.mxu0 %v20296_v55  ;;  %v24631_v41 = vld [vmem:[#allocation14_spill] sm:$0xff] }
 0x191   :  { %v2648_v43 = vmax.f32 %v1974_v31, %v2465_v30  ;;  %v1975_v49 = vmax.f32 %v24619_v44, %v1794_v34  ;;  %v24632_v27 = vmax.f32 %v24630_v40, %v24631_v41 }
 0x192   :  { %v2721_v53 = vadd.f32 %v21773_v52, %v2650_v5  ;;  %v2651_v37 = vmax.f32 %v1977_v33, %v16904_v56  ;;  %v24633_v56 = vld [vmem:[#allocation15_spill] sm:$0xff]  ;;  %v24634_v5 = vld [vmem:[#allocation16_spill] sm:$0xff] }
 0x193   :  { %v2719_v54 = vadd.f32 %v21773_v52, %v2648_v43  ;;  %v2649_v57 = vmax.f32 %v1975_v49, %v2468_v32  ;;  %16978 = vmatpush3.bf16.msra.mxu0 %v20296_v55  ;;  %v24635_v21 = vmax.f32 %v24633_v56, %v24634_v5 }
 0x194   :  { %2785 = vst [vmem:[#allocation2 + $0x1a0] sm:$0xff] %v2721_v53  ;;  %v2722_v20 = vadd.f32 %v21773_v52, %v2651_v37  ;;  %16979 = vmatprep.subr.bf16.mxu0 %v20297_v2 }
 0x195   :  { %2783 = vst [vmem:[#allocation2 + $0x180] sm:$0xff] %v2719_v54  ;;  %v2720_v22 = vadd.f32 %v21773_v52, %v2649_v57  ;;  %v16839_v3 = vpop.f32.mrb[92].mxu0  ;;  %v16907_v6 = vpop.f32.mrb[92].mxu1 }
 0x196   :  { %2786 = vst [vmem:[#allocation2 + $0x1b0] sm:$0xff] %v2722_v20  ;;  %v1807_v7 = vpop.f32.mrb[93].mxu0  ;;  %v2481_v42 = vpop.f32.mrb[93].mxu1  ;;  %v24636_v3 = vld [vmem:[#allocation17_spill] sm:$0xff]  ;;  %v24637_v6 = vld [vmem:[#allocation18_spill] sm:$0xff] }
 0x197   :  { %2784 = vst [vmem:[#allocation2 + $0x190] sm:$0xff] %v2720_v22  ;;  %v1978_v15 = vmax.f32 %v24620_v39, %v1807_v7  ;;  %v16840_v13 = vpop.f32.mrb[94].mxu0  ;;  %v16908_v14 = vpop.f32.mrb[94].mxu1  ;;  %16980 = vmatpush3.bf16.msra.mxu0 %v20297_v2  ;;  %v24626_v2 = vmax.f32 %v24624_v19, %v24625_v1  ;;  %v24638_v7 = vmax.f32 %v24636_v3, %v24637_v6  ;;  %v24642_v19 = vld [vmem:[#allocation21_spill] sm:$0xff]  ;;  %v24643_v1 = vld [vmem:[#allocation22_spill] sm:$0xff] }
 0x198   :  { %v1810_v9 = vpop.f32.mrb[95].mxu0  ;;  %v2484_v10 = vpop.f32.mrb[95].mxu1  ;;  %16989 = vmatprep.subr.bf16.mxu0 %v21892_v51 }
 0x199   :  { %v2652_v55 = vmax.f32 %v1978_v15, %v2481_v42  ;;  %v1979_v60 = vmax.f32 %v24623_v4, %v1810_v9 }
 0x19b   :  { %v2723_v61 = vadd.f32 %v21773_v52, %v2652_v55  ;;  %v2653_v36 = vmax.f32 %v1979_v60, %v2484_v10  ;;  %v24639_v55 = vld [vmem:[#allocation19_spill] sm:$0xff] }
 0x19c   :  { %v24641_v16 = vmax.f32 %v24639_v55, %v24640_v12  ;;  %v21987_v55 = vld [vmem:[%s24423_s3 + $0x88] sm:$0xff]  }
 0x19d   :  { %2787 = vst [vmem:[#allocation2 + $0x1c0] sm:$0xff] %v2723_v61  ;;  %v2724_v58 = vadd.f32 %v21773_v52, %v2653_v36  ;;  %v16843_v8 = vpop.f32.mrb[96].mxu0  ;;  %v16911_v11 = vpop.f32.mrb[96].mxu1 }
 0x19e   :  { %v1984_v35 = vmax.f32 %v24626_v2, %v16843_v8  ;;  %v1823_v38 = vpop.f32.mrb[97].mxu0  ;;  %v2497_v45 = vpop.f32.mrb[97].mxu1  ;;  %v24644_v2 = vmax.f32 %v24642_v19, %v24643_v1  ;;  %v24657_v19 = vld [vmem:[#allocation31_spill] sm:$0xff]  ;;  %v24658_v1 = vld [vmem:[#allocation32_spill] sm:$0xff] }
 0x19f   :  { %2788 = vst [vmem:[#allocation2 + $0x1d0] sm:$0xff] %v2724_v58  ;;  %v1982_v24 = vmax.f32 %v24629_v23, %v1823_v38  ;;  %v16844_v18 = vpop.f32.mrb[98].mxu0  ;;  %v16912_v25 = vpop.f32.mrb[98].mxu1  ;;  %v24645_v23 = vld [vmem:[#allocation23_spill] sm:$0xff] }
 0x1a0   :  { %v2658_v26 = vmax.f32 %v1984_v35, %v16911_v11  ;;  %v1985_v30 = vmax.f32 %v24632_v27, %v16844_v18  ;;  %v1826_v47 = vpop.f32.mrb[99].mxu0  ;;  %v2500_v31 = vpop.f32.mrb[99].mxu1 }
 0x1a1   :  { %v2656_v28 = vmax.f32 %v1982_v24, %v2497_v45  ;;  %v1983_v33 = vmax.f32 %v24635_v21, %v1826_v47  ;;  %v24646_v24 = vld [vmem:[#allocation24_spill] sm:$0xff]  ;;  %v24648_v47 = vld [vmem:[#allocation25_spill] sm:$0xff] }
 0x1a2   :  { %v21934_v34 = vadd.f32 %v21773_v52, %v2658_v26  ;;  %v2659_v32 = vmax.f32 %v1985_v30, %v16912_v25  ;;  %v24647_v18 = vmax.f32 %v24645_v23, %v24646_v24 }
 0x1a3   :  { %v21937_v43 = vadd.f32 %v21773_v52, %v2656_v28  ;;  %v2657_v44 = vmax.f32 %v1983_v33, %v2500_v31  ;;  %v24649_v31 = vld [vmem:[#allocation26_spill] sm:$0xff] }
 0x1a4   :  { %2793 = vst [vmem:[#allocation2 + $0x220] sm:$0xff] %v21934_v34  ;;  %v21941_v49 = vadd.f32 %v21773_v52, %v2659_v32  ;;  %v24650_v28 = vmax.f32 %v24648_v47, %v24649_v31  ;;  %v3322_v31 = vld [vmem:[#allocation2 + $0x91] sm:$0xff] }
 0x1a5   :  { %2791 = vst [vmem:[#allocation2 + $0x200] sm:$0xff] %v21937_v43  ;;  %v21945_v53 = vadd.f32 %v21773_v52, %v2657_v44  ;;  %v16847_v37 = vpop.f32.mrb[100].mxu0  ;;  %v16915_v54 = vpop.f32.mrb[100].mxu1  ;;  %v24651_v44 = vld [vmem:[#allocation27_spill] sm:$0xff] }
 0x1a6   :  { %2794 = vst [vmem:[#allocation2 + $0x230] sm:$0xff] %v21941_v49  ;;  %v1839_v57 = vpop.f32.mrb[101].mxu0  ;;  %v2513_v20 = vpop.f32.mrb[101].mxu1  ;;  %v2898_v22 = vpack.c.bf16 %v21941_v49, %v21934_v34  ;;  %v24652_v37 = vld [vmem:[#allocation28_spill] sm:$0xff] }
 0x1a7   :  { %2792 = vst [vmem:[#allocation2 + $0x210] sm:$0xff] %v21945_v53  ;;  %v1986_v42 = vmax.f32 %v24638_v7, %v1839_v57  ;;  %v16848_v39 = vpop.f32.mrb[102].mxu0  ;;  %v16916_v15 = vpop.f32.mrb[102].mxu1  ;;  %v2897_v13 = vpack.c.bf16 %v21945_v53, %v21937_v43  ;;  %v24653_v54 = vmax.f32 %v24651_v44, %v24652_v37  ;;  %v24667_v44 = vld [vmem:[#allocation38_spill] sm:$0xff] }
 0x1a8   :  { %v1842_v14 = vpop.f32.mrb[103].mxu0  ;;  %v2516_v9 = vpop.f32.mrb[103].mxu1  ;;  %v22055_v43 = vld [vmem:[%s24423_s3 + $0xa8] sm:$0xff]  }
 0x1a9   :  { %v2660_v10 = vmax.f32 %v1986_v42, %v2513_v20  ;;  %v1987_v4 = vmax.f32 %v24641_v16, %v1842_v14  ;;  %v24654_v16 = vld [vmem:[#allocation29_spill] sm:$0xff] }
 0x1ab   :  { %v2731_v60 = vadd.f32 %v21773_v52, %v2660_v10  ;;  %v2661_v61 = vmax.f32 %v1987_v4, %v2516_v9  ;;  %v3177_v27 = vld [vmem:[#allocation2 + $0x221] sm:$0xff] }
 0x1ac   :  { %v3175_v46 = vld [vmem:[#allocation2 + $0x201] sm:$0xff] }
 0x1ad   :  { %2795 = vst [vmem:[#allocation2 + $0x240] sm:$0xff] %v2731_v60  ;;  %v2732_v36 = vadd.f32 %v21773_v52, %v2661_v61  ;;  %v16851_v58 = vpop.f32.mrb[104].mxu0  ;;  %v16919_v8 = vpop.f32.mrb[104].mxu1  ;;  %v3178_v11 = vld [vmem:[#allocation2 + $0x231] sm:$0xff] }
 0x1ae   :  { %v1992_v35 = vmax.f32 %v24644_v2, %v16851_v58  ;;  %v1855_v38 = vpop.f32.mrb[105].mxu0  ;;  %v2529_v45 = vpop.f32.mrb[105].mxu1  ;;  %v3176_v50 = vld [vmem:[#allocation2 + $0x211] sm:$0xff]  ;;  %v21972_v33 = vpack.c.bf16 %v3178_v11, %v3177_v27  ;;  %v24659_v2 = vmax.f32 %v24657_v19, %v24658_v1 }
 0x1af   :  { %2796 = vst [vmem:[#allocation2 + $0x250] sm:$0xff] %v2732_v36  ;;  %v1990_v25 = vmax.f32 %v24647_v18, %v1855_v38  ;;  %v16852_v26 = vpop.f32.mrb[106].mxu0  ;;  %v16920_v40 = vpop.f32.mrb[106].mxu1  ;;  %v21967_v41 = vpack.c.bf16 %v3176_v50, %v3175_v46  ;;  %v22002_v50 = vld [vmem:[%s24423_s3 + $0x90] sm:$0xff]   ;;  %v2890_v18 = vld [vmem:[#allocation2 + $0x30] sm:$0xff] }
 0x1b0   :  { %v2666_v30 = vmax.f32 %v1992_v35, %v16919_v8  ;;  %v1993_v56 = vmax.f32 %v24650_v28, %v16852_v26  ;;  %v1858_v5 = vpop.f32.mrb[107].mxu0  ;;  %v2532_v21 = vpop.f32.mrb[107].mxu1  ;;  %v24661_v26 = vld [vmem:[#allocation34_spill] sm:$0xff]  ;;  %v24663_v28 = vld [vmem:[#allocation35_spill] sm:$0xff] }
 0x1b1   :  { %v2664_v32 = vmax.f32 %v1990_v25, %v2529_v45  ;;  %v1991_v57 = vmax.f32 %v24653_v54, %v1858_v5  ;;  %17561 = vmatprep.mubr.bf16.mxu1 %v21967_v41  ;;  %v24660_v25 = vld [vmem:[#allocation33_spill] sm:$0xff] }
 0x1b2   :  { %v2737_v20 = vadd.f32 %v21773_v52, %v2666_v30  ;;  %v2667_v3 = vmax.f32 %v1993_v56, %v16920_v40  ;;  %17562 = vmatmul.mubr.bf16.gmra.mrb[132].mxu1 %v21972_v33  ;;  %v24662_v40 = vmax.f32 %v24660_v25, %v24661_v26  ;;  %v24664_v56 = vld [vmem:[#allocation36_spill] sm:$0xff] }
 0x1b3   :  { %v2735_v6 = vadd.f32 %v21773_v52, %v2664_v32  ;;  %v2665_v7 = vmax.f32 %v1991_v57, %v2532_v21  ;;  %17581 = vmatprep.mubr.bf16.mxu1 %v21841_v63  ;;  %v24655_v63 = vld [vmem:[#allocation30_spill] sm:$0xff]  ;;  %v24665_v5 = vmax.f32 %v24663_v28, %v24664_v56  ;;  %v24666_v32 = vld [vmem:[#allocation37_spill] sm:$0xff] }
 0x1b4   :  { %2801 = vst [vmem:[#allocation2 + $0x2a0] sm:$0xff] %v2737_v20  ;;  %v2738_v42 = vadd.f32 %v21773_v52, %v2667_v3  ;;  %v24656_v4 = vmax.f32 %v24654_v16, %v24655_v63  ;;  %v24668_v37 = vmax.f32 %v24666_v32, %v24667_v44  ;;  %v24684_v44 = vld [vmem:[#allocation49_spill] sm:$0xff] }
 0x1b5   :  { %2799 = vst [vmem:[#allocation2 + $0x280] sm:$0xff] %v2735_v6  ;;  %v2736_v39 = vadd.f32 %v21773_v52, %v2665_v7  ;;  %v16855_v15 = vpop.f32.mrb[108].mxu0  ;;  %v16923_v14 = vpop.f32.mrb[108].mxu1  ;;  %v22022_v7 = vld [vmem:[%s24423_s3 + $0x98] sm:$0xff]  }
 0x1b6   :  { %2802 = vst [vmem:[#allocation2 + $0x2b0] sm:$0xff] %v2738_v42  ;;  %v1871_v9 = vpop.f32.mrb[109].mxu0  ;;  %v2545_v10 = vpop.f32.mrb[109].mxu1  ;;  %v2927_v12 = vpack.c.bf16 %v2738_v42, %v2737_v20  ;;  %v24670_v15 = vld [vmem:[#allocation40_spill] sm:$0xff] }
 0x1b7   :  { %2800 = vst [vmem:[#allocation2 + $0x290] sm:$0xff] %v2736_v39  ;;  %v1994_v60 = vmax.f32 %v24656_v4, %v1871_v9  ;;  %v16856_v61 = vpop.f32.mrb[110].mxu0  ;;  %v16924_v36 = vpop.f32.mrb[110].mxu1  ;;  %v2926_v58 = vpack.c.bf16 %v2736_v39, %v2735_v6  ;;  %v3321_v6 = vld [vmem:[#allocation2 + $0x81] sm:$0xff] }
 0x1b8   :  { %v1874_v8 = vpop.f32.mrb[111].mxu0  ;;  %v2548_v11 = vpop.f32.mrb[111].mxu1  ;;  %v24669_v39 = vld [vmem:[#allocation39_spill] sm:$0xff]  ;;  %v22027_v16 = vpack.c.bf16 %v3322_v31, %v3321_v6 }
 0x1b9   :  { %v1995_v35 = vmax.f32 %v24659_v2, %v1874_v8  ;;  %v2668_v38 = vmax.f32 %v1994_v60, %v2545_v10  ;;  %16961 = vmatprep.mubr.bf16.mxu0 %v2926_v58  ;;  %v24671_v14 = vmax.f32 %v24669_v39, %v24670_v15  ;;  %v24687_v39 = vld [vmem:[#allocation51_spill] sm:$0xff]  ;;  %v24688_v15 = vld [vmem:[#allocation52_spill] sm:$0xff] }
 0x1ba   :  { %17582 = vmatmul.mubr.bf16.vlgmr.msra.gmra.mrb[128].mxu1 %v21836_v0  ;;  %16962 = vmatmul.mubr.bf16.gmra.mrb[132].mxu0 %v2927_v12 }
 0x1bb   :  { %v2739_v45 = vadd.f32 %v21773_v52, %v2668_v38  ;;  %v2669_v46 = vmax.f32 %v1995_v35, %v2548_v11  ;;  %17590 = vmatpush3.bf16.msra.mxu1 %v21892_v51  ;;  %17585 = vmatprep.mubr.bf16.mxu1 %v2926_v58  ;;  %v22038_v58 = vld [vmem:[%s24423_s3 + $0xa0] sm:$0xff]   ;;  %v24673_v38 = vld [vmem:[#allocation42_spill] sm:$0xff] }
 0x1bc   :  { %17591 = vmatprep.subr.bf16.mxu1 %v21987_v55  ;;  %16981 = vmatprep.mubr.bf16.mxu0 %v2895_v17  ;;  %v2889_v17 = vld [vmem:[#allocation2 + $0x20] sm:$0xff]  ;;  %v24672_v35 = vld [vmem:[#allocation41_spill] sm:$0xff] }
 0x1bd   :  { %2803 = vst [vmem:[#allocation2 + $0x2c0] sm:$0xff] %v2739_v45  ;;  %v2740_v0 = vadd.f32 %v21773_v52, %v2669_v46  ;;  %v16859_v23 = vpop.f32.mrb[112].mxu0  ;;  %v16927_v24 = vpop.f32.mrb[112].mxu1  ;;  %v2896_v42 = vpack.c.bf16 %v2890_v18, %v2889_v17  ;;  %v24676_v18 = vld [vmem:[#allocation44_spill] sm:$0xff] }
 0x1be   :  { %v2000_v27 = vmax.f32 %v24662_v40, %v16859_v23  ;;  %v1887_v30 = vpop.f32.mrb[113].mxu0  ;;  %v2561_v47 = vpop.f32.mrb[113].mxu1 }
 0x1bf   :  { %2804 = vst [vmem:[#allocation2 + $0x2d0] sm:$0xff] %v2740_v0  ;;  %v1998_v21 = vmax.f32 %v24665_v5, %v1887_v30  ;;  %17592 = vmatpush3.bf16.msra.mxu1 %v21987_v55  ;;  %v16860_v59 = vpop.f32.mrb[114].mxu0  ;;  %v16928_v62 = vpop.f32.mrb[114].mxu1 }
 0x1c0   :  { %v2001_v54 = vmax.f32 %v24668_v37, %v16860_v59  ;;  %v2674_v57 = vmax.f32 %v2000_v27, %v16927_v24  ;;  %v1890_v20 = vpop.f32.mrb[115].mxu0  ;;  %17593 = vmatprep.subr.bf16.mxu1 %v22002_v50  ;;  %v2564_v3 = vpop.f32.mrb[115].mxu1  ;;  %v24675_v24 = vld [vmem:[#allocation43_spill] sm:$0xff]  ;;  %v24682_v59 = vld [vmem:[#allocation48_spill] sm:$0xff]  ;;  %v24685_v37 = vld [vmem:[#allocation50_spill] sm:$0xff] }
 0x1c1   :  { %v1999_v9 = vmax.f32 %v24671_v14, %v1890_v20  ;;  %v2672_v10 = vmax.f32 %v1998_v21, %v2561_v47  ;;  %v24677_v25 = vmax.f32 %v24675_v24, %v24676_v18  ;;  %v22080_v47 = vld [vmem:[%s24423_s3 + $0xb0] sm:$0xff]   ;;  %v24689_v14 = vmax.f32 %v24687_v39, %v24688_v15 }
 0x1c2   :  { %v2745_v63 = vadd.f32 %v21773_v52, %v2674_v57  ;;  %v2675_v4 = vmax.f32 %v2001_v54, %v16928_v62  ;;  %17586 = vmatmul.mubr.bf16.gmra.mrb[132].mxu1 %v2927_v12  ;;  %16982 = vmatmul.mubr.bf16.vlgmr.msra.gmra.mrb[128].mxu0 %v2896_v42  ;;  %v24681_v21 = vld [vmem:[#allocation47_spill] sm:$0xff]  ;;  %v24686_v54 = vmax.f32 %v24684_v44, %v24685_v37  ;;  %v20311_v44 = vld [vmem:[%s24423_s3 + $0xe8] sm:$0xff]  }
 0x1c3   :  { %v2743_v60 = vadd.f32 %v21773_v52, %v2672_v10  ;;  %v2673_v61 = vmax.f32 %v1999_v9, %v2564_v3  ;;  %17594 = vmatpush3.bf16.msra.mxu1 %v22002_v50  ;;  %17605 = vmatprep.mubr.bf16.mxu1 %v22027_v16  ;;  %v24683_v62 = vmax.f32 %v24681_v21, %v24682_v59  ;;  %v22099_v42 = vld [vmem:[%s24423_s3 + $0xb8] sm:$0xff]   ;;  %v3328_v21 = vld [vmem:[#allocation2 + $0x2b1] sm:$0xff] }
 0x1c4   :  { %2809 = vst [vmem:[#allocation2 + $0x320] sm:$0xff] %v2745_v63  ;;  %v2746_v36 = vadd.f32 %v21773_v52, %v2675_v4  ;;  %17595 = vmatprep.subr.bf16.mxu1 %v22022_v7  ;;  %16990 = vmatpush3.bf16.msra.mxu0 %v21892_v51  ;;  %v24674_v51 = vmax.f32 %v24672_v35, %v24673_v38  ;;  %v3323_v38 = vld [vmem:[#allocation2 + $0xa1] sm:$0xff]  ;;  %v3472_v59 = vld [vmem:[#allocation2 + $0x12] sm:$0xff] }
 0x1c5   :  { %2807 = vst [vmem:[#allocation2 + $0x300] sm:$0xff] %v2743_v60  ;;  %v2744_v12 = vadd.f32 %v21773_v52, %v2673_v61  ;;  %v16863_v8 = vpop.f32.mrb[116].mxu0  ;;  %v16931_v11 = vpop.f32.mrb[116].mxu1  ;;  %16985 = vmatprep.mubr.bf16.mxu0 %v2897_v13  ;;  %16991 = vmatprep.subr.bf16.mxu0 %v21987_v55 }
 0x1c6   :  { %2810 = vst [vmem:[#allocation2 + $0x330] sm:$0xff] %v2746_v36  ;;  %v1903_v19 = vpop.f32.mrb[117].mxu0  ;;  %v2577_v1 = vpop.f32.mrb[117].mxu1  ;;  %v22046_v2 = vpack.c.bf16 %v2746_v36, %v2745_v63 }
 0x1c7   :  { %2808 = vst [vmem:[#allocation2 + $0x310] sm:$0xff] %v2744_v12  ;;  %v2002_v45 = vmax.f32 %v24674_v51, %v1903_v19  ;;  %17596 = vmatpush3.bf16.msra.mxu1 %v22022_v7  ;;  %v16864_v46 = vpop.f32.mrb[118].mxu0  ;;  %v16932_v0 = vpop.f32.mrb[118].mxu1  ;;  %v22057_v53 = vpack.c.bf16 %v2744_v12, %v2743_v60  ;;  %v3324_v19 = vld [vmem:[#allocation2 + $0xb1] sm:$0xff]  ;;  %v3325_v51 = vld [vmem:[#allocation2 + $0x281] sm:$0xff] }
 0x1c8   :  { %v1906_v13 = vpop.f32.mrb[119].mxu0  ;;  %17597 = vmatprep.subr.bf16.mxu1 %v22038_v58  ;;  %v2580_v23 = vpop.f32.mrb[119].mxu1  ;;  %16992 = vmatpush3.bf16.msra.mxu0 %v21987_v55  ;;  %v22074_v55 = vld [vmem:[%s24422_s2] ss:$0 sm:$0xff]  ;;  %v20307_v46 = vld [vmem:[%s24423_s3 + $0xc8] sm:$0xff]  }
 0x1c9   :  { %v2003_v26 = vmax.f32 %v24677_v25, %v1906_v13  ;;  %v2676_v40 = vmax.f32 %v2002_v45, %v2577_v1  ;;  %16993 = vmatprep.subr.bf16.mxu0 %v22002_v50  ;;  %v3326_v45 = vld [vmem:[#allocation2 + $0x291] sm:$0xff]  ;;  %v24691_v13 = vld [vmem:[#allocation54_spill] sm:$0xff] }
 0x1ca   :  { %16986 = vmatmul.mubr.bf16.gmra.mrb[132].mxu0 %v2898_v22  ;;  %v24679_v22 = vld [vmem:[#allocation46_spill] sm:$0xff] }
 0x1cb   :  { %v2747_v27 = vadd.f32 %v21773_v52, %v2676_v40  ;;  %v2677_v30 = vmax.f32 %v2003_v26, %v2580_v23  ;;  %17598 = vmatpush3.bf16.msra.mxu1 %v22038_v58  ;;  %17005 = vmatprep.mubr.bf16.mxu0 %v21813_v29  ;;  %v24678_v29 = vld [vmem:[#allocation45_spill] sm:$0xff] }
 0x1cc   :  { %17599 = vmatprep.subr.bf16.mxu1 %v22055_v43  ;;  %16994 = vmatpush3.bf16.msra.mxu0 %v22002_v50  ;;  %v24680_v31 = vmax.f32 %v24678_v29, %v24679_v22 }
 0x1cd   :  { %2811 = vst [vmem:[#allocation2 + $0x340] sm:$0xff] %v2747_v27  ;;  %v2748_v52 = vadd.f32 %v22074_v55, %v2677_v30  ;;  %v16867_v34 = vpop.f32.mrb[120].mxu0  ;;  %v16935_v49 = vpop.f32.mrb[120].mxu1  ;;  %16995 = vmatprep.subr.bf16.mxu0 %v22022_v7  ;;  %v22128_v27 = vpack.c.bf16 %v3324_v19, %v3323_v38 }
 0x1ce   :  { %v2008_v28 = vmax.f32 %v24680_v31, %v16867_v34  ;;  %v1919_v56 = vpop.f32.mrb[121].mxu0  ;;  %v2593_v5 = vpop.f32.mrb[121].mxu1  ;;  %v24694_v34 = vld [vmem:[#allocation56_spill] sm:$0xff]  ;;  %v22134_v31 = vpack.c.bf16 %v3326_v45, %v3325_v51 }
 0x1cf   :  { %2812 = vst [vmem:[#allocation2 + $0x350] sm:$0xff] %v2748_v52  ;;  %v2006_v17 = vmax.f32 %v24683_v62, %v1919_v56  ;;  %17600 = vmatpush3.bf16.msra.mxu1 %v22055_v43  ;;  %v16868_v50 = vpop.f32.mrb[122].mxu0  ;;  %v16936_v32 = vpop.f32.mrb[122].mxu1  ;;  %v24693_v52 = vld [vmem:[#allocation55_spill] sm:$0xff] }
 0x1d0   :  { %v2009_v57 = vmax.f32 %v24686_v54, %v16868_v50  ;;  %v2682_v20 = vmax.f32 %v2008_v28, %v16935_v49  ;;  %v1922_v3 = vpop.f32.mrb[123].mxu0  ;;  %17601 = vmatprep.subr.bf16.mxu1 %v22080_v47  ;;  %v2596_v6 = vpop.f32.mrb[123].mxu1  ;;  %16996 = vmatpush3.bf16.msra.mxu0 %v22022_v7  ;;  %v20306_v7 = vld [vmem:[%s24423_s3 + $0xc0] sm:$0xff]   ;;  %v24695_v49 = vmax.f32 %v24693_v52, %v24694_v34  ;;  %v3327_v62 = vld [vmem:[#allocation2 + $0x2a1] sm:$0xff] }
 0x1d1   :  { %v2007_v9 = vmax.f32 %v24689_v14, %v1922_v3  ;;  %v2680_v10 = vmax.f32 %v2006_v17, %v2593_v5  ;;  %16997 = vmatprep.subr.bf16.mxu0 %v22038_v58  ;;  %v22146_v17 = vpack.c.bf16 %v3328_v21, %v3327_v62  ;;  %v3471_v50 = vld [vmem:[#allocation2 + $0x2] sm:$0xff] }
 0x1d2   :  { %v2753_v63 = vadd.f32 %v22074_v55, %v2682_v20  ;;  %v2683_v4 = vmax.f32 %v2009_v57, %v16936_v32  ;;  %v20309_v32 = vld [vmem:[%s24423_s3 + $0xd8] sm:$0xff]  }
 0x1d3   :  { %v2751_v60 = vadd.f32 %v22074_v55, %v2680_v10  ;;  %v2681_v61 = vmax.f32 %v2007_v9, %v2596_v6  ;;  %17602 = vmatpush3.bf16.msra.mxu1 %v22080_v47 }
 0x1d4   :  { %2817 = vst [vmem:[#allocation2 + $0x3a0] sm:$0xff] %v2753_v63  ;;  %v2754_v36 = vadd.f32 %v22074_v55, %v2683_v4  ;;  %17603 = vmatprep.subr.bf16.mxu1 %v22099_v42  ;;  %16998 = vmatpush3.bf16.msra.mxu0 %v22038_v58  ;;  %v24690_v58 = vld [vmem:[#allocation53_spill] sm:$0xff] }
 0x1d5   :  { %2815 = vst [vmem:[#allocation2 + $0x380] sm:$0xff] %v2751_v60  ;;  %v2752_v12 = vadd.f32 %v22074_v55, %v2681_v61  ;;  %v16871_v8 = vpop.f32.mrb[124].mxu0  ;;  %v16939_v11 = vpop.f32.mrb[124].mxu1  ;;  %16999 = vmatprep.subr.bf16.mxu0 %v22055_v43  ;;  %v24692_v23 = vmax.f32 %v24690_v58, %v24691_v13 }
 0x1d6   :  { %2818 = vst [vmem:[#allocation2 + $0x3b0] sm:$0xff] %v2754_v36  ;;  %v1935_v1 = vpop.f32.mrb[125].mxu0  ;;  %v2609_v35 = vpop.f32.mrb[125].mxu1  ;;  %v22120_v0 = vpack.c.bf16 %v2754_v36, %v2753_v63 }
 0x1d7   :  { %2816 = vst [vmem:[#allocation2 + $0x390] sm:$0xff] %v2752_v12  ;;  %v2010_v24 = vmax.f32 %v24692_v23, %v1935_v1  ;;  %17604 = vmatpush3.bf16.msra.mxu1 %v22099_v42  ;;  %v16872_v18 = vpop.f32.mrb[126].mxu0  ;;  %v16940_v25 = vpop.f32.mrb[126].mxu1  ;;  %v22126_v26 = vpack.c.bf16 %v2752_v12, %v2751_v60 }
 0x1d8   :  { %v1938_v40 = vpop.f32.mrb[127].mxu0  ;;  %17613 = vmatprep.subr.bf16.mxu1 %v20306_v7  ;;  %v2612_v30 = vpop.f32.mrb[127].mxu1  ;;  %17000 = vmatpush3.bf16.msra.mxu0 %v22055_v43  ;;  %v20308_v43 = vld [vmem:[%s24423_s3 + $0xd0] sm:$0xff]  }
 0x1d9   :  { %v2011_v29 = vmax.f32 %v24695_v49, %v1938_v40  ;;  %v2684_v22 = vmax.f32 %v2010_v24, %v2609_v35  ;;  %17001 = vmatprep.subr.bf16.mxu0 %v22080_v47 }
 0x1da   :  { %17606 = vmatmul.mubr.bf16.vlgmr.msra.gmra.mrb[128].mxu1 %v22128_v27 }
 0x1db   :  { %v2755_v28 = vadd.f32 %v22074_v55, %v2684_v22  ;;  %v2685_v56 = vmax.f32 %v2011_v29, %v2612_v30  ;;  %17609 = vmatprep.mubr.bf16.mxu1 %v22134_v31  ;;  %17614 = vmatpush3.bf16.msra.mxu1 %v20306_v7 }
 0x1dc   :  { %17615 = vmatprep.subr.bf16.mxu1 %v20307_v46  ;;  %17002 = vmatpush3.bf16.msra.mxu0 %v22080_v47  ;;  %v22152_v47 = vpack.c.bf16 %v3472_v59, %v3471_v50 }
 0x1dd   :  { %2819 = vst [vmem:[#allocation2 + $0x3c0] sm:$0xff] %v2755_v28  ;;  %v2756_v5 = vadd.f32 %v22074_v55, %v2685_v56  ;;  %17003 = vmatprep.subr.bf16.mxu0 %v22099_v42  ;;  %v20310_v55 = vld [vmem:[%s24423_s3 + $0xe0] sm:$0xff]  }
 0x1df   :  { %2820 = vst [vmem:[#allocation2 + $0x3d0] sm:$0xff] %v2756_v5  ;;  %17616 = vmatpush3.bf16.msra.mxu1 %v20307_v46 }
 0x1e0   :  { %17617 = vmatprep.subr.bf16.mxu1 %v20308_v43  ;;  %17004 = vmatpush3.bf16.msra.mxu0 %v22099_v42 }
 0x1e1   :  { %17013 = vmatprep.subr.bf16.mxu0 %v20306_v7 }
 0x1e2   :  { %17610 = vmatmul.mubr.bf16.gmra.mrb[132].mxu1 %v22146_v17 }
 0x1e3   :  { %17618 = vmatpush3.bf16.msra.mxu1 %v20308_v43  ;;  %17629 = vmatprep.mubr.bf16.mxu1 %v22152_v47 }
 0x1e4   :  { %17619 = vmatprep.subr.bf16.mxu1 %v20309_v32  ;;  %17006 = vmatmul.mubr.bf16.vlgmr.msra.gmra.mrb[128].mxu0 %v21818_v48  ;;  %v20312_v48 = vld [vmem:[%s24423_s3 + $0xf0] sm:$0xff]  }
 0x1e5   :  { %17009 = vmatprep.mubr.bf16.mxu0 %v21967_v41  ;;  %17014 = vmatpush3.bf16.msra.mxu0 %v20306_v7  ;;  %v20313_v41 = vld [vmem:[%s24423_s3 + $0xf8] sm:$0xff]  }
 0x1e6   :  { %17015 = vmatprep.subr.bf16.mxu0 %v20307_v46 }
 0x1e7   :  { %17620 = vmatpush3.bf16.msra.mxu1 %v20309_v32 }
 0x1e8   :  { %17621 = vmatprep.subr.bf16.mxu1 %v20310_v55 }
 0x1e9   :  { %17016 = vmatpush3.bf16.msra.mxu0 %v20307_v46 }
 0x1ea   :  { %17017 = vmatprep.subr.bf16.mxu0 %v20308_v43 }
 0x1eb   :  { %17622 = vmatpush3.bf16.msra.mxu1 %v20310_v55 }
 0x1ec   :  { %17623 = vmatprep.subr.bf16.mxu1 %v20311_v44  ;;  %17010 = vmatmul.mubr.bf16.gmra.mrb[132].mxu0 %v21972_v33 }
 0x1ed   :  { %17018 = vmatpush3.bf16.msra.mxu0 %v20308_v43  ;;  %17029 = vmatprep.mubr.bf16.mxu0 %v22027_v16 }
 0x1ee   :  { %17019 = vmatprep.subr.bf16.mxu0 %v20309_v32 }
 0x1ef   :  { %17624 = vmatpush3.bf16.msra.mxu1 %v20311_v44 }
 0x1f0   :  { %17625 = vmatprep.subr.bf16.mxu1 %v20312_v48 }
 0x1f1   :  { %17020 = vmatpush3.bf16.msra.mxu0 %v20309_v32 }
 0x1f2   :  { %16 = vsyncpa [#allocation5], 0  ;;  %17021 = vmatprep.subr.bf16.mxu0 %v20310_v55  ;;  %v20314_v37 = vld [vmem:[%s24423_s3 + $0x100] sm:$0xff]   ;;  %v3473_v16 = vld [vmem:[#allocation2 + $0x22] sm:$0xff]  ;;  %vm12272_vm1 = vcmask 1041409   ;;  %vm20853_vm2 = vmmov 0  }
 0x1f3   :  { %17626 = vmatpush3.bf16.msra.mxu1 %v20312_v48  ;;  %v3474_v33 = vld [vmem:[#allocation2 + $0x32] sm:$0xff]  ;;  %v3475_v20 = vld [vmem:[#allocation2 + $0x202] sm:$0xff]  ;;  %s20854_s14 = smov [#allocation4]  }
 0x1f4   :  { %17627 = vmatprep.subr.bf16.mxu1 %v20313_v41  ;;  %v3476_v54 = vld [vmem:[#allocation2 + $0x212] sm:$0xff]  ;;  %v22175_v57 = vpack.c.bf16 %v3474_v33, %v3473_v16  ;;  %v20316_v42 = vld [vmem:[%s24423_s3 + $0x110] sm:$0xff]   ;;  %v20317_v63 = vld [vmem:[%s24423_s3 + $0x118] sm:$0xff]   ;;  %s13948_s15 = sshll.u32 %s20854_s14, 4  ;;  %s13949_s15 = int_to_ptr.vmem [resolvable:$true] %s13948_s15 }
 0x1f5   :  { %17022 = vmatpush3.bf16.msra.mxu0 %v20310_v55  ;;  %v20315_v3 = vld [vmem:[%s24423_s3 + $0x108] sm:$0xff]   ;;  %v22180_v6 = vpack.c.bf16 %v3476_v54, %v3475_v20  ;;  %v3477_v14 = vld [vmem:[#allocation2 + $0x222] sm:$0xff]  ;;  %v20318_v60 = vld [vmem:[%s24423_s3 + $0x120] sm:$0xff]   ;;  %p20833_p1 = scmp.lt.s32.totalorder %s13949_s15, %s13949_s15 }
 0x1f6   :  { %17023 = vmatprep.subr.bf16.mxu0 %v20311_v44  ;;  %v3478_v39 = vld [vmem:[#allocation2 + $0x232] sm:$0xff]  ;;  %v6905_v10 = vld [vmem:[#allocation2 + $0x82] sm:$0xff] }
 0x1f7   :  { %17628 = vmatpush3.bf16.msra.mxu1 %v20313_v41  ;;  %v6906_v15 = vld [vmem:[#allocation2 + $0x92] sm:$0xff]  ;;  %v22187_v9 = vpack.c.bf16 %v3478_v39, %v3477_v14  ;;  %v20320_v36 = vld [vmem:[%s24423_s3 + $0x130] sm:$0xff]   ;;  %v20321_v7 = vld [vmem:[%s24423_s3 + $0x138] sm:$0xff]  }
 0x1f8   :  { %17637 = vmatprep.subr.bf16.mxu1 %v20314_v37  ;;  %v6913_v4 = vpack.c.bf16 %v6906_v15, %v6905_v10  ;;  %v20319_v61 = vld [vmem:[%s24423_s3 + $0x128] sm:$0xff]   ;;  %v20322_v12 = vld [vmem:[%s24423_s3 + $0x140] sm:$0xff]   ;;  %v6907_v19 = vld [vmem:[#allocation2 + $0xa2] sm:$0xff] }
 0x1f9   :  { %17024 = vmatpush3.bf16.msra.mxu0 %v20311_v44  ;;  %v6908_v8 = vld [vmem:[#allocation2 + $0xb2] sm:$0xff]  ;;  %v6909_v35 = vld [vmem:[#allocation2 + $0x282] sm:$0xff] }
 0x1fa   :  { %17630 = vmatmul.mubr.bf16.vlgmr.msra.gmra.mrb[128].mxu1 %v22175_v57  ;;  %17025 = vmatprep.subr.bf16.mxu0 %v20312_v48  ;;  %v6910_v11 = vld [vmem:[#allocation2 + $0x292] sm:$0xff]  ;;  %v6914_v1 = vpack.c.bf16 %v6908_v8, %v6907_v19  ;;  %v20324_v45 = vld [vmem:[%s24423_s3 + $0x150] sm:$0xff]   ;;  %v20325_v18 = vld [vmem:[%s24423_s3 + $0x158] sm:$0xff]  }
 0x1fb   :  { %17633 = vmatprep.mubr.bf16.mxu1 %v22180_v6  ;;  %17638 = vmatpush3.bf16.msra.mxu1 %v20314_v37  ;;  %v20323_v38 = vld [vmem:[%s24423_s3 + $0x148] sm:$0xff]   ;;  %v6915_v51 = vpack.c.bf16 %v6910_v11, %v6909_v35  ;;  %v3774_v58 = vld [vmem:[#allocation2 + $0x190] sm:$0xff]  ;;  %v6911_v13 = vld [vmem:[#allocation2 + $0x2a2] sm:$0xff] }
 0x1fc   :  { %17639 = vmatprep.subr.bf16.mxu1 %v20315_v3  ;;  %v6912_v46 = vld [vmem:[#allocation2 + $0x2b2] sm:$0xff]  ;;  %v3773_v24 = vld [vmem:[#allocation2 + $0x180] sm:$0xff]  ;;  %v20329_v29 = vld [vmem:[%s24423_s3 + $0x178] sm:$0xff]  }
 0x1fd   :  { %17026 = vmatpush3.bf16.msra.mxu0 %v20312_v48  ;;  %v6916_v23 = vpack.c.bf16 %v6912_v46, %v6911_v13  ;;  %v22221_v25 = vpack.c.bf16 %v3774_v58, %v3773_v24  ;;  %v20326_v40 = vld [vmem:[%s24423_s3 + $0x160] sm:$0xff]   ;;  %v3622_v52 = vld [vmem:[#allocation2 + $0x100] sm:$0xff]  ;;  %v20331_v43 = vld [vmem:[%s24423_s3 + $0x188] sm:$0xff]  }
 0x1fe   :  { %17027 = vmatprep.subr.bf16.mxu0 %v20313_v41  ;;  %v3623_v30 = vld [vmem:[#allocation2 + $0x110] sm:$0xff]  ;;  %v20328_v49 = vld [vmem:[%s24423_s3 + $0x170] sm:$0xff]   ;;  %v20335_v44 = vld [vmem:[%s24423_s3 + $0x1a8] sm:$0xff]  }
 0x1ff   :  { %17640 = vmatpush3.bf16.msra.mxu1 %v20315_v3  ;;  %v22232_v34 = vpack.c.bf16 %v3623_v30, %v3622_v52  ;;  %v20330_v22 = vld [vmem:[%s24423_s3 + $0x180] sm:$0xff]   ;;  %v3775_v28 = vld [vmem:[#allocation2 + $0x1a0] sm:$0xff]  ;;  %v20351_v30 = vld [vmem:[%s24423_s3 + $0x228] sm:$0xff]  }
 0x200   :  { %17641 = vmatprep.subr.bf16.mxu1 %v20316_v42  ;;  %v20332_v5 = vld [vmem:[%s24423_s3 + $0x190] sm:$0xff]   ;;  %v3924_v21 = vld [vmem:[#allocation2 + $0x111] sm:$0xff] }
 0x201   :  { %17028 = vmatpush3.bf16.msra.mxu0 %v20313_v41  ;;  %v3625_v59 = vld [vmem:[#allocation2 + $0x130] sm:$0xff]  ;;  %v3923_v62 = vld [vmem:[#allocation2 + $0x101] sm:$0xff] }
 0x202   :  { %17634 = vmatmul.mubr.bf16.gmra.mrb[132].mxu1 %v22187_v9  ;;  %17037 = vmatprep.subr.bf16.mxu0 %v20314_v37  ;;  %v22258_v50 = vpack.c.bf16 %v3924_v21, %v3923_v62  ;;  %v3624_v32 = vld [vmem:[#allocation2 + $0x120] sm:$0xff]  ;;  %v20334_v55 = vld [vmem:[%s24423_s3 + $0x1a0] sm:$0xff]   ;;  %v20337_v41 = vld [vmem:[%s24423_s3 + $0x1b8] sm:$0xff]  }
 0x203   :  { %17642 = vmatpush3.bf16.msra.mxu1 %v20316_v42  ;;  %17653 = vmatprep.mubr.bf16.mxu1 %v6913_v4  ;;  %v20336_v48 = vld [vmem:[%s24423_s3 + $0x1b0] sm:$0xff]   ;;  %v3926_v33 = vld [vmem:[#allocation2 + $0x131] sm:$0xff] }
 0x204   :  { %17643 = vmatprep.subr.bf16.mxu1 %v20317_v63  ;;  %17030 = vmatmul.mubr.bf16.vlgmr.msra.gmra.mrb[128].mxu0 %v22128_v27  ;;  %v20327_v27 = vld [vmem:[%s24423_s3 + $0x168] sm:$0xff]   ;;  %v3925_v16 = vld [vmem:[#allocation2 + $0x121] sm:$0xff] }
 0x205   :  { %17033 = vmatprep.mubr.bf16.mxu0 %v22134_v31  ;;  %17038 = vmatpush3.bf16.msra.mxu0 %v20314_v37  ;;  %v3776_v31 = vld [vmem:[#allocation2 + $0x1b0] sm:$0xff]  ;;  %v3927_v20 = vld [vmem:[#allocation2 + $0x301] sm:$0xff]  ;;  %v20355_v21 = vld [vmem:[%s24423_s3 + $0x248] sm:$0xff]  }
 0x206   :  { %17039 = vmatprep.subr.bf16.mxu0 %v20315_v3  ;;  %v22245_v56 = vpack.c.bf16 %v3776_v31, %v3775_v28  ;;  %v20338_v37 = vld [vmem:[%s24423_s3 + $0x1c0] sm:$0xff]   ;;  %v3929_v14 = vld [vmem:[#allocation2 + $0x321] sm:$0xff] }
 0x207   :  { %17644 = vmatpush3.bf16.msra.mxu1 %v20317_v63  ;;  %v3928_v54 = vld [vmem:[#allocation2 + $0x311] sm:$0xff]  ;;  %v4073_v10 = vld [vmem:[#allocation2 + $0x181] sm:$0xff] }
 0x208   :  { %17645 = vmatprep.subr.bf16.mxu1 %v20318_v60  ;;  %v3930_v39 = vld [vmem:[#allocation2 + $0x331] sm:$0xff]  ;;  %v4075_v19 = vld [vmem:[#allocation2 + $0x1a1] sm:$0xff] }
 0x209   :  { %17040 = vmatpush3.bf16.msra.mxu0 %v20315_v3  ;;  %v20339_v3 = vld [vmem:[%s24423_s3 + $0x1c8] sm:$0xff]   ;;  %v4077_v35 = vld [vmem:[#allocation2 + $0x381] sm:$0xff] }
 0x20a   :  { %17041 = vmatprep.subr.bf16.mxu0 %v20316_v42  ;;  %v4074_v15 = vld [vmem:[#allocation2 + $0x191] sm:$0xff]  ;;  %v4079_v13 = vld [vmem:[#allocation2 + $0x3a1] sm:$0xff] }
 0x20b   :  { %17646 = vmatpush3.bf16.msra.mxu1 %v20318_v60  ;;  %v22300_v4 = vpack.c.bf16 %v4074_v15, %v4073_v10  ;;  %v4076_v8 = vld [vmem:[#allocation2 + $0x1b1] sm:$0xff]  ;;  %v4223_v24 = vld [vmem:[#allocation2 + $0x102] sm:$0xff] }
 0x20c   :  { %17647 = vmatprep.subr.bf16.mxu1 %v20319_v61  ;;  %17034 = vmatmul.mubr.bf16.gmra.mrb[132].mxu0 %v22146_v17  ;;  %v20333_v17 = vld [vmem:[%s24423_s3 + $0x198] sm:$0xff]   ;;  %v4078_v11 = vld [vmem:[#allocation2 + $0x391] sm:$0xff]  ;;  %v20352_v52 = vld [vmem:[%s24423_s3 + $0x230] sm:$0xff]  }
 0x20d   :  { %17042 = vmatpush3.bf16.msra.mxu0 %v20316_v42  ;;  %17053 = vmatprep.mubr.bf16.mxu0 %v22152_v47  ;;  %v22261_v47 = vpack.c.bf16 %v3625_v59, %v3624_v32  ;;  %v20340_v42 = vld [vmem:[%s24423_s3 + $0x1d0] sm:$0xff]   ;;  %v4080_v46 = vld [vmem:[#allocation2 + $0x3b1] sm:$0xff] }
 0x20e   :  { %17043 = vmatprep.subr.bf16.mxu0 %v20317_v63  ;;  %v4224_v58 = vld [vmem:[#allocation2 + $0x112] sm:$0xff]  ;;  %v4225_v28 = vld [vmem:[#allocation2 + $0x122] sm:$0xff] }
 0x20f   :  { %17648 = vmatpush3.bf16.msra.mxu1 %v20319_v61  ;;  %v4228_v31 = vld [vmem:[#allocation2 + $0x312] sm:$0xff]  ;;  %v20356_v62 = vld [vmem:[%s24423_s3 + $0x250] sm:$0xff]  }
 0x210   :  { %17649 = vmatprep.subr.bf16.mxu1 %v20320_v36  ;;  %v7283_v32 = vld [vmem:[#allocation2 + $0x192] sm:$0xff]  ;;  %v7284_v15 = vld [vmem:[#allocation2 + $0x1a2] sm:$0xff] }
 0x211   :  { %17044 = vmatpush3.bf16.msra.mxu0 %v20317_v63  ;;  %v20341_v63 = vld [vmem:[%s24423_s3 + $0x1d8] sm:$0xff]  }
 0x212   :  { %17045 = vmatprep.subr.bf16.mxu0 %v20318_v60  ;;  %v7286_v10 = vld [vmem:[#allocation2 + $0x382] sm:$0xff] }
 0x213   :  { %17650 = vmatpush3.bf16.msra.mxu1 %v20320_v36 }
 0x214   :  { %17651 = vmatprep.subr.bf16.mxu1 %v20321_v7 }
 0x215   :  { %17046 = vmatpush3.bf16.msra.mxu0 %v20318_v60  ;;  %v20342_v60 = vld [vmem:[%s24423_s3 + $0x1e0] sm:$0xff]  }
 0x216   :  { %17047 = vmatprep.subr.bf16.mxu0 %v20319_v61 }
 0x217   :  { %17652 = vmatpush3.bf16.msra.mxu1 %v20321_v7 }
 0x218   :  { %17661 = vmatprep.subr.bf16.mxu1 %v20322_v12 }
 0x219   :  { %17048 = vmatpush3.bf16.msra.mxu0 %v20319_v61  ;;  %v20343_v61 = vld [vmem:[%s24423_s3 + $0x1e8] sm:$0xff]  }
 0x21a   :  { %17654 = vmatmul.mubr.bf16.vlgmr.msra.gmra.mrb[128].mxu1 %v6914_v1  ;;  %17049 = vmatprep.subr.bf16.mxu0 %v20320_v36  ;;  %v22323_v1 = vpack.c.bf16 %v4076_v8, %v4075_v19  ;;  %v20365_v19 = vld [vmem:[%s24423_s3 + $0x298] sm:$0xff]  }
 0x21b   :  { %17657 = vmatprep.mubr.bf16.mxu1 %v6915_v51  ;;  %17662 = vmatpush3.bf16.msra.mxu1 %v20322_v12  ;;  %v22328_v51 = vpack.c.bf16 %v4078_v11, %v4077_v35  ;;  %v4526_v11 = vld [vmem:[#allocation2 + $0xa0] sm:$0xff] }
 0x21c   :  { %17663 = vmatprep.subr.bf16.mxu1 %v20323_v38 }
 0x21d   :  { %17050 = vmatpush3.bf16.msra.mxu0 %v20320_v36  ;;  %v20344_v36 = vld [vmem:[%s24423_s3 + $0x1f0] sm:$0xff]  }
 0x21e   :  { %17051 = vmatprep.subr.bf16.mxu0 %v20321_v7 }
 0x21f   :  { %17664 = vmatpush3.bf16.msra.mxu1 %v20323_v38 }
 0x220   :  { %17665 = vmatprep.subr.bf16.mxu1 %v20324_v45 }
 0x221   :  { %17052 = vmatpush3.bf16.msra.mxu0 %v20321_v7  ;;  %v20345_v7 = vld [vmem:[%s24423_s3 + $0x1f8] sm:$0xff]  }
 0x222   :  { %17658 = vmatmul.mubr.bf16.gmra.mrb[132].mxu1 %v6916_v23  ;;  %17061 = vmatprep.subr.bf16.mxu0 %v20322_v12  ;;  %v22335_v23 = vpack.c.bf16 %v4080_v46, %v4079_v13  ;;  %v4374_v46 = vld [vmem:[#allocation2 + $0x10] sm:$0xff] }
 0x223   :  { %17666 = vmatpush3.bf16.msra.mxu1 %v20324_v45  ;;  %17677 = vmatprep.mubr.bf16.mxu1 %v22221_v25 }
 0x224   :  { %17667 = vmatprep.subr.bf16.mxu1 %v20325_v18  ;;  %17054 = vmatmul.mubr.bf16.vlgmr.msra.gmra.mrb[128].mxu0 %v22175_v57  ;;  %v22283_v57 = vpack.c.bf16 %v3926_v33, %v3925_v16  ;;  %v20358_v33 = vld [vmem:[%s24423_s3 + $0x260] sm:$0xff]   ;;  %v20360_v16 = vld [vmem:[%s24423_s3 + $0x270] sm:$0xff]  }
 0x225   :  { %17057 = vmatprep.mubr.bf16.mxu0 %v22180_v6  ;;  %17062 = vmatpush3.bf16.msra.mxu0 %v20322_v12  ;;  %v22288_v6 = vpack.c.bf16 %v3928_v54, %v3927_v20  ;;  %v20346_v12 = vld [vmem:[%s24423_s3 + $0x200] sm:$0xff]   ;;  %v20359_v54 = vld [vmem:[%s24423_s3 + $0x268] sm:$0xff]   ;;  %v20361_v20 = vld [vmem:[%s24423_s3 + $0x278] sm:$0xff]  }
 0x226   :  { %17063 = vmatprep.subr.bf16.mxu0 %v20323_v38 }
 0x227   :  { %17668 = vmatpush3.bf16.msra.mxu1 %v20325_v18 }
 0x228   :  { %17669 = vmatprep.subr.bf16.mxu1 %v20326_v40 }
 0x229   :  { %17064 = vmatpush3.bf16.msra.mxu0 %v20323_v38  ;;  %v20347_v38 = vld [vmem:[%s24423_s3 + $0x208] sm:$0xff]  }
 0x22a   :  { %17065 = vmatprep.subr.bf16.mxu0 %v20324_v45 }
 0x22b   :  { %17670 = vmatpush3.bf16.msra.mxu1 %v20326_v40 }
 0x22c   :  { %17671 = vmatprep.subr.bf16.mxu1 %v20327_v27  ;;  %17058 = vmatmul.mubr.bf16.gmra.mrb[132].mxu0 %v22187_v9  ;;  %v22295_v9 = vpack.c.bf16 %v3930_v39, %v3929_v14  ;;  %v7287_v39 = vld [vmem:[#allocation2 + $0x392] sm:$0xff] }
 0x22d   :  { %17066 = vmatpush3.bf16.msra.mxu0 %v20324_v45  ;;  %17077 = vmatprep.mubr.bf16.mxu0 %v22232_v34  ;;  %v20348_v45 = vld [vmem:[%s24423_s3 + $0x210] sm:$0xff]  }
 0x22e   :  { %17067 = vmatprep.subr.bf16.mxu0 %v20325_v18 }
 0x22f   :  { %17672 = vmatpush3.bf16.msra.mxu1 %v20327_v27 }
 0x230   :  { %17673 = vmatprep.subr.bf16.mxu1 %v20328_v49 }
 0x231   :  { %17068 = vmatpush3.bf16.msra.mxu0 %v20325_v18  ;;  %v20349_v18 = vld [vmem:[%s24423_s3 + $0x218] sm:$0xff]  }
 0x232   :  { %17069 = vmatprep.subr.bf16.mxu0 %v20326_v40 }
 0x233   :  { %17674 = vmatpush3.bf16.msra.mxu1 %v20328_v49 }
 0x234   :  { %17675 = vmatprep.subr.bf16.mxu1 %v20329_v29 }
 0x235   :  { %17070 = vmatpush3.bf16.msra.mxu0 %v20326_v40  ;;  %v22340_v40 = vpack.c.bf16 %v4224_v58, %v4223_v24  ;;  %v4375_v58 = vld [vmem:[#allocation2 + $0x20] sm:$0xff] }
 0x236   :  { %17071 = vmatprep.subr.bf16.mxu0 %v20327_v27  ;;  %v22432_v13 = vpack.c.bf16 %v4375_v58, %v4374_v46  ;;  %v20368_v24 = vld [vmem:[%s24423_s3 + $0x2b0] sm:$0xff]   ;;  %v20379_v58 = vld [vmem:[%s24423_s3 + $0x308] sm:$0xff]  }
 0x237   :  { %17676 = vmatpush3.bf16.msra.mxu1 %v20329_v29  ;;  %v4680_v46 = vld [vmem:[#allocation2 + $0x221] sm:$0xff] }
 0x238   :  { %17685 = vmatprep.subr.bf16.mxu1 %v20330_v22 }
 0x239   :  { %17072 = vmatpush3.bf16.msra.mxu0 %v20327_v27  ;;  %v20350_v27 = vld [vmem:[%s24423_s3 + $0x220] sm:$0xff]  }
 0x23a   :  { %17678 = vmatmul.mubr.bf16.vlgmr.msra.gmra.mrb[128].mxu1 %v22245_v56  ;;  %17073 = vmatprep.subr.bf16.mxu0 %v20328_v49 }
 0x23b   :  { %17681 = vmatprep.mubr.bf16.mxu1 %v22126_v26  ;;  %17686 = vmatpush3.bf16.msra.mxu1 %v20330_v22 }
 0x23c   :  { %17687 = vmatprep.subr.bf16.mxu1 %v20331_v43 }
 0x23d   :  { %17074 = vmatpush3.bf16.msra.mxu0 %v20328_v49  ;;  %v20353_v49 = vld [vmem:[%s24423_s3 + $0x238] sm:$0xff]  }
 0x23e   :  { %17075 = vmatprep.subr.bf16.mxu0 %v20329_v29 }
 0x23f   :  { %17688 = vmatpush3.bf16.msra.mxu1 %v20331_v43 }
 0x240   :  { %17689 = vmatprep.subr.bf16.mxu1 %v20332_v5 }
 0x241   :  { %17076 = vmatpush3.bf16.msra.mxu0 %v20329_v29  ;;  %v20354_v29 = vld [vmem:[%s24423_s3 + $0x240] sm:$0xff]  }
 0x242   :  { %17682 = vmatmul.mubr.bf16.gmra.mrb[132].mxu1 %v22120_v0  ;;  %17085 = vmatprep.subr.bf16.mxu0 %v20330_v22 }
 0x243   :  { %17690 = vmatpush3.bf16.msra.mxu1 %v20332_v5  ;;  %17701 = vmatprep.mubr.bf16.mxu1 %v22258_v50 }
 0x244   :  { %17691 = vmatprep.subr.bf16.mxu1 %v20333_v17  ;;  %17078 = vmatmul.mubr.bf16.vlgmr.msra.gmra.mrb[128].mxu0 %v22261_v47 }
 0x245   :  { %17081 = vmatprep.mubr.bf16.mxu0 %v22057_v53  ;;  %17086 = vmatpush3.bf16.msra.mxu0 %v20330_v22  ;;  %v4226_v22 = vld [vmem:[#allocation2 + $0x132] sm:$0xff] }
 0x246   :  { %17087 = vmatprep.subr.bf16.mxu0 %v20331_v43 }
 0x247   :  { %17692 = vmatpush3.bf16.msra.mxu1 %v20333_v17 }
 0x248   :  { %17693 = vmatprep.subr.bf16.mxu1 %v20334_v55 }
 0x249   :  { %17088 = vmatpush3.bf16.msra.mxu0 %v20331_v43  ;;  %v22363_v43 = vpack.c.bf16 %v4226_v22, %v4225_v28  ;;  %v4530_v22 = vld [vmem:[#allocation2 + $0x2a0] sm:$0xff] }
 0x24a   :  { %17089 = vmatprep.subr.bf16.mxu0 %v20332_v5 }
 0x24b   :  { %17694 = vmatpush3.bf16.msra.mxu1 %v20334_v55 }
 0x24c   :  { %17695 = vmatprep.subr.bf16.mxu1 %v20335_v44  ;;  %17082 = vmatmul.mubr.bf16.gmra.mrb[132].mxu0 %v22046_v2 }
 0x24d   :  { %17090 = vmatpush3.bf16.msra.mxu0 %v20332_v5  ;;  %17101 = vmatprep.mubr.bf16.mxu0 %v22221_v25  ;;  %v4227_v5 = vld [vmem:[#allocation2 + $0x302] sm:$0xff] }
 0x24e   :  { %17091 = vmatprep.subr.bf16.mxu0 %v20333_v17  ;;  %v22368_v59 = vpack.c.bf16 %v4228_v31, %v4227_v5  ;;  %v20371_v31 = vld [vmem:[%s24423_s3 + $0x2c8] sm:$0xff]   ;;  %v20372_v5 = vld [vmem:[%s24423_s3 + $0x2d0] sm:$0xff]  }
 0x24f   :  { %17696 = vmatpush3.bf16.msra.mxu1 %v20335_v44 }
 0x250   :  { %17697 = vmatprep.subr.bf16.mxu1 %v20336_v48 }
 0x251   :  { %17092 = vmatpush3.bf16.msra.mxu0 %v20333_v17  ;;  %v4230_v17 = vld [vmem:[#allocation2 + $0x332] sm:$0xff] }
 0x252   :  { %17093 = vmatprep.subr.bf16.mxu0 %v20334_v55 }
 0x253   :  { %17698 = vmatpush3.bf16.msra.mxu1 %v20336_v48 }
 0x254   :  { %17699 = vmatprep.subr.bf16.mxu1 %v20337_v41 }
 0x255   :  { %17094 = vmatpush3.bf16.msra.mxu0 %v20334_v55  ;;  %v4229_v55 = vld [vmem:[#allocation2 + $0x322] sm:$0xff] }
 0x256   :  { %17095 = vmatprep.subr.bf16.mxu0 %v20335_v44 }
 0x257   :  { %17700 = vmatpush3.bf16.msra.mxu1 %v20337_v41 }
 0x258   :  { %17709 = vmatprep.subr.bf16.mxu1 %v20338_v37 }
 0x259   :  { %17096 = vmatpush3.bf16.msra.mxu0 %v20335_v44  ;;  %v22375_v44 = vpack.c.bf16 %v4230_v17, %v4229_v55  ;;  %v4531_v17 = vld [vmem:[#allocation2 + $0x2b0] sm:$0xff] }
 0x25a   :  { %17702 = vmatmul.mubr.bf16.vlgmr.msra.gmra.mrb[128].mxu1 %v22283_v57  ;;  %17097 = vmatprep.subr.bf16.mxu0 %v20336_v48 }
 0x25b   :  { %17705 = vmatprep.mubr.bf16.mxu1 %v22288_v6  ;;  %17710 = vmatpush3.bf16.msra.mxu1 %v20338_v37 }
 0x25c   :  { %17711 = vmatprep.subr.bf16.mxu1 %v20339_v3 }
 0x25d   :  { %17098 = vmatpush3.bf16.msra.mxu0 %v20336_v48  ;;  %v7282_v48 = vld [vmem:[#allocation2 + $0x182] sm:$0xff] }
 0x25e   :  { %17099 = vmatprep.subr.bf16.mxu0 %v20337_v41 }
 0x25f   :  { %17712 = vmatpush3.bf16.msra.mxu1 %v20339_v3 }
 0x260   :  { %17713 = vmatprep.subr.bf16.mxu1 %v20340_v42 }
 0x261   :  { %17100 = vmatpush3.bf16.msra.mxu0 %v20337_v41  ;;  %v20357_v41 = vld [vmem:[%s24423_s3 + $0x258] sm:$0xff]  }
 0x262   :  { %17706 = vmatmul.mubr.bf16.gmra.mrb[132].mxu1 %v22295_v9  ;;  %17109 = vmatprep.subr.bf16.mxu0 %v20338_v37 }
 0x263   :  { %17714 = vmatpush3.bf16.msra.mxu1 %v20340_v42  ;;  %17725 = vmatprep.mubr.bf16.mxu1 %v22300_v4 }
 0x264   :  { %17715 = vmatprep.subr.bf16.mxu1 %v20341_v63  ;;  %17102 = vmatmul.mubr.bf16.vlgmr.msra.gmra.mrb[128].mxu0 %v22245_v56 }
 0x265   :  { %17105 = vmatprep.mubr.bf16.mxu0 %v22126_v26  ;;  %17110 = vmatpush3.bf16.msra.mxu0 %v20338_v37  ;;  %v22380_v37 = vpack.c.bf16 %v7283_v32, %v7282_v48  ;;  %v4377_v32 = vld [vmem:[#allocation2 + $0x40] sm:$0xff] }
 0x266   :  { %17111 = vmatprep.subr.bf16.mxu0 %v20339_v3  ;;  %v4676_v48 = vld [vmem:[#allocation2 + $0x21] sm:$0xff] }
 0x267   :  { %17716 = vmatpush3.bf16.msra.mxu1 %v20341_v63 }
 0x268   :  { %17717 = vmatprep.subr.bf16.mxu1 %v20342_v60 }
 0x269   :  { %17112 = vmatpush3.bf16.msra.mxu0 %v20339_v3  ;;  %v20362_v3 = vld [vmem:[%s24423_s3 + $0x280] sm:$0xff]  }
 0x26a   :  { %17113 = vmatprep.subr.bf16.mxu0 %v20340_v42 }
 0x26b   :  { %17718 = vmatpush3.bf16.msra.mxu1 %v20342_v60 }
 0x26c   :  { %17719 = vmatprep.subr.bf16.mxu1 %v20343_v61  ;;  %17106 = vmatmul.mubr.bf16.gmra.mrb[132].mxu0 %v22120_v0 }
 0x26d   :  { %17114 = vmatpush3.bf16.msra.mxu0 %v20340_v42  ;;  %17125 = vmatprep.mubr.bf16.mxu0 %v22258_v50  ;;  %v7285_v42 = vld [vmem:[#allocation2 + $0x1b2] sm:$0xff] }
 0x26e   :  { %17115 = vmatprep.subr.bf16.mxu0 %v20341_v63  ;;  %v22403_v14 = vpack.c.bf16 %v7285_v42, %v7284_v15  ;;  %v4381_v15 = vld [vmem:[#allocation2 + $0x240] sm:$0xff] }
 0x26f   :  { %17720 = vmatpush3.bf16.msra.mxu1 %v20343_v61 }
 0x270   :  { %17721 = vmatprep.subr.bf16.mxu1 %v20344_v36 }
 0x271   :  { %17116 = vmatpush3.bf16.msra.mxu0 %v20341_v63  ;;  %v20363_v63 = vld [vmem:[%s24423_s3 + $0x288] sm:$0xff]  }
 0x272   :  { %17117 = vmatprep.subr.bf16.mxu0 %v20342_v60 }
 0x273   :  { %17722 = vmatpush3.bf16.msra.mxu1 %v20344_v36 }
 0x274   :  { %17723 = vmatprep.subr.bf16.mxu1 %v20345_v7 }
 0x275   :  { %17118 = vmatpush3.bf16.msra.mxu0 %v20342_v60  ;;  %v22408_v60 = vpack.c.bf16 %v7287_v39, %v7286_v10  ;;  %v20374_v39 = vld [vmem:[%s24423_s3 + $0x2e0] sm:$0xff]   ;;  %v20375_v10 = vld [vmem:[%s24423_s3 + $0x2e8] sm:$0xff]  }
 0x276   :  { %17119 = vmatprep.subr.bf16.mxu0 %v20343_v61 }
 0x277   :  { %17724 = vmatpush3.bf16.msra.mxu1 %v20345_v7 }
 0x278   :  { %17733 = vmatprep.subr.bf16.mxu1 %v20346_v12 }
 0x279   :  { %17120 = vmatpush3.bf16.msra.mxu0 %v20343_v61  ;;  %v20364_v61 = vld [vmem:[%s24423_s3 + $0x290] sm:$0xff]  }
 0x27a   :  { %17726 = vmatmul.mubr.bf16.vlgmr.msra.gmra.mrb[128].mxu1 %v22323_v1  ;;  %17121 = vmatprep.subr.bf16.mxu0 %v20344_v36 }
 0x27b   :  { %17729 = vmatprep.mubr.bf16.mxu1 %v22328_v51  ;;  %17734 = vmatpush3.bf16.msra.mxu1 %v20346_v12 }
 0x27c   :  { %17735 = vmatprep.subr.bf16.mxu1 %v20347_v38 }
 0x27d   :  { %17122 = vmatpush3.bf16.msra.mxu0 %v20344_v36  ;;  %v7289_v36 = vld [vmem:[#allocation2 + $0x3b2] sm:$0xff] }
 0x27e   :  { %17123 = vmatprep.subr.bf16.mxu0 %v20345_v7 }
 0x27f   :  { %17736 = vmatpush3.bf16.msra.mxu1 %v20347_v38 }
 0x280   :  { %17737 = vmatprep.subr.bf16.mxu1 %v20348_v45 }
 0x281   :  { %17124 = vmatpush3.bf16.msra.mxu0 %v20345_v7  ;;  %v4525_v7 = vld [vmem:[#allocation2 + $0x90] sm:$0xff] }
 0x282   :  { %17730 = vmatmul.mubr.bf16.gmra.mrb[132].mxu1 %v22335_v23  ;;  %17133 = vmatprep.subr.bf16.mxu0 %v20346_v12  ;;  %v22420_v35 = vpack.c.bf16 %v4526_v11, %v4525_v7  ;;  %v20377_v7 = vld [vmem:[%s24423_s3 + $0x2f8] sm:$0xff]  }
 0x283   :  { %17738 = vmatpush3.bf16.msra.mxu1 %v20348_v45  ;;  %17749 = vmatprep.mubr.bf16.mxu1 %v22340_v40  ;;  %v4678_v11 = vld [vmem:[#allocation2 + $0x41] sm:$0xff] }
 0x284   :  { %17739 = vmatprep.subr.bf16.mxu1 %v20349_v18  ;;  %17126 = vmatmul.mubr.bf16.vlgmr.msra.gmra.mrb[128].mxu0 %v22283_v57 }
 0x285   :  { %17129 = vmatprep.mubr.bf16.mxu0 %v22288_v6  ;;  %17134 = vmatpush3.bf16.msra.mxu0 %v20346_v12  ;;  %v7288_v12 = vld [vmem:[#allocation2 + $0x3a2] sm:$0xff] }
 0x286   :  { %17135 = vmatprep.subr.bf16.mxu0 %v20347_v38  ;;  %v22415_v8 = vpack.c.bf16 %v7289_v36, %v7288_v12  ;;  %v20376_v36 = vld [vmem:[%s24423_s3 + $0x2f0] sm:$0xff]   ;;  %v20378_v12 = vld [vmem:[%s24423_s3 + $0x300] sm:$0xff]  }
 0x287   :  { %17740 = vmatpush3.bf16.msra.mxu1 %v20349_v18 }
 0x288   :  { %17741 = vmatprep.subr.bf16.mxu1 %v20350_v27 }
 0x289   :  { %17136 = vmatpush3.bf16.msra.mxu0 %v20347_v38  ;;  %v20366_v38 = vld [vmem:[%s24423_s3 + $0x2a0] sm:$0xff]  }
 0x28a   :  { %17137 = vmatprep.subr.bf16.mxu0 %v20348_v45 }
 0x28b   :  { %17742 = vmatpush3.bf16.msra.mxu1 %v20350_v27 }
 0x28c   :  { %17743 = vmatprep.subr.bf16.mxu1 %v20351_v30  ;;  %17130 = vmatmul.mubr.bf16.gmra.mrb[132].mxu0 %v22295_v9 }
 0x28d   :  { %17138 = vmatpush3.bf16.msra.mxu0 %v20348_v45  ;;  %17149 = vmatprep.mubr.bf16.mxu0 %v22300_v4  ;;  %v20367_v45 = vld [vmem:[%s24423_s3 + $0x2a8] sm:$0xff]  }
 0x28e   :  { %17139 = vmatprep.subr.bf16.mxu0 %v20349_v18 }
 0x28f   :  { %17744 = vmatpush3.bf16.msra.mxu1 %v20351_v30 }
 0x290   :  { %17745 = vmatprep.subr.bf16.mxu1 %v20352_v52 }
 0x291   :  { %17140 = vmatpush3.bf16.msra.mxu0 %v20349_v18  ;;  %v20369_v18 = vld [vmem:[%s24423_s3 + $0x2b8] sm:$0xff]  }
 0x292   :  { %17141 = vmatprep.subr.bf16.mxu0 %v20350_v27 }
 0x293   :  { %17746 = vmatpush3.bf16.msra.mxu1 %v20352_v52 }
 0x294   :  { %17747 = vmatprep.subr.bf16.mxu1 %v20353_v49 }
 0x295   :  { %17142 = vmatpush3.bf16.msra.mxu0 %v20350_v27  ;;  %v20370_v27 = vld [vmem:[%s24423_s3 + $0x2c0] sm:$0xff]  }
 0x296   :  { %17143 = vmatprep.subr.bf16.mxu0 %v20351_v30 }
 0x297   :  { %17748 = vmatpush3.bf16.msra.mxu1 %v20353_v49 }
 0x298   :  { %17757 = vmatprep.subr.bf16.mxu1 %v20354_v29 }
 0x299   :  { %17144 = vmatpush3.bf16.msra.mxu0 %v20351_v30  ;;  %v4528_v30 = vld [vmem:[#allocation2 + $0xc0] sm:$0xff] }
 0x29a   :  { %17750 = vmatmul.mubr.bf16.vlgmr.msra.gmra.mrb[128].mxu1 %v22363_v43  ;;  %17145 = vmatprep.subr.bf16.mxu0 %v20352_v52 }
 0x29b   :  { %17753 = vmatprep.mubr.bf16.mxu1 %v22368_v59  ;;  %17758 = vmatpush3.bf16.msra.mxu1 %v20354_v29 }
 0x29c   :  { %17759 = vmatprep.subr.bf16.mxu1 %v20355_v21 }
 0x29d   :  { %17146 = vmatpush3.bf16.msra.mxu0 %v20352_v52  ;;  %v4529_v52 = vld [vmem:[#allocation2 + $0x290] sm:$0xff] }
 0x29e   :  { %17147 = vmatprep.subr.bf16.mxu0 %v20353_v49  ;;  %v22450_v28 = vpack.c.bf16 %v4530_v22, %v4529_v52  ;;  %v4681_v52 = vld [vmem:[#allocation2 + $0x231] sm:$0xff]  ;;  %v4826_v22 = vld [vmem:[#allocation2 + $0xa1] sm:$0xff] }
 0x29f   :  { %17760 = vmatpush3.bf16.msra.mxu1 %v20355_v21 }
 0x2a0   :  { %17761 = vmatprep.subr.bf16.mxu1 %v20356_v62 }
 0x2a1   :  { %17148 = vmatpush3.bf16.msra.mxu0 %v20353_v49  ;;  %v4527_v49 = vld [vmem:[#allocation2 + $0xb0] sm:$0xff] }
 0x2a2   :  { %17754 = vmatmul.mubr.bf16.gmra.mrb[132].mxu1 %v22375_v44  ;;  %17157 = vmatprep.subr.bf16.mxu0 %v20354_v29 }
 0x2a3   :  { %17762 = vmatpush3.bf16.msra.mxu1 %v20356_v62  ;;  %17773 = vmatprep.mubr.bf16.mxu1 %v22380_v37 }
 0x2a4   :  { %17763 = vmatprep.subr.bf16.mxu1 %v20357_v41  ;;  %17150 = vmatmul.mubr.bf16.vlgmr.msra.gmra.mrb[128].mxu0 %v22323_v1 }
 0x2a5   :  { %17153 = vmatprep.mubr.bf16.mxu0 %v22328_v51  ;;  %17158 = vmatpush3.bf16.msra.mxu0 %v20354_v29  ;;  %v22445_v29 = vpack.c.bf16 %v4528_v30, %v4527_v49  ;;  %v4825_v30 = vld [vmem:[#allocation2 + $0x91] sm:$0xff] }
 0x2a6   :  { %17159 = vmatprep.subr.bf16.mxu0 %v20355_v21 }
 0x2a7   :  { %17764 = vmatpush3.bf16.msra.mxu1 %v20357_v41 }
 0x2a8   :  { %17765 = vmatprep.subr.bf16.mxu1 %v20358_v33 }
 0x2a9   :  { %17160 = vmatpush3.bf16.msra.mxu0 %v20355_v21  ;;  %v4532_v21 = vld [vmem:[#allocation2 + $0x2c0] sm:$0xff] }
 0x2aa   :  { %17161 = vmatprep.subr.bf16.mxu0 %v20356_v62  ;;  %v22457_v55 = vpack.c.bf16 %v4532_v21, %v4531_v17  ;;  %v20382_v21 = vld [vmem:[%s24423_s3 + $0x320] sm:$0xff]   ;;  %v20384_v17 = vld [vmem:[%s24423_s3 + $0x330] sm:$0xff]  }
 0x2ab   :  { %17766 = vmatpush3.bf16.msra.mxu1 %v20358_v33 }
 0x2ac   :  { %17767 = vmatprep.subr.bf16.mxu1 %v20359_v54  ;;  %17154 = vmatmul.mubr.bf16.gmra.mrb[132].mxu0 %v22335_v23 }
 0x2ad   :  { %17162 = vmatpush3.bf16.msra.mxu0 %v20356_v62  ;;  %17173 = vmatprep.mubr.bf16.mxu0 %v22340_v40  ;;  %v4675_v62 = vld [vmem:[#allocation2 + $0x11] sm:$0xff] }
 0x2ae   :  { %17163 = vmatprep.subr.bf16.mxu0 %v20357_v41 }
 0x2af   :  { %17768 = vmatpush3.bf16.msra.mxu1 %v20359_v54 }
 0x2b0   :  { %17769 = vmatprep.subr.bf16.mxu1 %v20360_v16 }
 0x2b1   :  { %17164 = vmatpush3.bf16.msra.mxu0 %v20357_v41  ;;  %v20373_v41 = vld [vmem:[%s24423_s3 + $0x2d8] sm:$0xff]  }
 0x2b2   :  { %17165 = vmatprep.subr.bf16.mxu0 %v20358_v33 }
 0x2b3   :  { %17770 = vmatpush3.bf16.msra.mxu1 %v20360_v16 }
 0x2b4   :  { %17771 = vmatprep.subr.bf16.mxu1 %v20361_v20 }
 0x2b5   :  { %17166 = vmatpush3.bf16.msra.mxu0 %v20358_v33  ;;  %v4378_v33 = vld [vmem:[#allocation2 + $0x210] sm:$0xff] }
 0x2b6   :  { %17167 = vmatprep.subr.bf16.mxu0 %v20359_v54 }
 0x2b7   :  { %17772 = vmatpush3.bf16.msra.mxu1 %v20361_v20 }
 0x2b8   :  { %17781 = vmatprep.subr.bf16.mxu1 %v20362_v3 }
 0x2b9   :  { %17168 = vmatpush3.bf16.msra.mxu0 %v20359_v54  ;;  %v22462_v54 = vpack.c.bf16 %v4676_v48, %v4675_v62  ;;  %v20383_v62 = vld [vmem:[%s24423_s3 + $0x328] sm:$0xff]   ;;  %v20386_v48 = vld [vmem:[%s24423_s3 + $0x340] sm:$0xff]  }
 0x2ba   :  { %17774 = vmatmul.mubr.bf16.vlgmr.msra.gmra.mrb[128].mxu1 %v22403_v14  ;;  %17169 = vmatprep.subr.bf16.mxu0 %v20360_v16 }
 0x2bb   :  { %17777 = vmatprep.mubr.bf16.mxu1 %v22408_v60  ;;  %17782 = vmatpush3.bf16.msra.mxu1 %v20362_v3 }
 0x2bc   :  { %17783 = vmatprep.subr.bf16.mxu1 %v20363_v63 }
 0x2bd   :  { %17170 = vmatpush3.bf16.msra.mxu0 %v20360_v16  ;;  %v4376_v16 = vld [vmem:[#allocation2 + $0x30] sm:$0xff] }
 0x2be   :  { %17171 = vmatprep.subr.bf16.mxu0 %v20361_v20 }
 0x2bf   :  { %17784 = vmatpush3.bf16.msra.mxu1 %v20363_v63 }
 0x2c0   :  { %17785 = vmatprep.subr.bf16.mxu1 %v20364_v61 }
 0x2c1   :  { %17172 = vmatpush3.bf16.msra.mxu0 %v20361_v20  ;;  %v22465_v20 = vpack.c.bf16 %v4377_v32, %v4376_v16  ;;  %v20385_v32 = vld [vmem:[%s24423_s3 + $0x338] sm:$0xff]   ;;  %v4827_v16 = vld [vmem:[#allocation2 + $0xb1] sm:$0xff] }
 0x2c2   :  { %17778 = vmatmul.mubr.bf16.gmra.mrb[132].mxu1 %v22415_v8  ;;  %17181 = vmatprep.subr.bf16.mxu0 %v20362_v3 }
 0x2c3   :  { %17786 = vmatpush3.bf16.msra.mxu1 %v20364_v61  ;;  %17797 = vmatprep.mubr.bf16.mxu1 %v22420_v35 }
 0x2c4   :  { %17787 = vmatprep.subr.bf16.mxu1 %v20365_v19  ;;  %17174 = vmatmul.mubr.bf16.vlgmr.msra.gmra.mrb[128].mxu0 %v22363_v43 }
 0x2c5   :  { %17177 = vmatprep.mubr.bf16.mxu0 %v22368_v59  ;;  %17182 = vmatpush3.bf16.msra.mxu0 %v20362_v3  ;;  %v4379_v3 = vld [vmem:[#allocation2 + $0x220] sm:$0xff] }
 0x2c6   :  { %17183 = vmatprep.subr.bf16.mxu0 %v20363_v63  ;;  %v22468_v42 = vpack.c.bf16 %v4379_v3, %v4378_v33  ;;  %v4829_v33 = vld [vmem:[#allocation2 + $0x291] sm:$0xff] }
 0x2c7   :  { %17788 = vmatpush3.bf16.msra.mxu1 %v20365_v19 }
 0x2c8   :  { %17789 = vmatprep.subr.bf16.mxu1 %v20366_v38 }
 0x2c9   :  { %17184 = vmatpush3.bf16.msra.mxu0 %v20363_v63  ;;  %v4380_v63 = vld [vmem:[#allocation2 + $0x230] sm:$0xff] }
 0x2ca   :  { %17185 = vmatprep.subr.bf16.mxu0 %v20364_v61 }
 0x2cb   :  { %17790 = vmatpush3.bf16.msra.mxu1 %v20366_v38 }
 0x2cc   :  { %17791 = vmatprep.subr.bf16.mxu1 %v20367_v45  ;;  %17178 = vmatmul.mubr.bf16.gmra.mrb[132].mxu0 %v22375_v44 }
 0x2cd   :  { %17186 = vmatpush3.bf16.msra.mxu0 %v20364_v61  ;;  %17197 = vmatprep.mubr.bf16.mxu0 %v22432_v13  ;;  %v22478_v61 = vpack.c.bf16 %v4381_v15, %v4380_v63  ;;  %v20387_v15 = vld [vmem:[%s24423_s3 + $0x348] sm:$0xff]   ;;  %v20388_v63 = vld [vmem:[%s24423_s3 + $0x350] sm:$0xff]  }
 0x2ce   :  { %17187 = vmatprep.subr.bf16.mxu0 %v20365_v19 }
 0x2cf   :  { %17792 = vmatpush3.bf16.msra.mxu1 %v20367_v45 }
 0x2d0   :  { %17793 = vmatprep.subr.bf16.mxu1 %v20368_v24 }
 0x2d1   :  { %17188 = vmatpush3.bf16.msra.mxu0 %v20365_v19  ;;  %v4679_v19 = vld [vmem:[#allocation2 + $0x211] sm:$0xff] }
 0x2d2   :  { %17189 = vmatprep.subr.bf16.mxu0 %v20366_v38 }
 0x2d3   :  { %17794 = vmatpush3.bf16.msra.mxu1 %v20368_v24 }
 0x2d4   :  { %17795 = vmatprep.subr.bf16.mxu1 %v20369_v18 }
 0x2d5   :  { %17190 = vmatpush3.bf16.msra.mxu0 %v20366_v38  ;;  %v4677_v38 = vld [vmem:[#allocation2 + $0x31] sm:$0xff] }
 0x2d6   :  { %17191 = vmatprep.subr.bf16.mxu0 %v20367_v45 }
 0x2d7   :  { %17796 = vmatpush3.bf16.msra.mxu1 %v20369_v18 }
 0x2d8   :  { %17805 = vmatprep.subr.bf16.mxu1 %v20370_v27 }
 0x2d9   :  { %17192 = vmatpush3.bf16.msra.mxu0 %v20367_v45  ;;  %v22491_v45 = vpack.c.bf16 %v4678_v11, %v4677_v38  ;;  %v20389_v38 = vld [vmem:[%s24423_s3 + $0x358] sm:$0xff]  }
 0x2da   :  { %17798 = vmatmul.mubr.bf16.vlgmr.msra.gmra.mrb[128].mxu1 %v22445_v29  ;;  %17193 = vmatprep.subr.bf16.mxu0 %v20368_v24 }
 0x2db   :  { %17801 = vmatprep.mubr.bf16.mxu1 %v22450_v28  ;;  %17806 = vmatpush3.bf16.msra.mxu1 %v20370_v27 }
 0x2dc   :  { %17807 = vmatprep.subr.bf16.mxu1 %v20371_v31 }
 0x2dd   :  { %17194 = vmatpush3.bf16.msra.mxu0 %v20368_v24  ;;  %v22496_v24 = vpack.c.bf16 %v4680_v46, %v4679_v19  ;;  %v4976_v19 = vld [vmem:[#allocation2 + $0x22] sm:$0xff] }
 0x2de   :  { %17195 = vmatprep.subr.bf16.mxu0 %v20369_v18 }
 0x2df   :  { %17808 = vmatpush3.bf16.msra.mxu1 %v20371_v31 }
 0x2e0   :  { %17809 = vmatprep.subr.bf16.mxu1 %v20372_v5 }
 0x2e1   :  { %17196 = vmatpush3.bf16.msra.mxu0 %v20369_v18  ;;  %v20380_v18 = vld [vmem:[%s24423_s3 + $0x310] sm:$0xff]  }
 0x2e2   :  { %17802 = vmatmul.mubr.bf16.gmra.mrb[132].mxu1 %v22457_v55  ;;  %17205 = vmatprep.subr.bf16.mxu0 %v20370_v27 }
 0x2e3   :  { %17810 = vmatpush3.bf16.msra.mxu1 %v20372_v5  ;;  %17821 = vmatprep.mubr.bf16.mxu1 %v22462_v54 }
 0x2e4   :  { %17811 = vmatprep.subr.bf16.mxu1 %v20373_v41  ;;  %17198 = vmatmul.mubr.bf16.vlgmr.msra.gmra.mrb[128].mxu0 %v22465_v20 }
 0x2e5   :  { %17201 = vmatprep.mubr.bf16.mxu0 %v22468_v42  ;;  %17206 = vmatpush3.bf16.msra.mxu0 %v20370_v27  ;;  %v4682_v27 = vld [vmem:[#allocation2 + $0x241] sm:$0xff] }
 0x2e6   :  { %17207 = vmatprep.subr.bf16.mxu0 %v20371_v31  ;;  %v22503_v49 = vpack.c.bf16 %v4682_v27, %v4681_v52  ;;  %v20392_v27 = vld [vmem:[%s24423_s3 + $0x370] sm:$0xff]   ;;  %v20394_v52 = vld [vmem:[%s24423_s3 + $0x380] sm:$0xff]  }
 0x2e7   :  { %17812 = vmatpush3.bf16.msra.mxu1 %v20373_v41 }
 0x2e8   :  { %17813 = vmatprep.subr.bf16.mxu1 %v20374_v39 }
 0x2e9   :  { %17208 = vmatpush3.bf16.msra.mxu0 %v20371_v31  ;;  %v20381_v31 = vld [vmem:[%s24423_s3 + $0x318] sm:$0xff]  }
 0x2ea   :  { %17209 = vmatprep.subr.bf16.mxu0 %v20372_v5 }
 0x2eb   :  { %17814 = vmatpush3.bf16.msra.mxu1 %v20374_v39 }
 0x2ec   :  { %17815 = vmatprep.subr.bf16.mxu1 %v20375_v10  ;;  %17202 = vmatmul.mubr.bf16.gmra.mrb[132].mxu0 %v22478_v61 }
 0x2ed   :  { %17210 = vmatpush3.bf16.msra.mxu0 %v20372_v5  ;;  %17221 = vmatprep.mubr.bf16.mxu0 %v22420_v35  ;;  %v22508_v5 = vpack.c.bf16 %v4826_v22, %v4825_v30  ;;  %v20393_v30 = vld [vmem:[%s24423_s3 + $0x378] sm:$0xff]  }
 0x2ee   :  { %17211 = vmatprep.subr.bf16.mxu0 %v20373_v41  ;;  %v4978_v22 = vld [vmem:[#allocation2 + $0x42] sm:$0xff] }
 0x2ef   :  { %17816 = vmatpush3.bf16.msra.mxu1 %v20375_v10 }
 0x2f0   :  { %17817 = vmatprep.subr.bf16.mxu1 %v20376_v36 }
 0x2f1   :  { %17212 = vmatpush3.bf16.msra.mxu0 %v20373_v41  ;;  %v4828_v41 = vld [vmem:[#allocation2 + $0xc1] sm:$0xff] }
 0x2f2   :  { %17213 = vmatprep.subr.bf16.mxu0 %v20374_v39  ;;  %v22531_v3 = vpack.c.bf16 %v4828_v41, %v4827_v16  ;;  %v20396_v41 = vld [vmem:[%s24423_s3 + $0x390] sm:$0xff]   ;;  %v7659_v16 = vld [vmem:[#allocation2 + $0x92] sm:$0xff] }
 0x2f3   :  { %17818 = vmatpush3.bf16.msra.mxu1 %v20376_v36 }
 0x2f4   :  { %17819 = vmatprep.subr.bf16.mxu1 %v20377_v7 }
 0x2f5   :  { %17214 = vmatpush3.bf16.msra.mxu0 %v20374_v39  ;;  %v4830_v39 = vld [vmem:[#allocation2 + $0x2a1] sm:$0xff] }
 0x2f6   :  { %17215 = vmatprep.subr.bf16.mxu0 %v20375_v10 }
 0x2f7   :  { %17820 = vmatpush3.bf16.msra.mxu1 %v20377_v7 }
 0x2f8   :  { %17829 = vmatprep.subr.bf16.mxu1 %v20378_v12 }
 0x2f9   :  { %17216 = vmatpush3.bf16.msra.mxu0 %v20375_v10  ;;  %v22536_v10 = vpack.c.bf16 %v4830_v39, %v4829_v33  ;;  %v4982_v33 = vld [vmem:[#allocation2 + $0x242] sm:$0xff]  ;;  %v4981_v39 = vld [vmem:[#allocation2 + $0x232] sm:$0xff] }
 0x2fa   :  { %17822 = vmatmul.mubr.bf16.vlgmr.msra.gmra.mrb[128].mxu1 %v22491_v45  ;;  %17217 = vmatprep.subr.bf16.mxu0 %v20376_v36 }
 0x2fb   :  { %17825 = vmatprep.mubr.bf16.mxu1 %v22496_v24  ;;  %17830 = vmatpush3.bf16.msra.mxu1 %v20378_v12 }
 0x2fc   :  { %17831 = vmatprep.subr.bf16.mxu1 %v20379_v58 }
 0x2fd   :  { %17218 = vmatpush3.bf16.msra.mxu0 %v20376_v36  ;;  %v4832_v36 = vld [vmem:[#allocation2 + $0x2c1] sm:$0xff] }
 0x2fe   :  { %17219 = vmatprep.subr.bf16.mxu0 %v20377_v7 }
 0x2ff   :  { %17832 = vmatpush3.bf16.msra.mxu1 %v20379_v58 }
 0x300   :  { %17833 = vmatprep.subr.bf16.mxu1 %v20380_v18 }
 0x301   :  { %17220 = vmatpush3.bf16.msra.mxu0 %v20377_v7  ;;  %v4975_v7 = vld [vmem:[#allocation2 + $0x12] sm:$0xff] }
 0x302   :  { %17826 = vmatmul.mubr.bf16.gmra.mrb[132].mxu1 %v22503_v49  ;;  %17229 = vmatprep.subr.bf16.mxu0 %v20378_v12  ;;  %v22548_v46 = vpack.c.bf16 %v4976_v19, %v4975_v7  ;;  %v20399_v19 = vld [vmem:[%s24423_s3 + $0x3a8] sm:$0xff]  }
 0x303   :  { %17834 = vmatpush3.bf16.msra.mxu1 %v20380_v18  ;;  %17845 = vmatprep.mubr.bf16.mxu1 %v22508_v5 }
 0x304   :  { %17835 = vmatprep.subr.bf16.mxu1 %v20381_v31  ;;  %17222 = vmatmul.mubr.bf16.vlgmr.msra.gmra.mrb[128].mxu0 %v22445_v29 }
 0x305   :  { %17225 = vmatprep.mubr.bf16.mxu0 %v22450_v28  ;;  %17230 = vmatpush3.bf16.msra.mxu0 %v20378_v12  ;;  %v4831_v12 = vld [vmem:[#allocation2 + $0x2b1] sm:$0xff] }
 0x306   :  { %17231 = vmatprep.subr.bf16.mxu0 %v20379_v58  ;;  %v22543_v11 = vpack.c.bf16 %v4832_v36, %v4831_v12  ;;  %v20397_v36 = vld [vmem:[%s24423_s3 + $0x398] sm:$0xff]   ;;  %v20398_v12 = vld [vmem:[%s24423_s3 + $0x3a0] sm:$0xff]  }
 0x307   :  { %17836 = vmatpush3.bf16.msra.mxu1 %v20381_v31 }
 0x308   :  { %17837 = vmatprep.subr.bf16.mxu1 %v20382_v21 }
 0x309   :  { %17232 = vmatpush3.bf16.msra.mxu0 %v20379_v58  ;;  %v20390_v58 = vld [vmem:[%s24423_s3 + $0x360] sm:$0xff]  }
 0x30a   :  { %17233 = vmatprep.subr.bf16.mxu0 %v20380_v18 }
 0x30b   :  { %17838 = vmatpush3.bf16.msra.mxu1 %v20382_v21 }
 0x30c   :  { %17839 = vmatprep.subr.bf16.mxu1 %v20383_v62  ;;  %17226 = vmatmul.mubr.bf16.gmra.mrb[132].mxu0 %v22457_v55 }
 0x30d   :  { %17234 = vmatpush3.bf16.msra.mxu0 %v20380_v18  ;;  %17245 = vmatprep.mubr.bf16.mxu0 %v22462_v54  ;;  %v20391_v18 = vld [vmem:[%s24423_s3 + $0x368] sm:$0xff]  }
 0x30e   :  { %17235 = vmatprep.subr.bf16.mxu0 %v20381_v31 }
 0x30f   :  { %17840 = vmatpush3.bf16.msra.mxu1 %v20383_v62 }
 0x310   :  { %17841 = vmatprep.subr.bf16.mxu1 %v20384_v17 }
 0x311   :  { %17236 = vmatpush3.bf16.msra.mxu0 %v20381_v31  ;;  %v4979_v31 = vld [vmem:[#allocation2 + $0x212] sm:$0xff] }
 0x312   :  { %17237 = vmatprep.subr.bf16.mxu0 %v20382_v21 }
 0x313   :  { %17842 = vmatpush3.bf16.msra.mxu1 %v20384_v17 }
 0x314   :  { %17843 = vmatprep.subr.bf16.mxu1 %v20385_v32 }
 0x315   :  { %17238 = vmatpush3.bf16.msra.mxu0 %v20382_v21  ;;  %v4977_v21 = vld [vmem:[#allocation2 + $0x32] sm:$0xff] }
 0x316   :  { %17239 = vmatprep.subr.bf16.mxu0 %v20383_v62 }
 0x317   :  { %17844 = vmatpush3.bf16.msra.mxu1 %v20385_v32 }
 0x318   :  { %17853 = vmatprep.subr.bf16.mxu1 %v20386_v48 }
 0x319   :  { %17240 = vmatpush3.bf16.msra.mxu0 %v20383_v62  ;;  %v22571_v62 = vpack.c.bf16 %v4978_v22, %v4977_v21  ;;  %v20403_v21 = vld [vmem:[%s24423_s3 + $0x3c8] sm:$0xff]  }
 0x31a   :  { %17846 = vmatmul.mubr.bf16.vlgmr.msra.gmra.mrb[128].mxu1 %v22531_v3  ;;  %17241 = vmatprep.subr.bf16.mxu0 %v20384_v17 }
 0x31b   :  { %17849 = vmatprep.mubr.bf16.mxu1 %v22536_v10  ;;  %17854 = vmatpush3.bf16.msra.mxu1 %v20386_v48 }
 0x31c   :  { %17855 = vmatprep.subr.bf16.mxu1 %v20387_v15 }
 0x31d   :  { %17242 = vmatpush3.bf16.msra.mxu0 %v20384_v17  ;;  %v4980_v17 = vld [vmem:[#allocation2 + $0x222] sm:$0xff] }
 0x31e   :  { %17243 = vmatprep.subr.bf16.mxu0 %v20385_v32 }
 0x31f   :  { %17856 = vmatpush3.bf16.msra.mxu1 %v20387_v15 }
 0x320   :  { %17857 = vmatprep.subr.bf16.mxu1 %v20388_v63 }
 0x321   :  { %17244 = vmatpush3.bf16.msra.mxu0 %v20385_v32  ;;  %v20395_v32 = vld [vmem:[%s24423_s3 + $0x388] sm:$0xff]  }
 0x322   :  { %17850 = vmatmul.mubr.bf16.gmra.mrb[132].mxu1 %v22543_v11  ;;  %17253 = vmatprep.subr.bf16.mxu0 %v20386_v48 }
 0x323   :  { %17858 = vmatpush3.bf16.msra.mxu1 %v20388_v63  ;;  %17869 = vmatprep.mubr.bf16.mxu1 %v22548_v46 }
 0x324   :  { %17859 = vmatprep.subr.bf16.mxu1 %v20389_v38  ;;  %17246 = vmatmul.mubr.bf16.vlgmr.msra.gmra.mrb[128].mxu0 %v22491_v45 }
 0x325   :  { %17249 = vmatprep.mubr.bf16.mxu0 %v22496_v24  ;;  %17254 = vmatpush3.bf16.msra.mxu0 %v20386_v48  ;;  %v22576_v48 = vpack.c.bf16 %v4980_v17, %v4979_v31  ;;  %v7664_v31 = vld [vmem:[#allocation2 + $0x2a2] sm:$0xff] }
 0x326   :  { %17255 = vmatprep.subr.bf16.mxu0 %v20387_v15 }
 0x327   :  { %17860 = vmatpush3.bf16.msra.mxu1 %v20389_v38 }
 0x328   :  { %17861 = vmatprep.subr.bf16.mxu1 %v20390_v58 }
 0x329   :  { %17256 = vmatpush3.bf16.msra.mxu0 %v20387_v15  ;;  %v22583_v15 = vpack.c.bf16 %v4982_v33, %v4981_v39  ;;  %v5277_v33 = vld [vmem:[#allocation2 + $0x190] sm:$0xff] }
 0x32a   :  { %17257 = vmatprep.subr.bf16.mxu0 %v20388_v63 }
 0x32b   :  { %17862 = vmatpush3.bf16.msra.mxu1 %v20390_v58 }
 0x32c   :  { %17863 = vmatprep.subr.bf16.mxu1 %v20391_v18  ;;  %17250 = vmatmul.mubr.bf16.gmra.mrb[132].mxu0 %v22503_v49 }
 0x32d   :  { %17258 = vmatpush3.bf16.msra.mxu0 %v20388_v63  ;;  %17269 = vmatprep.mubr.bf16.mxu0 %v22508_v5  ;;  %v7660_v63 = vld [vmem:[#allocation2 + $0xa2] sm:$0xff] }
 0x32e   :  { %17259 = vmatprep.subr.bf16.mxu0 %v20389_v38  ;;  %v22588_v7 = vpack.c.bf16 %v7660_v63, %v7659_v16  ;;  %v7665_v16 = vld [vmem:[#allocation2 + $0x2b2] sm:$0xff]  ;;  %v5278_v63 = vld [vmem:[#allocation2 + $0x1a0] sm:$0xff] }
 0x32f   :  { %17864 = vmatpush3.bf16.msra.mxu1 %v20391_v18 }
 0x330   :  { %17865 = vmatprep.subr.bf16.mxu1 %v20392_v27 }
 0x331   :  { %17260 = vmatpush3.bf16.msra.mxu0 %v20389_v38  ;;  %v20400_v38 = vld [vmem:[%s24423_s3 + $0x3b0] sm:$0xff]  }
 0x332   :  { %17261 = vmatprep.subr.bf16.mxu0 %v20390_v58 }
 0x333   :  { %17866 = vmatpush3.bf16.msra.mxu1 %v20392_v27 }
 0x334   :  { %17867 = vmatprep.subr.bf16.mxu1 %v20393_v30 }
 0x335   :  { %17262 = vmatpush3.bf16.msra.mxu0 %v20390_v58  ;;  %v20401_v58 = vld [vmem:[%s24423_s3 + $0x3b8] sm:$0xff]  }
 0x336   :  { %17263 = vmatprep.subr.bf16.mxu0 %v20391_v18 }
 0x337   :  { %17868 = vmatpush3.bf16.msra.mxu1 %v20393_v30 }
 0x338   :  { %17877 = vmatprep.subr.bf16.mxu1 %v20394_v52 }
 0x339   :  { %17264 = vmatpush3.bf16.msra.mxu0 %v20391_v18  ;;  %v20402_v18 = vld [vmem:[%s24423_s3 + $0x3c0] sm:$0xff]  }
 0x33a   :  { %17870 = vmatmul.mubr.bf16.vlgmr.msra.gmra.mrb[128].mxu1 %v22571_v62  ;;  %17265 = vmatprep.subr.bf16.mxu0 %v20392_v27 }
 0x33b   :  { %17873 = vmatprep.mubr.bf16.mxu1 %v22576_v48  ;;  %17878 = vmatpush3.bf16.msra.mxu1 %v20394_v52 }
 0x33c   :  { %17879 = vmatprep.subr.bf16.mxu1 %v20395_v32 }
 0x33d   :  { %17266 = vmatpush3.bf16.msra.mxu0 %v20392_v27  ;;  %v7662_v27 = vld [vmem:[#allocation2 + $0xc2] sm:$0xff] }
 0x33e   :  { %17267 = vmatprep.subr.bf16.mxu0 %v20393_v30 }
 0x33f   :  { %17880 = vmatpush3.bf16.msra.mxu1 %v20395_v32 }
 0x340   :  { %17881 = vmatprep.subr.bf16.mxu1 %v20396_v41 }
 0x341   :  { %17268 = vmatpush3.bf16.msra.mxu0 %v20393_v30  ;;  %v7663_v30 = vld [vmem:[#allocation2 + $0x292] sm:$0xff] }
 0x342   :  { %17874 = vmatmul.mubr.bf16.gmra.mrb[132].mxu1 %v22583_v15  ;;  %17277 = vmatprep.subr.bf16.mxu0 %v20394_v52  ;;  %v22616_v17 = vpack.c.bf16 %v7664_v31, %v7663_v30  ;;  %v20410_v31 = vld [vmem:[%s24423_s3 + $0x400] sm:$0xff]  }
 0x343   :  { %17882 = vmatpush3.bf16.msra.mxu1 %v20396_v41  ;;  %17893 = vmatprep.mubr.bf16.mxu1 %v22588_v7 }
 0x344   :  { %17883 = vmatprep.subr.bf16.mxu1 %v20397_v36  ;;  %17270 = vmatmul.mubr.bf16.vlgmr.msra.gmra.mrb[128].mxu0 %v22531_v3  ;;  %24697 = vst [vmem:[#allocation8_spill] sm:$0xff] %v22616_v17 }
 0x345   :  { %17273 = vmatprep.mubr.bf16.mxu0 %v22536_v10  ;;  %17278 = vmatpush3.bf16.msra.mxu0 %v20394_v52  ;;  %v7661_v52 = vld [vmem:[#allocation2 + $0xb2] sm:$0xff] }
 0x346   :  { %17279 = vmatprep.subr.bf16.mxu0 %v20395_v32  ;;  %v22611_v22 = vpack.c.bf16 %v7662_v27, %v7661_v52  ;;  %v5127_v27 = vld [vmem:[#allocation2 + $0x120] sm:$0xff]  ;;  %v20409_v52 = vld [vmem:[%s24423_s3 + $0x3f8] sm:$0xff]  }
 0x347   :  { %17884 = vmatpush3.bf16.msra.mxu1 %v20397_v36 }
 0x348   :  { %17885 = vmatprep.subr.bf16.mxu1 %v20398_v12  ;;  %24696 = vst [vmem:[#allocation7_spill] sm:$0xff] %v22611_v22 }
 0x349   :  { %17280 = vmatpush3.bf16.msra.mxu0 %v20395_v32  ;;  %v20404_v32 = vld [vmem:[%s24423_s3 + $0x3d0] sm:$0xff]  }
 0x34a   :  { %17281 = vmatprep.subr.bf16.mxu0 %v20396_v41 }
 0x34b   :  { %17886 = vmatpush3.bf16.msra.mxu1 %v20398_v12 }
 0x34c   :  { %17887 = vmatprep.subr.bf16.mxu1 %v20399_v19  ;;  %17274 = vmatmul.mubr.bf16.gmra.mrb[132].mxu0 %v22543_v11 }
 0x34d   :  { %17282 = vmatpush3.bf16.msra.mxu0 %v20396_v41  ;;  %17293 = vmatprep.mubr.bf16.mxu0 %v22548_v46  ;;  %v7666_v41 = vld [vmem:[#allocation2 + $0x2c2] sm:$0xff] }
 0x34e   :  { %17283 = vmatprep.subr.bf16.mxu0 %v20397_v36  ;;  %v22623_v39 = vpack.c.bf16 %v7666_v41, %v7665_v16  ;;  %v5279_v41 = vld [vmem:[#allocation2 + $0x1b0] sm:$0xff]  ;;  %v5282_v16 = vld [vmem:[#allocation2 + $0x3a0] sm:$0xff] }
 0x34f   :  { %17888 = vmatpush3.bf16.msra.mxu1 %v20399_v19 }
 0x350   :  { %17889 = vmatprep.subr.bf16.mxu1 %v20400_v38  ;;  %24698 = vst [vmem:[#allocation9_spill] sm:$0xff] %v22623_v39 }
 0x351   :  { %17284 = vmatpush3.bf16.msra.mxu0 %v20397_v36  ;;  %v20405_v36 = vld [vmem:[%s24423_s3 + $0x3d8] sm:$0xff]  }
 0x352   :  { %17285 = vmatprep.subr.bf16.mxu0 %v20398_v12 }
 0x353   :  { %17890 = vmatpush3.bf16.msra.mxu1 %v20400_v38 }
 0x354   :  { %17891 = vmatprep.subr.bf16.mxu1 %v20401_v58 }
 0x355   :  { %17286 = vmatpush3.bf16.msra.mxu0 %v20398_v12  ;;  %v22628_v12 = vpack.c.bf16 %v5278_v63, %v5277_v33  ;;  %v20411_v63 = vld [vmem:[%s24423_s3 + $0x408] sm:$0xff]  }
 0x356   :  { %17287 = vmatprep.subr.bf16.mxu0 %v20399_v19 }
 0x357   :  { %17892 = vmatpush3.bf16.msra.mxu1 %v20401_v58  ;;  %24699 = vst [vmem:[#allocation10_spill] sm:$0xff] %v22628_v12 }
 0x358   :  { %17901 = vmatprep.subr.bf16.mxu1 %v20402_v18 }
 0x359   :  { %17288 = vmatpush3.bf16.msra.mxu0 %v20399_v19  ;;  %v20406_v19 = vld [vmem:[%s24423_s3 + $0x3e0] sm:$0xff]  }
 0x35a   :  { %17894 = vmatmul.mubr.bf16.vlgmr.msra.gmra.mrb[128].mxu1 %v22611_v22  ;;  %17289 = vmatprep.subr.bf16.mxu0 %v20400_v38  ;;  %v5131_v22 = vld [vmem:[#allocation2 + $0x320] sm:$0xff] }
 0x35b   :  { %17897 = vmatprep.mubr.bf16.mxu1 %v22616_v17  ;;  %17902 = vmatpush3.bf16.msra.mxu1 %v20402_v18  ;;  %v5128_v17 = vld [vmem:[#allocation2 + $0x130] sm:$0xff] }
 0x35c   :  { %17903 = vmatprep.subr.bf16.mxu1 %v20403_v21 }
 0x35d   :  { %17290 = vmatpush3.bf16.msra.mxu0 %v20400_v38  ;;  %v20407_v38 = vld [vmem:[%s24423_s3 + $0x3e8] sm:$0xff]  }
 0x35e   :  { %17291 = vmatprep.subr.bf16.mxu0 %v20401_v58 }
 0x35f   :  { %17904 = vmatpush3.bf16.msra.mxu1 %v20403_v21 }
 0x360   :  { %17905 = vmatprep.subr.bf16.mxu1 %v20404_v32 }
 0x361   :  { %17292 = vmatpush3.bf16.msra.mxu0 %v20401_v58  ;;  %v5126_v58 = vld [vmem:[#allocation2 + $0x110] sm:$0xff] }
 0x362   :  { %17898 = vmatmul.mubr.bf16.gmra.mrb[132].mxu1 %v22623_v39  ;;  %17301 = vmatprep.subr.bf16.mxu0 %v20402_v18  ;;  %v22640_v30 = vpack.c.bf16 %v5127_v27, %v5126_v58  ;;  %v5284_v58 = vld [vmem:[#allocation2 + $0x3c0] sm:$0xff]  ;;  %v5427_v27 = vld [vmem:[#allocation2 + $0x111] sm:$0xff] }
 0x363   :  { %17906 = vmatpush3.bf16.msra.mxu1 %v20404_v32  ;;  %17917 = vmatprep.mubr.bf16.mxu1 %v22628_v12 }
 0x364   :  { %17907 = vmatprep.subr.bf16.mxu1 %v20405_v36  ;;  %17294 = vmatmul.mubr.bf16.vlgmr.msra.gmra.mrb[128].mxu0 %v22571_v62  ;;  %24700 = vst [vmem:[#allocation11_spill] sm:$0xff] %v22640_v30 }
 0x365   :  { %17297 = vmatprep.mubr.bf16.mxu0 %v22576_v48  ;;  %17302 = vmatpush3.bf16.msra.mxu0 %v20402_v18  ;;  %v20408_v18 = vld [vmem:[%s24423_s3 + $0x3f0] sm:$0xff]  }
 0x366   :  { %17303 = vmatprep.subr.bf16.mxu0 %v20403_v21 }
 0x367   :  { %17908 = vmatpush3.bf16.msra.mxu1 %v20405_v36 }
 0x368   :  { %17909 = vmatprep.subr.bf16.mxu1 %v20406_v19 }
 0x369   :  { %17304 = vmatpush3.bf16.msra.mxu0 %v20403_v21  ;;  %v5280_v21 = vld [vmem:[#allocation2 + $0x1c0] sm:$0xff] }
 0x36a   :  { %17305 = vmatprep.subr.bf16.mxu0 %v20404_v32  ;;  %v22653_v33 = vpack.c.bf16 %v5280_v21, %v5279_v41  ;;  %v5283_v21 = vld [vmem:[#allocation2 + $0x3b0] sm:$0xff] }
 0x36b   :  { %17910 = vmatpush3.bf16.msra.mxu1 %v20406_v19  ;;  %v22665_v41 = vpack.c.bf16 %v5284_v58, %v5283_v21  ;;  %v20418_v21 = vld [vmem:[%s24423_s3 + $0x440] sm:$0xff]  }
 0x36c   :  { %17911 = vmatprep.subr.bf16.mxu1 %v20407_v38  ;;  %17298 = vmatmul.mubr.bf16.gmra.mrb[132].mxu0 %v22583_v15  ;;  %24701 = vst [vmem:[#allocation12_spill] sm:$0xff] %v22653_v33 }
 0x36d   :  { %17306 = vmatpush3.bf16.msra.mxu0 %v20404_v32  ;;  %17317 = vmatprep.mubr.bf16.mxu0 %v22640_v30  ;;  %v5281_v32 = vld [vmem:[#allocation2 + $0x390] sm:$0xff]  ;;  %24703 = vst [vmem:[#allocation14_spill] sm:$0xff] %v22665_v41 }
 0x36e   :  { %17307 = vmatprep.subr.bf16.mxu0 %v20405_v36  ;;  %v5130_v30 = vld [vmem:[#allocation2 + $0x310] sm:$0xff] }
 0x36f   :  { %17912 = vmatpush3.bf16.msra.mxu1 %v20407_v38  ;;  %v22676_v58 = vpack.c.bf16 %v5131_v22, %v5130_v30  ;;  %v5132_v22 = vld [vmem:[#allocation2 + $0x330] sm:$0xff] }
 0x370   :  { %17913 = vmatprep.subr.bf16.mxu1 %v20408_v18 }
 0x371   :  { %17308 = vmatpush3.bf16.msra.mxu0 %v20405_v36  ;;  %v22658_v36 = vpack.c.bf16 %v5282_v16, %v5281_v32  ;;  %v5129_v32 = vld [vmem:[#allocation2 + $0x140] sm:$0xff]  ;;  %v20413_v16 = vld [vmem:[%s24423_s3 + $0x418] sm:$0xff]   ;;  %24706 = vst [vmem:[#allocation17_spill] sm:$0xff] %v22676_v58 }
 0x372   :  { %17309 = vmatprep.subr.bf16.mxu0 %v20406_v19 }
 0x373   :  { %17914 = vmatpush3.bf16.msra.mxu1 %v20408_v18  ;;  %24702 = vst [vmem:[#allocation13_spill] sm:$0xff] %v22658_v36 }
 0x374   :  { %17915 = vmatprep.subr.bf16.mxu1 %v20409_v52 }
 0x375   :  { %17310 = vmatpush3.bf16.msra.mxu0 %v20406_v19  ;;  %v20412_v19 = vld [vmem:[%s24423_s3 + $0x410] sm:$0xff]  }
 0x376   :  { %17311 = vmatprep.subr.bf16.mxu0 %v20407_v38 }
 0x377   :  { %17916 = vmatpush3.bf16.msra.mxu1 %v20409_v52 }
 0x378   :  { %17925 = vmatprep.subr.bf16.mxu1 %v20410_v31 }
 0x379   :  { %17312 = vmatpush3.bf16.msra.mxu0 %v20407_v38  ;;  %v5428_v38 = vld [vmem:[#allocation2 + $0x121] sm:$0xff] }
 0x37a   :  { %17918 = vmatmul.mubr.bf16.vlgmr.msra.gmra.mrb[128].mxu1 %v22653_v33  ;;  %17313 = vmatprep.subr.bf16.mxu0 %v20408_v18  ;;  %v22670_v39 = vpack.c.bf16 %v5428_v38, %v5427_v27  ;;  %v20414_v27 = vld [vmem:[%s24423_s3 + $0x420] sm:$0xff]  }
 0x37b   :  { %17921 = vmatprep.mubr.bf16.mxu1 %v22658_v36  ;;  %17926 = vmatpush3.bf16.msra.mxu1 %v20410_v31  ;;  %v5429_v38 = vld [vmem:[#allocation2 + $0x131] sm:$0xff] }
 0x37c   :  { %17927 = vmatprep.subr.bf16.mxu1 %v20411_v63  ;;  %24704 = vst [vmem:[#allocation15_spill] sm:$0xff] %v22670_v39 }
 0x37d   :  { %17314 = vmatpush3.bf16.msra.mxu0 %v20408_v18  ;;  %v22673_v18 = vpack.c.bf16 %v5129_v32, %v5128_v17  ;;  %v5133_v17 = vld [vmem:[#allocation2 + $0x340] sm:$0xff] }
 0x37e   :  { %17315 = vmatprep.subr.bf16.mxu0 %v20409_v52  ;;  %v22686_v30 = vpack.c.bf16 %v5133_v17, %v5132_v22  ;;  %v5430_v32 = vld [vmem:[#allocation2 + $0x141] sm:$0xff] }
 0x37f   :  { %17928 = vmatpush3.bf16.msra.mxu1 %v20411_v63  ;;  %24705 = vst [vmem:[#allocation16_spill] sm:$0xff] %v22673_v18  ;;  %v22699_v17 = vpack.c.bf16 %v5430_v32, %v5429_v38  ;;  %v5432_v22 = vld [vmem:[#allocation2 + $0x321] sm:$0xff]  ;;  %v5577_v38 = vld [vmem:[#allocation2 + $0x191] sm:$0xff] }
 0x380   :  { %17929 = vmatprep.subr.bf16.mxu1 %v20412_v19  ;;  %24707 = vst [vmem:[#allocation18_spill] sm:$0xff] %v22686_v30  ;;  %v5434_v32 = vld [vmem:[#allocation2 + $0x341] sm:$0xff] }
 0x381   :  { %17316 = vmatpush3.bf16.msra.mxu0 %v20409_v52  ;;  %v20415_v52 = vld [vmem:[%s24423_s3 + $0x428] sm:$0xff]   ;;  %24708 = vst [vmem:[#allocation19_spill] sm:$0xff] %v22699_v17 }
 0x382   :  { %17922 = vmatmul.mubr.bf16.gmra.mrb[132].mxu1 %v22665_v41  ;;  %17325 = vmatprep.subr.bf16.mxu0 %v20410_v31 }
 0x383   :  { %17930 = vmatpush3.bf16.msra.mxu1 %v20412_v19  ;;  %17941 = vmatprep.mubr.bf16.mxu1 %v22670_v39 }
 0x384   :  { %17931 = vmatprep.subr.bf16.mxu1 %v20413_v16  ;;  %17318 = vmatmul.mubr.bf16.vlgmr.msra.gmra.mrb[128].mxu0 %v22673_v18 }
 0x385   :  { %17321 = vmatprep.mubr.bf16.mxu0 %v22676_v58  ;;  %17326 = vmatpush3.bf16.msra.mxu0 %v20410_v31  ;;  %v20416_v31 = vld [vmem:[%s24423_s3 + $0x430] sm:$0xff]   ;;  %v5433_v58 = vld [vmem:[#allocation2 + $0x331] sm:$0xff] }
 0x386   :  { %17327 = vmatprep.subr.bf16.mxu0 %v20411_v63 }
 0x387   :  { %17932 = vmatpush3.bf16.msra.mxu1 %v20413_v16 }
 0x388   :  { %17933 = vmatprep.subr.bf16.mxu1 %v20414_v27 }
 0x389   :  { %17328 = vmatpush3.bf16.msra.mxu0 %v20411_v63  ;;  %v20417_v63 = vld [vmem:[%s24423_s3 + $0x438] sm:$0xff]  }
 0x38a   :  { %17329 = vmatprep.subr.bf16.mxu0 %v20412_v19 }
 0x38b   :  { %17934 = vmatpush3.bf16.msra.mxu1 %v20414_v27 }
 0x38c   :  { %17935 = vmatprep.subr.bf16.mxu1 %v20415_v52  ;;  %17322 = vmatmul.mubr.bf16.gmra.mrb[132].mxu0 %v22686_v30 }
 0x38d   :  { %17330 = vmatpush3.bf16.msra.mxu0 %v20412_v19  ;;  %17341 = vmatprep.mubr.bf16.mxu0 %v22628_v12  ;;  %v5431_v19 = vld [vmem:[#allocation2 + $0x311] sm:$0xff]  ;;  %v5882_v12 = vld [vmem:[#allocation2 + $0x220] sm:$0xff] }
 0x38e   :  { %17331 = vmatprep.subr.bf16.mxu0 %v20413_v16  ;;  %v22704_v30 = vpack.c.bf16 %v5432_v22, %v5431_v19  ;;  %v22711_v19 = vpack.c.bf16 %v5434_v32, %v5433_v58  ;;  %v20421_v22 = vld [vmem:[%s24423_s3 + $0x458] sm:$0xff]   ;;  %v20422_v58 = vld [vmem:[%s24423_s3 + $0x460] sm:$0xff]  }
 0x38f   :  { %17936 = vmatpush3.bf16.msra.mxu1 %v20415_v52  ;;  %v5580_v32 = vld [vmem:[#allocation2 + $0x1c1] sm:$0xff] }
 0x390   :  { %17937 = vmatprep.subr.bf16.mxu1 %v20416_v31  ;;  %24709 = vst [vmem:[#allocation20_spill] sm:$0xff] %v22704_v30  ;;  %24710 = vst [vmem:[#allocation21_spill] sm:$0xff] %v22711_v19 }
 0x391   :  { %17332 = vmatpush3.bf16.msra.mxu0 %v20413_v16  ;;  %v20419_v16 = vld [vmem:[%s24423_s3 + $0x448] sm:$0xff]  }
 0x392   :  { %17333 = vmatprep.subr.bf16.mxu0 %v20414_v27 }
 0x393   :  { %17938 = vmatpush3.bf16.msra.mxu1 %v20416_v31 }
 0x394   :  { %17939 = vmatprep.subr.bf16.mxu1 %v20417_v63 }
 0x395   :  { %17334 = vmatpush3.bf16.msra.mxu0 %v20414_v27  ;;  %v20420_v27 = vld [vmem:[%s24423_s3 + $0x450] sm:$0xff]  }
 0x396   :  { %17335 = vmatprep.subr.bf16.mxu0 %v20415_v52 }
 0x397   :  { %17940 = vmatpush3.bf16.msra.mxu1 %v20417_v63 }
 0x398   :  { %17949 = vmatprep.subr.bf16.mxu1 %v20418_v21 }
 0x399   :  { %17336 = vmatpush3.bf16.msra.mxu0 %v20415_v52  ;;  %v5578_v52 = vld [vmem:[#allocation2 + $0x1a1] sm:$0xff] }
 0x39a   :  { %17942 = vmatmul.mubr.bf16.vlgmr.msra.gmra.mrb[128].mxu1 %v22699_v17  ;;  %17337 = vmatprep.subr.bf16.mxu0 %v20416_v31  ;;  %v22716_v18 = vpack.c.bf16 %v5578_v52, %v5577_v38  ;;  %v5579_v38 = vld [vmem:[#allocation2 + $0x1b1] sm:$0xff] }
 0x39b   :  { %17945 = vmatprep.mubr.bf16.mxu1 %v22704_v30  ;;  %17950 = vmatpush3.bf16.msra.mxu1 %v20418_v21  ;;  %v22739_v52 = vpack.c.bf16 %v5580_v32, %v5579_v38  ;;  %v5584_v32 = vld [vmem:[#allocation2 + $0x3c1] sm:$0xff]  ;;  %v5727_v38 = vld [vmem:[#allocation2 + $0x112] sm:$0xff] }
 0x39c   :  { %17951 = vmatprep.subr.bf16.mxu1 %v20419_v16  ;;  %24711 = vst [vmem:[#allocation22_spill] sm:$0xff] %v22716_v18 }
 0x39d   :  { %17338 = vmatpush3.bf16.msra.mxu0 %v20416_v31  ;;  %v20423_v31 = vld [vmem:[%s24423_s3 + $0x468] sm:$0xff]   ;;  %24712 = vst [vmem:[#allocation23_spill] sm:$0xff] %v22739_v52 }
 0x39e   :  { %17339 = vmatprep.subr.bf16.mxu0 %v20417_v63 }
 0x39f   :  { %17952 = vmatpush3.bf16.msra.mxu1 %v20419_v16 }
 0x3a0   :  { %17953 = vmatprep.subr.bf16.mxu1 %v20420_v27 }
 0x3a1   :  { %17340 = vmatpush3.bf16.msra.mxu0 %v20417_v63  ;;  %v20424_v63 = vld [vmem:[%s24423_s3 + $0x470] sm:$0xff]  }
 0x3a2   :  { %17946 = vmatmul.mubr.bf16.gmra.mrb[132].mxu1 %v22711_v19  ;;  %17349 = vmatprep.subr.bf16.mxu0 %v20418_v21 }
 0x3a3   :  { %17954 = vmatpush3.bf16.msra.mxu1 %v20420_v27  ;;  %17965 = vmatprep.mubr.bf16.mxu1 %v22716_v18 }
 0x3a4   :  { %17955 = vmatprep.subr.bf16.mxu1 %v20421_v22  ;;  %17342 = vmatmul.mubr.bf16.vlgmr.msra.gmra.mrb[128].mxu0 %v22653_v33 }
 0x3a5   :  { %17345 = vmatprep.mubr.bf16.mxu0 %v22658_v36  ;;  %17350 = vmatpush3.bf16.msra.mxu0 %v20418_v21  ;;  %v20425_v21 = vld [vmem:[%s24423_s3 + $0x478] sm:$0xff]   ;;  %v5583_v36 = vld [vmem:[#allocation2 + $0x3b1] sm:$0xff] }
 0x3a6   :  { %17351 = vmatprep.subr.bf16.mxu0 %v20419_v16 }
 0x3a7   :  { %17956 = vmatpush3.bf16.msra.mxu1 %v20421_v22 }
 0x3a8   :  { %17957 = vmatprep.subr.bf16.mxu1 %v20422_v58 }
 0x3a9   :  { %17352 = vmatpush3.bf16.msra.mxu0 %v20419_v16  ;;  %v20426_v16 = vld [vmem:[%s24423_s3 + $0x480] sm:$0xff]  }
 0x3aa   :  { %17353 = vmatprep.subr.bf16.mxu0 %v20420_v27 }
 0x3ab   :  { %17958 = vmatpush3.bf16.msra.mxu1 %v20422_v58 }
 0x3ac   :  { %17959 = vmatprep.subr.bf16.mxu1 %v20423_v31  ;;  %17346 = vmatmul.mubr.bf16.gmra.mrb[132].mxu0 %v22665_v41 }
 0x3ad   :  { %17354 = vmatpush3.bf16.msra.mxu0 %v20420_v27  ;;  %17365 = vmatprep.mubr.bf16.mxu0 %v22670_v39  ;;  %v5581_v27 = vld [vmem:[#allocation2 + $0x391] sm:$0xff]  ;;  %v5582_v39 = vld [vmem:[#allocation2 + $0x3a1] sm:$0xff] }
 0x3ae   :  { %17355 = vmatprep.subr.bf16.mxu0 %v20421_v22  ;;  %v22744_v41 = vpack.c.bf16 %v5582_v39, %v5581_v27  ;;  %v22751_v39 = vpack.c.bf16 %v5584_v32, %v5583_v36  ;;  %v20429_v27 = vld [vmem:[%s24423_s3 + $0x498] sm:$0xff]   ;;  %v20430_v36 = vld [vmem:[%s24423_s3 + $0x4a0] sm:$0xff]  }
 0x3af   :  { %17960 = vmatpush3.bf16.msra.mxu1 %v20423_v31  ;;  %v5730_v32 = vld [vmem:[#allocation2 + $0x142] sm:$0xff] }
 0x3b0   :  { %17961 = vmatprep.subr.bf16.mxu1 %v20424_v63  ;;  %24713 = vst [vmem:[#allocation24_spill] sm:$0xff] %v22744_v41  ;;  %24714 = vst [vmem:[#allocation25_spill] sm:$0xff] %v22751_v39 }
 0x3b1   :  { %17356 = vmatpush3.bf16.msra.mxu0 %v20421_v22  ;;  %v20427_v22 = vld [vmem:[%s24423_s3 + $0x488] sm:$0xff]  }
 0x3b2   :  { %17357 = vmatprep.subr.bf16.mxu0 %v20422_v58 }
 0x3b3   :  { %17962 = vmatpush3.bf16.msra.mxu1 %v20424_v63 }
 0x3b4   :  { %17963 = vmatprep.subr.bf16.mxu1 %v20425_v21 }
 0x3b5   :  { %17358 = vmatpush3.bf16.msra.mxu0 %v20422_v58  ;;  %v20428_v58 = vld [vmem:[%s24423_s3 + $0x490] sm:$0xff]  }
 0x3b6   :  { %17359 = vmatprep.subr.bf16.mxu0 %v20423_v31 }
 0x3b7   :  { %17964 = vmatpush3.bf16.msra.mxu1 %v20425_v21 }
 0x3b8   :  { %17973 = vmatprep.subr.bf16.mxu1 %v20426_v16 }
 0x3b9   :  { %17360 = vmatpush3.bf16.msra.mxu0 %v20423_v31  ;;  %v5728_v31 = vld [vmem:[#allocation2 + $0x122] sm:$0xff] }
 0x3ba   :  { %17966 = vmatmul.mubr.bf16.vlgmr.msra.gmra.mrb[128].mxu1 %v22739_v52  ;;  %17361 = vmatprep.subr.bf16.mxu0 %v20424_v63  ;;  %v22756_v33 = vpack.c.bf16 %v5728_v31, %v5727_v38  ;;  %v5729_v38 = vld [vmem:[#allocation2 + $0x132] sm:$0xff] }
 0x3bb   :  { %17969 = vmatprep.mubr.bf16.mxu1 %v22744_v41  ;;  %17974 = vmatpush3.bf16.msra.mxu1 %v20426_v16  ;;  %v22779_v31 = vpack.c.bf16 %v5730_v32, %v5729_v38  ;;  %v5734_v32 = vld [vmem:[#allocation2 + $0x342] sm:$0xff]  ;;  %v8036_v38 = vld [vmem:[#allocation2 + $0x192] sm:$0xff] }
 0x3bc   :  { %17975 = vmatprep.subr.bf16.mxu1 %v20427_v22  ;;  %24715 = vst [vmem:[#allocation26_spill] sm:$0xff] %v22756_v33 }
 0x3bd   :  { %17362 = vmatpush3.bf16.msra.mxu0 %v20424_v63  ;;  %v20431_v63 = vld [vmem:[%s24423_s3 + $0x4a8] sm:$0xff]   ;;  %24716 = vst [vmem:[#allocation27_spill] sm:$0xff] %v22779_v31 }
 0x3be   :  { %17363 = vmatprep.subr.bf16.mxu0 %v20425_v21 }
 0x3bf   :  { %17976 = vmatpush3.bf16.msra.mxu1 %v20427_v22 }
 0x3c0   :  { %17977 = vmatprep.subr.bf16.mxu1 %v20428_v58 }
 0x3c1   :  { %17364 = vmatpush3.bf16.msra.mxu0 %v20425_v21  ;;  %v20432_v21 = vld [vmem:[%s24423_s3 + $0x4b0] sm:$0xff]  }
 0x3c2   :  { %17970 = vmatmul.mubr.bf16.gmra.mrb[132].mxu1 %v22751_v39  ;;  %17373 = vmatprep.subr.bf16.mxu0 %v20426_v16 }
 0x3c3   :  { %17978 = vmatpush3.bf16.msra.mxu1 %v20428_v58  ;;  %17989 = vmatprep.mubr.bf16.mxu1 %v22756_v33 }
 0x3c4   :  { %17979 = vmatprep.subr.bf16.mxu1 %v20429_v27  ;;  %17366 = vmatmul.mubr.bf16.vlgmr.msra.gmra.mrb[128].mxu0 %v22699_v17 }
 0x3c5   :  { %17369 = vmatprep.mubr.bf16.mxu0 %v22704_v30  ;;  %17374 = vmatpush3.bf16.msra.mxu0 %v20426_v16  ;;  %v20433_v16 = vld [vmem:[%s24423_s3 + $0x4b8] sm:$0xff]   ;;  %v5733_v30 = vld [vmem:[#allocation2 + $0x332] sm:$0xff] }
 0x3c6   :  { %17375 = vmatprep.subr.bf16.mxu0 %v20427_v22 }
 0x3c7   :  { %17980 = vmatpush3.bf16.msra.mxu1 %v20429_v27 }
 0x3c8   :  { %17981 = vmatprep.subr.bf16.mxu1 %v20430_v36 }
 0x3c9   :  { %17376 = vmatpush3.bf16.msra.mxu0 %v20427_v22  ;;  %v20434_v22 = vld [vmem:[%s24423_s3 + $0x4c0] sm:$0xff]  }
 0x3ca   :  { %17377 = vmatprep.subr.bf16.mxu0 %v20428_v58 }
 0x3cb   :  { %17982 = vmatpush3.bf16.msra.mxu1 %v20430_v36 }
 0x3cc   :  { %17983 = vmatprep.subr.bf16.mxu1 %v20431_v63  ;;  %17370 = vmatmul.mubr.bf16.gmra.mrb[132].mxu0 %v22711_v19 }
 0x3cd   :  { %17378 = vmatpush3.bf16.msra.mxu0 %v20428_v58  ;;  %17389 = vmatprep.mubr.bf16.mxu0 %v22716_v18  ;;  %v5731_v58 = vld [vmem:[#allocation2 + $0x312] sm:$0xff]  ;;  %v5732_v18 = vld [vmem:[#allocation2 + $0x322] sm:$0xff] }
 0x3ce   :  { %17379 = vmatprep.subr.bf16.mxu0 %v20429_v27  ;;  %v22784_v19 = vpack.c.bf16 %v5732_v18, %v5731_v58  ;;  %v22791_v18 = vpack.c.bf16 %v5734_v32, %v5733_v30  ;;  %v20437_v58 = vld [vmem:[%s24423_s3 + $0x4d8] sm:$0xff]   ;;  %v20438_v30 = vld [vmem:[%s24423_s3 + $0x4e0] sm:$0xff]  }
 0x3cf   :  { %17984 = vmatpush3.bf16.msra.mxu1 %v20431_v63  ;;  %v8039_v32 = vld [vmem:[#allocation2 + $0x1c2] sm:$0xff] }
 0x3d0   :  { %17985 = vmatprep.subr.bf16.mxu1 %v20432_v21  ;;  %24717 = vst [vmem:[#allocation28_spill] sm:$0xff] %v22784_v19  ;;  %24718 = vst [vmem:[#allocation29_spill] sm:$0xff] %v22791_v18 }
 0x3d1   :  { %17380 = vmatpush3.bf16.msra.mxu0 %v20429_v27  ;;  %v20435_v27 = vld [vmem:[%s24423_s3 + $0x4c8] sm:$0xff]  }
 0x3d2   :  { %17381 = vmatprep.subr.bf16.mxu0 %v20430_v36 }
 0x3d3   :  { %17986 = vmatpush3.bf16.msra.mxu1 %v20432_v21 }
 0x3d4   :  { %17987 = vmatprep.subr.bf16.mxu1 %v20433_v16 }
 0x3d5   :  { %17382 = vmatpush3.bf16.msra.mxu0 %v20430_v36  ;;  %v20436_v36 = vld [vmem:[%s24423_s3 + $0x4d0] sm:$0xff]  }
 0x3d6   :  { %17383 = vmatprep.subr.bf16.mxu0 %v20431_v63 }
 0x3d7   :  { %17988 = vmatpush3.bf16.msra.mxu1 %v20433_v16 }
 0x3d8   :  { %17997 = vmatprep.subr.bf16.mxu1 %v20434_v22 }
 0x3d9   :  { %17384 = vmatpush3.bf16.msra.mxu0 %v20431_v63  ;;  %v8037_v63 = vld [vmem:[#allocation2 + $0x1a2] sm:$0xff] }
 0x3da   :  { %17990 = vmatmul.mubr.bf16.vlgmr.msra.gmra.mrb[128].mxu1 %v22779_v31  ;;  %17385 = vmatprep.subr.bf16.mxu0 %v20432_v21  ;;  %v22796_v17 = vpack.c.bf16 %v8037_v63, %v8036_v38  ;;  %v8038_v38 = vld [vmem:[#allocation2 + $0x1b2] sm:$0xff] }
 0x3db   :  { %17993 = vmatprep.mubr.bf16.mxu1 %v22784_v19  ;;  %17998 = vmatpush3.bf16.msra.mxu1 %v20434_v22  ;;  %v22819_v63 = vpack.c.bf16 %v8039_v32, %v8038_v38  ;;  %v8043_v32 = vld [vmem:[#allocation2 + $0x3c2] sm:$0xff]  ;;  %v6030_v38 = vld [vmem:[#allocation2 + $0xb0] sm:$0xff] }
 0x3dc   :  { %17999 = vmatprep.subr.bf16.mxu1 %v20435_v27  ;;  %24719 = vst [vmem:[#allocation30_spill] sm:$0xff] %v22796_v17 }
 0x3dd   :  { %17386 = vmatpush3.bf16.msra.mxu0 %v20432_v21  ;;  %v20439_v21 = vld [vmem:[%s24423_s3 + $0x4e8] sm:$0xff]   ;;  %24720 = vst [vmem:[#allocation31_spill] sm:$0xff] %v22819_v63 }
 0x3de   :  { %17387 = vmatprep.subr.bf16.mxu0 %v20433_v16 }
 0x3df   :  { %18000 = vmatpush3.bf16.msra.mxu1 %v20435_v27 }
 0x3e0   :  { %18001 = vmatprep.subr.bf16.mxu1 %v20436_v36 }
 0x3e1   :  { %17388 = vmatpush3.bf16.msra.mxu0 %v20433_v16  ;;  %v20440_v16 = vld [vmem:[%s24423_s3 + $0x4f0] sm:$0xff]  }
 0x3e2   :  { %17994 = vmatmul.mubr.bf16.gmra.mrb[132].mxu1 %v22791_v18  ;;  %17397 = vmatprep.subr.bf16.mxu0 %v20434_v22 }
 0x3e3   :  { %18002 = vmatpush3.bf16.msra.mxu1 %v20436_v36  ;;  %18013 = vmatprep.mubr.bf16.mxu1 %v22796_v17  ;;  %v8041_v17 = vld [vmem:[#allocation2 + $0x3a2] sm:$0xff] }
 0x3e4   :  { %18003 = vmatprep.subr.bf16.mxu1 %v20437_v58  ;;  %17390 = vmatmul.mubr.bf16.vlgmr.msra.gmra.mrb[128].mxu0 %v22739_v52  ;;  %v5880_v52 = vld [vmem:[#allocation2 + $0x40] sm:$0xff] }
 0x3e5   :  { %17393 = vmatprep.mubr.bf16.mxu0 %v22744_v41  ;;  %17398 = vmatpush3.bf16.msra.mxu0 %v20434_v22  ;;  %v20441_v22 = vld [vmem:[%s24423_s3 + $0x4f8] sm:$0xff]  }
 0x3e6   :  { %17399 = vmatprep.subr.bf16.mxu0 %v20435_v27 }
 0x3e7   :  { %18004 = vmatpush3.bf16.msra.mxu1 %v20437_v58 }
 0x3e8   :  { %18005 = vmatprep.subr.bf16.mxu1 %v20438_v30 }
 0x3e9   :  { %17400 = vmatpush3.bf16.msra.mxu0 %v20435_v27  ;;  %v20442_v27 = vld [vmem:[%s24423_s3 + $0x500] sm:$0xff]  }
 0x3ea   :  { %17401 = vmatprep.subr.bf16.mxu0 %v20436_v36 }
 0x3eb   :  { %18006 = vmatpush3.bf16.msra.mxu1 %v20438_v30 }
 0x3ec   :  { %18007 = vmatprep.subr.bf16.mxu1 %v20439_v21  ;;  %17394 = vmatmul.mubr.bf16.gmra.mrb[132].mxu0 %v22751_v39  ;;  %v8042_v39 = vld [vmem:[#allocation2 + $0x3b2] sm:$0xff] }
 0x3ed   :  { %17402 = vmatpush3.bf16.msra.mxu0 %v20436_v36  ;;  %17413 = vmatprep.mubr.bf16.mxu0 %v22756_v33  ;;  %v8040_v36 = vld [vmem:[#allocation2 + $0x392] sm:$0xff] }
 0x3ee   :  { %17403 = vmatprep.subr.bf16.mxu0 %v20437_v58  ;;  %v22824_v33 = vpack.c.bf16 %v8041_v17, %v8040_v36  ;;  %v22831_v17 = vpack.c.bf16 %v8043_v32, %v8042_v39  ;;  %v20445_v36 = vld [vmem:[%s24423_s3 + $0x518] sm:$0xff]   ;;  %v20446_v39 = vld [vmem:[%s24423_s3 + $0x520] sm:$0xff]   ;;  %v5878_v32 = vld [vmem:[#allocation2 + $0x20] sm:$0xff] }
 0x3ef   :  { %18008 = vmatpush3.bf16.msra.mxu1 %v20439_v21 }
 0x3f0   :  { %18009 = vmatprep.subr.bf16.mxu1 %v20440_v16  ;;  %24721 = vst [vmem:[#allocation32_spill] sm:$0xff] %v22824_v33  ;;  %24722 = vst [vmem:[#allocation33_spill] sm:$0xff] %v22831_v17 }
 0x3f1   :  { %17404 = vmatpush3.bf16.msra.mxu0 %v20437_v58  ;;  %v20443_v58 = vld [vmem:[%s24423_s3 + $0x508] sm:$0xff]  }
 0x3f2   :  { %17405 = vmatprep.subr.bf16.mxu0 %v20438_v30 }
 0x3f3   :  { %18010 = vmatpush3.bf16.msra.mxu1 %v20440_v16 }
 0x3f4   :  { %18011 = vmatprep.subr.bf16.mxu1 %v20441_v22 }
 0x3f5   :  { %17406 = vmatpush3.bf16.msra.mxu0 %v20438_v30  ;;  %v20444_v30 = vld [vmem:[%s24423_s3 + $0x510] sm:$0xff]  }
 0x3f6   :  { %17407 = vmatprep.subr.bf16.mxu0 %v20439_v21 }
 0x3f7   :  { %18012 = vmatpush3.bf16.msra.mxu1 %v20441_v22 }
 0x3f8   :  { %18021 = vmatprep.subr.bf16.mxu1 %v20442_v27 }
 0x3f9   :  { %17408 = vmatpush3.bf16.msra.mxu0 %v20439_v21  ;;  %v6029_v21 = vld [vmem:[#allocation2 + $0xa0] sm:$0xff] }
 0x3fa   :  { %18014 = vmatmul.mubr.bf16.vlgmr.msra.gmra.mrb[128].mxu1 %v22819_v63  ;;  %17409 = vmatprep.subr.bf16.mxu0 %v20440_v16 }
 0x3fb   :  { %18017 = vmatprep.mubr.bf16.mxu1 %v22824_v33  ;;  %18022 = vmatpush3.bf16.msra.mxu1 %v20442_v27  ;;  %v22836_v33 = vpack.c.bf16 %v6030_v38, %v6029_v21  ;;  %v20450_v21 = vld [vmem:[%s24423_s3 + $0x540] sm:$0xff]  }
 0x3fc   :  { %18023 = vmatprep.subr.bf16.mxu1 %v20443_v58 }
 0x3fd   :  { %17410 = vmatpush3.bf16.msra.mxu0 %v20440_v16  ;;  %v20447_v16 = vld [vmem:[%s24423_s3 + $0x528] sm:$0xff]  }
 0x3fe   :  { %17411 = vmatprep.subr.bf16.mxu0 %v20441_v22 }
 0x3ff   :  { %18024 = vmatpush3.bf16.msra.mxu1 %v20443_v58 }
 0x400   :  { %18025 = vmatprep.subr.bf16.mxu1 %v20444_v30 }
 0x401   :  { %17412 = vmatpush3.bf16.msra.mxu0 %v20441_v22  ;;  %v5879_v22 = vld [vmem:[#allocation2 + $0x30] sm:$0xff] }
 0x402   :  { %18018 = vmatmul.mubr.bf16.gmra.mrb[132].mxu1 %v22831_v17  ;;  %17421 = vmatprep.subr.bf16.mxu0 %v20442_v27  ;;  %v22848_v38 = vpack.c.bf16 %v5879_v22, %v5878_v32  ;;  %v6032_v22 = vld [vmem:[#allocation2 + $0xd0] sm:$0xff]  ;;  %v6031_v32 = vld [vmem:[#allocation2 + $0xc0] sm:$0xff] }
 0x403   :  { %18026 = vmatpush3.bf16.msra.mxu1 %v20444_v30  ;;  %18037 = vmatprep.mubr.bf16.mxu1 %v22836_v33  ;;  %v6033_v17 = vld [vmem:[#allocation2 + $0x2a0] sm:$0xff] }
 0x404   :  { %18027 = vmatprep.subr.bf16.mxu1 %v20445_v36  ;;  %17414 = vmatmul.mubr.bf16.vlgmr.msra.gmra.mrb[128].mxu0 %v22779_v31  ;;  %24723 = vst [vmem:[#allocation34_spill] sm:$0xff] %v22848_v38  ;;  %v5883_v31 = vld [vmem:[#allocation2 + $0x230] sm:$0xff] }
 0x405   :  { %17417 = vmatprep.mubr.bf16.mxu0 %v22784_v19  ;;  %17422 = vmatpush3.bf16.msra.mxu0 %v20442_v27  ;;  %v20448_v27 = vld [vmem:[%s24423_s3 + $0x530] sm:$0xff]   ;;  %v20453_v19 = vld [vmem:[%s24423_s3 + $0x558] sm:$0xff]  }
 0x406   :  { %17423 = vmatprep.subr.bf16.mxu0 %v20443_v58 }
 0x407   :  { %18028 = vmatpush3.bf16.msra.mxu1 %v20445_v36 }
 0x408   :  { %18029 = vmatprep.subr.bf16.mxu1 %v20446_v39 }
 0x409   :  { %17424 = vmatpush3.bf16.msra.mxu0 %v20443_v58  ;;  %v20449_v58 = vld [vmem:[%s24423_s3 + $0x538] sm:$0xff]  }
 0x40a   :  { %17425 = vmatprep.subr.bf16.mxu0 %v20444_v30 }
 0x40b   :  { %18030 = vmatpush3.bf16.msra.mxu1 %v20446_v39 }
 0x40c   :  { %18031 = vmatprep.subr.bf16.mxu1 %v20447_v16  ;;  %17418 = vmatmul.mubr.bf16.gmra.mrb[132].mxu0 %v22791_v18  ;;  %v6035_v18 = vld [vmem:[#allocation2 + $0x2c0] sm:$0xff] }
 0x40d   :  { %17426 = vmatpush3.bf16.msra.mxu0 %v20444_v30  ;;  %17437 = vmatprep.mubr.bf16.mxu0 %v22848_v38  ;;  %v6034_v30 = vld [vmem:[#allocation2 + $0x2b0] sm:$0xff]  ;;  %v22861_v38 = vpack.c.bf16 %v6032_v22, %v6031_v32 }
 0x40e   :  { %17427 = vmatprep.subr.bf16.mxu0 %v20445_v36  ;;  %v22866_v63 = vpack.c.bf16 %v6034_v30, %v6033_v17  ;;  %v6036_v22 = vld [vmem:[#allocation2 + $0x2d0] sm:$0xff] }
 0x40f   :  { %18032 = vmatpush3.bf16.msra.mxu1 %v20447_v16  ;;  %24724 = vst [vmem:[#allocation35_spill] sm:$0xff] %v22861_v38  ;;  %v6180_v32 = vld [vmem:[#allocation2 + $0x31] sm:$0xff]  ;;  %v22873_v30 = vpack.c.bf16 %v6036_v22, %v6035_v18  ;;  %v22884_v18 = vpack.c.bf16 %v5883_v31, %v5882_v12  ;;  %v5884_v12 = vld [vmem:[#allocation2 + $0x240] sm:$0xff] }
 0x410   :  { %18033 = vmatprep.subr.bf16.mxu1 %v20448_v27  ;;  %24725 = vst [vmem:[#allocation36_spill] sm:$0xff] %v22866_v63  ;;  %v5881_v17 = vld [vmem:[#allocation2 + $0x50] sm:$0xff] }
 0x411   :  { %17428 = vmatpush3.bf16.msra.mxu0 %v20445_v36  ;;  %v20451_v36 = vld [vmem:[%s24423_s3 + $0x548] sm:$0xff]   ;;  %24726 = vst [vmem:[#allocation37_spill] sm:$0xff] %v22873_v30  ;;  %24729 = vst [vmem:[#allocation40_spill] sm:$0xff] %v22884_v18  ;;  %v20454_v22 = vld [vmem:[%s24423_s3 + $0x560] sm:$0xff]  }
 0x412   :  { %17429 = vmatprep.subr.bf16.mxu0 %v20446_v39 }
 0x413   :  { %18034 = vmatpush3.bf16.msra.mxu1 %v20448_v27 }
 0x414   :  { %18035 = vmatprep.subr.bf16.mxu1 %v20449_v58 }
 0x415   :  { %17430 = vmatpush3.bf16.msra.mxu0 %v20446_v39  ;;  %v20452_v39 = vld [vmem:[%s24423_s3 + $0x550] sm:$0xff]  }
 0x416   :  { %17431 = vmatprep.subr.bf16.mxu0 %v20447_v16 }
 0x417   :  { %18036 = vmatpush3.bf16.msra.mxu1 %v20449_v58 }
 0x418   :  { %18045 = vmatprep.subr.bf16.mxu1 %v20450_v21 }
 0x419   :  { %17432 = vmatpush3.bf16.msra.mxu0 %v20447_v16  ;;  %v6179_v16 = vld [vmem:[#allocation2 + $0x21] sm:$0xff] }
 0x41a   :  { %18038 = vmatmul.mubr.bf16.vlgmr.msra.gmra.mrb[128].mxu1 %v22861_v38  ;;  %17433 = vmatprep.subr.bf16.mxu0 %v20448_v27  ;;  %v22878_v41 = vpack.c.bf16 %v6180_v32, %v6179_v16  ;;  %v20458_v32 = vld [vmem:[%s24423_s3 + $0x580] sm:$0xff]   ;;  %v6181_v16 = vld [vmem:[#allocation2 + $0x41] sm:$0xff] }
 0x41b   :  { %18041 = vmatprep.mubr.bf16.mxu1 %v22866_v63  ;;  %18046 = vmatpush3.bf16.msra.mxu1 %v20450_v21 }
 0x41c   :  { %18047 = vmatprep.subr.bf16.mxu1 %v20451_v36  ;;  %24727 = vst [vmem:[#allocation38_spill] sm:$0xff] %v22878_v41 }
 0x41d   :  { %17434 = vmatpush3.bf16.msra.mxu0 %v20448_v27  ;;  %v22881_v27 = vpack.c.bf16 %v5881_v17, %v5880_v52  ;;  %v5885_v52 = vld [vmem:[#allocation2 + $0x250] sm:$0xff] }
 0x41e   :  { %17435 = vmatprep.subr.bf16.mxu0 %v20449_v58  ;;  %v22894_v31 = vpack.c.bf16 %v5885_v52, %v5884_v12  ;;  %v6182_v17 = vld [vmem:[#allocation2 + $0x51] sm:$0xff]  ;;  %v6183_v12 = vld [vmem:[#allocation2 + $0x221] sm:$0xff] }
 0x41f   :  { %18048 = vmatpush3.bf16.msra.mxu1 %v20451_v36  ;;  %24728 = vst [vmem:[#allocation39_spill] sm:$0xff] %v22881_v27  ;;  %v22907_v52 = vpack.c.bf16 %v6182_v17, %v6181_v16  ;;  %v6186_v17 = vld [vmem:[#allocation2 + $0x251] sm:$0xff] }
 0x420   :  { %18049 = vmatprep.subr.bf16.mxu1 %v20452_v39  ;;  %24730 = vst [vmem:[#allocation41_spill] sm:$0xff] %v22894_v31  ;;  %v6330_v16 = vld [vmem:[#allocation2 + $0xb1] sm:$0xff] }
 0x421   :  { %17436 = vmatpush3.bf16.msra.mxu0 %v20449_v58  ;;  %v20455_v58 = vld [vmem:[%s24423_s3 + $0x568] sm:$0xff]   ;;  %24731 = vst [vmem:[#allocation42_spill] sm:$0xff] %v22907_v52 }
 0x422   :  { %18042 = vmatmul.mubr.bf16.gmra.mrb[132].mxu1 %v22873_v30  ;;  %17445 = vmatprep.subr.bf16.mxu0 %v20450_v21 }
 0x423   :  { %18050 = vmatpush3.bf16.msra.mxu1 %v20452_v39  ;;  %18061 = vmatprep.mubr.bf16.mxu1 %v22878_v41 }
 0x424   :  { %18051 = vmatprep.subr.bf16.mxu1 %v20453_v19  ;;  %17438 = vmatmul.mubr.bf16.vlgmr.msra.gmra.mrb[128].mxu0 %v22881_v27 }
 0x425   :  { %17441 = vmatprep.mubr.bf16.mxu0 %v22884_v18  ;;  %17446 = vmatpush3.bf16.msra.mxu0 %v20450_v21  ;;  %v20456_v21 = vld [vmem:[%s24423_s3 + $0x570] sm:$0xff]  }
 0x426   :  { %17447 = vmatprep.subr.bf16.mxu0 %v20451_v36  ;;  %v6185_v18 = vld [vmem:[#allocation2 + $0x241] sm:$0xff] }
 0x427   :  { %18052 = vmatpush3.bf16.msra.mxu1 %v20453_v19 }
 0x428   :  { %18053 = vmatprep.subr.bf16.mxu1 %v20454_v22 }
 0x429   :  { %17448 = vmatpush3.bf16.msra.mxu0 %v20451_v36  ;;  %v20457_v36 = vld [vmem:[%s24423_s3 + $0x578] sm:$0xff]  }
 0x42a   :  { %17449 = vmatprep.subr.bf16.mxu0 %v20452_v39 }
 0x42b   :  { %18054 = vmatpush3.bf16.msra.mxu1 %v20454_v22 }
 0x42c   :  { %18055 = vmatprep.subr.bf16.mxu1 %v20455_v58  ;;  %17442 = vmatmul.mubr.bf16.gmra.mrb[132].mxu0 %v22894_v31 }
 0x42d   :  { %17450 = vmatpush3.bf16.msra.mxu0 %v20452_v39  ;;  %17461 = vmatprep.mubr.bf16.mxu0 %v22836_v33  ;;  %v6184_v39 = vld [vmem:[#allocation2 + $0x231] sm:$0xff] }
 0x42e   :  { %17451 = vmatprep.subr.bf16.mxu0 %v20453_v19  ;;  %v22912_v31 = vpack.c.bf16 %v6184_v39, %v6183_v12  ;;  %v22919_v39 = vpack.c.bf16 %v6186_v17, %v6185_v18  ;;  %v20461_v12 = vld [vmem:[%s24423_s3 + $0x598] sm:$0xff]   ;;  %v20462_v18 = vld [vmem:[%s24423_s3 + $0x5a0] sm:$0xff]  }
 0x42f   :  { %18056 = vmatpush3.bf16.msra.mxu1 %v20455_v58  ;;  %v6332_v17 = vld [vmem:[#allocation2 + $0xd1] sm:$0xff] }
 0x430   :  { %18057 = vmatprep.subr.bf16.mxu1 %v20456_v21  ;;  %24732 = vst [vmem:[#allocation43_spill] sm:$0xff] %v22912_v31  ;;  %24733 = vst [vmem:[#allocation44_spill] sm:$0xff] %v22919_v39 }
 0x431   :  { %17452 = vmatpush3.bf16.msra.mxu0 %v20453_v19  ;;  %v20459_v19 = vld [vmem:[%s24423_s3 + $0x588] sm:$0xff]  }
 0x432   :  { %17453 = vmatprep.subr.bf16.mxu0 %v20454_v22 }
 0x433   :  { %18058 = vmatpush3.bf16.msra.mxu1 %v20456_v21 }
 0x434   :  { %18059 = vmatprep.subr.bf16.mxu1 %v20457_v36 }
 0x435   :  { %17454 = vmatpush3.bf16.msra.mxu0 %v20454_v22  ;;  %v20460_v22 = vld [vmem:[%s24423_s3 + $0x590] sm:$0xff]  }
 0x436   :  { %17455 = vmatprep.subr.bf16.mxu0 %v20455_v58 }
 0x437   :  { %18060 = vmatpush3.bf16.msra.mxu1 %v20457_v36 }
 0x438   :  { %18069 = vmatprep.subr.bf16.mxu1 %v20458_v32 }
 0x439   :  { %17456 = vmatpush3.bf16.msra.mxu0 %v20455_v58  ;;  %v6329_v58 = vld [vmem:[#allocation2 + $0xa1] sm:$0xff] }
 0x43a   :  { %18062 = vmatmul.mubr.bf16.vlgmr.msra.gmra.mrb[128].mxu1 %v22907_v52  ;;  %17457 = vmatprep.subr.bf16.mxu0 %v20456_v21  ;;  %v22924_v27 = vpack.c.bf16 %v6330_v16, %v6329_v58  ;;  %v6331_v16 = vld [vmem:[#allocation2 + $0xc1] sm:$0xff] }
 0x43b   :  { %18065 = vmatprep.mubr.bf16.mxu1 %v22912_v31  ;;  %18070 = vmatpush3.bf16.msra.mxu1 %v20458_v32  ;;  %v22947_v58 = vpack.c.bf16 %v6332_v17, %v6331_v16  ;;  %v6336_v17 = vld [vmem:[#allocation2 + $0x2d1] sm:$0xff] }
 0x43c   :  { %18071 = vmatprep.subr.bf16.mxu1 %v20459_v19  ;;  %24734 = vst [vmem:[#allocation45_spill] sm:$0xff] %v22924_v27  ;;  %v6480_v16 = vld [vmem:[#allocation2 + $0x32] sm:$0xff] }
 0x43d   :  { %17458 = vmatpush3.bf16.msra.mxu0 %v20456_v21  ;;  %v20463_v21 = vld [vmem:[%s24423_s3 + $0x5a8] sm:$0xff]  }
 0x43e   :  { %17459 = vmatprep.subr.bf16.mxu0 %v20457_v36 }
 0x43f   :  { %18072 = vmatpush3.bf16.msra.mxu1 %v20459_v19 }
 0x440   :  { %18073 = vmatprep.subr.bf16.mxu1 %v20460_v22 }
 0x441   :  { %17460 = vmatpush3.bf16.msra.mxu0 %v20457_v36  ;;  %v20464_v36 = vld [vmem:[%s24423_s3 + $0x5b0] sm:$0xff]  }
 0x442   :  { %18066 = vmatmul.mubr.bf16.gmra.mrb[132].mxu1 %v22919_v39  ;;  %17469 = vmatprep.subr.bf16.mxu0 %v20458_v32 }
 0x443   :  { %18074 = vmatpush3.bf16.msra.mxu1 %v20460_v22  ;;  %18085 = vmatprep.mubr.bf16.mxu1 %v22924_v27 }
 0x444   :  { %18075 = vmatprep.subr.bf16.mxu1 %v20461_v12  ;;  %17462 = vmatmul.mubr.bf16.vlgmr.msra.gmra.mrb[128].mxu0 %v22861_v38 }
 0x445   :  { %17465 = vmatprep.mubr.bf16.mxu0 %v22866_v63  ;;  %17470 = vmatpush3.bf16.msra.mxu0 %v20458_v32  ;;  %v20465_v32 = vld [vmem:[%s24423_s3 + $0x5b8] sm:$0xff]  }
 0x446   :  { %17471 = vmatprep.subr.bf16.mxu0 %v20459_v19  ;;  %v6335_v63 = vld [vmem:[#allocation2 + $0x2c1] sm:$0xff] }
 0x447   :  { %18076 = vmatpush3.bf16.msra.mxu1 %v20461_v12 }
 0x448   :  { %18077 = vmatprep.subr.bf16.mxu1 %v20462_v18 }
 0x449   :  { %17472 = vmatpush3.bf16.msra.mxu0 %v20459_v19  ;;  %v20466_v19 = vld [vmem:[%s24423_s3 + $0x5c0] sm:$0xff]  }
 0x44a   :  { %17473 = vmatprep.subr.bf16.mxu0 %v20460_v22 }
 0x44b   :  { %18078 = vmatpush3.bf16.msra.mxu1 %v20462_v18 }
 0x44c   :  { %18079 = vmatprep.subr.bf16.mxu1 %v20463_v21  ;;  %17466 = vmatmul.mubr.bf16.gmra.mrb[132].mxu0 %v22873_v30 }
 0x44d   :  { %17474 = vmatpush3.bf16.msra.mxu0 %v20460_v22  ;;  %17485 = vmatprep.mubr.bf16.mxu0 %v22878_v41  ;;  %v6334_v22 = vld [vmem:[#allocation2 + $0x2b1] sm:$0xff]  ;;  %v6333_v41 = vld [vmem:[#allocation2 + $0x2a1] sm:$0xff] }
 0x44e   :  { %17475 = vmatprep.subr.bf16.mxu0 %v20461_v12  ;;  %v22952_v30 = vpack.c.bf16 %v6334_v22, %v6333_v41  ;;  %v22959_v41 = vpack.c.bf16 %v6336_v17, %v6335_v63  ;;  %v20469_v22 = vld [vmem:[%s24423_s3 + $0x5d8] sm:$0xff]   ;;  %v20470_v63 = vld [vmem:[%s24423_s3 + $0x5e0] sm:$0xff]  }
 0x44f   :  { %18080 = vmatpush3.bf16.msra.mxu1 %v20463_v21  ;;  %v6482_v17 = vld [vmem:[#allocation2 + $0x52] sm:$0xff] }
 0x450   :  { %18081 = vmatprep.subr.bf16.mxu1 %v20464_v36 }
 0x451   :  { %17476 = vmatpush3.bf16.msra.mxu0 %v20461_v12  ;;  %v20467_v12 = vld [vmem:[%s24423_s3 + $0x5c8] sm:$0xff]  }
 0x452   :  { %17477 = vmatprep.subr.bf16.mxu0 %v20462_v18 }
 0x453   :  { %18082 = vmatpush3.bf16.msra.mxu1 %v20464_v36 }
 0x454   :  { %18083 = vmatprep.subr.bf16.mxu1 %v20465_v32 }
 0x455   :  { %17478 = vmatpush3.bf16.msra.mxu0 %v20462_v18  ;;  %v20468_v18 = vld [vmem:[%s24423_s3 + $0x5d0] sm:$0xff]  }
 0x456   :  { %17479 = vmatprep.subr.bf16.mxu0 %v20463_v21 }
 0x457   :  { %18084 = vmatpush3.bf16.msra.mxu1 %v20465_v32 }
 0x458   :  { %18093 = vmatprep.subr.bf16.mxu1 %v20466_v19 }
 0x459   :  { %17480 = vmatpush3.bf16.msra.mxu0 %v20463_v21  ;;  %v6479_v21 = vld [vmem:[#allocation2 + $0x22] sm:$0xff] }
 0x45a   :  { %18086 = vmatmul.mubr.bf16.vlgmr.msra.gmra.mrb[128].mxu1 %v22947_v58  ;;  %17481 = vmatprep.subr.bf16.mxu0 %v20464_v36  ;;  %v22964_v38 = vpack.c.bf16 %v6480_v16, %v6479_v21  ;;  %v6481_v16 = vld [vmem:[#allocation2 + $0x42] sm:$0xff] }
 0x45b   :  { %18089 = vmatprep.mubr.bf16.mxu1 %v22952_v30  ;;  %18094 = vmatpush3.bf16.msra.mxu1 %v20466_v19  ;;  %v22987_v21 = vpack.c.bf16 %v6482_v17, %v6481_v16  ;;  %v6486_v17 = vld [vmem:[#allocation2 + $0x252] sm:$0xff] }
 0x45c   :  { %18095 = vmatprep.subr.bf16.mxu1 %v20467_v12  ;;  %24735 = vst [vmem:[#allocation46_spill] sm:$0xff] %v22964_v38  ;;  %v8414_v16 = vld [vmem:[#allocation2 + $0xb2] sm:$0xff] }
 0x45d   :  { %17482 = vmatpush3.bf16.msra.mxu0 %v20464_v36  ;;  %v20471_v36 = vld [vmem:[%s24423_s3 + $0x5e8] sm:$0xff]  }
 0x45e   :  { %17483 = vmatprep.subr.bf16.mxu0 %v20465_v32 }
 0x45f   :  { %18096 = vmatpush3.bf16.msra.mxu1 %v20467_v12 }
 0x460   :  { %18097 = vmatprep.subr.bf16.mxu1 %v20468_v18 }
 0x461   :  { %17484 = vmatpush3.bf16.msra.mxu0 %v20465_v32  ;;  %v20472_v32 = vld [vmem:[%s24423_s3 + $0x5f0] sm:$0xff]  }
 0x462   :  { %18090 = vmatmul.mubr.bf16.gmra.mrb[132].mxu1 %v22959_v41  ;;  %17493 = vmatprep.subr.bf16.mxu0 %v20466_v19 }
 0x463   :  { %18098 = vmatpush3.bf16.msra.mxu1 %v20468_v18  ;;  %18109 = vmatprep.mubr.bf16.mxu1 %v22964_v38 }
 0x464   :  { %18099 = vmatprep.subr.bf16.mxu1 %v20469_v22  ;;  %17486 = vmatmul.mubr.bf16.vlgmr.msra.gmra.mrb[128].mxu0 %v22907_v52 }
 0x465   :  { %17489 = vmatprep.mubr.bf16.mxu0 %v22912_v31  ;;  %17494 = vmatpush3.bf16.msra.mxu0 %v20466_v19  ;;  %v20473_v19 = vld [vmem:[%s24423_s3 + $0x5f8] sm:$0xff]  }
 0x466   :  { %17495 = vmatprep.subr.bf16.mxu0 %v20467_v12  ;;  %v6485_v31 = vld [vmem:[#allocation2 + $0x242] sm:$0xff] }
 0x467   :  { %18100 = vmatpush3.bf16.msra.mxu1 %v20469_v22 }
 0x468   :  { %18101 = vmatprep.subr.bf16.mxu1 %v20470_v63 }
 0x469   :  { %17496 = vmatpush3.bf16.msra.mxu0 %v20467_v12  ;;  %v20474_v12 = vld [vmem:[%s24423_s3 + $0x600] sm:$0xff]  }
 0x46a   :  { %17497 = vmatprep.subr.bf16.mxu0 %v20468_v18 }
 0x46b   :  { %18102 = vmatpush3.bf16.msra.mxu1 %v20470_v63 }
 0x46c   :  { %18103 = vmatprep.subr.bf16.mxu1 %v20471_v36  ;;  %17490 = vmatmul.mubr.bf16.gmra.mrb[132].mxu0 %v22919_v39 }
 0x46d   :  { %17498 = vmatpush3.bf16.msra.mxu0 %v20468_v18  ;;  %17509 = vmatprep.mubr.bf16.mxu0 %v22924_v27  ;;  %v6484_v18 = vld [vmem:[#allocation2 + $0x232] sm:$0xff]  ;;  %v6483_v27 = vld [vmem:[#allocation2 + $0x222] sm:$0xff] }
 0x46e   :  { %17499 = vmatprep.subr.bf16.mxu0 %v20469_v22  ;;  %v22992_v39 = vpack.c.bf16 %v6484_v18, %v6483_v27  ;;  %v22999_v27 = vpack.c.bf16 %v6486_v17, %v6485_v31  ;;  %v20477_v18 = vld [vmem:[%s24423_s3 + $0x618] sm:$0xff]   ;;  %v20478_v31 = vld [vmem:[%s24423_s3 + $0x620] sm:$0xff]  }
 0x46f   :  { %18104 = vmatpush3.bf16.msra.mxu1 %v20471_v36  ;;  %v8418_v17 = vld [vmem:[#allocation2 + $0x2b2] sm:$0xff] }
 0x470   :  { %18105 = vmatprep.subr.bf16.mxu1 %v20472_v32 }
 0x471   :  { %17500 = vmatpush3.bf16.msra.mxu0 %v20469_v22  ;;  %v20475_v22 = vld [vmem:[%s24423_s3 + $0x608] sm:$0xff]  }
 0x472   :  { %17501 = vmatprep.subr.bf16.mxu0 %v20470_v63 }
 0x473   :  { %18106 = vmatpush3.bf16.msra.mxu1 %v20472_v32 }
 0x474   :  { %18107 = vmatprep.subr.bf16.mxu1 %v20473_v19 }
 0x475   :  { %17502 = vmatpush3.bf16.msra.mxu0 %v20470_v63  ;;  %v20476_v63 = vld [vmem:[%s24423_s3 + $0x610] sm:$0xff]  }
 0x476   :  { %17503 = vmatprep.subr.bf16.mxu0 %v20471_v36 }
 0x477   :  { %18108 = vmatpush3.bf16.msra.mxu1 %v20473_v19 }
 0x478   :  { %18117 = vmatprep.subr.bf16.mxu1 %v20474_v12 }
 0x479   :  { %17504 = vmatpush3.bf16.msra.mxu0 %v20471_v36  ;;  %v8413_v36 = vld [vmem:[#allocation2 + $0xa2] sm:$0xff] }
 0x47a   :  { %18110 = vmatmul.mubr.bf16.vlgmr.msra.gmra.mrb[128].mxu1 %v22987_v21  ;;  %17505 = vmatprep.subr.bf16.mxu0 %v20472_v32  ;;  %v23004_v52 = vpack.c.bf16 %v8414_v16, %v8413_v36  ;;  %v8415_v16 = vld [vmem:[#allocation2 + $0xc2] sm:$0xff]  ;;  %v20627_v36 = vld [vmem:[%s24423_s3 + $0x40] sm:$0xff]  }
 0x47b   :  { %18113 = vmatprep.mubr.bf16.mxu1 %v22992_v39  ;;  %18118 = vmatpush3.bf16.msra.mxu1 %v20474_v12 }
 0x47c   :  { %18119 = vmatprep.subr.bf16.mxu1 %v20475_v22  ;;  %24736 = vst [vmem:[#allocation47_spill] sm:$0xff] %v23004_v52 }
 0x47d   :  { %17506 = vmatpush3.bf16.msra.mxu0 %v20472_v32  ;;  %v20479_v32 = vld [vmem:[%s24423_s3 + $0x628] sm:$0xff]  }
 0x47e   :  { %17507 = vmatprep.subr.bf16.mxu0 %v20473_v19 }
 0x47f   :  { %18120 = vmatpush3.bf16.msra.mxu1 %v20475_v22 }
 0x480   :  { %18121 = vmatprep.subr.bf16.mxu1 %v20476_v63 }
 0x481   :  { %17508 = vmatpush3.bf16.msra.mxu0 %v20473_v19  ;;  %v20480_v19 = vld [vmem:[%s24423_s3 + $0x630] sm:$0xff]  }
 0x482   :  { %18114 = vmatmul.mubr.bf16.gmra.mrb[132].mxu1 %v22999_v27  ;;  %17517 = vmatprep.subr.bf16.mxu0 %v20474_v12 }
 0x483   :  { %18122 = vmatpush3.bf16.msra.mxu1 %v20476_v63  ;;  %18133 = vmatprep.mubr.bf16.mxu1 %v23004_v52  ;;  %v8417_v52 = vld [vmem:[#allocation2 + $0x2a2] sm:$0xff] }
 0x484   :  { %18123 = vmatprep.subr.bf16.mxu1 %v20477_v18  ;;  %17510 = vmatmul.mubr.bf16.vlgmr.msra.gmra.mrb[128].mxu0 %v22947_v58 }
 0x485   :  { %17513 = vmatprep.mubr.bf16.mxu0 %v22952_v30  ;;  %17518 = vmatpush3.bf16.msra.mxu0 %v20474_v12  ;;  %v20481_v12 = vld [vmem:[%s24423_s3 + $0x638] sm:$0xff]  }
 0x486   :  { %17519 = vmatprep.subr.bf16.mxu0 %v20475_v22 }
 0x487   :  { %18124 = vmatpush3.bf16.msra.mxu1 %v20477_v18 }
 0x488   :  { %18125 = vmatprep.subr.bf16.mxu1 %v20478_v31 }
 0x489   :  { %17520 = vmatpush3.bf16.msra.mxu0 %v20475_v22  ;;  %v8416_v22 = vld [vmem:[#allocation2 + $0xd2] sm:$0xff] }
 0x48a   :  { %17521 = vmatprep.subr.bf16.mxu0 %v20476_v63 }
 0x48b   :  { %18126 = vmatpush3.bf16.msra.mxu1 %v20478_v31 }
 0x48c   :  { %18127 = vmatprep.subr.bf16.mxu1 %v20479_v32  ;;  %17514 = vmatmul.mubr.bf16.gmra.mrb[132].mxu0 %v22959_v41 }
 0x48d   :  { %17522 = vmatpush3.bf16.msra.mxu0 %v20476_v63  ;;  %17533 = vmatprep.mubr.bf16.mxu0 %v22964_v38  ;;  %v23024_v63 = vpack.c.bf16 %v8416_v22, %v8415_v16  ;;  %v23029_v38 = vpack.c.bf16 %v8418_v17, %v8417_v52  ;;  %v8419_v22 = vld [vmem:[#allocation2 + $0x2c2] sm:$0xff] }
 0x48e   :  { %17523 = vmatprep.subr.bf16.mxu0 %v20477_v18  ;;  %v20629_v52 = vld [vmem:[%s24423_s3 + $0x50] sm:$0xff]  }
 0x48f   :  { %18128 = vmatpush3.bf16.msra.mxu1 %v20479_v32  ;;  %v20633_v17 = vld [vmem:[%s24423_s3 + $0x70] sm:$0xff]  }
 0x490   :  { %18129 = vmatprep.subr.bf16.mxu1 %v20480_v19 }
 0x491   :  { %17524 = vmatpush3.bf16.msra.mxu0 %v20477_v18  ;;  %v20628_v18 = vld [vmem:[%s24423_s3 + $0x48] sm:$0xff]  }
 0x492   :  { %17525 = vmatprep.subr.bf16.mxu0 %v20478_v31 }
 0x493   :  { %18130 = vmatpush3.bf16.msra.mxu1 %v20480_v19 }
 0x494   :  { %18131 = vmatprep.subr.bf16.mxu1 %v20481_v12 }
 0x495   :  { %17526 = vmatpush3.bf16.msra.mxu0 %v20478_v31  ;;  %v8420_v31 = vld [vmem:[#allocation2 + $0x2d2] sm:$0xff] }
 0x496   :  { %17527 = vmatprep.subr.bf16.mxu0 %v20479_v32  ;;  %v23036_v16 = vpack.c.bf16 %v8420_v31, %v8419_v22  ;;  %v20636_v31 = vld [vmem:[%s24423_s3 + $0x8] sm:$0xff]   ;;  %v20637_v22 = vld [vmem:[%s24423_s3 + $0x10] sm:$0xff]  }
 0x497   :  { %18132 = vmatpush3.bf16.msra.mxu1 %v20481_v12 }
 0x498   :  { %18741 = vmatprep.subr.bf16.mxu1 %v20627_v36 }
 0x499   :  { %17528 = vmatpush3.bf16.msra.mxu0 %v20479_v32  ;;  %v20630_v32 = vld [vmem:[%s24423_s3 + $0x58] sm:$0xff]  }
 0x49a   :  { %18134 = vmatmul.mubr.bf16.vlgmr.msra.gmra.mrb[128].mxu1 %v23024_v63  ;;  %17529 = vmatprep.subr.bf16.mxu0 %v20480_v19 }
 0x49b   :  { %18137 = vmatprep.mubr.bf16.mxu1 %v23029_v38  ;;  %18742 = vmatpush3.bf16.msra.mxu1 %v20627_v36 }
 0x49c   :  { %18743 = vmatprep.subr.bf16.mxu1 %v20628_v18 }
 0x49d   :  { %17530 = vmatpush3.bf16.msra.mxu0 %v20480_v19  ;;  %v20631_v19 = vld [vmem:[%s24423_s3 + $0x60] sm:$0xff]  }
 0x49e   :  { %17531 = vmatprep.subr.bf16.mxu0 %v20481_v12 }
 0x49f   :  { %18744 = vmatpush3.bf16.msra.mxu1 %v20628_v18 }
 0x4a0   :  { %18745 = vmatprep.subr.bf16.mxu1 %v20629_v52 }
 0x4a1   :  { %17532 = vmatpush3.bf16.msra.mxu0 %v20481_v12  ;;  %v20632_v12 = vld [vmem:[%s24423_s3 + $0x68] sm:$0xff]  }
 0x4a2   :  { %18138 = vmatmul.mubr.bf16.gmra.mrb[132].mxu1 %v23036_v16  ;;  %18141 = vmatprep.subr.bf16.mxu0 %v20627_v36 }
 0x4a3   :  { %18746 = vmatpush3.bf16.msra.mxu1 %v20629_v52  ;;  %18757 = vmatprep.mubr.bf16.mxu1 %v22258_v50 }
 0x4a4   :  { %18747 = vmatprep.subr.bf16.mxu1 %v20630_v32  ;;  %17534 = vmatmul.mubr.bf16.vlgmr.msra.gmra.mrb[128].mxu0 %v22987_v21 }
 0x4a5   :  { %17537 = vmatprep.mubr.bf16.mxu0 %v22992_v39  ;;  %18142 = vmatpush3.bf16.msra.mxu0 %v20627_v36  ;;  %v20634_v36 = vld [vmem:[%s24423_s3 + $0x78] sm:$0xff]  }
 0x4a6   :  { %18143 = vmatprep.subr.bf16.mxu0 %v20628_v18 }
 0x4a7   :  { %18748 = vmatpush3.bf16.msra.mxu1 %v20630_v32 }
 0x4a8   :  { %18749 = vmatprep.subr.bf16.mxu1 %v20631_v19 }
 0x4a9   :  { %18144 = vmatpush3.bf16.msra.mxu0 %v20628_v18  ;;  %v20635_v18 = vld [vmem:[%s24423_s3] sm:$0xff]  }
 0x4aa   :  { %18145 = vmatprep.subr.bf16.mxu0 %v20629_v52 }
 0x4ab   :  { %18750 = vmatpush3.bf16.msra.mxu1 %v20631_v19 }
 0x4ac   :  { %18751 = vmatprep.subr.bf16.mxu1 %v20632_v12  ;;  %17538 = vmatmul.mubr.bf16.gmra.mrb[132].mxu0 %v22999_v27 }
 0x4ad   :  { %18146 = vmatpush3.bf16.msra.mxu0 %v20629_v52  ;;  %18157 = vmatprep.mubr.bf16.mxu0 %v22221_v25  ;;  %v20638_v52 = vld [vmem:[%s24423_s3 + $0x18] sm:$0xff]  }
 0x4ae   :  { %18147 = vmatprep.subr.bf16.mxu0 %v20630_v32 }
 0x4af   :  { %18752 = vmatpush3.bf16.msra.mxu1 %v20632_v12 }
 0x4b0   :  { %18753 = vmatprep.subr.bf16.mxu1 %v20633_v17 }
 0x4b1   :  { %18148 = vmatpush3.bf16.msra.mxu0 %v20630_v32  ;;  %v20639_v32 = vld [vmem:[%s24423_s3 + $0x20] sm:$0xff]  }
 0x4b2   :  { %18149 = vmatprep.subr.bf16.mxu0 %v20631_v19 }
 0x4b3   :  { %18754 = vmatpush3.bf16.msra.mxu1 %v20633_v17 }
 0x4b4   :  { %18755 = vmatprep.subr.bf16.mxu1 %v20634_v36 }
 0x4b5   :  { %18150 = vmatpush3.bf16.msra.mxu0 %v20631_v19  ;;  %v20641_v19 = vld [vmem:[%s24423_s3 + $0x30] sm:$0xff]  }
 0x4b6   :  { %18151 = vmatprep.subr.bf16.mxu0 %v20632_v12 }
 0x4b7   :  { %18756 = vmatpush3.bf16.msra.mxu1 %v20634_v36 }
 0x4b8   :  { %18765 = vmatprep.subr.bf16.mxu1 %v20635_v18 }
 0x4b9   :  { %18152 = vmatpush3.bf16.msra.mxu0 %v20632_v12  ;;  %v20642_v12 = vld [vmem:[%s24423_s3 + $0x38] sm:$0xff]  }
 0x4ba   :  { %18758 = vmatmul.mubr.bf16.vlgmr.msra.gmra.mrb[136].mxu1 %v22283_v57  ;;  %18153 = vmatprep.subr.bf16.mxu0 %v20633_v17 }
 0x4bb   :  { %18761 = vmatprep.mubr.bf16.mxu1 %v22288_v6  ;;  %18766 = vmatpush3.bf16.msra.mxu1 %v20635_v18 }
 0x4bc   :  { %18767 = vmatprep.subr.bf16.mxu1 %v20636_v31 }
 0x4bd   :  { %18154 = vmatpush3.bf16.msra.mxu0 %v20633_v17  ;;  %v20644_v17 = vld [vmem:[%s24423_s3 + $0x88] sm:$0xff]  }
 0x4be   :  { %18155 = vmatprep.subr.bf16.mxu0 %v20634_v36 }
 0x4bf   :  { %18768 = vmatpush3.bf16.msra.mxu1 %v20636_v31 }
 0x4c0   :  { %18769 = vmatprep.subr.bf16.mxu1 %v20637_v22 }
 0x4c1   :  { %18156 = vmatpush3.bf16.msra.mxu0 %v20634_v36  ;;  %v20645_v36 = vld [vmem:[%s24423_s3 + $0x90] sm:$0xff]  }
 0x4c2   :  { %18762 = vmatmul.mubr.bf16.gmra.mrb[140].mxu1 %v22295_v9  ;;  %18165 = vmatprep.subr.bf16.mxu0 %v20635_v18 }
 0x4c3   :  { %18770 = vmatpush3.bf16.msra.mxu1 %v20637_v22  ;;  %18781 = vmatprep.mubr.bf16.mxu1 %v22221_v25  ;;  %v20640_v25 = vld [vmem:[%s24423_s3 + $0x28] sm:$0xff]  }
 0x4c4   :  { %18771 = vmatprep.subr.bf16.mxu1 %v20638_v52  ;;  %18158 = vmatmul.mubr.bf16.vlgmr.msra.gmra.mrb[136].mxu0 %v22245_v56 }
 0x4c5   :  { %18161 = vmatprep.mubr.bf16.mxu0 %v22126_v26  ;;  %18166 = vmatpush3.bf16.msra.mxu0 %v20635_v18  ;;  %v20653_v18 = vld [vmem:[%s24423_s3 + $0xd0] sm:$0xff]  }
 0x4c6   :  { %18167 = vmatprep.subr.bf16.mxu0 %v20636_v31 }
 0x4c7   :  { %18772 = vmatpush3.bf16.msra.mxu1 %v20638_v52 }
 0x4c8   :  { %18773 = vmatprep.subr.bf16.mxu1 %v20639_v32 }
 0x4c9   :  { %18168 = vmatpush3.bf16.msra.mxu0 %v20636_v31  ;;  %v20654_v31 = vld [vmem:[%s24423_s3 + $0xd8] sm:$0xff]  }
 0x4ca   :  { %18169 = vmatprep.subr.bf16.mxu0 %v20637_v22 }
 0x4cb   :  { %18774 = vmatpush3.bf16.msra.mxu1 %v20639_v32 }
 0x4cc   :  { %18775 = vmatprep.subr.bf16.mxu1 %v20640_v25  ;;  %18162 = vmatmul.mubr.bf16.gmra.mrb[140].mxu0 %v22120_v0 }
 0x4cd   :  { %18170 = vmatpush3.bf16.msra.mxu0 %v20637_v22  ;;  %18181 = vmatprep.mubr.bf16.mxu0 %v22232_v34  ;;  %v20643_v34 = vld [vmem:[%s24423_s3 + $0x80] sm:$0xff]  }
 0x4ce   :  { %18171 = vmatprep.subr.bf16.mxu0 %v20638_v52  ;;  %v20655_v22 = vld [vmem:[%s24423_s3 + $0xe0] sm:$0xff]  }
 0x4cf   :  { %18776 = vmatpush3.bf16.msra.mxu1 %v20640_v25 }
 0x4d0   :  { %18777 = vmatprep.subr.bf16.mxu1 %v20641_v19 }
 0x4d1   :  { %18172 = vmatpush3.bf16.msra.mxu0 %v20638_v52  ;;  %v20656_v52 = vld [vmem:[%s24423_s3 + $0xe8] sm:$0xff]  }
 0x4d2   :  { %18173 = vmatprep.subr.bf16.mxu0 %v20639_v32 }
 0x4d3   :  { %18778 = vmatpush3.bf16.msra.mxu1 %v20641_v19 }
 0x4d4   :  { %18779 = vmatprep.subr.bf16.mxu1 %v20642_v12 }
 0x4d5   :  { %18174 = vmatpush3.bf16.msra.mxu0 %v20639_v32  ;;  %v20661_v32 = vld [vmem:[%s24423_s3 + $0x110] sm:$0xff]  }
 0x4d6   :  { %18175 = vmatprep.subr.bf16.mxu0 %v20640_v25 }
 0x4d7   :  { %18780 = vmatpush3.bf16.msra.mxu1 %v20642_v12 }
 0x4d8   :  { %18789 = vmatprep.subr.bf16.mxu1 %v20643_v34 }
 0x4d9   :  { %18176 = vmatpush3.bf16.msra.mxu0 %v20640_v25  ;;  %v20662_v25 = vld [vmem:[%s24423_s3 + $0x118] sm:$0xff]  }
 0x4da   :  { %18782 = vmatmul.mubr.bf16.vlgmr.msra.gmra.mrb[136].mxu1 %v22245_v56  ;;  %18177 = vmatprep.subr.bf16.mxu0 %v20641_v19  ;;  %v20648_v56 = vld [vmem:[%s24423_s3 + $0xa8] sm:$0xff]  }
 0x4db   :  { %18785 = vmatprep.mubr.bf16.mxu1 %v22126_v26  ;;  %18790 = vmatpush3.bf16.msra.mxu1 %v20643_v34  ;;  %v20646_v26 = vld [vmem:[%s24423_s3 + $0x98] sm:$0xff]  }
 0x4dc   :  { %18791 = vmatprep.subr.bf16.mxu1 %v20644_v17 }
 0x4dd   :  { %18178 = vmatpush3.bf16.msra.mxu0 %v20641_v19  ;;  %v20663_v19 = vld [vmem:[%s24423_s3 + $0x120] sm:$0xff]  }
 0x4de   :  { %18179 = vmatprep.subr.bf16.mxu0 %v20642_v12 }
 0x4df   :  { %18792 = vmatpush3.bf16.msra.mxu1 %v20644_v17 }
 0x4e0   :  { %18793 = vmatprep.subr.bf16.mxu1 %v20645_v36 }
 0x4e1   :  { %18180 = vmatpush3.bf16.msra.mxu0 %v20642_v12  ;;  %v20669_v12 = vld [vmem:[%s24423_s3 + $0x150] sm:$0xff]  }
 0x4e2   :  { %18786 = vmatmul.mubr.bf16.gmra.mrb[140].mxu1 %v22120_v0  ;;  %18189 = vmatprep.subr.bf16.mxu0 %v20643_v34  ;;  %v20647_v0 = vld [vmem:[%s24423_s3 + $0xa0] sm:$0xff]  }
 0x4e3   :  { %18794 = vmatpush3.bf16.msra.mxu1 %v20645_v36  ;;  %18805 = vmatprep.mubr.bf16.mxu1 %v22300_v4 }
 0x4e4   :  { %18795 = vmatprep.subr.bf16.mxu1 %v20646_v26  ;;  %18182 = vmatmul.mubr.bf16.vlgmr.msra.gmra.mrb[136].mxu0 %v22261_v47  ;;  %v20650_v47 = vld [vmem:[%s24423_s3 + $0xb8] sm:$0xff]  }
 0x4e5   :  { %18185 = vmatprep.mubr.bf16.mxu0 %v22057_v53  ;;  %18190 = vmatpush3.bf16.msra.mxu0 %v20643_v34  ;;  %v20649_v53 = vld [vmem:[%s24423_s3 + $0xb0] sm:$0xff]  }
 0x4e6   :  { %18191 = vmatprep.subr.bf16.mxu0 %v20644_v17  ;;  %v20677_v34 = vld [vmem:[%s24423_s3 + $0x190] sm:$0xff]  }
 0x4e7   :  { %18796 = vmatpush3.bf16.msra.mxu1 %v20646_v26 }
 0x4e8   :  { %18797 = vmatprep.subr.bf16.mxu1 %v20647_v0 }
 0x4e9   :  { %18192 = vmatpush3.bf16.msra.mxu0 %v20644_v17  ;;  %v20678_v17 = vld [vmem:[%s24423_s3 + $0x198] sm:$0xff]  }
 0x4ea   :  { %18193 = vmatprep.subr.bf16.mxu0 %v20645_v36 }
 0x4eb   :  { %18798 = vmatpush3.bf16.msra.mxu1 %v20647_v0 }
 0x4ec   :  { %18799 = vmatprep.subr.bf16.mxu1 %v20648_v56  ;;  %18186 = vmatmul.mubr.bf16.gmra.mrb[140].mxu0 %v22046_v2  ;;  %v20651_v2 = vld [vmem:[%s24423_s3 + $0xc0] sm:$0xff]  }
 0x4ed   :  { %18194 = vmatpush3.bf16.msra.mxu0 %v20645_v36  ;;  %18205 = vmatprep.mubr.bf16.mxu0 %v22258_v50  ;;  %v20652_v50 = vld [vmem:[%s24423_s3 + $0xc8] sm:$0xff]   ;;  %v20679_v36 = vld [vmem:[%s24423_s3 + $0x1a0] sm:$0xff]  }
 0x4ee   :  { %18195 = vmatprep.subr.bf16.mxu0 %v20646_v26 }
 0x4ef   :  { %18800 = vmatpush3.bf16.msra.mxu1 %v20648_v56 }
 0x4f0   :  { %18801 = vmatprep.subr.bf16.mxu1 %v20649_v53 }
 0x4f1   :  { %18196 = vmatpush3.bf16.msra.mxu0 %v20646_v26  ;;  %v20680_v26 = vld [vmem:[%s24423_s3 + $0x1a8] sm:$0xff]  }
 0x4f2   :  { %18197 = vmatprep.subr.bf16.mxu0 %v20647_v0 }
 0x4f3   :  { %18802 = vmatpush3.bf16.msra.mxu1 %v20649_v53 }
 0x4f4   :  { %18803 = vmatprep.subr.bf16.mxu1 %v20650_v47 }
 0x4f5   :  { %18198 = vmatpush3.bf16.msra.mxu0 %v20647_v0 }
 0x4f6   :  { %18199 = vmatprep.subr.bf16.mxu0 %v20648_v56 }
 0x4f7   :  { %18804 = vmatpush3.bf16.msra.mxu1 %v20650_v47 }
 0x4f8   :  { %18813 = vmatprep.subr.bf16.mxu1 %v20651_v2 }
 0x4f9   :  { %18200 = vmatpush3.bf16.msra.mxu0 %v20648_v56 }
 0x4fa   :  { %18806 = vmatmul.mubr.bf16.vlgmr.msra.gmra.mrb[136].mxu1 %v22323_v1  ;;  %18201 = vmatprep.subr.bf16.mxu0 %v20649_v53 }
 0x4fb   :  { %18809 = vmatprep.mubr.bf16.mxu1 %v22328_v51  ;;  %18814 = vmatpush3.bf16.msra.mxu1 %v20651_v2 }
 0x4fc   :  { %18815 = vmatprep.subr.bf16.mxu1 %v20652_v50 }
 0x4fd   :  { %18202 = vmatpush3.bf16.msra.mxu0 %v20649_v53  ;;  %v20681_v53 = vld [vmem:[%s24423_s3 + $0x1b0] sm:$0xff]  }
 0x4fe   :  { %18203 = vmatprep.subr.bf16.mxu0 %v20650_v47 }
 0x4ff   :  { %18816 = vmatpush3.bf16.msra.mxu1 %v20652_v50 }
 0x500   :  { %18817 = vmatprep.subr.bf16.mxu1 %v20653_v18 }
 0x501   :  { %18204 = vmatpush3.bf16.msra.mxu0 %v20650_v47 }
 0x502   :  { %18810 = vmatmul.mubr.bf16.gmra.mrb[140].mxu1 %v22335_v23  ;;  %18213 = vmatprep.subr.bf16.mxu0 %v20651_v2 }
 0x503   :  { %18818 = vmatpush3.bf16.msra.mxu1 %v20653_v18  ;;  %18829 = vmatprep.mubr.bf16.mxu1 %v22340_v40 }
 0x504   :  { %18819 = vmatprep.subr.bf16.mxu1 %v20654_v31  ;;  %18206 = vmatmul.mubr.bf16.vlgmr.msra.gmra.mrb[136].mxu0 %v22283_v57  ;;  %v20657_v57 = vld [vmem:[%s24423_s3 + $0xf0] sm:$0xff]  }
 0x505   :  { %18209 = vmatprep.mubr.bf16.mxu0 %v22288_v6  ;;  %18214 = vmatpush3.bf16.msra.mxu0 %v20651_v2  ;;  %v20658_v6 = vld [vmem:[%s24423_s3 + $0xf8] sm:$0xff]  }
 0x506   :  { %18215 = vmatprep.subr.bf16.mxu0 %v20652_v50 }
 0x507   :  { %18820 = vmatpush3.bf16.msra.mxu1 %v20654_v31 }
 0x508   :  { %18821 = vmatprep.subr.bf16.mxu1 %v20655_v22 }
 0x509   :  { %18216 = vmatpush3.bf16.msra.mxu0 %v20652_v50 }
 0x50a   :  { %18217 = vmatprep.subr.bf16.mxu0 %v20653_v18 }
 0x50b   :  { %18822 = vmatpush3.bf16.msra.mxu1 %v20655_v22 }
 0x50c   :  { %18823 = vmatprep.subr.bf16.mxu1 %v20656_v52  ;;  %18210 = vmatmul.mubr.bf16.gmra.mrb[140].mxu0 %v22295_v9  ;;  %v20659_v9 = vld [vmem:[%s24423_s3 + $0x100] sm:$0xff]  }
 0x50d   :  { %18218 = vmatpush3.bf16.msra.mxu0 %v20653_v18  ;;  %18229 = vmatprep.mubr.bf16.mxu0 %v22300_v4  ;;  %v20660_v4 = vld [vmem:[%s24423_s3 + $0x108] sm:$0xff]  }
 0x50e   :  { %18219 = vmatprep.subr.bf16.mxu0 %v20654_v31 }
 0x50f   :  { %18824 = vmatpush3.bf16.msra.mxu1 %v20656_v52 }
 0x510   :  { %18825 = vmatprep.subr.bf16.mxu1 %v20657_v57 }
 0x511   :  { %18220 = vmatpush3.bf16.msra.mxu0 %v20654_v31  ;;  %v20683_v31 = vld [vmem:[%s24423_s3 + $0x1c0] sm:$0xff]  }
 0x512   :  { %18221 = vmatprep.subr.bf16.mxu0 %v20655_v22 }
 0x513   :  { %18826 = vmatpush3.bf16.msra.mxu1 %v20657_v57 }
 0x514   :  { %18827 = vmatprep.subr.bf16.mxu1 %v20658_v6 }
 0x515   :  { %18222 = vmatpush3.bf16.msra.mxu0 %v20655_v22 }
 0x516   :  { %18223 = vmatprep.subr.bf16.mxu0 %v20656_v52 }
 0x517   :  { %18828 = vmatpush3.bf16.msra.mxu1 %v20658_v6 }
 0x518   :  { %18837 = vmatprep.subr.bf16.mxu1 %v20659_v9 }
 0x519   :  { %18224 = vmatpush3.bf16.msra.mxu0 %v20656_v52 }
 0x51a   :  { %18830 = vmatmul.mubr.bf16.vlgmr.msra.gmra.mrb[136].mxu1 %v22363_v43  ;;  %18225 = vmatprep.subr.bf16.mxu0 %v20657_v57 }
 0x51b   :  { %18833 = vmatprep.mubr.bf16.mxu1 %v22368_v59  ;;  %18838 = vmatpush3.bf16.msra.mxu1 %v20659_v9 }
 0x51c   :  { %18839 = vmatprep.subr.bf16.mxu1 %v20660_v4 }
 0x51d   :  { %18226 = vmatpush3.bf16.msra.mxu0 %v20657_v57 }
 0x51e   :  { %18227 = vmatprep.subr.bf16.mxu0 %v20658_v6 }
 0x51f   :  { %18840 = vmatpush3.bf16.msra.mxu1 %v20660_v4 }
 0x520   :  { %18841 = vmatprep.subr.bf16.mxu1 %v20661_v32 }
 0x521   :  { %18228 = vmatpush3.bf16.msra.mxu0 %v20658_v6 }
 0x522   :  { %18834 = vmatmul.mubr.bf16.gmra.mrb[140].mxu1 %v22375_v44  ;;  %18237 = vmatprep.subr.bf16.mxu0 %v20659_v9 }
 0x523   :  { %18842 = vmatpush3.bf16.msra.mxu1 %v20661_v32  ;;  %18853 = vmatprep.mubr.bf16.mxu1 %v22380_v37  ;;  %v20664_v37 = vld [vmem:[%s24423_s3 + $0x128] sm:$0xff]  }
 0x524   :  { %18843 = vmatprep.subr.bf16.mxu1 %v20662_v25  ;;  %18230 = vmatmul.mubr.bf16.vlgmr.msra.gmra.mrb[136].mxu0 %v22323_v1  ;;  %v20665_v1 = vld [vmem:[%s24423_s3 + $0x130] sm:$0xff]  }
 0x525   :  { %18233 = vmatprep.mubr.bf16.mxu0 %v22328_v51  ;;  %18238 = vmatpush3.bf16.msra.mxu0 %v20659_v9  ;;  %v20666_v51 = vld [vmem:[%s24423_s3 + $0x138] sm:$0xff]  }
 0x526   :  { %18239 = vmatprep.subr.bf16.mxu0 %v20660_v4 }
 0x527   :  { %18844 = vmatpush3.bf16.msra.mxu1 %v20662_v25 }
 0x528   :  { %18845 = vmatprep.subr.bf16.mxu1 %v20663_v19 }
 0x529   :  { %18240 = vmatpush3.bf16.msra.mxu0 %v20660_v4 }
 0x52a   :  { %18241 = vmatprep.subr.bf16.mxu0 %v20661_v32 }
 0x52b   :  { %18846 = vmatpush3.bf16.msra.mxu1 %v20663_v19 }
 0x52c   :  { %18847 = vmatprep.subr.bf16.mxu1 %v20664_v37  ;;  %18234 = vmatmul.mubr.bf16.gmra.mrb[140].mxu0 %v22335_v23  ;;  %v20667_v23 = vld [vmem:[%s24423_s3 + $0x140] sm:$0xff]  }
 0x52d   :  { %18242 = vmatpush3.bf16.msra.mxu0 %v20661_v32  ;;  %18253 = vmatprep.mubr.bf16.mxu0 %v22340_v40  ;;  %v20668_v40 = vld [vmem:[%s24423_s3 + $0x148] sm:$0xff]  }
 0x52e   :  { %18243 = vmatprep.subr.bf16.mxu0 %v20662_v25 }
 0x52f   :  { %18848 = vmatpush3.bf16.msra.mxu1 %v20664_v37 }
 0x530   :  { %18849 = vmatprep.subr.bf16.mxu1 %v20665_v1 }
 0x531   :  { %18244 = vmatpush3.bf16.msra.mxu0 %v20662_v25  ;;  %v20684_v25 = vld [vmem:[%s24423_s3 + $0x1c8] sm:$0xff]  }
 0x532   :  { %18245 = vmatprep.subr.bf16.mxu0 %v20663_v19 }
 0x533   :  { %18850 = vmatpush3.bf16.msra.mxu1 %v20665_v1 }
 0x534   :  { %18851 = vmatprep.subr.bf16.mxu1 %v20666_v51 }
 0x535   :  { %18246 = vmatpush3.bf16.msra.mxu0 %v20663_v19 }
 0x536   :  { %18247 = vmatprep.subr.bf16.mxu0 %v20664_v37 }
 0x537   :  { %18852 = vmatpush3.bf16.msra.mxu1 %v20666_v51 }
 0x538   :  { %18861 = vmatprep.subr.bf16.mxu1 %v20667_v23 }
 0x539   :  { %18248 = vmatpush3.bf16.msra.mxu0 %v20664_v37  ;;  %v20685_v37 = vld [vmem:[%s24423_s3 + $0x1d0] sm:$0xff]  }
 0x53a   :  { %18854 = vmatmul.mubr.bf16.vlgmr.msra.gmra.mrb[136].mxu1 %v22403_v14  ;;  %18249 = vmatprep.subr.bf16.mxu0 %v20665_v1  ;;  %v20670_v14 = vld [vmem:[%s24423_s3 + $0x158] sm:$0xff]  }
 0x53b   :  { %18857 = vmatprep.mubr.bf16.mxu1 %v22408_v60  ;;  %18862 = vmatpush3.bf16.msra.mxu1 %v20667_v23  ;;  %v20671_v60 = vld [vmem:[%s24423_s3 + $0x160] sm:$0xff]  }
 0x53c   :  { %18863 = vmatprep.subr.bf16.mxu1 %v20668_v40 }
 0x53d   :  { %18250 = vmatpush3.bf16.msra.mxu0 %v20665_v1 }
 0x53e   :  { %18251 = vmatprep.subr.bf16.mxu0 %v20666_v51 }
 0x53f   :  { %18864 = vmatpush3.bf16.msra.mxu1 %v20668_v40 }
 0x540   :  { %18865 = vmatprep.subr.bf16.mxu1 %v20669_v12 }
 0x541   :  { %18252 = vmatpush3.bf16.msra.mxu0 %v20666_v51 }
 0x542   :  { %18858 = vmatmul.mubr.bf16.gmra.mrb[140].mxu1 %v22415_v8  ;;  %18261 = vmatprep.subr.bf16.mxu0 %v20667_v23  ;;  %v20672_v8 = vld [vmem:[%s24423_s3 + $0x168] sm:$0xff]  }
 0x543   :  { %18866 = vmatpush3.bf16.msra.mxu1 %v20669_v12  ;;  %18877 = vmatprep.mubr.bf16.mxu1 %v22420_v35 }
 0x544   :  { %18867 = vmatprep.subr.bf16.mxu1 %v20670_v14  ;;  %18254 = vmatmul.mubr.bf16.vlgmr.msra.gmra.mrb[136].mxu0 %v22363_v43  ;;  %v20673_v43 = vld [vmem:[%s24423_s3 + $0x170] sm:$0xff]  }
 0x545   :  { %18257 = vmatprep.mubr.bf16.mxu0 %v22368_v59  ;;  %18262 = vmatpush3.bf16.msra.mxu0 %v20667_v23  ;;  %v20674_v59 = vld [vmem:[%s24423_s3 + $0x178] sm:$0xff]  }
 0x546   :  { %18263 = vmatprep.subr.bf16.mxu0 %v20668_v40 }
 0x547   :  { %18868 = vmatpush3.bf16.msra.mxu1 %v20670_v14 }
 0x548   :  { %18869 = vmatprep.subr.bf16.mxu1 %v20671_v60 }
 0x549   :  { %18264 = vmatpush3.bf16.msra.mxu0 %v20668_v40 }
 0x54a   :  { %18265 = vmatprep.subr.bf16.mxu0 %v20669_v12 }
 0x54b   :  { %18870 = vmatpush3.bf16.msra.mxu1 %v20671_v60 }
 0x54c   :  { %18871 = vmatprep.subr.bf16.mxu1 %v20672_v8  ;;  %18258 = vmatmul.mubr.bf16.gmra.mrb[140].mxu0 %v22375_v44  ;;  %v20675_v44 = vld [vmem:[%s24423_s3 + $0x180] sm:$0xff]  }
 0x54d   :  { %18266 = vmatpush3.bf16.msra.mxu0 %v20669_v12  ;;  %18277 = vmatprep.mubr.bf16.mxu0 %v22432_v13  ;;  %v20676_v13 = vld [vmem:[%s24423_s3 + $0x188] sm:$0xff]  }
 0x54e   :  { %18267 = vmatprep.subr.bf16.mxu0 %v20670_v14 }
 0x54f   :  { %18872 = vmatpush3.bf16.msra.mxu1 %v20672_v8 }
 0x550   :  { %18873 = vmatprep.subr.bf16.mxu1 %v20673_v43 }
 0x551   :  { %18268 = vmatpush3.bf16.msra.mxu0 %v20670_v14 }
 0x552   :  { %18269 = vmatprep.subr.bf16.mxu0 %v20671_v60 }
 0x553   :  { %18874 = vmatpush3.bf16.msra.mxu1 %v20673_v43 }
 0x554   :  { %18875 = vmatprep.subr.bf16.mxu1 %v20674_v59 }
 0x555   :  { %18270 = vmatpush3.bf16.msra.mxu0 %v20671_v60 }
 0x556   :  { %18271 = vmatprep.subr.bf16.mxu0 %v20672_v8 }
 0x557   :  { %18876 = vmatpush3.bf16.msra.mxu1 %v20674_v59 }
 0x558   :  { %18885 = vmatprep.subr.bf16.mxu1 %v20675_v44 }
 0x559   :  { %18272 = vmatpush3.bf16.msra.mxu0 %v20672_v8  ;;  %v20686_v8 = vld [vmem:[%s24423_s3 + $0x1d8] sm:$0xff]  }
 0x55a   :  { %18878 = vmatmul.mubr.bf16.vlgmr.msra.gmra.mrb[136].mxu1 %v22445_v29  ;;  %18273 = vmatprep.subr.bf16.mxu0 %v20673_v43 }
 0x55b   :  { %18881 = vmatprep.mubr.bf16.mxu1 %v22450_v28  ;;  %18886 = vmatpush3.bf16.msra.mxu1 %v20675_v44 }
 0x55c   :  { %18887 = vmatprep.subr.bf16.mxu1 %v20676_v13 }
 0x55d   :  { %18274 = vmatpush3.bf16.msra.mxu0 %v20673_v43  ;;  %v20687_v43 = vld [vmem:[%s24423_s3 + $0x1e0] sm:$0xff]  }
 0x55e   :  { %18275 = vmatprep.subr.bf16.mxu0 %v20674_v59 }
 0x55f   :  { %18888 = vmatpush3.bf16.msra.mxu1 %v20676_v13 }
 0x560   :  { %18889 = vmatprep.subr.bf16.mxu1 %v20677_v34 }
 0x561   :  { %18276 = vmatpush3.bf16.msra.mxu0 %v20674_v59  ;;  %v20688_v59 = vld [vmem:[%s24423_s3 + $0x1e8] sm:$0xff]  }
 0x562   :  { %18882 = vmatmul.mubr.bf16.gmra.mrb[140].mxu1 %v22457_v55  ;;  %18285 = vmatprep.subr.bf16.mxu0 %v20675_v44 }
 0x563   :  { %18890 = vmatpush3.bf16.msra.mxu1 %v20677_v34  ;;  %18901 = vmatprep.mubr.bf16.mxu1 %v22462_v54 }
 0x564   :  { %18891 = vmatprep.subr.bf16.mxu1 %v20678_v17  ;;  %18278 = vmatmul.mubr.bf16.vlgmr.msra.gmra.mrb[136].mxu0 %v22465_v20 }
 0x565   :  { %18281 = vmatprep.mubr.bf16.mxu0 %v22468_v42  ;;  %18286 = vmatpush3.bf16.msra.mxu0 %v20675_v44  ;;  %v20693_v44 = vld [vmem:[%s24423_s3 + $0x210] sm:$0xff]  }
 0x566   :  { %18287 = vmatprep.subr.bf16.mxu0 %v20676_v13 }
 0x567   :  { %18892 = vmatpush3.bf16.msra.mxu1 %v20678_v17 }
 0x568   :  { %18893 = vmatprep.subr.bf16.mxu1 %v20679_v36 }
 0x569   :  { %18288 = vmatpush3.bf16.msra.mxu0 %v20676_v13  ;;  %v20694_v13 = vld [vmem:[%s24423_s3 + $0x218] sm:$0xff]  }
 0x56a   :  { %18289 = vmatprep.subr.bf16.mxu0 %v20677_v34 }
 0x56b   :  { %18894 = vmatpush3.bf16.msra.mxu1 %v20679_v36 }
 0x56c   :  { %18895 = vmatprep.subr.bf16.mxu1 %v20680_v26  ;;  %18282 = vmatmul.mubr.bf16.gmra.mrb[140].mxu0 %v22478_v61 }
 0x56d   :  { %v23247_v20 = vpop.f32.mrb[128].mxu1  ;;  %18290 = vmatpush3.bf16.msra.mxu0 %v20677_v34  ;;  %18301 = vmatprep.mubr.bf16.mxu0 %v22420_v35  ;;  %v20682_v35 = vld [vmem:[%s24423_s3 + $0x1b8] sm:$0xff]   ;;  %v20695_v34 = vld [vmem:[%s24423_s3 + $0x220] sm:$0xff]  }
 0x56e   :  { %v23250_v42 = vpop.f32.mrb[129].mxu1  ;;  %18291 = vmatprep.subr.bf16.mxu0 %v20678_v17 }
 0x56f   :  { %v23252_v0 = vpop.f32.mrb[130].mxu1  ;;  %18896 = vmatpush3.bf16.msra.mxu1 %v20680_v26 }
 0x570   :  { %v23254_v56 = vpop.f32.mrb[131].mxu1  ;;  %18897 = vmatprep.subr.bf16.mxu1 %v20681_v53 }
 0x571   :  { %18292 = vmatpush3.bf16.msra.mxu0 %v20678_v17  ;;  %v20696_v17 = vld [vmem:[%s24423_s3 + $0x228] sm:$0xff]  }
 0x572   :  { %18293 = vmatprep.subr.bf16.mxu0 %v20679_v36 }
 0x573   :  { %18898 = vmatpush3.bf16.msra.mxu1 %v20681_v53 }
 0x574   :  { %18899 = vmatprep.subr.bf16.mxu1 %v20682_v35 }
 0x575   :  { %v23262_v61 = vpop.f32.mrb[132].mxu1  ;;  %18294 = vmatpush3.bf16.msra.mxu0 %v20679_v36  ;;  %v20701_v36 = vld [vmem:[%s24423_s3 + $0x250] sm:$0xff]  }
 0x576   :  { %v23264_v47 = vpop.f32.mrb[133].mxu1  ;;  %18295 = vmatprep.subr.bf16.mxu0 %v20680_v26 }
 0x577   :  { %v23266_v2 = vpop.f32.mrb[134].mxu1  ;;  %18900 = vmatpush3.bf16.msra.mxu1 %v20682_v35  ;;  %v23268_v50 = vpop.f32.mrb[128].mxu0 }
 0x578   :  { %v23270_v18 = vpop.f32.mrb[135].mxu1  ;;  %18909 = vmatprep.subr.bf16.mxu1 %v20683_v31  ;;  %v8500_v22 = vmax.f32 %v23268_v50, %v23247_v20  ;;  %v23277_v52 = vpop.f32.mrb[129].mxu0 }
 0x579   :  { %v8498_v57 = vmax.f32 %v23277_v52, %v23250_v42  ;;  %v23281_v6 = vpop.f32.mrb[130].mxu0  ;;  %18296 = vmatpush3.bf16.msra.mxu0 %v20680_v26  ;;  %v20702_v26 = vld [vmem:[%s24423_s3 + $0x258] sm:$0xff]  }
 0x57a   :  { %18902 = vmatmul.mubr.bf16.vlgmr.msra.gmra.mrb[136].mxu1 %v22491_v45  ;;  %v8501_v9 = vmax.f32 %v23281_v6, %v23252_v0  ;;  %v23286_v4 = vpop.f32.mrb[131].mxu0  ;;  %18297 = vmatprep.subr.bf16.mxu0 %v20681_v53 }
 0x57b   :  { %18905 = vmatprep.mubr.bf16.mxu1 %v22496_v24  ;;  %18910 = vmatpush3.bf16.msra.mxu1 %v20683_v31  ;;  %v8499_v32 = vmax.f32 %v23286_v4, %v23254_v56 }
 0x57c   :  { %18911 = vmatprep.subr.bf16.mxu1 %v20684_v25 }
 0x57d   :  { %18298 = vmatpush3.bf16.msra.mxu0 %v20681_v53  ;;  %v20703_v53 = vld [vmem:[%s24423_s3 + $0x260] sm:$0xff]  }
 0x57e   :  { %18299 = vmatprep.subr.bf16.mxu0 %v20682_v35 }
 0x57f   :  { %18912 = vmatpush3.bf16.msra.mxu1 %v20684_v25  ;;  %v23294_v19 = vpop.f32.mrb[132].mxu0 }
 0x580   :  { %18913 = vmatprep.subr.bf16.mxu1 %v20685_v37  ;;  %v8504_v1 = vmax.f32 %v23294_v19, %v23262_v61  ;;  %v23301_v51 = vpop.f32.mrb[133].mxu0 }
 0x581   :  { %v8502_v23 = vmax.f32 %v23301_v51, %v23264_v47  ;;  %v23305_v40 = vpop.f32.mrb[134].mxu0  ;;  %18300 = vmatpush3.bf16.msra.mxu0 %v20682_v35  ;;  %v24738_v35 = vld [vmem:[#allocation8_spill] sm:$0xff] }
 0x582   :  { %18906 = vmatmul.mubr.bf16.gmra.mrb[140].mxu1 %v22503_v49  ;;  %v8505_v12 = vmax.f32 %v23305_v40, %v23266_v2  ;;  %v23310_v14 = vpop.f32.mrb[135].mxu0  ;;  %18309 = vmatprep.subr.bf16.mxu0 %v20683_v31 }
 0x583   :  { %18914 = vmatpush3.bf16.msra.mxu1 %v20685_v37  ;;  %18925 = vmatprep.mubr.bf16.mxu1 %v22508_v5  ;;  %v8503_v60 = vmax.f32 %v23310_v14, %v23270_v18 }
 0x584   :  { %18915 = vmatprep.subr.bf16.mxu1 %v20686_v8  ;;  %18302 = vmatmul.mubr.bf16.vlgmr.msra.gmra.mrb[136].mxu0 %v22445_v29  ;;  %v20689_v29 = vld [vmem:[%s24423_s3 + $0x1f0] sm:$0xff]  }
 0x585   :  { %18305 = vmatprep.mubr.bf16.mxu0 %v22450_v28  ;;  %18310 = vmatpush3.bf16.msra.mxu0 %v20683_v31  ;;  %v20690_v28 = vld [vmem:[%s24423_s3 + $0x1f8] sm:$0xff]   ;;  %v20708_v31 = vld [vmem:[%s24423_s3 + $0x288] sm:$0xff]  }
 0x586   :  { %18311 = vmatprep.subr.bf16.mxu0 %v20684_v25 }
 0x587   :  { %18916 = vmatpush3.bf16.msra.mxu1 %v20686_v8 }
 0x588   :  { %18917 = vmatprep.subr.bf16.mxu1 %v20687_v43 }
 0x589   :  { %18312 = vmatpush3.bf16.msra.mxu0 %v20684_v25  ;;  %v20709_v25 = vld [vmem:[%s24423_s3 + $0x290] sm:$0xff]  }
 0x58a   :  { %18313 = vmatprep.subr.bf16.mxu0 %v20685_v37 }
 0x58b   :  { %18918 = vmatpush3.bf16.msra.mxu1 %v20687_v43 }
 0x58c   :  { %18919 = vmatprep.subr.bf16.mxu1 %v20688_v59  ;;  %18306 = vmatmul.mubr.bf16.gmra.mrb[140].mxu0 %v22457_v55  ;;  %v20691_v55 = vld [vmem:[%s24423_s3 + $0x200] sm:$0xff]  }
 0x58d   :  { %18314 = vmatpush3.bf16.msra.mxu0 %v20685_v37  ;;  %18325 = vmatprep.mubr.bf16.mxu0 %v22462_v54  ;;  %v20692_v54 = vld [vmem:[%s24423_s3 + $0x208] sm:$0xff]  }
 0x58e   :  { %18315 = vmatprep.subr.bf16.mxu0 %v20686_v8  ;;  %v24739_v37 = vld [vmem:[#allocation9_spill] sm:$0xff] }
 0x58f   :  { %18920 = vmatpush3.bf16.msra.mxu1 %v20688_v59 }
 0x590   :  { %18921 = vmatprep.subr.bf16.mxu1 %v20689_v29 }
 0x591   :  { %18316 = vmatpush3.bf16.msra.mxu0 %v20686_v8  ;;  %v24740_v8 = vld [vmem:[#allocation10_spill] sm:$0xff] }
 0x592   :  { %18317 = vmatprep.subr.bf16.mxu0 %v20687_v43 }
 0x593   :  { %18922 = vmatpush3.bf16.msra.mxu1 %v20689_v29 }
 0x594   :  { %18923 = vmatprep.subr.bf16.mxu1 %v20690_v28 }
 0x595   :  { %18318 = vmatpush3.bf16.msra.mxu0 %v20687_v43  ;;  %v20710_v43 = vld [vmem:[%s24423_s3 + $0x298] sm:$0xff]  }
 0x596   :  { %18319 = vmatprep.subr.bf16.mxu0 %v20688_v59 }
 0x597   :  { %18924 = vmatpush3.bf16.msra.mxu1 %v20690_v28 }
 0x598   :  { %18933 = vmatprep.subr.bf16.mxu1 %v20691_v55 }
 0x599   :  { %18320 = vmatpush3.bf16.msra.mxu0 %v20688_v59  ;;  %v20711_v59 = vld [vmem:[%s24423_s3 + $0x2a0] sm:$0xff]  }
 0x59a   :  { %18926 = vmatmul.mubr.bf16.vlgmr.msra.gmra.mrb[136].mxu1 %v22531_v3  ;;  %18321 = vmatprep.subr.bf16.mxu0 %v20689_v29 }
 0x59b   :  { %18929 = vmatprep.mubr.bf16.mxu1 %v22536_v10  ;;  %18934 = vmatpush3.bf16.msra.mxu1 %v20691_v55 }
 0x59c   :  { %18935 = vmatprep.subr.bf16.mxu1 %v20692_v54 }
 0x59d   :  { %18322 = vmatpush3.bf16.msra.mxu0 %v20689_v29  ;;  %v20712_v29 = vld [vmem:[%s24423_s3 + $0x2a8] sm:$0xff]  }
 0x59e   :  { %18323 = vmatprep.subr.bf16.mxu0 %v20690_v28 }
 0x59f   :  { %18936 = vmatpush3.bf16.msra.mxu1 %v20692_v54 }
 0x5a0   :  { %18937 = vmatprep.subr.bf16.mxu1 %v20693_v44 }
 0x5a1   :  { %18324 = vmatpush3.bf16.msra.mxu0 %v20690_v28  ;;  %v20714_v28 = vld [vmem:[%s24423_s3 + $0x2b8] sm:$0xff]  }
 0x5a2   :  { %18930 = vmatmul.mubr.bf16.gmra.mrb[140].mxu1 %v22543_v11  ;;  %18333 = vmatprep.subr.bf16.mxu0 %v20691_v55 }
 0x5a3   :  { %18938 = vmatpush3.bf16.msra.mxu1 %v20693_v44  ;;  %18949 = vmatprep.mubr.bf16.mxu1 %v22548_v46 }
 0x5a4   :  { %18939 = vmatprep.subr.bf16.mxu1 %v20694_v13  ;;  %18326 = vmatmul.mubr.bf16.vlgmr.msra.gmra.mrb[136].mxu0 %v22491_v45  ;;  %v20697_v45 = vld [vmem:[%s24423_s3 + $0x230] sm:$0xff]  }
 0x5a5   :  { %18329 = vmatprep.mubr.bf16.mxu0 %v22496_v24  ;;  %18334 = vmatpush3.bf16.msra.mxu0 %v20691_v55  ;;  %v20698_v24 = vld [vmem:[%s24423_s3 + $0x238] sm:$0xff]  }
 0x5a6   :  { %18335 = vmatprep.subr.bf16.mxu0 %v20692_v54  ;;  %v24742_v55 = vld [vmem:[#allocation12_spill] sm:$0xff] }
 0x5a7   :  { %18940 = vmatpush3.bf16.msra.mxu1 %v20694_v13 }
 0x5a8   :  { %18941 = vmatprep.subr.bf16.mxu1 %v20695_v34 }
 0x5a9   :  { %18336 = vmatpush3.bf16.msra.mxu0 %v20692_v54  ;;  %v24743_v54 = vld [vmem:[#allocation13_spill] sm:$0xff] }
 0x5aa   :  { %18337 = vmatprep.subr.bf16.mxu0 %v20693_v44 }
 0x5ab   :  { %18942 = vmatpush3.bf16.msra.mxu1 %v20695_v34 }
 0x5ac   :  { %18943 = vmatprep.subr.bf16.mxu1 %v20696_v17  ;;  %18330 = vmatmul.mubr.bf16.gmra.mrb[140].mxu0 %v22503_v49  ;;  %v20699_v49 = vld [vmem:[%s24423_s3 + $0x240] sm:$0xff]  }
 0x5ad   :  { %18338 = vmatpush3.bf16.msra.mxu0 %v20693_v44  ;;  %18349 = vmatprep.mubr.bf16.mxu0 %v22508_v5  ;;  %v20700_v5 = vld [vmem:[%s24423_s3 + $0x248] sm:$0xff]  }
 0x5ae   :  { %18339 = vmatprep.subr.bf16.mxu0 %v20694_v13  ;;  %v20716_v44 = vld [vmem:[%s24423_s3 + $0x2c8] sm:$0xff]  }
 0x5af   :  { %18944 = vmatpush3.bf16.msra.mxu1 %v20696_v17 }
 0x5b0   :  { %18945 = vmatprep.subr.bf16.mxu1 %v20697_v45 }
 0x5b1   :  { %18340 = vmatpush3.bf16.msra.mxu0 %v20694_v13  ;;  %v20717_v13 = vld [vmem:[%s24423_s3 + $0x2d0] sm:$0xff]  }
 0x5b2   :  { %18341 = vmatprep.subr.bf16.mxu0 %v20695_v34 }
 0x5b3   :  { %18946 = vmatpush3.bf16.msra.mxu1 %v20697_v45 }
 0x5b4   :  { %18947 = vmatprep.subr.bf16.mxu1 %v20698_v24 }
 0x5b5   :  { %18342 = vmatpush3.bf16.msra.mxu0 %v20695_v34  ;;  %v24744_v34 = vld [vmem:[#allocation14_spill] sm:$0xff] }
 0x5b6   :  { %18343 = vmatprep.subr.bf16.mxu0 %v20696_v17 }
 0x5b7   :  { %18948 = vmatpush3.bf16.msra.mxu1 %v20698_v24 }
 0x5b8   :  { %18957 = vmatprep.subr.bf16.mxu1 %v20699_v49 }
 0x5b9   :  { %18344 = vmatpush3.bf16.msra.mxu0 %v20696_v17  ;;  %v24745_v17 = vld [vmem:[#allocation15_spill] sm:$0xff] }
 0x5ba   :  { %18950 = vmatmul.mubr.bf16.vlgmr.msra.gmra.mrb[136].mxu1 %v22571_v62  ;;  %18345 = vmatprep.subr.bf16.mxu0 %v20697_v45 }
 0x5bb   :  { %18953 = vmatprep.mubr.bf16.mxu1 %v22576_v48  ;;  %18958 = vmatpush3.bf16.msra.mxu1 %v20699_v49 }
 0x5bc   :  { %18959 = vmatprep.subr.bf16.mxu1 %v20700_v5 }
 0x5bd   :  { %18346 = vmatpush3.bf16.msra.mxu0 %v20697_v45  ;;  %v20718_v45 = vld [vmem:[%s24423_s3 + $0x2d8] sm:$0xff]  }
 0x5be   :  { %18347 = vmatprep.subr.bf16.mxu0 %v20698_v24 }
 0x5bf   :  { %18960 = vmatpush3.bf16.msra.mxu1 %v20700_v5 }
 0x5c0   :  { %18961 = vmatprep.subr.bf16.mxu1 %v20701_v36 }
 0x5c1   :  { %18348 = vmatpush3.bf16.msra.mxu0 %v20698_v24  ;;  %v24746_v24 = vld [vmem:[#allocation16_spill] sm:$0xff] }
 0x5c2   :  { %18954 = vmatmul.mubr.bf16.gmra.mrb[140].mxu1 %v22583_v15  ;;  %18357 = vmatprep.subr.bf16.mxu0 %v20699_v49 }
 0x5c3   :  { %18962 = vmatpush3.bf16.msra.mxu1 %v20701_v36  ;;  %18973 = vmatprep.mubr.bf16.mxu1 %v22588_v7  ;;  %v20704_v7 = vld [vmem:[%s24423_s3 + $0x268] sm:$0xff]  }
 0x5c4   :  { %18963 = vmatprep.subr.bf16.mxu1 %v20702_v26  ;;  %18350 = vmatmul.mubr.bf16.vlgmr.msra.gmra.mrb[136].mxu0 %v22531_v3  ;;  %v20705_v3 = vld [vmem:[%s24423_s3 + $0x270] sm:$0xff]  }
 0x5c5   :  { %18353 = vmatprep.mubr.bf16.mxu0 %v22536_v10  ;;  %18358 = vmatpush3.bf16.msra.mxu0 %v20699_v49  ;;  %v20706_v10 = vld [vmem:[%s24423_s3 + $0x278] sm:$0xff]   ;;  %v24747_v49 = vld [vmem:[#allocation17_spill] sm:$0xff] }
 0x5c6   :  { %18359 = vmatprep.subr.bf16.mxu0 %v20700_v5 }
 0x5c7   :  { %18964 = vmatpush3.bf16.msra.mxu1 %v20702_v26 }
 0x5c8   :  { %18965 = vmatprep.subr.bf16.mxu1 %v20703_v53 }
 0x5c9   :  { %18360 = vmatpush3.bf16.msra.mxu0 %v20700_v5  ;;  %v20719_v5 = vld [vmem:[%s24423_s3 + $0x2e0] sm:$0xff]  }
 0x5ca   :  { %18361 = vmatprep.subr.bf16.mxu0 %v20701_v36 }
 0x5cb   :  { %18966 = vmatpush3.bf16.msra.mxu1 %v20703_v53 }
 0x5cc   :  { %18967 = vmatprep.subr.bf16.mxu1 %v20704_v7  ;;  %18354 = vmatmul.mubr.bf16.gmra.mrb[140].mxu0 %v22543_v11  ;;  %v20707_v11 = vld [vmem:[%s24423_s3 + $0x280] sm:$0xff]  }
 0x5cd   :  { %18362 = vmatpush3.bf16.msra.mxu0 %v20701_v36  ;;  %18373 = vmatprep.mubr.bf16.mxu0 %v22548_v46  ;;  %v24737_v46 = vld [vmem:[#allocation7_spill] sm:$0xff]  ;;  %v20720_v36 = vld [vmem:[%s24423_s3 + $0x2e8] sm:$0xff]  }
 0x5ce   :  { %18363 = vmatprep.subr.bf16.mxu0 %v20702_v26 }
 0x5cf   :  { %18968 = vmatpush3.bf16.msra.mxu1 %v20704_v7 }
 0x5d0   :  { %18969 = vmatprep.subr.bf16.mxu1 %v20705_v3 }
 0x5d1   :  { %18364 = vmatpush3.bf16.msra.mxu0 %v20702_v26  ;;  %v24748_v26 = vld [vmem:[#allocation18_spill] sm:$0xff] }
 0x5d2   :  { %18365 = vmatprep.subr.bf16.mxu0 %v20703_v53 }
 0x5d3   :  { %18970 = vmatpush3.bf16.msra.mxu1 %v20705_v3 }
 0x5d4   :  { %18971 = vmatprep.subr.bf16.mxu1 %v20706_v10 }
 0x5d5   :  { %18366 = vmatpush3.bf16.msra.mxu0 %v20703_v53  ;;  %v20721_v53 = vld [vmem:[%s24423_s3 + $0x2f0] sm:$0xff]  }
 0x5d6   :  { %18367 = vmatprep.subr.bf16.mxu0 %v20704_v7 }
 0x5d7   :  { %18972 = vmatpush3.bf16.msra.mxu1 %v20706_v10 }
 0x5d8   :  { %18981 = vmatprep.subr.bf16.mxu1 %v20707_v11 }
 0x5d9   :  { %18368 = vmatpush3.bf16.msra.mxu0 %v20704_v7  ;;  %v20722_v7 = vld [vmem:[%s24423_s3 + $0x2f8] sm:$0xff]  }
 0x5da   :  { %18974 = vmatmul.mubr.bf16.vlgmr.msra.gmra.mrb[136].mxu1 %v24737_v46  ;;  %18369 = vmatprep.subr.bf16.mxu0 %v20705_v3  ;;  %v20724_v46 = vld [vmem:[%s24423_s3 + $0x308] sm:$0xff]  }
 0x5db   :  { %18977 = vmatprep.mubr.bf16.mxu1 %v24738_v35  ;;  %18982 = vmatpush3.bf16.msra.mxu1 %v20707_v11  ;;  %v20725_v35 = vld [vmem:[%s24423_s3 + $0x310] sm:$0xff]  }
 0x5dc   :  { %18983 = vmatprep.subr.bf16.mxu1 %v20708_v31 }
 0x5dd   :  { %18370 = vmatpush3.bf16.msra.mxu0 %v20705_v3  ;;  %v20723_v3 = vld [vmem:[%s24423_s3 + $0x300] sm:$0xff]  }
 0x5de   :  { %18371 = vmatprep.subr.bf16.mxu0 %v20706_v10 }
 0x5df   :  { %18984 = vmatpush3.bf16.msra.mxu1 %v20708_v31 }
 0x5e0   :  { %18985 = vmatprep.subr.bf16.mxu1 %v20709_v25 }
 0x5e1   :  { %18372 = vmatpush3.bf16.msra.mxu0 %v20706_v10  ;;  %v24749_v10 = vld [vmem:[#allocation19_spill] sm:$0xff] }
 0x5e2   :  { %18978 = vmatmul.mubr.bf16.gmra.mrb[140].mxu1 %v24739_v37  ;;  %18381 = vmatprep.subr.bf16.mxu0 %v20707_v11  ;;  %v20726_v37 = vld [vmem:[%s24423_s3 + $0x318] sm:$0xff]  }
 0x5e3   :  { %18986 = vmatpush3.bf16.msra.mxu1 %v20709_v25  ;;  %18997 = vmatprep.mubr.bf16.mxu1 %v24740_v8 }
 0x5e4   :  { %18987 = vmatprep.subr.bf16.mxu1 %v20710_v43  ;;  %18374 = vmatmul.mubr.bf16.vlgmr.msra.gmra.mrb[136].mxu0 %v22571_v62  ;;  %v24741_v62 = vld [vmem:[#allocation11_spill] sm:$0xff] }
 0x5e5   :  { %18377 = vmatprep.mubr.bf16.mxu0 %v22576_v48  ;;  %18382 = vmatpush3.bf16.msra.mxu0 %v20707_v11  ;;  %v20713_v48 = vld [vmem:[%s24423_s3 + $0x2b0] sm:$0xff]   ;;  %v24750_v11 = vld [vmem:[#allocation20_spill] sm:$0xff] }
 0x5e6   :  { %18383 = vmatprep.subr.bf16.mxu0 %v20708_v31 }
 0x5e7   :  { %18988 = vmatpush3.bf16.msra.mxu1 %v20710_v43 }
 0x5e8   :  { %18989 = vmatprep.subr.bf16.mxu1 %v20711_v59 }
 0x5e9   :  { %18384 = vmatpush3.bf16.msra.mxu0 %v20708_v31  ;;  %v24751_v31 = vld [vmem:[#allocation21_spill] sm:$0xff] }
 0x5ea   :  { %18385 = vmatprep.subr.bf16.mxu0 %v20709_v25 }
 0x5eb   :  { %18990 = vmatpush3.bf16.msra.mxu1 %v20711_v59 }
 0x5ec   :  { %18991 = vmatprep.subr.bf16.mxu1 %v20712_v29  ;;  %18378 = vmatmul.mubr.bf16.gmra.mrb[140].mxu0 %v22583_v15  ;;  %v20715_v15 = vld [vmem:[%s24423_s3 + $0x2c0] sm:$0xff]  }
 0x5ed   :  { %18386 = vmatpush3.bf16.msra.mxu0 %v20709_v25  ;;  %18397 = vmatprep.mubr.bf16.mxu0 %v24741_v62  ;;  %v24752_v25 = vld [vmem:[#allocation22_spill] sm:$0xff]  ;;  %v20731_v62 = vld [vmem:[%s24423_s3 + $0x340] sm:$0xff]  }
 0x5ee   :  { %18387 = vmatprep.subr.bf16.mxu0 %v20710_v43 }
 0x5ef   :  { %18992 = vmatpush3.bf16.msra.mxu1 %v20712_v29 }
 0x5f0   :  { %18993 = vmatprep.subr.bf16.mxu1 %v20713_v48 }
 0x5f1   :  { %18388 = vmatpush3.bf16.msra.mxu0 %v20710_v43  ;;  %v20728_v43 = vld [vmem:[%s24423_s3 + $0x328] sm:$0xff]  }
 0x5f2   :  { %18389 = vmatprep.subr.bf16.mxu0 %v20711_v59 }
 0x5f3   :  { %18994 = vmatpush3.bf16.msra.mxu1 %v20713_v48 }
 0x5f4   :  { %18995 = vmatprep.subr.bf16.mxu1 %v20714_v28 }
 0x5f5   :  { %18390 = vmatpush3.bf16.msra.mxu0 %v20711_v59  ;;  %v20729_v59 = vld [vmem:[%s24423_s3 + $0x330] sm:$0xff]  }
 0x5f6   :  { %18391 = vmatprep.subr.bf16.mxu0 %v20712_v29 }
 0x5f7   :  { %18996 = vmatpush3.bf16.msra.mxu1 %v20714_v28 }
 0x5f8   :  { %19005 = vmatprep.subr.bf16.mxu1 %v20715_v15 }
 0x5f9   :  { %18392 = vmatpush3.bf16.msra.mxu0 %v20712_v29  ;;  %v20730_v29 = vld [vmem:[%s24423_s3 + $0x338] sm:$0xff]  }
 0x5fa   :  { %18998 = vmatmul.mubr.bf16.vlgmr.msra.gmra.mrb[136].mxu1 %v24742_v55  ;;  %18393 = vmatprep.subr.bf16.mxu0 %v20713_v48 }
 0x5fb   :  { %19001 = vmatprep.mubr.bf16.mxu1 %v24743_v54  ;;  %19006 = vmatpush3.bf16.msra.mxu1 %v20715_v15 }
 0x5fc   :  { %19007 = vmatprep.subr.bf16.mxu1 %v20716_v44 }
 0x5fd   :  { %18394 = vmatpush3.bf16.msra.mxu0 %v20713_v48  ;;  %v24753_v48 = vld [vmem:[#allocation23_spill] sm:$0xff] }
 0x5fe   :  { %18395 = vmatprep.subr.bf16.mxu0 %v20714_v28 }
 0x5ff   :  { %19008 = vmatpush3.bf16.msra.mxu1 %v20716_v44 }
 0x600   :  { %19009 = vmatprep.subr.bf16.mxu1 %v20717_v13 }
 0x601   :  { %18396 = vmatpush3.bf16.msra.mxu0 %v20714_v28  ;;  %v24754_v28 = vld [vmem:[#allocation24_spill] sm:$0xff] }
 0x602   :  { %19002 = vmatmul.mubr.bf16.gmra.mrb[140].mxu1 %v24744_v34  ;;  %18405 = vmatprep.subr.bf16.mxu0 %v20715_v15 }
 0x603   :  { %19010 = vmatpush3.bf16.msra.mxu1 %v20717_v13  ;;  %19021 = vmatprep.mubr.bf16.mxu1 %v24745_v17 }
 0x604   :  { %19011 = vmatprep.subr.bf16.mxu1 %v20718_v45  ;;  %18398 = vmatmul.mubr.bf16.vlgmr.msra.gmra.mrb[136].mxu0 %v24746_v24  ;;  %v20738_v24 = vld [vmem:[%s24423_s3 + $0x378] sm:$0xff]  }
 0x605   :  { %18401 = vmatprep.mubr.bf16.mxu0 %v24747_v49  ;;  %18406 = vmatpush3.bf16.msra.mxu0 %v20715_v15  ;;  %v20732_v15 = vld [vmem:[%s24423_s3 + $0x348] sm:$0xff]   ;;  %v20739_v49 = vld [vmem:[%s24423_s3 + $0x380] sm:$0xff]  }
 0x606   :  { %18407 = vmatprep.subr.bf16.mxu0 %v20716_v44 }
 0x607   :  { %19012 = vmatpush3.bf16.msra.mxu1 %v20718_v45 }
 0x608   :  { %19013 = vmatprep.subr.bf16.mxu1 %v20719_v5 }
 0x609   :  { %18408 = vmatpush3.bf16.msra.mxu0 %v20716_v44  ;;  %v24756_v44 = vld [vmem:[#allocation26_spill] sm:$0xff] }
 0x60a   :  { %18409 = vmatprep.subr.bf16.mxu0 %v20717_v13 }
 0x60b   :  { %19014 = vmatpush3.bf16.msra.mxu1 %v20719_v5 }
 0x60c   :  { %19015 = vmatprep.subr.bf16.mxu1 %v20720_v36  ;;  %18402 = vmatmul.mubr.bf16.gmra.mrb[140].mxu0 %v24748_v26  ;;  %v20740_v26 = vld [vmem:[%s24423_s3 + $0x388] sm:$0xff]  }
 0x60d   :  { %18410 = vmatpush3.bf16.msra.mxu0 %v20717_v13  ;;  %18421 = vmatprep.mubr.bf16.mxu0 %v24740_v8  ;;  %v20727_v8 = vld [vmem:[%s24423_s3 + $0x320] sm:$0xff]   ;;  %v20734_v13 = vld [vmem:[%s24423_s3 + $0x358] sm:$0xff]  }
 0x60e   :  { %18411 = vmatprep.subr.bf16.mxu0 %v20718_v45 }
 0x60f   :  { %19016 = vmatpush3.bf16.msra.mxu1 %v20720_v36 }
 0x610   :  { %19017 = vmatprep.subr.bf16.mxu1 %v20721_v53 }
 0x611   :  { %18412 = vmatpush3.bf16.msra.mxu0 %v20718_v45  ;;  %v20737_v45 = vld [vmem:[%s24423_s3 + $0x370] sm:$0xff]  }
 0x612   :  { %18413 = vmatprep.subr.bf16.mxu0 %v20719_v5 }
 0x613   :  { %19018 = vmatpush3.bf16.msra.mxu1 %v20721_v53 }
 0x614   :  { %19019 = vmatprep.subr.bf16.mxu1 %v20722_v7 }
 0x615   :  { %18414 = vmatpush3.bf16.msra.mxu0 %v20719_v5  ;;  %v24757_v5 = vld [vmem:[#allocation27_spill] sm:$0xff] }
 0x616   :  { %18415 = vmatprep.subr.bf16.mxu0 %v20720_v36 }
 0x617   :  { %19020 = vmatpush3.bf16.msra.mxu1 %v20722_v7 }
 0x618   :  { %19029 = vmatprep.subr.bf16.mxu1 %v20723_v3 }
 0x619   :  { %18416 = vmatpush3.bf16.msra.mxu0 %v20720_v36  ;;  %v24758_v36 = vld [vmem:[#allocation28_spill] sm:$0xff] }
 0x61a   :  { %19022 = vmatmul.mubr.bf16.vlgmr.msra.gmra.mrb[136].mxu1 %v24749_v10  ;;  %18417 = vmatprep.subr.bf16.mxu0 %v20721_v53 }
 0x61b   :  { %19025 = vmatprep.mubr.bf16.mxu1 %v24750_v11  ;;  %19030 = vmatpush3.bf16.msra.mxu1 %v20723_v3 }
 0x61c   :  { %19031 = vmatprep.subr.bf16.mxu1 %v20724_v46 }
 0x61d   :  { %18418 = vmatpush3.bf16.msra.mxu0 %v20721_v53  ;;  %v20741_v53 = vld [vmem:[%s24423_s3 + $0x390] sm:$0xff]  }
 0x61e   :  { %18419 = vmatprep.subr.bf16.mxu0 %v20722_v7 }
 0x61f   :  { %19032 = vmatpush3.bf16.msra.mxu1 %v20724_v46 }
 0x620   :  { %19033 = vmatprep.subr.bf16.mxu1 %v20725_v35 }
 0x621   :  { %18420 = vmatpush3.bf16.msra.mxu0 %v20722_v7  ;;  %v24759_v7 = vld [vmem:[#allocation29_spill] sm:$0xff] }
 0x622   :  { %19026 = vmatmul.mubr.bf16.gmra.mrb[140].mxu1 %v24751_v31  ;;  %18429 = vmatprep.subr.bf16.mxu0 %v20723_v3 }
 0x623   :  { %19034 = vmatpush3.bf16.msra.mxu1 %v20725_v35  ;;  %19045 = vmatprep.mubr.bf16.mxu1 %v24752_v25 }
 0x624   :  { %19035 = vmatprep.subr.bf16.mxu1 %v20726_v37  ;;  %18422 = vmatmul.mubr.bf16.vlgmr.msra.gmra.mrb[136].mxu0 %v24742_v55  ;;  %v20733_v55 = vld [vmem:[%s24423_s3 + $0x350] sm:$0xff]  }
 0x625   :  { %18425 = vmatprep.mubr.bf16.mxu0 %v24743_v54  ;;  %18430 = vmatpush3.bf16.msra.mxu0 %v20723_v3  ;;  %v24755_v54 = vld [vmem:[#allocation25_spill] sm:$0xff]  ;;  %v24760_v3 = vld [vmem:[#allocation30_spill] sm:$0xff] }
 0x626   :  { %18431 = vmatprep.subr.bf16.mxu0 %v20724_v46 }
 0x627   :  { %19036 = vmatpush3.bf16.msra.mxu1 %v20726_v37 }
 0x628   :  { %19037 = vmatprep.subr.bf16.mxu1 %v20727_v8 }
 0x629   :  { %18432 = vmatpush3.bf16.msra.mxu0 %v20724_v46  ;;  %v20744_v46 = vld [vmem:[%s24423_s3 + $0x3a8] sm:$0xff]  }
 0x62a   :  { %18433 = vmatprep.subr.bf16.mxu0 %v20725_v35 }
 0x62b   :  { %19038 = vmatpush3.bf16.msra.mxu1 %v20727_v8 }
 0x62c   :  { %19039 = vmatprep.subr.bf16.mxu1 %v20728_v43  ;;  %18426 = vmatmul.mubr.bf16.gmra.mrb[140].mxu0 %v24744_v34  ;;  %v20735_v34 = vld [vmem:[%s24423_s3 + $0x360] sm:$0xff]  }
 0x62d   :  { %18434 = vmatpush3.bf16.msra.mxu0 %v20725_v35  ;;  %18445 = vmatprep.mubr.bf16.mxu0 %v24745_v17  ;;  %v20736_v17 = vld [vmem:[%s24423_s3 + $0x368] sm:$0xff]   ;;  %v20745_v35 = vld [vmem:[%s24423_s3 + $0x3b0] sm:$0xff]  }
 0x62e   :  { %18435 = vmatprep.subr.bf16.mxu0 %v20726_v37 }
 0x62f   :  { %19040 = vmatpush3.bf16.msra.mxu1 %v20728_v43 }
 0x630   :  { %19041 = vmatprep.subr.bf16.mxu1 %v20729_v59 }
 0x631   :  { %18436 = vmatpush3.bf16.msra.mxu0 %v20726_v37  ;;  %v24761_v37 = vld [vmem:[#allocation31_spill] sm:$0xff] }
 0x632   :  { %18437 = vmatprep.subr.bf16.mxu0 %v20727_v8 }
 0x633   :  { %19042 = vmatpush3.bf16.msra.mxu1 %v20729_v59 }
 0x634   :  { %19043 = vmatprep.subr.bf16.mxu1 %v20730_v29 }
 0x635   :  { %18438 = vmatpush3.bf16.msra.mxu0 %v20727_v8  ;;  %v24762_v8 = vld [vmem:[#allocation32_spill] sm:$0xff] }
 0x636   :  { %18439 = vmatprep.subr.bf16.mxu0 %v20728_v43 }
 0x637   :  { %19044 = vmatpush3.bf16.msra.mxu1 %v20730_v29 }
 0x638   :  { %19053 = vmatprep.subr.bf16.mxu1 %v20731_v62 }
 0x639   :  { %18440 = vmatpush3.bf16.msra.mxu0 %v20728_v43  ;;  %v20748_v43 = vld [vmem:[%s24423_s3 + $0x3c8] sm:$0xff]  }
 0x63a   :  { %19046 = vmatmul.mubr.bf16.vlgmr.msra.gmra.mrb[136].mxu1 %v24753_v48  ;;  %18441 = vmatprep.subr.bf16.mxu0 %v20729_v59 }
 0x63b   :  { %19049 = vmatprep.mubr.bf16.mxu1 %v24754_v28  ;;  %19054 = vmatpush3.bf16.msra.mxu1 %v20731_v62 }
 0x63c   :  { %19055 = vmatprep.subr.bf16.mxu1 %v20732_v15 }
 0x63d   :  { %18442 = vmatpush3.bf16.msra.mxu0 %v20729_v59  ;;  %v20749_v59 = vld [vmem:[%s24423_s3 + $0x3d0] sm:$0xff]  }
 0x63e   :  { %18443 = vmatprep.subr.bf16.mxu0 %v20730_v29 }
 0x63f   :  { %19056 = vmatpush3.bf16.msra.mxu1 %v20732_v15 }
 0x640   :  { %19057 = vmatprep.subr.bf16.mxu1 %v20733_v55 }
 0x641   :  { %18444 = vmatpush3.bf16.msra.mxu0 %v20730_v29  ;;  %v24763_v29 = vld [vmem:[#allocation33_spill] sm:$0xff] }
 0x642   :  { %19050 = vmatmul.mubr.bf16.gmra.mrb[140].mxu1 %v24755_v54  ;;  %18453 = vmatprep.subr.bf16.mxu0 %v20731_v62 }
 0x643   :  { %19058 = vmatpush3.bf16.msra.mxu1 %v20733_v55  ;;  %19069 = vmatprep.mubr.bf16.mxu1 %v24756_v44 }
 0x644   :  { %19059 = vmatprep.subr.bf16.mxu1 %v20734_v13  ;;  %18446 = vmatmul.mubr.bf16.vlgmr.msra.gmra.mrb[136].mxu0 %v24749_v10  ;;  %v20742_v10 = vld [vmem:[%s24423_s3 + $0x398] sm:$0xff]  }
 0x645   :  { %18449 = vmatprep.mubr.bf16.mxu0 %v24750_v11  ;;  %18454 = vmatpush3.bf16.msra.mxu0 %v20731_v62  ;;  %v20743_v11 = vld [vmem:[%s24423_s3 + $0x3a0] sm:$0xff]   ;;  %v20750_v62 = vld [vmem:[%s24423_s3 + $0x3d8] sm:$0xff]  }
 0x646   :  { %18455 = vmatprep.subr.bf16.mxu0 %v20732_v15 }
 0x647   :  { %19060 = vmatpush3.bf16.msra.mxu1 %v20734_v13 }
 0x648   :  { %19061 = vmatprep.subr.bf16.mxu1 %v20735_v34 }
 0x649   :  { %18456 = vmatpush3.bf16.msra.mxu0 %v20732_v15  ;;  %v24764_v15 = vld [vmem:[#allocation34_spill] sm:$0xff] }
 0x64a   :  { %18457 = vmatprep.subr.bf16.mxu0 %v20733_v55 }
 0x64b   :  { %19062 = vmatpush3.bf16.msra.mxu1 %v20735_v34 }
 0x64c   :  { %19063 = vmatprep.subr.bf16.mxu1 %v20736_v17  ;;  %18450 = vmatmul.mubr.bf16.gmra.mrb[140].mxu0 %v24751_v31  ;;  %v20746_v31 = vld [vmem:[%s24423_s3 + $0x3b8] sm:$0xff]  }
 0x64d   :  { %18458 = vmatpush3.bf16.msra.mxu0 %v20733_v55  ;;  %18469 = vmatprep.mubr.bf16.mxu0 %v24752_v25  ;;  %v20747_v25 = vld [vmem:[%s24423_s3 + $0x3c0] sm:$0xff]   ;;  %v20753_v55 = vld [vmem:[%s24423_s3 + $0x3f0] sm:$0xff]  }
 0x64e   :  { %18459 = vmatprep.subr.bf16.mxu0 %v20734_v13 }
 0x64f   :  { %19064 = vmatpush3.bf16.msra.mxu1 %v20736_v17 }
 0x650   :  { %19065 = vmatprep.subr.bf16.mxu1 %v20737_v45 }
 0x651   :  { %18460 = vmatpush3.bf16.msra.mxu0 %v20734_v13  ;;  %v24765_v13 = vld [vmem:[#allocation35_spill] sm:$0xff] }
 0x652   :  { %18461 = vmatprep.subr.bf16.mxu0 %v20735_v34 }
 0x653   :  { %19066 = vmatpush3.bf16.msra.mxu1 %v20737_v45 }
 0x654   :  { %19067 = vmatprep.subr.bf16.mxu1 %v20738_v24 }
 0x655   :  { %18462 = vmatpush3.bf16.msra.mxu0 %v20735_v34  ;;  %v24766_v34 = vld [vmem:[#allocation36_spill] sm:$0xff] }
 0x656   :  { %18463 = vmatprep.subr.bf16.mxu0 %v20736_v17 }
 0x657   :  { %19068 = vmatpush3.bf16.msra.mxu1 %v20738_v24 }
 0x658   :  { %19077 = vmatprep.subr.bf16.mxu1 %v20739_v49 }
 0x659   :  { %18464 = vmatpush3.bf16.msra.mxu0 %v20736_v17  ;;  %v20756_v17 = vld [vmem:[%s24423_s3 + $0x408] sm:$0xff]  }
 0x65a   :  { %19070 = vmatmul.mubr.bf16.vlgmr.msra.gmra.mrb[136].mxu1 %v24757_v5  ;;  %18465 = vmatprep.subr.bf16.mxu0 %v20737_v45 }
 0x65b   :  { %19073 = vmatprep.mubr.bf16.mxu1 %v24758_v36  ;;  %19078 = vmatpush3.bf16.msra.mxu1 %v20739_v49 }
 0x65c   :  { %19079 = vmatprep.subr.bf16.mxu1 %v20740_v26 }
 0x65d   :  { %18466 = vmatpush3.bf16.msra.mxu0 %v20737_v45  ;;  %v20757_v45 = vld [vmem:[%s24423_s3 + $0x410] sm:$0xff]  }
 0x65e   :  { %18467 = vmatprep.subr.bf16.mxu0 %v20738_v24 }
 0x65f   :  { %19080 = vmatpush3.bf16.msra.mxu1 %v20740_v26 }
 0x660   :  { %19081 = vmatprep.subr.bf16.mxu1 %v20741_v53 }
 0x661   :  { %18468 = vmatpush3.bf16.msra.mxu0 %v20738_v24  ;;  %v24767_v24 = vld [vmem:[#allocation37_spill] sm:$0xff] }
 0x662   :  { %19074 = vmatmul.mubr.bf16.gmra.mrb[140].mxu1 %v24759_v7  ;;  %18477 = vmatprep.subr.bf16.mxu0 %v20739_v49 }
 0x663   :  { %19082 = vmatpush3.bf16.msra.mxu1 %v20741_v53  ;;  %19093 = vmatprep.mubr.bf16.mxu1 %v24760_v3  ;;  %v24771_v3 = vld [vmem:[#allocation41_spill] sm:$0xff] }
 0x664   :  { %19083 = vmatprep.subr.bf16.mxu1 %v20742_v10  ;;  %18470 = vmatmul.mubr.bf16.vlgmr.msra.gmra.mrb[136].mxu0 %v24753_v48  ;;  %v20751_v48 = vld [vmem:[%s24423_s3 + $0x3e0] sm:$0xff]  }
 0x665   :  { %18473 = vmatprep.mubr.bf16.mxu0 %v24754_v28  ;;  %18478 = vmatpush3.bf16.msra.mxu0 %v20739_v49  ;;  %v20752_v28 = vld [vmem:[%s24423_s3 + $0x3e8] sm:$0xff]  }
 0x666   :  { %18479 = vmatprep.subr.bf16.mxu0 %v20740_v26  ;;  %v24768_v49 = vld [vmem:[#allocation38_spill] sm:$0xff] }
 0x667   :  { %19084 = vmatpush3.bf16.msra.mxu1 %v20742_v10 }
 0x668   :  { %19085 = vmatprep.subr.bf16.mxu1 %v20743_v11 }
 0x669   :  { %18480 = vmatpush3.bf16.msra.mxu0 %v20740_v26  ;;  %v24770_v26 = vld [vmem:[#allocation40_spill] sm:$0xff] }
 0x66a   :  { %18481 = vmatprep.subr.bf16.mxu0 %v20741_v53 }
 0x66b   :  { %19086 = vmatpush3.bf16.msra.mxu1 %v20743_v11 }
 0x66c   :  { %19087 = vmatprep.subr.bf16.mxu1 %v20744_v46  ;;  %18474 = vmatmul.mubr.bf16.gmra.mrb[140].mxu0 %v24755_v54  ;;  %v20754_v54 = vld [vmem:[%s24423_s3 + $0x3f8] sm:$0xff]  }
 0x66d   :  { %18482 = vmatpush3.bf16.msra.mxu0 %v20741_v53  ;;  %18493 = vmatprep.mubr.bf16.mxu0 %v24756_v44  ;;  %v20755_v44 = vld [vmem:[%s24423_s3 + $0x400] sm:$0xff]  }
 0x66e   :  { %18483 = vmatprep.subr.bf16.mxu0 %v20742_v10  ;;  %v20759_v53 = vld [vmem:[%s24423_s3 + $0x420] sm:$0xff]  }
 0x66f   :  { %19088 = vmatpush3.bf16.msra.mxu1 %v20744_v46 }
 0x670   :  { %19089 = vmatprep.subr.bf16.mxu1 %v20745_v35 }
 0x671   :  { %18484 = vmatpush3.bf16.msra.mxu0 %v20742_v10  ;;  %v20761_v10 = vld [vmem:[%s24423_s3 + $0x430] sm:$0xff]  }
 0x672   :  { %18485 = vmatprep.subr.bf16.mxu0 %v20743_v11 }
 0x673   :  { %19090 = vmatpush3.bf16.msra.mxu1 %v20745_v35 }
 0x674   :  { %19091 = vmatprep.subr.bf16.mxu1 %v20746_v31 }
 0x675   :  { %18486 = vmatpush3.bf16.msra.mxu0 %v20743_v11  ;;  %v20762_v11 = vld [vmem:[%s24423_s3 + $0x438] sm:$0xff]  }
 0x676   :  { %18487 = vmatprep.subr.bf16.mxu0 %v20744_v46 }
 0x677   :  { %19092 = vmatpush3.bf16.msra.mxu1 %v20746_v31 }
 0x678   :  { %19101 = vmatprep.subr.bf16.mxu1 %v20747_v25 }
 0x679   :  { %18488 = vmatpush3.bf16.msra.mxu0 %v20744_v46  ;;  %v24772_v46 = vld [vmem:[#allocation42_spill] sm:$0xff] }
 0x67a   :  { %19094 = vmatmul.mubr.bf16.vlgmr.msra.gmra.mrb[136].mxu1 %v24761_v37  ;;  %18489 = vmatprep.subr.bf16.mxu0 %v20745_v35  ;;  %v24774_v37 = vld [vmem:[#allocation44_spill] sm:$0xff] }
 0x67b   :  { %19097 = vmatprep.mubr.bf16.mxu1 %v24762_v8  ;;  %19102 = vmatpush3.bf16.msra.mxu1 %v20747_v25  ;;  %v24775_v8 = vld [vmem:[#allocation45_spill] sm:$0xff] }
 0x67c   :  { %19103 = vmatprep.subr.bf16.mxu1 %v20748_v43 }
 0x67d   :  { %18490 = vmatpush3.bf16.msra.mxu0 %v20745_v35  ;;  %v24773_v35 = vld [vmem:[#allocation43_spill] sm:$0xff] }
 0x67e   :  { %18491 = vmatprep.subr.bf16.mxu0 %v20746_v31 }
 0x67f   :  { %19104 = vmatpush3.bf16.msra.mxu1 %v20748_v43 }
 0x680   :  { %19105 = vmatprep.subr.bf16.mxu1 %v20749_v59 }
 0x681   :  { %18492 = vmatpush3.bf16.msra.mxu0 %v20746_v31  ;;  %v20764_v31 = vld [vmem:[%s24423_s3 + $0x448] sm:$0xff]  }
 0x682   :  { %19098 = vmatmul.mubr.bf16.gmra.mrb[140].mxu1 %v24763_v29  ;;  %18501 = vmatprep.subr.bf16.mxu0 %v20747_v25  ;;  %v20768_v29 = vld [vmem:[%s24423_s3 + $0x468] sm:$0xff]  }
 0x683   :  { %19106 = vmatpush3.bf16.msra.mxu1 %v20749_v59  ;;  %19117 = vmatprep.mubr.bf16.mxu1 %v22836_v33 }
 0x684   :  { %19107 = vmatprep.subr.bf16.mxu1 %v20750_v62  ;;  %18494 = vmatmul.mubr.bf16.vlgmr.msra.gmra.mrb[136].mxu0 %v24757_v5  ;;  %v20758_v5 = vld [vmem:[%s24423_s3 + $0x418] sm:$0xff]  }
 0x685   :  { %18497 = vmatprep.mubr.bf16.mxu0 %v24758_v36  ;;  %18502 = vmatpush3.bf16.msra.mxu0 %v20747_v25  ;;  %v24769_v36 = vld [vmem:[#allocation39_spill] sm:$0xff] }
 0x686   :  { %18503 = vmatprep.subr.bf16.mxu0 %v20748_v43  ;;  %v20765_v25 = vld [vmem:[%s24423_s3 + $0x450] sm:$0xff]  }
 0x687   :  { %19108 = vmatpush3.bf16.msra.mxu1 %v20750_v62 }
 0x688   :  { %19109 = vmatprep.subr.bf16.mxu1 %v20751_v48 }
 0x689   :  { %18504 = vmatpush3.bf16.msra.mxu0 %v20748_v43  ;;  %v20766_v43 = vld [vmem:[%s24423_s3 + $0x458] sm:$0xff]  }
 0x68a   :  { %18505 = vmatprep.subr.bf16.mxu0 %v20749_v59 }
 0x68b   :  { %19110 = vmatpush3.bf16.msra.mxu1 %v20751_v48 }
 0x68c   :  { %19111 = vmatprep.subr.bf16.mxu1 %v20752_v28  ;;  %18498 = vmatmul.mubr.bf16.gmra.mrb[140].mxu0 %v24759_v7  ;;  %v20760_v7 = vld [vmem:[%s24423_s3 + $0x428] sm:$0xff]  }
 0x68d   :  { %18506 = vmatpush3.bf16.msra.mxu0 %v20749_v59  ;;  %18517 = vmatprep.mubr.bf16.mxu0 %v24764_v15  ;;  %v20767_v59 = vld [vmem:[%s24423_s3 + $0x460] sm:$0xff]   ;;  %v20772_v15 = vld [vmem:[%s24423_s3 + $0x488] sm:$0xff]  }
 0x68e   :  { %18507 = vmatprep.subr.bf16.mxu0 %v20750_v62 }
 0x68f   :  { %19112 = vmatpush3.bf16.msra.mxu1 %v20752_v28 }
 0x690   :  { %19113 = vmatprep.subr.bf16.mxu1 %v20753_v55 }
 0x691   :  { %18508 = vmatpush3.bf16.msra.mxu0 %v20750_v62  ;;  %v20769_v62 = vld [vmem:[%s24423_s3 + $0x470] sm:$0xff]  }
 0x692   :  { %18509 = vmatprep.subr.bf16.mxu0 %v20751_v48 }
 0x693   :  { %19114 = vmatpush3.bf16.msra.mxu1 %v20753_v55 }
 0x694   :  { %19115 = vmatprep.subr.bf16.mxu1 %v20754_v54 }
 0x695   :  { %18510 = vmatpush3.bf16.msra.mxu0 %v20751_v48  ;;  %v20770_v48 = vld [vmem:[%s24423_s3 + $0x478] sm:$0xff]  }
 0x696   :  { %18511 = vmatprep.subr.bf16.mxu0 %v20752_v28 }
 0x697   :  { %19116 = vmatpush3.bf16.msra.mxu1 %v20754_v54 }
 0x698   :  { %19125 = vmatprep.subr.bf16.mxu1 %v20755_v44 }
 0x699   :  { %18512 = vmatpush3.bf16.msra.mxu0 %v20752_v28  ;;  %v20771_v28 = vld [vmem:[%s24423_s3 + $0x480] sm:$0xff]  }
 0x69a   :  { %19118 = vmatmul.mubr.bf16.vlgmr.msra.gmra.mrb[136].mxu1 %v24765_v13  ;;  %18513 = vmatprep.subr.bf16.mxu0 %v20753_v55 }
 0x69b   :  { %19121 = vmatprep.mubr.bf16.mxu1 %v24766_v34  ;;  %19126 = vmatpush3.bf16.msra.mxu1 %v20755_v44 }
 0x69c   :  { %19127 = vmatprep.subr.bf16.mxu1 %v20756_v17 }
 0x69d   :  { %18514 = vmatpush3.bf16.msra.mxu0 %v20753_v55  ;;  %v20773_v55 = vld [vmem:[%s24423_s3 + $0x490] sm:$0xff]  }
 0x69e   :  { %18515 = vmatprep.subr.bf16.mxu0 %v20754_v54 }
 0x69f   :  { %19128 = vmatpush3.bf16.msra.mxu1 %v20756_v17 }
 0x6a0   :  { %19129 = vmatprep.subr.bf16.mxu1 %v20757_v45 }
 0x6a1   :  { %18516 = vmatpush3.bf16.msra.mxu0 %v20754_v54  ;;  %v24776_v54 = vld [vmem:[#allocation46_spill] sm:$0xff] }
 0x6a2   :  { %19122 = vmatmul.mubr.bf16.gmra.mrb[140].mxu1 %v24767_v24  ;;  %18525 = vmatprep.subr.bf16.mxu0 %v20755_v44 }
 0x6a3   :  { %19130 = vmatpush3.bf16.msra.mxu1 %v20757_v45  ;;  %19141 = vmatprep.mubr.bf16.mxu1 %v24768_v49 }
 0x6a4   :  { %19131 = vmatprep.subr.bf16.mxu1 %v20758_v5  ;;  %18518 = vmatmul.mubr.bf16.vlgmr.msra.gmra.mrb[136].mxu0 %v24769_v36  ;;  %v24777_v36 = vld [vmem:[#allocation47_spill] sm:$0xff] }
 0x6a5   :  { %18521 = vmatprep.mubr.bf16.mxu0 %v24770_v26  ;;  %18526 = vmatpush3.bf16.msra.mxu0 %v20755_v44  ;;  %v20774_v44 = vld [vmem:[%s24423_s3 + $0x498] sm:$0xff]  }
 0x6a6   :  { %18527 = vmatprep.subr.bf16.mxu0 %v20756_v17  ;;  %v20782_v26 = vld [vmem:[%s24423_s3 + $0x4d8] sm:$0xff]  }
 0x6a7   :  { %19132 = vmatpush3.bf16.msra.mxu1 %v20758_v5 }
 0x6a8   :  { %19133 = vmatprep.subr.bf16.mxu1 %v20759_v53 }
 0x6a9   :  { %18528 = vmatpush3.bf16.msra.mxu0 %v20756_v17  ;;  %v20777_v17 = vld [vmem:[%s24423_s3 + $0x4b0] sm:$0xff]  }
 0x6aa   :  { %18529 = vmatprep.subr.bf16.mxu0 %v20757_v45 }
 0x6ab   :  { %19134 = vmatpush3.bf16.msra.mxu1 %v20759_v53 }
 0x6ac   :  { %19135 = vmatprep.subr.bf16.mxu1 %v20760_v7  ;;  %18522 = vmatmul.mubr.bf16.gmra.mrb[140].mxu0 %v24771_v3  ;;  %v20788_v3 = vld [vmem:[%s24423_s3 + $0x508] sm:$0xff]  }
 0x6ad   :  { %18530 = vmatpush3.bf16.msra.mxu0 %v20757_v45  ;;  %18541 = vmatprep.mubr.bf16.mxu0 %v22836_v33  ;;  %v20763_v33 = vld [vmem:[%s24423_s3 + $0x440] sm:$0xff]   ;;  %v20778_v45 = vld [vmem:[%s24423_s3 + $0x4b8] sm:$0xff]  }
 0x6ae   :  { %18531 = vmatprep.subr.bf16.mxu0 %v20758_v5 }
 0x6af   :  { %19136 = vmatpush3.bf16.msra.mxu1 %v20760_v7 }
 0x6b0   :  { %19137 = vmatprep.subr.bf16.mxu1 %v20761_v10 }
 0x6b1   :  { %18532 = vmatpush3.bf16.msra.mxu0 %v20758_v5  ;;  %v20781_v5 = vld [vmem:[%s24423_s3 + $0x4d0] sm:$0xff]  }
 0x6b2   :  { %18533 = vmatprep.subr.bf16.mxu0 %v20759_v53 }
 0x6b3   :  { %19138 = vmatpush3.bf16.msra.mxu1 %v20761_v10 }
 0x6b4   :  { %19139 = vmatprep.subr.bf16.mxu1 %v20762_v11 }
 0x6b5   :  { %18534 = vmatpush3.bf16.msra.mxu0 %v20759_v53  ;;  %v20783_v53 = vld [vmem:[%s24423_s3 + $0x4e0] sm:$0xff]  }
 0x6b6   :  { %18535 = vmatprep.subr.bf16.mxu0 %v20760_v7 }
 0x6b7   :  { %19140 = vmatpush3.bf16.msra.mxu1 %v20762_v11 }
 0x6b8   :  { %19149 = vmatprep.subr.bf16.mxu1 %v20763_v33 }
 0x6b9   :  { %18536 = vmatpush3.bf16.msra.mxu0 %v20760_v7  ;;  %v20784_v7 = vld [vmem:[%s24423_s3 + $0x4e8] sm:$0xff]  }
 0x6ba   :  { %19142 = vmatmul.mubr.bf16.vlgmr.msra.gmra.mrb[136].mxu1 %v24772_v46  ;;  %18537 = vmatprep.subr.bf16.mxu0 %v20761_v10 }
 0x6bb   :  { %19145 = vmatprep.mubr.bf16.mxu1 %v24773_v35  ;;  %19150 = vmatpush3.bf16.msra.mxu1 %v20763_v33 }
 0x6bc   :  { %19151 = vmatprep.subr.bf16.mxu1 %v20764_v31 }
 0x6bd   :  { %18538 = vmatpush3.bf16.msra.mxu0 %v20761_v10  ;;  %v10038_v10 = vld [vmem:[#allocation2 + $0x1b0] sm:$0xff] }
 0x6be   :  { %18539 = vmatprep.subr.bf16.mxu0 %v20762_v11 }
 0x6bf   :  { %19152 = vmatpush3.bf16.msra.mxu1 %v20764_v31 }
 0x6c0   :  { %19153 = vmatprep.subr.bf16.mxu1 %v20765_v25 }
 0x6c1   :  { %18540 = vmatpush3.bf16.msra.mxu0 %v20762_v11  ;;  %v20789_v11 = vld [vmem:[%s24423_s3 + $0x510] sm:$0xff]  }
 0x6c2   :  { %19146 = vmatmul.mubr.bf16.gmra.mrb[140].mxu1 %v24774_v37  ;;  %18549 = vmatprep.subr.bf16.mxu0 %v20763_v33 }
 0x6c3   :  { %19154 = vmatpush3.bf16.msra.mxu1 %v20765_v25  ;;  %19165 = vmatprep.mubr.bf16.mxu1 %v24775_v8 }
 0x6c4   :  { %19155 = vmatprep.subr.bf16.mxu1 %v20766_v43  ;;  %18542 = vmatmul.mubr.bf16.vlgmr.msra.gmra.mrb[136].mxu0 %v24765_v13  ;;  %v20775_v13 = vld [vmem:[%s24423_s3 + $0x4a0] sm:$0xff]  }
 0x6c5   :  { %18545 = vmatprep.mubr.bf16.mxu0 %v24766_v34  ;;  %18550 = vmatpush3.bf16.msra.mxu0 %v20763_v33  ;;  %v20776_v34 = vld [vmem:[%s24423_s3 + $0x4a8] sm:$0xff]   ;;  %v10037_v33 = vld [vmem:[#allocation2 + $0x1a0] sm:$0xff] }
 0x6c6   :  { %18551 = vmatprep.subr.bf16.mxu0 %v20764_v31 }
 0x6c7   :  { %19156 = vmatpush3.bf16.msra.mxu1 %v20766_v43 }
 0x6c8   :  { %19157 = vmatprep.subr.bf16.mxu1 %v20767_v59 }
 0x6c9   :  { %18552 = vmatpush3.bf16.msra.mxu0 %v20764_v31 }
 0x6ca   :  { %18553 = vmatprep.subr.bf16.mxu0 %v20765_v25 }
 0x6cb   :  { %19158 = vmatpush3.bf16.msra.mxu1 %v20767_v59 }
 0x6cc   :  { %19159 = vmatprep.subr.bf16.mxu1 %v20768_v29  ;;  %18546 = vmatmul.mubr.bf16.gmra.mrb[140].mxu0 %v24767_v24  ;;  %v20779_v24 = vld [vmem:[%s24423_s3 + $0x4c0] sm:$0xff]  }
 0x6cd   :  { %18554 = vmatpush3.bf16.msra.mxu0 %v20765_v25  ;;  %18565 = vmatprep.mubr.bf16.mxu0 %v24768_v49  ;;  %v20780_v49 = vld [vmem:[%s24423_s3 + $0x4c8] sm:$0xff]   ;;  %v20794_v25 = vld [vmem:[%s24423_s3 + $0x538] sm:$0xff]  }
 0x6ce   :  { %18555 = vmatprep.subr.bf16.mxu0 %v20766_v43 }
 0x6cf   :  { %19160 = vmatpush3.bf16.msra.mxu1 %v20768_v29 }
 0x6d0   :  { %19161 = vmatprep.subr.bf16.mxu1 %v20769_v62 }
 0x6d1   :  { %18556 = vmatpush3.bf16.msra.mxu0 %v20766_v43 }
 0x6d2   :  { %18557 = vmatprep.subr.bf16.mxu0 %v20767_v59 }
 0x6d3   :  { %19162 = vmatpush3.bf16.msra.mxu1 %v20769_v62 }
 0x6d4   :  { %19163 = vmatprep.subr.bf16.mxu1 %v20770_v48 }
 0x6d5   :  { %18558 = vmatpush3.bf16.msra.mxu0 %v20767_v59  ;;  %v20795_v59 = vld [vmem:[%s24423_s3 + $0x540] sm:$0xff]  }
 0x6d6   :  { %18559 = vmatprep.subr.bf16.mxu0 %v20768_v29 }
 0x6d7   :  { %19164 = vmatpush3.bf16.msra.mxu1 %v20770_v48 }
 0x6d8   :  { %19173 = vmatprep.subr.bf16.mxu1 %v20771_v28 }
 0x6d9   :  { %18560 = vmatpush3.bf16.msra.mxu0 %v20768_v29  ;;  %v10041_v29 = vld [vmem:[#allocation2 + $0x3a0] sm:$0xff] }
 0x6da   :  { %19166 = vmatmul.mubr.bf16.vlgmr.msra.gmra.mrb[136].mxu1 %v22947_v58  ;;  %18561 = vmatprep.subr.bf16.mxu0 %v20769_v62 }
 0x6db   :  { %19169 = vmatprep.mubr.bf16.mxu1 %v22952_v30  ;;  %19174 = vmatpush3.bf16.msra.mxu1 %v20771_v28 }
 0x6dc   :  { %19175 = vmatprep.subr.bf16.mxu1 %v20772_v15 }
 0x6dd   :  { %18562 = vmatpush3.bf16.msra.mxu0 %v20769_v62 }
 0x6de   :  { %18563 = vmatprep.subr.bf16.mxu0 %v20770_v48 }
 0x6df   :  { %19176 = vmatpush3.bf16.msra.mxu1 %v20772_v15 }
 0x6e0   :  { %19177 = vmatprep.subr.bf16.mxu1 %v20773_v55 }
 0x6e1   :  { %18564 = vmatpush3.bf16.msra.mxu0 %v20770_v48  ;;  %v20796_v48 = vld [vmem:[%s24423_s3 + $0x548] sm:$0xff]  }
 0x6e2   :  { %19170 = vmatmul.mubr.bf16.gmra.mrb[140].mxu1 %v22959_v41  ;;  %18573 = vmatprep.subr.bf16.mxu0 %v20771_v28 }
 0x6e3   :  { %19178 = vmatpush3.bf16.msra.mxu1 %v20773_v55  ;;  %19189 = vmatprep.mubr.bf16.mxu1 %v24776_v54 }
 0x6e4   :  { %19179 = vmatprep.subr.bf16.mxu1 %v20774_v44  ;;  %18566 = vmatmul.mubr.bf16.vlgmr.msra.gmra.mrb[136].mxu0 %v24772_v46  ;;  %v9952_v46 = vld [vmem:[#allocation2 + $0x130] sm:$0xff] }
 0x6e5   :  { %18569 = vmatprep.mubr.bf16.mxu0 %v24773_v35  ;;  %18574 = vmatpush3.bf16.msra.mxu0 %v20771_v28  ;;  %v9951_v35 = vld [vmem:[#allocation2 + $0x120] sm:$0xff]  ;;  %v10044_v28 = vld [vmem:[#allocation2 + $0x3d0] sm:$0xff] }
 0x6e6   :  { %18575 = vmatprep.subr.bf16.mxu0 %v20772_v15  ;;  %v9959_v31 = vpack.c.bf16 %v9952_v46, %v9951_v35  ;;  %v10126_v46 = vld [vmem:[#allocation2 + $0x321] sm:$0xff] }
 0x6e7   :  { %19180 = vmatpush3.bf16.msra.mxu1 %v20774_v44 }
 0x6e8   :  { %19181 = vmatprep.subr.bf16.mxu1 %v20775_v13 }
 0x6e9   :  { %18576 = vmatpush3.bf16.msra.mxu0 %v20772_v15  ;;  %v10123_v15 = vld [vmem:[#allocation2 + $0x131] sm:$0xff] }
 0x6ea   :  { %18577 = vmatprep.subr.bf16.mxu0 %v20773_v55 }
 0x6eb   :  { %19182 = vmatpush3.bf16.msra.mxu1 %v20775_v13 }
 0x6ec   :  { %19183 = vmatprep.subr.bf16.mxu1 %v20776_v34  ;;  %18570 = vmatmul.mubr.bf16.gmra.mrb[140].mxu0 %v24774_v37  ;;  %v10040_v37 = vld [vmem:[#allocation2 + $0x1d0] sm:$0xff] }
 0x6ed   :  { %18578 = vmatpush3.bf16.msra.mxu0 %v20773_v55  ;;  %18589 = vmatprep.mubr.bf16.mxu0 %v24775_v8  ;;  %v10039_v8 = vld [vmem:[#allocation2 + $0x1c0] sm:$0xff] }
 0x6ee   :  { %18579 = vmatprep.subr.bf16.mxu0 %v20774_v44  ;;  %v23751_v43 = vpack.c.bf16 %v10040_v37, %v10039_v8  ;;  %v10043_v55 = vld [vmem:[#allocation2 + $0x3c0] sm:$0xff] }
 0x6ef   :  { %19184 = vmatpush3.bf16.msra.mxu1 %v20776_v34  ;;  %v10207_v8 = vld [vmem:[#allocation2 + $0x1a1] sm:$0xff] }
 0x6f0   :  { %19185 = vmatprep.subr.bf16.mxu1 %v20777_v17 }
 0x6f1   :  { %18580 = vmatpush3.bf16.msra.mxu0 %v20774_v44  ;;  %v23763_v44 = vpack.c.bf16 %v10044_v28, %v10043_v55  ;;  %v20808_v28 = vld [vmem:[%s24423_s3 + $0x5a8] sm:$0xff]  }
 0x6f2   :  { %18581 = vmatprep.subr.bf16.mxu0 %v20775_v13  ;;  %v10212_v55 = vld [vmem:[#allocation2 + $0x3b1] sm:$0xff] }
 0x6f3   :  { %19186 = vmatpush3.bf16.msra.mxu1 %v20777_v17 }
 0x6f4   :  { %19187 = vmatprep.subr.bf16.mxu1 %v20778_v45 }
 0x6f5   :  { %18582 = vmatpush3.bf16.msra.mxu0 %v20775_v13  ;;  %v20797_v13 = vld [vmem:[%s24423_s3 + $0x550] sm:$0xff]  }
 0x6f6   :  { %18583 = vmatprep.subr.bf16.mxu0 %v20776_v34 }
 0x6f7   :  { %19188 = vmatpush3.bf16.msra.mxu1 %v20778_v45 }
 0x6f8   :  { %19197 = vmatprep.subr.bf16.mxu1 %v20779_v24 }
 0x6f9   :  { %18584 = vmatpush3.bf16.msra.mxu0 %v20776_v34  ;;  %v10122_v34 = vld [vmem:[#allocation2 + $0x121] sm:$0xff] }
 0x6fa   :  { %19190 = vmatmul.mubr.bf16.vlgmr.msra.gmra.mrb[136].mxu1 %v22987_v21  ;;  %18585 = vmatprep.subr.bf16.mxu0 %v20777_v17 }
 0x6fb   :  { %19193 = vmatprep.mubr.bf16.mxu1 %v22992_v39  ;;  %19198 = vmatpush3.bf16.msra.mxu1 %v20779_v24 }
 0x6fc   :  { %19199 = vmatprep.subr.bf16.mxu1 %v20780_v49 }
 0x6fd   :  { %18586 = vmatpush3.bf16.msra.mxu0 %v20777_v17  ;;  %v9956_v17 = vld [vmem:[#allocation2 + $0x330] sm:$0xff] }
 0x6fe   :  { %18587 = vmatprep.subr.bf16.mxu0 %v20778_v45 }
 0x6ff   :  { %19200 = vmatpush3.bf16.msra.mxu1 %v20780_v49 }
 0x700   :  { %19201 = vmatprep.subr.bf16.mxu1 %v20781_v5 }
 0x701   :  { %18588 = vmatpush3.bf16.msra.mxu0 %v20778_v45  ;;  %v23768_v45 = vpack.c.bf16 %v10123_v15, %v10122_v34  ;;  %v10210_v15 = vld [vmem:[#allocation2 + $0x1d1] sm:$0xff]  ;;  %v10211_v34 = vld [vmem:[#allocation2 + $0x3a1] sm:$0xff] }
 0x702   :  { %19194 = vmatmul.mubr.bf16.gmra.mrb[140].mxu1 %v22999_v27  ;;  %18597 = vmatprep.subr.bf16.mxu0 %v20779_v24 }
 0x703   :  { %19202 = vmatpush3.bf16.msra.mxu1 %v20781_v5  ;;  %19213 = vmatprep.mubr.bf16.mxu1 %v24777_v36 }
 0x704   :  { %19203 = vmatprep.subr.bf16.mxu1 %v20782_v26  ;;  %18590 = vmatmul.mubr.bf16.vlgmr.msra.gmra.mrb[136].mxu0 %v22947_v58  ;;  %v20786_v58 = vld [vmem:[%s24423_s3 + $0x4f8] sm:$0xff]  }
 0x705   :  { %18593 = vmatprep.mubr.bf16.mxu0 %v22952_v30  ;;  %18598 = vmatpush3.bf16.msra.mxu0 %v20779_v24  ;;  %v20785_v30 = vld [vmem:[%s24423_s3 + $0x4f0] sm:$0xff]  }
 0x706   :  { %18599 = vmatprep.subr.bf16.mxu0 %v20780_v49  ;;  %v9953_v24 = vld [vmem:[#allocation2 + $0x140] sm:$0xff] }
 0x707   :  { %19204 = vmatpush3.bf16.msra.mxu1 %v20782_v26 }
 0x708   :  { %19205 = vmatprep.subr.bf16.mxu1 %v20783_v53 }
 0x709   :  { %18600 = vmatpush3.bf16.msra.mxu0 %v20780_v49 }
 0x70a   :  { %18601 = vmatprep.subr.bf16.mxu0 %v20781_v5 }
 0x70b   :  { %19206 = vmatpush3.bf16.msra.mxu1 %v20783_v53 }
 0x70c   :  { %19207 = vmatprep.subr.bf16.mxu1 %v20784_v7  ;;  %18594 = vmatmul.mubr.bf16.gmra.mrb[140].mxu0 %v22959_v41  ;;  %v20787_v41 = vld [vmem:[%s24423_s3 + $0x500] sm:$0xff]  }
 0x70d   :  { %18602 = vmatpush3.bf16.msra.mxu0 %v20781_v5  ;;  %18613 = vmatprep.mubr.bf16.mxu0 %v24776_v54  ;;  %v9954_v54 = vld [vmem:[#allocation2 + $0x150] sm:$0xff]  ;;  %v9955_v5 = vld [vmem:[#allocation2 + $0x320] sm:$0xff] }
 0x70e   :  { %18603 = vmatprep.subr.bf16.mxu0 %v20782_v26  ;;  %v9960_v49 = vpack.c.bf16 %v9954_v54, %v9953_v24  ;;  %v9961_v36 = vpack.c.bf16 %v9956_v17, %v9955_v5  ;;  %v10209_v54 = vld [vmem:[#allocation2 + $0x1c1] sm:$0xff]  ;;  %v23833_v17 = vpack.c.bf16 %v10212_v55, %v10211_v34  ;;  %v10214_v24 = vld [vmem:[#allocation2 + $0x3d1] sm:$0xff] }
 0x70f   :  { %19208 = vmatpush3.bf16.msra.mxu1 %v20784_v7  ;;  %v10213_v5 = vld [vmem:[#allocation2 + $0x3c1] sm:$0xff]  ;;  %v12126_v55 = vld [vmem:[#allocation2 + $0x3b2] sm:$0xff] }
 0x710   :  { %19209 = vmatprep.subr.bf16.mxu1 %v20785_v30 }
 0x711   :  { %18604 = vmatpush3.bf16.msra.mxu0 %v20782_v26  ;;  %v20798_v26 = vld [vmem:[%s24423_s3 + $0x558] sm:$0xff]  }
 0x712   :  { %18605 = vmatprep.subr.bf16.mxu0 %v20783_v53 }
 0x713   :  { %19210 = vmatpush3.bf16.msra.mxu1 %v20785_v30 }
 0x714   :  { %19211 = vmatprep.subr.bf16.mxu1 %v20786_v58 }
 0x715   :  { %18606 = vmatpush3.bf16.msra.mxu0 %v20783_v53  ;;  %v9958_v53 = vld [vmem:[#allocation2 + $0x350] sm:$0xff] }
 0x716   :  { %18607 = vmatprep.subr.bf16.mxu0 %v20784_v7 }
 0x717   :  { %19212 = vmatpush3.bf16.msra.mxu1 %v20786_v58 }
 0x718   :  { %19221 = vmatprep.subr.bf16.mxu1 %v20787_v41 }
 0x719   :  { %18608 = vmatpush3.bf16.msra.mxu0 %v20784_v7  ;;  %v20799_v7 = vld [vmem:[%s24423_s3 + $0x560] sm:$0xff]  }
 0x71a   :  { %19214 = vmatmul.mubr.bf16.vlgmr.msra.gmra.mrb[136].mxu1 %v23024_v63  ;;  %18609 = vmatprep.subr.bf16.mxu0 %v20785_v30  ;;  %v23729_v63 = vpack.c.bf16 %v10038_v10, %v10037_v33  ;;  %v20802_v10 = vld [vmem:[%s24423_s3 + $0x578] sm:$0xff]   ;;  %v10127_v33 = vld [vmem:[#allocation2 + $0x331] sm:$0xff] }
 0x71b   :  { %19217 = vmatprep.mubr.bf16.mxu1 %v23029_v38  ;;  %19222 = vmatpush3.bf16.msra.mxu1 %v20787_v41  ;;  %v20790_v38 = vld [vmem:[%s24423_s3 + $0x518] sm:$0xff]   ;;  %v23793_v35 = vpack.c.bf16 %v10127_v33, %v10126_v46  ;;  %v10297_v33 = vld [vmem:[#allocation2 + $0x332] sm:$0xff] }
 0x71c   :  { %19223 = vmatprep.subr.bf16.mxu1 %v20788_v3  ;;  %v10296_v46 = vld [vmem:[#allocation2 + $0x322] sm:$0xff] }
 0x71d   :  { %18610 = vmatpush3.bf16.msra.mxu0 %v20785_v30  ;;  %v9957_v30 = vld [vmem:[#allocation2 + $0x340] sm:$0xff] }
 0x71e   :  { %18611 = vmatprep.subr.bf16.mxu0 %v20786_v58 }
 0x71f   :  { %19224 = vmatpush3.bf16.msra.mxu1 %v20788_v3 }
 0x720   :  { %19225 = vmatprep.subr.bf16.mxu1 %v20789_v11 }
 0x721   :  { %18612 = vmatpush3.bf16.msra.mxu0 %v20786_v58  ;;  %v9962_v58 = vpack.c.bf16 %v9958_v53, %v9957_v30  ;;  %v10292_v53 = vld [vmem:[#allocation2 + $0x122] sm:$0xff] }
 0x722   :  { %19218 = vmatmul.mubr.bf16.gmra.mrb[140].mxu1 %v23036_v16  ;;  %18621 = vmatprep.subr.bf16.mxu0 %v20787_v41  ;;  %v20791_v16 = vld [vmem:[%s24423_s3 + $0x520] sm:$0xff]   ;;  %v20814_v30 = vld [vmem:[%s24423_s3 + $0x5d8] sm:$0xff]  }
 0x723   :  { %19226 = vmatpush3.bf16.msra.mxu1 %v20789_v11  ;;  %19237 = vmatprep.mubr.bf16.mxu1 %v23729_v63 }
 0x724   :  { %19227 = vmatprep.subr.bf16.mxu1 %v20790_v38  ;;  %18614 = vmatmul.mubr.bf16.vlgmr.msra.gmra.mrb[136].mxu0 %v22987_v21  ;;  %v20792_v21 = vld [vmem:[%s24423_s3 + $0x528] sm:$0xff]  }
 0x725   :  { %18617 = vmatprep.mubr.bf16.mxu0 %v22992_v39  ;;  %18622 = vmatpush3.bf16.msra.mxu0 %v20787_v41  ;;  %v20793_v39 = vld [vmem:[%s24423_s3 + $0x530] sm:$0xff]   ;;  %v20800_v41 = vld [vmem:[%s24423_s3 + $0x568] sm:$0xff]  }
 0x726   :  { %18623 = vmatprep.subr.bf16.mxu0 %v20788_v3 }
 0x727   :  { %19228 = vmatpush3.bf16.msra.mxu1 %v20790_v38 }
 0x728   :  { %19229 = vmatprep.subr.bf16.mxu1 %v20791_v16 }
 0x729   :  { %18624 = vmatpush3.bf16.msra.mxu0 %v20788_v3  ;;  %v20801_v3 = vld [vmem:[%s24423_s3 + $0x570] sm:$0xff]  }
 0x72a   :  { %18625 = vmatprep.subr.bf16.mxu0 %v20789_v11 }
 0x72b   :  { %19230 = vmatpush3.bf16.msra.mxu1 %v20791_v16 }
 0x72c   :  { %19231 = vmatprep.subr.bf16.mxu1 %v20792_v21  ;;  %18618 = vmatmul.mubr.bf16.gmra.mrb[140].mxu0 %v22999_v27  ;;  %v10042_v27 = vld [vmem:[#allocation2 + $0x3b0] sm:$0xff] }
 0x72d   :  { %18626 = vmatpush3.bf16.msra.mxu0 %v20789_v11  ;;  %18637 = vmatprep.mubr.bf16.mxu0 %v9959_v31  ;;  %v23756_v62 = vpack.c.bf16 %v10042_v27, %v10041_v29  ;;  %v10125_v11 = vld [vmem:[#allocation2 + $0x151] sm:$0xff]  ;;  %v20805_v27 = vld [vmem:[%s24423_s3 + $0x590] sm:$0xff]   ;;  %v20806_v29 = vld [vmem:[%s24423_s3 + $0x598] sm:$0xff]  }
 0x72e   :  { %18627 = vmatprep.subr.bf16.mxu0 %v20790_v38  ;;  %v20804_v31 = vld [vmem:[%s24423_s3 + $0x588] sm:$0xff]  }
 0x72f   :  { %19232 = vmatpush3.bf16.msra.mxu1 %v20792_v21 }
 0x730   :  { %19233 = vmatprep.subr.bf16.mxu1 %v20793_v39 }
 0x731   :  { %18628 = vmatpush3.bf16.msra.mxu0 %v20790_v38 }
 0x732   :  { %18629 = vmatprep.subr.bf16.mxu0 %v20791_v16 }
 0x733   :  { %19234 = vmatpush3.bf16.msra.mxu1 %v20793_v39 }
 0x734   :  { %19235 = vmatprep.subr.bf16.mxu1 %v20794_v25 }
 0x735   :  { %18630 = vmatpush3.bf16.msra.mxu0 %v20791_v16  ;;  %v20803_v16 = vld [vmem:[%s24423_s3 + $0x580] sm:$0xff]  }
 0x736   :  { %18631 = vmatprep.subr.bf16.mxu0 %v20792_v21 }
 0x737   :  { %19236 = vmatpush3.bf16.msra.mxu1 %v20794_v25 }
 0x738   :  { %19245 = vmatprep.subr.bf16.mxu1 %v20795_v59 }
 0x739   :  { %18632 = vmatpush3.bf16.msra.mxu0 %v20792_v21  ;;  %v10129_v21 = vld [vmem:[#allocation2 + $0x351] sm:$0xff] }
 0x73a   :  { %19238 = vmatmul.mubr.bf16.vlgmr.msra.gmra.mrb[136].mxu1 %v23751_v43  ;;  %18633 = vmatprep.subr.bf16.mxu0 %v20793_v39 }
 0x73b   :  { %19241 = vmatprep.mubr.bf16.mxu1 %v23756_v62  ;;  %19246 = vmatpush3.bf16.msra.mxu1 %v20795_v59 }
 0x73c   :  { %19247 = vmatprep.subr.bf16.mxu1 %v20796_v48 }
 0x73d   :  { %18634 = vmatpush3.bf16.msra.mxu0 %v20793_v39  ;;  %v10208_v39 = vld [vmem:[#allocation2 + $0x1b1] sm:$0xff] }
 0x73e   :  { %18635 = vmatprep.subr.bf16.mxu0 %v20794_v25 }
 0x73f   :  { %19248 = vmatpush3.bf16.msra.mxu1 %v20796_v48 }
 0x740   :  { %19249 = vmatprep.subr.bf16.mxu1 %v20797_v13 }
 0x741   :  { %18636 = vmatpush3.bf16.msra.mxu0 %v20794_v25  ;;  %v10128_v25 = vld [vmem:[#allocation2 + $0x341] sm:$0xff] }
 0x742   :  { %19242 = vmatmul.mubr.bf16.gmra.mrb[140].mxu1 %v23763_v44  ;;  %18645 = vmatprep.subr.bf16.mxu0 %v20795_v59  ;;  %v23800_v37 = vpack.c.bf16 %v10129_v21, %v10128_v25  ;;  %v10299_v21 = vld [vmem:[#allocation2 + $0x352] sm:$0xff]  ;;  %v10298_v25 = vld [vmem:[#allocation2 + $0x342] sm:$0xff] }
 0x743   :  { %19250 = vmatpush3.bf16.msra.mxu1 %v20797_v13  ;;  %19261 = vmatprep.mubr.bf16.mxu1 %v23768_v45 }
 0x744   :  { %19251 = vmatprep.subr.bf16.mxu1 %v20798_v26  ;;  %18638 = vmatmul.mubr.bf16.vlgmr.msra.gmra.mrb[136].mxu0 %v9960_v49  ;;  %v10293_v49 = vld [vmem:[#allocation2 + $0x132] sm:$0xff] }
 0x745   :  { %18641 = vmatprep.mubr.bf16.mxu0 %v9961_v36  ;;  %18646 = vmatpush3.bf16.msra.mxu0 %v20795_v59  ;;  %v23805_v59 = vpack.c.bf16 %v10208_v39, %v10207_v8  ;;  %v23840_v36 = vpack.c.bf16 %v10214_v24, %v10213_v5  ;;  %v12122_v39 = vld [vmem:[#allocation2 + $0x1b2] sm:$0xff]  ;;  %v12121_v8 = vld [vmem:[#allocation2 + $0x1a2] sm:$0xff] }
 0x746   :  { %18647 = vmatprep.subr.bf16.mxu0 %v20796_v48  ;;  %v20483_v5 = vld [vmem:[%s24425_s5 + $0xc0] sm:$0xff]  }
 0x747   :  { %19252 = vmatpush3.bf16.msra.mxu1 %v20798_v26 }
 0x748   :  { %19253 = vmatprep.subr.bf16.mxu1 %v20799_v7 }
 0x749   :  { %18648 = vmatpush3.bf16.msra.mxu0 %v20796_v48  ;;  %v20807_v48 = vld [vmem:[%s24423_s3 + $0x5a0] sm:$0xff]  }
 0x74a   :  { %18649 = vmatprep.subr.bf16.mxu0 %v20797_v13 }
 0x74b   :  { %19254 = vmatpush3.bf16.msra.mxu1 %v20799_v7 }
 0x74c   :  { %19255 = vmatprep.subr.bf16.mxu1 %v20800_v41  ;;  %18642 = vmatmul.mubr.bf16.gmra.mrb[140].mxu0 %v9962_v58  ;;  %v20815_v58 = vld [vmem:[%s24423_s3 + $0x5e0] sm:$0xff]  }
 0x74d   :  { %18650 = vmatpush3.bf16.msra.mxu0 %v20797_v13  ;;  %18661 = vmatprep.mubr.bf16.mxu0 %v23729_v63  ;;  %v10124_v63 = vld [vmem:[#allocation2 + $0x141] sm:$0xff]  ;;  %v20811_v13 = vld [vmem:[%s24423_s3 + $0x5c0] sm:$0xff]  }
 0x74e   :  { %18651 = vmatprep.subr.bf16.mxu0 %v20798_v26  ;;  %v23788_v38 = vpack.c.bf16 %v10125_v11, %v10124_v63  ;;  %v10295_v11 = vld [vmem:[#allocation2 + $0x152] sm:$0xff]  ;;  %v10294_v63 = vld [vmem:[#allocation2 + $0x142] sm:$0xff] }
 0x74f   :  { %19256 = vmatpush3.bf16.msra.mxu1 %v20800_v41 }
 0x750   :  { %19257 = vmatprep.subr.bf16.mxu1 %v20801_v3 }
 0x751   :  { %18652 = vmatpush3.bf16.msra.mxu0 %v20798_v26  ;;  %v20813_v26 = vld [vmem:[%s24423_s3 + $0x5d0] sm:$0xff]  }
 0x752   :  { %18653 = vmatprep.subr.bf16.mxu0 %v20799_v7 }
 0x753   :  { %19258 = vmatpush3.bf16.msra.mxu1 %v20801_v3 }
 0x754   :  { %19259 = vmatprep.subr.bf16.mxu1 %v20802_v10 }
 0x755   :  { %18654 = vmatpush3.bf16.msra.mxu0 %v20799_v7  ;;  %v23845_v7 = vpack.c.bf16 %v10293_v49, %v10292_v53  ;;  %v20482_v49 = vld [vmem:[%s24425_s5 + $0x40] sm:$0xff]   ;;  %v20486_v53 = vld [vmem:[%s24425_s5 + $0x48] sm:$0xff]  }
 0x756   :  { %18655 = vmatprep.subr.bf16.mxu0 %v20800_v41 }
 0x757   :  { %19260 = vmatpush3.bf16.msra.mxu1 %v20802_v10 }
 0x758   :  { %19269 = vmatprep.subr.bf16.mxu1 %v20803_v16 }
 0x759   :  { %18656 = vmatpush3.bf16.msra.mxu0 %v20800_v41  ;;  %v20816_v41 = vld [vmem:[%s24423_s3 + $0x5e8] sm:$0xff]  }
 0x75a   :  { %19262 = vmatmul.mubr.bf16.vlgmr.msra.gmra.mrb[136].mxu1 %v23788_v38  ;;  %18657 = vmatprep.subr.bf16.mxu0 %v20801_v3 }
 0x75b   :  { %19265 = vmatprep.mubr.bf16.mxu1 %v23793_v35  ;;  %19270 = vmatpush3.bf16.msra.mxu1 %v20803_v16 }
 0x75c   :  { %19271 = vmatprep.subr.bf16.mxu1 %v20804_v31 }
 0x75d   :  { %18658 = vmatpush3.bf16.msra.mxu0 %v20801_v3  ;;  %v20817_v3 = vld [vmem:[%s24423_s3 + $0x5f0] sm:$0xff]  }
 0x75e   :  { %18659 = vmatprep.subr.bf16.mxu0 %v20802_v10 }
 0x75f   :  { %19272 = vmatpush3.bf16.msra.mxu1 %v20804_v31 }
 0x760   :  { %19273 = vmatprep.subr.bf16.mxu1 %v20805_v27 }
 0x761   :  { %18660 = vmatpush3.bf16.msra.mxu0 %v20802_v10  ;;  %v20818_v10 = vld [vmem:[%s24423_s3 + $0x5f8] sm:$0xff]  }
 0x762   :  { %19266 = vmatmul.mubr.bf16.gmra.mrb[140].mxu1 %v23800_v37  ;;  %18669 = vmatprep.subr.bf16.mxu0 %v20803_v16 }
 0x763   :  { %19274 = vmatpush3.bf16.msra.mxu1 %v20805_v27  ;;  %19285 = vmatprep.mubr.bf16.mxu1 %v23805_v59 }
 0x764   :  { %19275 = vmatprep.subr.bf16.mxu1 %v20806_v29  ;;  %18662 = vmatmul.mubr.bf16.vlgmr.msra.gmra.mrb[136].mxu0 %v23751_v43  ;;  %v20809_v43 = vld [vmem:[%s24423_s3 + $0x5b0] sm:$0xff]  }
 0x765   :  { %18665 = vmatprep.mubr.bf16.mxu0 %v23756_v62  ;;  %18670 = vmatpush3.bf16.msra.mxu0 %v20803_v16  ;;  %v20810_v62 = vld [vmem:[%s24423_s3 + $0x5b8] sm:$0xff]   ;;  %v20819_v16 = vld [vmem:[%s24423_s3 + $0x600] sm:$0xff]  }
 0x766   :  { %18671 = vmatprep.subr.bf16.mxu0 %v20804_v31 }
 0x767   :  { %19276 = vmatpush3.bf16.msra.mxu1 %v20806_v29 }
 0x768   :  { %19277 = vmatprep.subr.bf16.mxu1 %v20807_v48 }
 0x769   :  { %18672 = vmatpush3.bf16.msra.mxu0 %v20804_v31  ;;  %v20820_v31 = vld [vmem:[%s24423_s3 + $0x608] sm:$0xff]  }
 0x76a   :  { %18673 = vmatprep.subr.bf16.mxu0 %v20805_v27 }
 0x76b   :  { %19278 = vmatpush3.bf16.msra.mxu1 %v20807_v48 }
 0x76c   :  { %19279 = vmatprep.subr.bf16.mxu1 %v20808_v28  ;;  %18666 = vmatmul.mubr.bf16.gmra.mrb[140].mxu0 %v23763_v44  ;;  %v23828_v44 = vpack.c.bf16 %v10210_v15, %v10209_v54  ;;  %v12124_v15 = vld [vmem:[#allocation2 + $0x1d2] sm:$0xff]  ;;  %v12123_v54 = vld [vmem:[#allocation2 + $0x1c2] sm:$0xff] }
 0x76d   :  { %18674 = vmatpush3.bf16.msra.mxu0 %v20805_v27  ;;  %18685 = vmatprep.mubr.bf16.mxu0 %v23768_v45  ;;  %v20812_v45 = vld [vmem:[%s24423_s3 + $0x5c8] sm:$0xff]   ;;  %v20821_v27 = vld [vmem:[%s24423_s3 + $0x610] sm:$0xff]  }
 0x76e   :  { %18675 = vmatprep.subr.bf16.mxu0 %v20806_v29 }
 0x76f   :  { %19280 = vmatpush3.bf16.msra.mxu1 %v20808_v28 }
 0x770   :  { %19281 = vmatprep.subr.bf16.mxu1 %v20809_v43 }
 0x771   :  { %18676 = vmatpush3.bf16.msra.mxu0 %v20806_v29  ;;  %v20822_v29 = vld [vmem:[%s24423_s3 + $0x618] sm:$0xff]  }
 0x772   :  { %18677 = vmatprep.subr.bf16.mxu0 %v20807_v48 }
 0x773   :  { %19282 = vmatpush3.bf16.msra.mxu1 %v20809_v43 }
 0x774   :  { %19283 = vmatprep.subr.bf16.mxu1 %v20810_v62 }
 0x775   :  { %18678 = vmatpush3.bf16.msra.mxu0 %v20807_v48  ;;  %v20823_v48 = vld [vmem:[%s24423_s3 + $0x620] sm:$0xff]  }
 0x776   :  { %18679 = vmatprep.subr.bf16.mxu0 %v20808_v28 }
 0x777   :  { %19284 = vmatpush3.bf16.msra.mxu1 %v20810_v62 }
 0x778   :  { %19293 = vmatprep.subr.bf16.mxu1 %v20811_v13 }
 0x779   :  { %18680 = vmatpush3.bf16.msra.mxu0 %v20808_v28  ;;  %v20824_v28 = vld [vmem:[%s24423_s3 + $0x628] sm:$0xff]  }
 0x77a   :  { %19286 = vmatmul.mubr.bf16.vlgmr.msra.gmra.mrb[136].mxu1 %v23828_v44  ;;  %18681 = vmatprep.subr.bf16.mxu0 %v20809_v43 }
 0x77b   :  { %19289 = vmatprep.mubr.bf16.mxu1 %v23833_v17  ;;  %19294 = vmatpush3.bf16.msra.mxu1 %v20811_v13 }
 0x77c   :  { %19295 = vmatprep.subr.bf16.mxu1 %v20812_v45 }
 0x77d   :  { %18682 = vmatpush3.bf16.msra.mxu0 %v20809_v43  ;;  %v20825_v43 = vld [vmem:[%s24423_s3 + $0x630] sm:$0xff]  }
 0x77e   :  { %18683 = vmatprep.subr.bf16.mxu0 %v20810_v62 }
 0x77f   :  { %19296 = vmatpush3.bf16.msra.mxu1 %v20812_v45 }
 0x780   :  { %19297 = vmatprep.subr.bf16.mxu1 %v20813_v26 }
 0x781   :  { %18684 = vmatpush3.bf16.msra.mxu0 %v20810_v62  ;;  %v20826_v62 = vld [vmem:[%s24423_s3 + $0x638] sm:$0xff]  }
 0x782   :  { %19290 = vmatmul.mubr.bf16.gmra.mrb[140].mxu1 %v23840_v36  ;;  %18693 = vmatprep.subr.bf16.mxu0 %v20811_v13 }
 0x783   :  { %19298 = vmatpush3.bf16.msra.mxu1 %v20813_v26  ;;  %19309 = vmatprep.mubr.bf16.mxu1 %v23845_v7 }
 0x784   :  { %19299 = vmatprep.subr.bf16.mxu1 %v20814_v30  ;;  %18686 = vmatmul.mubr.bf16.vlgmr.msra.gmra.mrb[136].mxu0 %v23788_v38  ;;  %v23868_v38 = vpack.c.bf16 %v10295_v11, %v10294_v63  ;;  %v20493_v11 = vld [vmem:[%s24425_s5 + $0x90] sm:$0xff]   ;;  %v20495_v63 = vld [vmem:[%s24425_s5 + $0xd8] sm:$0xff]  }
 0x785   :  { %18689 = vmatprep.mubr.bf16.mxu0 %v23793_v35  ;;  %18694 = vmatpush3.bf16.msra.mxu0 %v20811_v13  ;;  %v23873_v35 = vpack.c.bf16 %v10297_v33, %v10296_v46  ;;  %v12125_v13 = vld [vmem:[#allocation2 + $0x3a2] sm:$0xff]  ;;  %v20498_v46 = vld [vmem:[%s24425_s5 + $0x60] sm:$0xff]  }
 0x786   :  { %18695 = vmatprep.subr.bf16.mxu0 %v20812_v45  ;;  %v12131_v34 = vpack.c.bf16 %v12126_v55, %v12125_v13  ;;  %v20494_v33 = vld [vmem:[%s24425_s5 + $0x58] sm:$0xff]   ;;  %v20514_v55 = vld [vmem:[%s24425_s5 + $0x140] sm:$0xff]  }
 0x787   :  { %19300 = vmatpush3.bf16.msra.mxu1 %v20814_v30 }
 0x788   :  { %19301 = vmatprep.subr.bf16.mxu1 %v20815_v58 }
 0x789   :  { %18696 = vmatpush3.bf16.msra.mxu0 %v20812_v45  ;;  %v12127_v45 = vld [vmem:[#allocation2 + $0x3c2] sm:$0xff] }
 0x78a   :  { %18697 = vmatprep.subr.bf16.mxu0 %v20813_v26 }
 0x78b   :  { %19302 = vmatpush3.bf16.msra.mxu1 %v20815_v58 }
 0x78c   :  { %19303 = vmatprep.subr.bf16.mxu1 %v20816_v41  ;;  %18690 = vmatmul.mubr.bf16.gmra.mrb[140].mxu0 %v23800_v37  ;;  %v10303_v37 = vpack.c.bf16 %v10299_v21, %v10298_v25  ;;  %v20501_v21 = vld [vmem:[%s24425_s5 + $0xa0] sm:$0xff]   ;;  %v20503_v25 = vld [vmem:[%s24425_s5 + $0xe8] sm:$0xff]  }
 0x78d   :  { %18698 = vmatpush3.bf16.msra.mxu0 %v20813_v26  ;;  %18709 = vmatprep.mubr.bf16.mxu0 %v23805_v59  ;;  %v12129_v59 = vpack.c.bf16 %v12122_v39, %v12121_v8  ;;  %v20485_v26 = vld [vmem:[%s24425_s5 + $0x80] sm:$0xff]   ;;  %v20502_v39 = vld [vmem:[%s24425_s5 + $0x68] sm:$0xff]   ;;  %v20506_v8 = vld [vmem:[%s24425_s5 + $0x70] sm:$0xff]  }
 0x78e   :  { %18699 = vmatprep.subr.bf16.mxu0 %v20814_v30 }
 0x78f   :  { %19304 = vmatpush3.bf16.msra.mxu1 %v20816_v41 }
 0x790   :  { %19305 = vmatprep.subr.bf16.mxu1 %v20817_v3 }
 0x791   :  { %18700 = vmatpush3.bf16.msra.mxu0 %v20814_v30  ;;  %v20488_v30 = vld [vmem:[%s24425_s5 + $0x8] sm:$0xff]  }
 0x792   :  { %18701 = vmatprep.subr.bf16.mxu0 %v20815_v58 }
 0x793   :  { %19306 = vmatpush3.bf16.msra.mxu1 %v20817_v3 }
 0x794   :  { %19307 = vmatprep.subr.bf16.mxu1 %v20818_v10 }
 0x795   :  { %18702 = vmatpush3.bf16.msra.mxu0 %v20815_v58  ;;  %v20489_v58 = vld [vmem:[%s24425_s5 + $0x88] sm:$0xff]  }
 0x796   :  { %18703 = vmatprep.subr.bf16.mxu0 %v20816_v41 }
 0x797   :  { %19308 = vmatpush3.bf16.msra.mxu1 %v20818_v10 }
 0x798   :  { %19317 = vmatprep.subr.bf16.mxu1 %v20819_v16 }
 0x799   :  { %18704 = vmatpush3.bf16.msra.mxu0 %v20816_v41  ;;  %v20490_v41 = vld [vmem:[%s24425_s5 + $0x50] sm:$0xff]  }
 0x79a   :  { %19310 = vmatmul.mubr.bf16.vlgmr.msra.gmra.mrb[136].mxu1 %v23868_v38  ;;  %18705 = vmatprep.subr.bf16.mxu0 %v20817_v3 }
 0x79b   :  { %19313 = vmatprep.mubr.bf16.mxu1 %v23873_v35  ;;  %19318 = vmatpush3.bf16.msra.mxu1 %v20819_v16 }
 0x79c   :  { %19319 = vmatprep.subr.bf16.mxu1 %v20820_v31 }
 0x79d   :  { %18706 = vmatpush3.bf16.msra.mxu0 %v20817_v3  ;;  %v20491_v3 = vld [vmem:[%s24425_s5 + $0xd0] sm:$0xff]  }
 0x79e   :  { %18707 = vmatprep.subr.bf16.mxu0 %v20818_v10 }
 0x79f   :  { %19320 = vmatpush3.bf16.msra.mxu1 %v20820_v31 }
 0x7a0   :  { %19321 = vmatprep.subr.bf16.mxu1 %v20821_v27 }
 0x7a1   :  { %18708 = vmatpush3.bf16.msra.mxu0 %v20818_v10  ;;  %v20492_v10 = vld [vmem:[%s24425_s5 + $0x10] sm:$0xff]  }
 0x7a2   :  { %19314 = vmatmul.mubr.bf16.gmra.mrb[140].mxu1 %v10303_v37  ;;  %18717 = vmatprep.subr.bf16.mxu0 %v20819_v16 }
 0x7a3   :  { %19322 = vmatpush3.bf16.msra.mxu1 %v20821_v27  ;;  %19333 = vmatprep.mubr.bf16.mxu1 %v12129_v59  ;;  %v20507_v59 = vld [vmem:[%s24425_s5 + $0xf0] sm:$0xff]  }
 0x7a4   :  { %19323 = vmatprep.subr.bf16.mxu1 %v20822_v29  ;;  %18710 = vmatmul.mubr.bf16.vlgmr.msra.gmra.mrb[136].mxu0 %v23828_v44  ;;  %v12130_v44 = vpack.c.bf16 %v12124_v15, %v12123_v54  ;;  %v20513_v15 = vld [vmem:[%s24425_s5 + $0xb8] sm:$0xff]   ;;  %v20515_v54 = vld [vmem:[%s24425_s5 + $0x1c0] sm:$0xff]  }
 0x7a5   :  { %18713 = vmatprep.mubr.bf16.mxu0 %v23833_v17  ;;  %18718 = vmatpush3.bf16.msra.mxu0 %v20819_v16  ;;  %v12128_v17 = vld [vmem:[#allocation2 + $0x3d2] sm:$0xff]  ;;  %v20497_v16 = vld [vmem:[%s24425_s5 + $0x98] sm:$0xff]  }
 0x7a6   :  { %18719 = vmatprep.subr.bf16.mxu0 %v20820_v31  ;;  %v12132_v24 = vpack.c.bf16 %v12128_v17, %v12127_v45 }
 0x7a7   :  { %19324 = vmatpush3.bf16.msra.mxu1 %v20822_v29 }
 0x7a8   :  { %19325 = vmatprep.subr.bf16.mxu1 %v20823_v48 }
 0x7a9   :  { %18720 = vmatpush3.bf16.msra.mxu0 %v20820_v31  ;;  %v20500_v31 = vld [vmem:[%s24425_s5 + $0x20] sm:$0xff]  }
 0x7aa   :  { %18721 = vmatprep.subr.bf16.mxu0 %v20821_v27 }
 0x7ab   :  { %19326 = vmatpush3.bf16.msra.mxu1 %v20823_v48 }
 0x7ac   :  { %19327 = vmatprep.subr.bf16.mxu1 %v20824_v28  ;;  %18714 = vmatmul.mubr.bf16.gmra.mrb[140].mxu0 %v23840_v36  ;;  %v20484_v36 = vld [vmem:[%s24425_s5] sm:$0xff]  }
 0x7ad   :  { %18722 = vmatpush3.bf16.msra.mxu0 %v20821_v27  ;;  %18733 = vmatprep.mubr.bf16.mxu0 %v23845_v7  ;;  %v20487_v7 = vld [vmem:[%s24425_s5 + $0xc8] sm:$0xff]  }
 0x7ae   :  { %18723 = vmatprep.subr.bf16.mxu0 %v20822_v29  ;;  %v20505_v27 = vld [vmem:[%s24425_s5 + $0xa8] sm:$0xff]  }
 0x7af   :  { %19328 = vmatpush3.bf16.msra.mxu1 %v20824_v28 }
 0x7b0   :  { %19329 = vmatprep.subr.bf16.mxu1 %v20825_v43 }
 0x7b1   :  { %18724 = vmatpush3.bf16.msra.mxu0 %v20822_v29  ;;  %v20508_v29 = vld [vmem:[%s24425_s5 + $0x30] sm:$0xff]  }
 0x7b2   :  { %18725 = vmatprep.subr.bf16.mxu0 %v20823_v48 }
 0x7b3   :  { %19330 = vmatpush3.bf16.msra.mxu1 %v20825_v43 }
 0x7b4   :  { %19331 = vmatprep.subr.bf16.mxu1 %v20826_v62 }
 0x7b5   :  { %18726 = vmatpush3.bf16.msra.mxu0 %v20823_v48  ;;  %v20509_v48 = vld [vmem:[%s24425_s5 + $0xb0] sm:$0xff]  }
 0x7b6   :  { %18727 = vmatprep.subr.bf16.mxu0 %v20824_v28 }
 0x7b7   :  { %19332 = vmatpush3.bf16.msra.mxu1 %v20826_v62 }
 0x7b8   :  { %16497 = vmatprep.subr.bf16.mxu1 %v20483_v5 }
 0x7b9   :  { %18728 = vmatpush3.bf16.msra.mxu0 %v20824_v28  ;;  %v20510_v28 = vld [vmem:[%s24425_s5 + $0x78] sm:$0xff]  }
 0x7ba   :  { %19334 = vmatmul.mubr.bf16.vlgmr.msra.gmra.mrb[136].mxu1 %v12130_v44  ;;  %18729 = vmatprep.subr.bf16.mxu0 %v20825_v43 }
 0x7bb   :  { %19337 = vmatprep.mubr.bf16.mxu1 %v12131_v34  ;;  %16498 = vmatpush3.bf16.msra.mxu1 %v20485_v26 }
 0x7bc   :  { %16499 = vmatprep.subr.bf16.mxu1 %v20487_v7  ;;  %v14991_v7 = vld [vmem:[%s24424_s4] ss:$0 sm:$0xff] }
 0x7bd   :  { %18730 = vmatpush3.bf16.msra.mxu0 %v20825_v43  ;;  %v20511_v43 = vld [vmem:[%s24425_s5 + $0xf8] sm:$0xff]  }
 0x7be   :  { %18731 = vmatprep.subr.bf16.mxu0 %v20826_v62 }
 0x7bf   :  { %16500 = vmatpush3.bf16.msra.mxu1 %v20489_v58 }
 0x7c0   :  { %16501 = vmatprep.subr.bf16.mxu1 %v20491_v3 }
 0x7c1   :  { %18732 = vmatpush3.bf16.msra.mxu0 %v20826_v62  ;;  %v20512_v62 = vld [vmem:[%s24425_s5 + $0x38] sm:$0xff]  }
 0x7c2   :  { %19338 = vmatmul.mubr.bf16.gmra.mrb[140].mxu1 %v12132_v24  ;;  %16475 = vmatprep.subr.bf16.mxu0 %v20482_v49 }
 0x7c3   :  { %16502 = vmatpush3.bf16.msra.mxu1 %v20493_v11 }
 0x7c4   :  { %18734 = vmatmul.mubr.bf16.vlgmr.msra.gmra.mrb[136].mxu0 %v23868_v38  ;;  %v20496_v38 = vld [vmem:[%s24425_s5 + $0x18] sm:$0xff]   ;;  %16503 = vmatprep.subr.bf16.mxu1 %v20495_v63 }
 0x7c5   :  { %18737 = vmatprep.mubr.bf16.mxu0 %v23873_v35  ;;  %16476 = vmatpush3.bf16.msra.mxu0 %v20484_v36  ;;  %v20499_v35 = vld [vmem:[%s24425_s5 + $0xe0] sm:$0xff]  }
 0x7c6   :  { %16477 = vmatprep.subr.bf16.mxu0 %v20486_v53 }
 0x7c7   :  { %16504 = vmatpush3.bf16.msra.mxu1 %v20497_v16 }
 0x7c8   :  { %16505 = vmatprep.subr.bf16.mxu1 %v20499_v35 }
 0x7c9   :  { %16478 = vmatpush3.bf16.msra.mxu0 %v20488_v30 }
 0x7ca   :  { %16479 = vmatprep.subr.bf16.mxu0 %v20490_v41 }
 0x7cb   :  { %16506 = vmatpush3.bf16.msra.mxu1 %v20501_v21 }
 0x7cc   :  { %18738 = vmatmul.mubr.bf16.gmra.mrb[140].mxu0 %v10303_v37  ;;  %v20504_v37 = vld [vmem:[%s24425_s5 + $0x28] sm:$0xff]   ;;  %16507 = vmatprep.subr.bf16.mxu1 %v20503_v25 }
 0x7cd   :  { %16480 = vmatpush3.bf16.msra.mxu0 %v20492_v10 }
 0x7ce   :  { %16481 = vmatprep.subr.bf16.mxu0 %v20494_v33 }
 0x7cf   :  { %16508 = vmatpush3.bf16.msra.mxu1 %v20505_v27 }
 0x7d0   :  { %16509 = vmatprep.subr.bf16.mxu1 %v20507_v59 }
 0x7d1   :  { %16482 = vmatpush3.bf16.msra.mxu0 %v20496_v38 }
 0x7d2   :  { %16483 = vmatprep.subr.bf16.mxu0 %v20498_v46 }
 0x7d3   :  { %16510 = vmatpush3.bf16.msra.mxu1 %v20509_v48 }
 0x7d4   :  { %16511 = vmatprep.subr.bf16.mxu1 %v20511_v43 }
 0x7d5   :  { %16484 = vmatpush3.bf16.msra.mxu0 %v20500_v31 }
 0x7d6   :  { %16485 = vmatprep.subr.bf16.mxu0 %v20502_v39 }
 0x7d7   :  { %16512 = vmatpush3.bf16.msra.mxu1 %v20513_v15 }
 0x7d8   :  { %16541 = vmatprep.subr.bf16.mxu1 %v20515_v54  ;;  %v20516_v54 = vld [vmem:[%s24425_s5 + $0x100] sm:$0xff]  }
 0x7d9   :  { %16486 = vmatpush3.bf16.msra.mxu0 %v20504_v37 }
 0x7da   :  { %16487 = vmatprep.subr.bf16.mxu0 %v20506_v8 }
 0x7dd   :  { %16488 = vmatpush3.bf16.msra.mxu0 %v20508_v29 }
 0x7de   :  { %16489 = vmatprep.subr.bf16.mxu0 %v20510_v28 }
 0x7e1   :  { %16490 = vmatpush3.bf16.msra.mxu0 %v20512_v62 }
 0x7e2   :  { %16519 = vmatprep.subr.bf16.mxu0 %v20514_v55 }
 0x88d   :  { %v19335_v44 = vpop.f32.mrb[136].mxu1 }
 0x88e   :  { %v12167_v13 = vpop.f32.mrb[137].mxu1 }
 0x88f   :  { %v19336_v34 = vpop.f32.mrb[138].mxu1 }
 0x890   :  { %v12170_v17 = vpop.f32.mrb[139].mxu1 }
 0x895   :  { %v19339_v45 = vpop.f32.mrb[140].mxu1 }
 0x896   :  { %v12183_v24 = vpop.f32.mrb[141].mxu1 }
 0x897   :  { %v19340_v49 = vpop.f32.mrb[142].mxu1  ;;  %v18735_v5 = vpop.f32.mrb[136].mxu0 }
 0x898   :  { %v12186_v36 = vpop.f32.mrb[143].mxu1  ;;  %v10379_v26 = vmax.f32 %v8500_v22, %v18735_v5  ;;  %v10338_v53 = vpop.f32.mrb[137].mxu0 }
 0x899   :  { %v10377_v30 = vmax.f32 %v8498_v57, %v10338_v53  ;;  %v18736_v58 = vpop.f32.mrb[138].mxu0 }
 0x89a   :  { %v12208_v41 = vmax.f32 %v10379_v26, %v19335_v44  ;;  %v10380_v3 = vmax.f32 %v8501_v9, %v18736_v58  ;;  %v10341_v10 = vpop.f32.mrb[139].mxu0  ;;  %v20517_v44 = vld [vmem:[%s24425_s5 + $0x180] sm:$0xff]   ;;  %v20522_v58 = vld [vmem:[%s24425_s5 + $0x150] sm:$0xff]  }
 0x89b   :  { %v12206_v11 = vmax.f32 %v10377_v30, %v12167_v13  ;;  %v10378_v20 = vmax.f32 %v8499_v32, %v10341_v10  ;;  %v20521_v30 = vld [vmem:[%s24425_s5 + $0x188] sm:$0xff]   ;;  %v20525_v10 = vld [vmem:[%s24425_s5 + $0x190] sm:$0xff]  }
 0x89c   :  { %v12223_v50 = vadd.f32 %v14991_v7, %v12208_v41  ;;  %v12209_v22 = vmax.f32 %v10380_v3, %v19336_v34  ;;  %v20523_v41 = vld [vmem:[%s24425_s5 + $0x1d0] sm:$0xff]  }
 0x89d   :  { %v12221_v33 = vadd.f32 %v14991_v7, %v12206_v11  ;;  %v12207_v63 = vmax.f32 %v10378_v20, %v12170_v17  ;;  %v20524_v3 = vld [vmem:[%s24425_s5 + $0x110] sm:$0xff]   ;;  %v20526_v11 = vld [vmem:[%s24425_s5 + $0x158] sm:$0xff]  }
 0x89e   :  { %12231 = vst [vmem:[#allocation3 + $0x10] sm:$0xff] %v12223_v50  ;;  %v12224_v38 = vadd.f32 %v14991_v7, %v12209_v22  ;;  %v20527_v20 = vld [vmem:[%s24425_s5 + $0x1d8] sm:$0xff]  }
 0x89f   :  { %12229 = vst [vmem:[#allocation3] sm:$0xff] %v12221_v33  ;;  %v12222_v42 = vadd.f32 %v14991_v7, %v12207_v63  ;;  %v18739_v52 = vpop.f32.mrb[140].mxu0  ;;  %v20528_v50 = vld [vmem:[%s24425_s5 + $0x118] sm:$0xff]   ;;  %v20530_v33 = vld [vmem:[%s24425_s5 + $0x160] sm:$0xff]  }
 0x8a0   :  { %12232 = vst [vmem:[#allocation3 + $0x18] sm:$0xff] %v12224_v38  ;;  %v10383_v0 = vmax.f32 %v8504_v1, %v18739_v52  ;;  %v10354_v57 = vpop.f32.mrb[141].mxu0  ;;  %v20529_v22 = vld [vmem:[%s24425_s5 + $0x198] sm:$0xff]   ;;  %v20531_v63 = vld [vmem:[%s24425_s5 + $0x1e0] sm:$0xff]   ;;  %v20534_v52 = vld [vmem:[%s24425_s5 + $0x168] sm:$0xff]  }
 0x8a1   :  { %12230 = vst [vmem:[#allocation3 + $0x8] sm:$0xff] %v12222_v42  ;;  %v10381_v56 = vmax.f32 %v8502_v23, %v10354_v57  ;;  %v18740_v6 = vpop.f32.mrb[142].mxu0  ;;  %v20532_v38 = vld [vmem:[%s24425_s5 + $0x120] sm:$0xff]   ;;  %v20536_v57 = vld [vmem:[%s24425_s5 + $0x128] sm:$0xff]  }
 0x8a2   :  { %v12212_v9 = vmax.f32 %v10383_v0, %v19339_v45  ;;  %v10384_v4 = vmax.f32 %v8505_v12, %v18740_v6  ;;  %v10357_v32 = vpop.f32.mrb[143].mxu0  ;;  %v20533_v42 = vld [vmem:[%s24425_s5 + $0x1a0] sm:$0xff]   ;;  %v20535_v0 = vld [vmem:[%s24425_s5 + $0x1e8] sm:$0xff]   ;;  %v20538_v6 = vld [vmem:[%s24425_s5 + $0x170] sm:$0xff]  }
 0x8a3   :  { %v12210_v16 = vmax.f32 %v10381_v56, %v12183_v24  ;;  %v10382_v46 = vmax.f32 %v8503_v60, %v10357_v32  ;;  %v20518_v24 = vld [vmem:[%s24425_s5 + $0x148] sm:$0xff]  }
 0x8a4   :  { %v12227_v61 = vadd.f32 %v14991_v7, %v12212_v9  ;;  %v12213_v19 = vmax.f32 %v10384_v4, %v19340_v49  ;;  %v20537_v56 = vld [vmem:[%s24425_s5 + $0x1a8] sm:$0xff]   ;;  %v20539_v9 = vld [vmem:[%s24425_s5 + $0x1f0] sm:$0xff]  }
 0x8a5   :  { %v12225_v1 = vadd.f32 %v14991_v7, %v12210_v16  ;;  %v12211_v35 = vmax.f32 %v10382_v46, %v12186_v36  ;;  %v20519_v36 = vld [vmem:[%s24425_s5 + $0x1c8] sm:$0xff]   ;;  %v20540_v16 = vld [vmem:[%s24425_s5 + $0x130] sm:$0xff]  }
 0x8a6   :  { %12235 = vst [vmem:[#allocation3 + $0x30] sm:$0xff] %v12227_v61  ;;  %v12228_v31 = vadd.f32 %v14991_v7, %v12213_v19  ;;  %v12239_v51 = vld [vmem:[#allocation3 + $0x1] sm:$0x1]  ;;  %v12243_v23 = vld [vmem:[#allocation3 + $0x3] sm:$0x1]  ;;  %v20542_v19 = vld [vmem:[%s24425_s5 + $0x178] sm:$0xff]  }
 0x8a7   :  { %12233 = vst [vmem:[#allocation3 + $0x20] sm:$0xff] %v12225_v1  ;;  %v12226_v47 = vadd.f32 %v14991_v7, %v12211_v35  ;;  %v12237_v12 = vld [vmem:[#allocation3] sm:$0x1]  ;;  %v12241_v48 = vld [vmem:[#allocation3 + $0x2] sm:$0x1]  ;;  %v20520_v7 = vld [vmem:[%s24425_s5 + $0x108] sm:$0xff]  }
 0x8a8   :  { %12236 = vst [vmem:[#allocation3 + $0x38] sm:$0xff] %v12228_v31  ;;  %v12247_v13 = vld [vmem:[#allocation3 + $0x9] sm:$0x1]  ;;  %v12251_v5 = vld [vmem:[#allocation3 + $0xb] sm:$0x1]  ;;  %v20541_v46 = vld [vmem:[%s24425_s5 + $0x1b0] sm:$0xff]  }
 0x8a9   :  { %12234 = vst [vmem:[#allocation3 + $0x28] sm:$0xff] %v12226_v47  ;;  %v20543_v1 = vld [vmem:[%s24425_s5 + $0x1f8] sm:$0xff]  }
 0x8ad   :  { %v12256_v61 = vld [vmem:[#allocation3 + $0x31] sm:$0x1]  ;;  %v12260_v35 = vld [vmem:[#allocation3 + $0x33] sm:$0x1] }
 0x8ae   :  { %v12240_v2 = vld [vmem:[#allocation3 + $0x21] sm:$0x1]  ;;  %v12244_v40 = vld [vmem:[#allocation3 + $0x23] sm:$0x1]  ;;  %v12238_v21 = vld [vmem:[#allocation3 + $0x20] sm:$0x1] }
 0x8af   :  { %v12277_v39 = vrot.slane %v12240_v2, 7  ;;  %v12287_v18 = vrot.slane %v12244_v40, 7  ;;  %v12271_v14 = vrot.slane %v12238_v21, 7  ;;  %v12242_v60 = vld [vmem:[#allocation3 + $0x22] sm:$0x1]  ;;  %v20544_v2 = vld [vmem:[%s24425_s5 + $0x138] sm:$0xff]  }
 0x8b0   :  { %v12282_v25 = vrot.slane %v12242_v60, 7  ;;  %v12248_v37 = vld [vmem:[#allocation3 + $0x29] sm:$0x1]  ;;  %v12252_v27 = vld [vmem:[#allocation3 + $0x2b] sm:$0x1]  ;;  %v20546_v40 = vld [vmem:[%s24425_s5 + $0x240] sm:$0xff]  }
 0x8b1   :  { %v12278_v8 = vsel %vm12272_vm1, %v12277_v39, %v12239_v51  ;;  %v12288_v59 = vsel %vm12272_vm1, %v12287_v18, %v12243_v23  ;;  %v12273_v29 = vsel %vm12272_vm1, %v12271_v14, %v12237_v12  ;;  %v12297_v28 = vrot.slane %v12248_v37, 7  ;;  %v12246_v4 = vld [vmem:[#allocation3 + $0x28] sm:$0x1]  ;;  %v12250_v32 = vld [vmem:[#allocation3 + $0x2a] sm:$0x1]  ;;  %v20547_v18 = vld [vmem:[%s24425_s5 + $0x2c0] sm:$0xff]  }
 0x8b2   :  { %v12351_v43 = vpack.c.bf16 %v12278_v8, %v12278_v8  ;;  %v12353_v62 = vpack.c.bf16 %v12288_v59, %v12288_v59  ;;  %v12350_v15 = vpack.c.bf16 %v12273_v29, %v12273_v29  ;;  %v12283_v55 = vsel %vm12272_vm1, %v12282_v25, %v12241_v48  ;;  %v20545_v23 = vld [vmem:[%s24425_s5 + $0x1b8] sm:$0xff]   ;;  %v12255_v25 = vld [vmem:[#allocation3 + $0x11] sm:$0x1] }
 0x8b3   :  { %v12352_v34 = vpack.c.bf16 %v12283_v55, %v12283_v55  ;;  %v12298_v17 = vsel %vm12272_vm1, %v12297_v28, %v12247_v13  ;;  %v12307_v45 = vrot.slane %v12252_v27, 7  ;;  %v12292_v31 = vrot.slane %v12246_v4, 7  ;;  %v12245_v21 = vld [vmem:[#allocation3 + $0x8] sm:$0x1]  ;;  %v12249_v39 = vld [vmem:[#allocation3 + $0xa] sm:$0x1] }
 0x8b4   :  { %13429 = vmatprep.mubr.bf16.mxu0 %v12351_v43  ;;  %13469 = vmatprep.mubr.bf16.mxu1 %v12353_v62  ;;  %v12355_v49 = vpack.c.bf16 %v12298_v17, %v12298_v17  ;;  %v12302_v47 = vrot.slane %v12250_v32, 7  ;;  %v12317_v51 = vrot.slane %v12256_v61, 7  ;;  %v12327_v12 = vrot.slane %v12260_v35, 7  ;;  %v12259_v27 = vld [vmem:[#allocation3 + $0x13] sm:$0x1]  ;;  %v20550_v62 = vld [vmem:[%s24425_s5 + $0x248] sm:$0xff]  }
 0x8b5   :  { %13430 = vmatmul.mubr.bf16.vlgmr.msra.gmra.mrb[144].mxu0 %v12350_v15  ;;  %13470 = vmatmul.mubr.bf16.vlgmr.msra.gmra.mrb[144].mxu1 %v12352_v34  ;;  %v12308_v26 = vsel %vm12272_vm1, %v12307_v45, %v12251_v5  ;;  %v12293_v14 = vsel %vm12272_vm1, %v12292_v31, %v12245_v21  ;;  %v20548_v8 = vld [vmem:[%s24425_s5 + $0x200] sm:$0xff]   ;;  %v20551_v15 = vld [vmem:[%s24425_s5 + $0x2c8] sm:$0xff]   ;;  %v20554_v13 = vld [vmem:[%s24425_s5 + $0x250] sm:$0xff]  }
 0x8b6   :  { %16520 = vmatpush3.bf16.msra.mxu0 %v20516_v54  ;;  %16542 = vmatpush3.bf16.msra.mxu1 %v20517_v44  ;;  %v12357_v53 = vpack.c.bf16 %v12308_v26, %v12308_v26  ;;  %v12303_v60 = vsel %vm12272_vm1, %v12302_v47, %v12249_v39  ;;  %v12318_v37 = vsel %vm12272_vm1, %v12317_v51, %v12255_v25  ;;  %v20549_v28 = vld [vmem:[%s24425_s5 + $0x280] sm:$0xff]   ;;  %v20552_v54 = vld [vmem:[%s24425_s5 + $0x208] sm:$0xff]   ;;  %v20555_v34 = vld [vmem:[%s24425_s5 + $0x2d0] sm:$0xff]  }
 0x8b7   :  { %13509 = vmatprep.mubr.bf16.mxu0 %v12355_v49  ;;  %16521 = vmatprep.subr.bf16.mxu0 %v20518_v24  ;;  %v12328_v59 = vsel %vm12272_vm1, %v12327_v12, %v12259_v27  ;;  %v12354_v29 = vpack.c.bf16 %v12293_v14, %v12293_v14  ;;  %v12356_v48 = vpack.c.bf16 %v12303_v60, %v12303_v60  ;;  %v20553_v44 = vld [vmem:[%s24425_s5 + $0x288] sm:$0xff]   ;;  %v20556_v17 = vld [vmem:[%s24425_s5 + $0x210] sm:$0xff]   ;;  %v20558_v24 = vld [vmem:[%s24425_s5 + $0x258] sm:$0xff]  }
 0x8b8   :  { %13549 = vmatprep.mubr.bf16.mxu1 %v12357_v53  ;;  %16543 = vmatprep.subr.bf16.mxu1 %v20519_v36  ;;  %v12359_v43 = vpack.c.bf16 %v12318_v37, %v12318_v37  ;;  %v12361_v55 = vpack.c.bf16 %v12328_v59, %v12328_v59  ;;  %v20557_v45 = vld [vmem:[%s24425_s5 + $0x290] sm:$0xff]   ;;  %v20559_v49 = vld [vmem:[%s24425_s5 + $0x2d8] sm:$0xff]   ;;  %v20562_v26 = vld [vmem:[%s24425_s5 + $0x260] sm:$0xff]  }
 0x8b9   :  { %v20560_v5 = vld [vmem:[%s24425_s5 + $0x218] sm:$0xff]   ;;  %v20563_v53 = vld [vmem:[%s24425_s5 + $0x2e0] sm:$0xff]   ;;  %v12263_v31 = vld [vmem:[#allocation3 + $0x19] sm:$0x1] }
 0x8ba   :  { %16522 = vmatpush3.bf16.msra.mxu0 %v20520_v7  ;;  %16544 = vmatpush3.bf16.msra.mxu1 %v20521_v30  ;;  %v20561_v36 = vld [vmem:[%s24425_s5 + $0x298] sm:$0xff]   ;;  %v20564_v7 = vld [vmem:[%s24425_s5 + $0x220] sm:$0xff]   ;;  %v20582_v39 = vld [vmem:[%s24425_s5 + $0x348] sm:$0xff]  }
 0x8bb   :  { %16523 = vmatprep.subr.bf16.mxu0 %v20522_v58  ;;  %16545 = vmatprep.subr.bf16.mxu1 %v20523_v41  ;;  %v20565_v30 = vld [vmem:[%s24425_s5 + $0x2a0] sm:$0xff]   ;;  %v20566_v58 = vld [vmem:[%s24425_s5 + $0x268] sm:$0xff]   ;;  %v20577_v4 = vld [vmem:[%s24425_s5 + $0x2b8] sm:$0xff]  }
 0x8bc   :  { %v20567_v41 = vld [vmem:[%s24425_s5 + $0x2e8] sm:$0xff]   ;;  %v12253_v32 = vld [vmem:[#allocation3 + $0x10] sm:$0x1]  ;;  %v20586_v27 = vld [vmem:[%s24425_s5 + $0x350] sm:$0xff]  }
 0x8bd   :  { %v20580_v47 = vld [vmem:[%s24425_s5 + $0x300] sm:$0xff]   ;;  %v20583_v14 = vld [vmem:[%s24425_s5 + $0x3c8] sm:$0xff]   ;;  %v20588_v59 = vld [vmem:[%s24425_s5 + $0x310] sm:$0xff]  }
 0x8be   :  { %16524 = vmatpush3.bf16.msra.mxu0 %v20524_v3  ;;  %16546 = vmatpush3.bf16.msra.mxu1 %v20525_v10  ;;  %v20568_v3 = vld [vmem:[%s24425_s5 + $0x228] sm:$0xff]  }
 0x8bf   :  { %16525 = vmatprep.subr.bf16.mxu0 %v20526_v11  ;;  %16547 = vmatprep.subr.bf16.mxu1 %v20527_v20  ;;  %v20569_v10 = vld [vmem:[%s24425_s5 + $0x2a8] sm:$0xff]   ;;  %v20570_v11 = vld [vmem:[%s24425_s5 + $0x270] sm:$0xff]  }
 0x8c0   :  { %v20571_v20 = vld [vmem:[%s24425_s5 + $0x2f0] sm:$0xff]   ;;  %v20584_v25 = vld [vmem:[%s24425_s5 + $0x308] sm:$0xff]  }
 0x8c1   :  { %v20585_v37 = vld [vmem:[%s24425_s5 + $0x388] sm:$0xff]  }
 0x8c2   :  { %16526 = vmatpush3.bf16.msra.mxu0 %v20528_v50  ;;  %16548 = vmatpush3.bf16.msra.mxu1 %v20529_v22  ;;  %v12254_v50 = vld [vmem:[#allocation3 + $0x30] sm:$0x1]  ;;  %v20572_v22 = vld [vmem:[%s24425_s5 + $0x230] sm:$0xff]  }
 0x8c3   :  { %16527 = vmatprep.subr.bf16.mxu0 %v20530_v33  ;;  %16549 = vmatprep.subr.bf16.mxu1 %v20531_v63  ;;  %v12258_v33 = vld [vmem:[#allocation3 + $0x32] sm:$0x1]  ;;  %v20573_v63 = vld [vmem:[%s24425_s5 + $0x2b0] sm:$0xff]  }
 0x8c6   :  { %16528 = vmatpush3.bf16.msra.mxu0 %v20532_v38  ;;  %16550 = vmatpush3.bf16.msra.mxu1 %v20533_v42  ;;  %v20574_v38 = vld [vmem:[%s24425_s5 + $0x278] sm:$0xff]   ;;  %v12264_v42 = vld [vmem:[#allocation3 + $0x39] sm:$0x1] }
 0x8c7   :  { %16529 = vmatprep.subr.bf16.mxu0 %v20534_v52  ;;  %16551 = vmatprep.subr.bf16.mxu1 %v20535_v0  ;;  %v20575_v52 = vld [vmem:[%s24425_s5 + $0x2f8] sm:$0xff]   ;;  %v12312_v0 = vrot.slane %v12254_v50, 7  ;;  %v12265_v50 = vld [vmem:[#allocation3 + $0x1a] sm:$0x1] }
 0x8c9   :  { %v12313_v61 = vsel %vm12272_vm1, %v12312_v0, %v12253_v32  ;;  %v20612_v0 = vld [vmem:[%s24427_s7 + $0x10] sm:$0xff]   ;;  %v20618_v32 = vld [vmem:[%s24429_s9] sm:$0xff]  }
 0x8ca   :  { %16530 = vmatpush3.bf16.msra.mxu0 %v20536_v57  ;;  %16552 = vmatpush3.bf16.msra.mxu1 %v20537_v56  ;;  %v12268_v57 = vld [vmem:[#allocation3 + $0x3b] sm:$0x1]  ;;  %v12322_v56 = vrot.slane %v12258_v33, 7 }
 0x8cb   :  { %16531 = vmatprep.subr.bf16.mxu0 %v20538_v6  ;;  %16553 = vmatprep.subr.bf16.mxu1 %v20539_v9  ;;  %v20576_v6 = vld [vmem:[%s24425_s5 + $0x238] sm:$0xff]   ;;  %v12337_v9 = vrot.slane %v12264_v42, 7  ;;  %v20610_v42 = vld [vmem:[%s24427_s7] sm:$0xff]  }
 0x8cd   :  { %v12338_v51 = vsel %vm12272_vm1, %v12337_v9, %v12263_v31  ;;  %v20616_v9 = vld [vmem:[%s24427_s7 + $0x30] sm:$0xff]  }
 0x8ce   :  { %16532 = vmatpush3.bf16.msra.mxu0 %v20540_v16  ;;  %16554 = vmatpush3.bf16.msra.mxu1 %v20541_v46  ;;  %v20578_v16 = vld [vmem:[%s24425_s5 + $0x340] sm:$0xff]   ;;  %v12347_v46 = vrot.slane %v12268_v57, 7  ;;  %v20613_v57 = vld [vmem:[%s24427_s7 + $0x18] sm:$0xff]  }
 0x8cf   :  { %16533 = vmatprep.subr.bf16.mxu0 %v20542_v19  ;;  %16555 = vmatprep.subr.bf16.mxu1 %v20543_v1  ;;  %v12257_v19 = vld [vmem:[#allocation3 + $0x12] sm:$0x1] }
 0x8d0   :  { %v20579_v1 = vld [vmem:[%s24425_s5 + $0x3c0] sm:$0xff]   ;;  %v12323_v35 = vsel %vm12272_vm1, %v12322_v56, %v12257_v19 }
 0x8d1   :  { %v12360_v21 = vpack.c.bf16 %v12323_v35, %v12323_v35  ;;  %v20614_v56 = vld [vmem:[%s24427_s7 + $0x20] sm:$0xff]  }
 0x8d2   :  { %16534 = vmatpush3.bf16.msra.mxu0 %v20544_v2  ;;  %16556 = vmatpush3.bf16.msra.mxu1 %v20545_v23  ;;  %v12267_v2 = vld [vmem:[#allocation3 + $0x1b] sm:$0x1]  ;;  %v12358_v23 = vpack.c.bf16 %v12313_v61, %v12313_v61  ;;  %v20621_v61 = vld [vmem:[%s24429_s9 + $0x18] sm:$0xff]   ;;  %v20622_v19 = vld [vmem:[%s24429_s9 + $0x20] sm:$0xff]  }
 0x8d3   :  { %16563 = vmatprep.subr.bf16.mxu0 %v20546_v40  ;;  %16585 = vmatprep.subr.bf16.mxu1 %v20547_v18  ;;  %v20581_v40 = vld [vmem:[%s24425_s5 + $0x380] sm:$0xff]   ;;  %v12348_v12 = vsel %vm12272_vm1, %v12347_v46, %v12267_v2  ;;  %v12363_v18 = vpack.c.bf16 %v12338_v51, %v12338_v51  ;;  %v20620_v46 = vld [vmem:[%s24429_s9 + $0x10] sm:$0xff]  }
 0x8d4   :  { %v12365_v60 = vpack.c.bf16 %v12348_v12, %v12348_v12  ;;  %v14992_v51 = vld [vmem:[%s24426_s6] ss:$0 sm:$0xff] }
 0x8d5   :  { %13510 = vmatmul.mubr.bf16.vlgmr.msra.gmra.mrb[148].mxu0 %v12354_v29  ;;  %13550 = vmatmul.mubr.bf16.vlgmr.msra.gmra.mrb[148].mxu1 %v12356_v48  ;;  %v20589_v29 = vld [vmem:[%s24425_s5 + $0x390] sm:$0xff]   ;;  %v20590_v48 = vld [vmem:[%s24425_s5 + $0x358] sm:$0xff]  }
 0x8d6   :  { %16564 = vmatpush3.bf16.msra.mxu0 %v20548_v8  ;;  %13589 = vmatprep.mubr.bf16.mxu0 %v12359_v43  ;;  %v20587_v8 = vld [vmem:[%s24425_s5 + $0x3d0] sm:$0xff]   ;;  %v20592_v43 = vld [vmem:[%s24425_s5 + $0x318] sm:$0xff]  }
 0x8d7   :  { %16586 = vmatpush3.bf16.msra.mxu1 %v20549_v28  ;;  %13629 = vmatprep.mubr.bf16.mxu1 %v12361_v55  ;;  %v20591_v28 = vld [vmem:[%s24425_s5 + $0x3d8] sm:$0xff]   ;;  %v20595_v55 = vld [vmem:[%s24425_s5 + $0x3e0] sm:$0xff]  }
 0x8d8   :  { %16565 = vmatprep.subr.bf16.mxu0 %v20550_v62  ;;  %16587 = vmatprep.subr.bf16.mxu1 %v20551_v15  ;;  %v20593_v62 = vld [vmem:[%s24425_s5 + $0x398] sm:$0xff]   ;;  %v20594_v15 = vld [vmem:[%s24425_s5 + $0x360] sm:$0xff]  }
 0x8da   :  { %16566 = vmatpush3.bf16.msra.mxu0 %v20552_v54  ;;  %v20596_v54 = vld [vmem:[%s24425_s5 + $0x320] sm:$0xff]  }
 0x8db   :  { %16588 = vmatpush3.bf16.msra.mxu1 %v20553_v44  ;;  %16567 = vmatprep.subr.bf16.mxu0 %v20554_v13  ;;  %v20597_v44 = vld [vmem:[%s24425_s5 + $0x3a0] sm:$0xff]   ;;  %v20598_v13 = vld [vmem:[%s24425_s5 + $0x368] sm:$0xff]  }
 0x8dc   :  { %16589 = vmatprep.subr.bf16.mxu1 %v20555_v34  ;;  %v20599_v34 = vld [vmem:[%s24425_s5 + $0x3e8] sm:$0xff]  }
 0x8de   :  { %16568 = vmatpush3.bf16.msra.mxu0 %v20556_v17  ;;  %v20600_v17 = vld [vmem:[%s24425_s5 + $0x328] sm:$0xff]  }
 0x8df   :  { %16590 = vmatpush3.bf16.msra.mxu1 %v20557_v45  ;;  %16569 = vmatprep.subr.bf16.mxu0 %v20558_v24  ;;  %v20601_v45 = vld [vmem:[%s24425_s5 + $0x3a8] sm:$0xff]   ;;  %v20602_v24 = vld [vmem:[%s24425_s5 + $0x370] sm:$0xff]  }
 0x8e0   :  { %16591 = vmatprep.subr.bf16.mxu1 %v20559_v49  ;;  %v20603_v49 = vld [vmem:[%s24425_s5 + $0x3f0] sm:$0xff]  }
 0x8e2   :  { %16570 = vmatpush3.bf16.msra.mxu0 %v20560_v5  ;;  %v12262_v5 = vld [vmem:[#allocation3 + $0x38] sm:$0x1] }
 0x8e3   :  { %16592 = vmatpush3.bf16.msra.mxu1 %v20561_v36  ;;  %16571 = vmatprep.subr.bf16.mxu0 %v20562_v26  ;;  %v20604_v36 = vld [vmem:[%s24425_s5 + $0x330] sm:$0xff]   ;;  %v12266_v26 = vld [vmem:[#allocation3 + $0x3a] sm:$0x1] }
 0x8e4   :  { %16593 = vmatprep.subr.bf16.mxu1 %v20563_v53  ;;  %v20605_v53 = vld [vmem:[%s24425_s5 + $0x3b0] sm:$0xff]  }
 0x8e6   :  { %16572 = vmatpush3.bf16.msra.mxu0 %v20564_v7  ;;  %v20606_v7 = vld [vmem:[%s24425_s5 + $0x378] sm:$0xff]  }
 0x8e7   :  { %16594 = vmatpush3.bf16.msra.mxu1 %v20565_v30  ;;  %16573 = vmatprep.subr.bf16.mxu0 %v20566_v58  ;;  %v20607_v30 = vld [vmem:[%s24425_s5 + $0x3f8] sm:$0xff]   ;;  %v12332_v58 = vrot.slane %v12262_v5, 7 }
 0x8e8   :  { %16595 = vmatprep.subr.bf16.mxu1 %v20567_v41  ;;  %v12342_v41 = vrot.slane %v12266_v26, 7 }
 0x8ea   :  { %16574 = vmatpush3.bf16.msra.mxu0 %v20568_v3  ;;  %v20608_v3 = vld [vmem:[%s24425_s5 + $0x338] sm:$0xff]  }
 0x8eb   :  { %16596 = vmatpush3.bf16.msra.mxu1 %v20569_v10  ;;  %16575 = vmatprep.subr.bf16.mxu0 %v20570_v11  ;;  %v20609_v10 = vld [vmem:[%s24425_s5 + $0x3b8] sm:$0xff]   ;;  %v12261_v11 = vld [vmem:[#allocation3 + $0x18] sm:$0x1] }
 0x8ec   :  { %16597 = vmatprep.subr.bf16.mxu1 %v20571_v20  ;;  %v12333_v20 = vsel %vm12272_vm1, %v12332_v58, %v12261_v11 }
 0x8ed   :  { %v12362_v33 = vpack.c.bf16 %v12333_v20, %v12333_v20 }
 0x8ee   :  { %16576 = vmatpush3.bf16.msra.mxu0 %v20572_v22  ;;  %v12343_v22 = vsel %vm12272_vm1, %v12342_v41, %v12265_v50 }
 0x8ef   :  { %16598 = vmatpush3.bf16.msra.mxu1 %v20573_v63  ;;  %16577 = vmatprep.subr.bf16.mxu0 %v20574_v38  ;;  %v24331_v63 = vld [vmem:[#allocation2 + $0x8] sm:$0xff]  ;;  %v12364_v38 = vpack.c.bf16 %v12343_v22, %v12343_v22 }
 0x8f0   :  { %16599 = vmatprep.subr.bf16.mxu1 %v20575_v52  ;;  %v20611_v52 = vld [vmem:[%s24427_s7 + $0x8] sm:$0xff]  }
 0x8f2   :  { %16578 = vmatpush3.bf16.msra.mxu0 %v20576_v6  ;;  %v20615_v6 = vld [vmem:[%s24427_s7 + $0x28] sm:$0xff]  }
 0x8f3   :  { %16600 = vmatpush3.bf16.msra.mxu1 %v20577_v4  ;;  %16607 = vmatprep.subr.bf16.mxu0 %v20578_v16  ;;  %v20617_v4 = vld [vmem:[%s24427_s7 + $0x38] sm:$0xff]   ;;  %v20619_v16 = vld [vmem:[%s24429_s9 + $0x8] sm:$0xff]  }
 0x8f4   :  { %16629 = vmatprep.subr.bf16.mxu1 %v20579_v1  ;;  %v20623_v1 = vld [vmem:[%s24429_s9 + $0x28] sm:$0xff]  }
 0x8f5   :  { %13590 = vmatmul.mubr.bf16.vlgmr.msra.gmra.mrb[152].mxu0 %v12358_v23 }
 0x8f6   :  { %13630 = vmatmul.mubr.bf16.vlgmr.msra.gmra.mrb[152].mxu1 %v12360_v21  ;;  %16608 = vmatpush3.bf16.msra.mxu0 %v20580_v47  ;;  %v20624_v47 = vld [vmem:[%s24429_s9 + $0x30] sm:$0xff]  }
 0x8f7   :  { %13669 = vmatprep.mubr.bf16.mxu0 %v12363_v18  ;;  %16630 = vmatpush3.bf16.msra.mxu1 %v20581_v40 }
 0x8f8   :  { %13709 = vmatprep.mubr.bf16.mxu1 %v12365_v60  ;;  %16609 = vmatprep.subr.bf16.mxu0 %v20582_v39 }
 0x8f9   :  { %16631 = vmatprep.subr.bf16.mxu1 %v20583_v14 }
 0x8fa   :  { %16610 = vmatpush3.bf16.msra.mxu0 %v20584_v25 }
 0x8fb   :  { %16632 = vmatpush3.bf16.msra.mxu1 %v20585_v37  ;;  %16611 = vmatprep.subr.bf16.mxu0 %v20586_v27 }
 0x8fc   :  { %16633 = vmatprep.subr.bf16.mxu1 %v20587_v8 }
 0x8fe   :  { %16612 = vmatpush3.bf16.msra.mxu0 %v20588_v59 }
 0x8ff   :  { %16634 = vmatpush3.bf16.msra.mxu1 %v20589_v29  ;;  %16613 = vmatprep.subr.bf16.mxu0 %v20590_v48 }
 0x900   :  { %16635 = vmatprep.subr.bf16.mxu1 %v20591_v28 }
 0x902   :  { %16614 = vmatpush3.bf16.msra.mxu0 %v20592_v43 }
 0x903   :  { %16636 = vmatpush3.bf16.msra.mxu1 %v20593_v62  ;;  %16615 = vmatprep.subr.bf16.mxu0 %v20594_v15 }
 0x904   :  { %16637 = vmatprep.subr.bf16.mxu1 %v20595_v55 }
 0x906   :  { %16616 = vmatpush3.bf16.msra.mxu0 %v20596_v54 }
 0x907   :  { %16638 = vmatpush3.bf16.msra.mxu1 %v20597_v44  ;;  %16617 = vmatprep.subr.bf16.mxu0 %v20598_v13 }
 0x908   :  { %16639 = vmatprep.subr.bf16.mxu1 %v20599_v34 }
 0x90a   :  { %16618 = vmatpush3.bf16.msra.mxu0 %v20600_v17 }
 0x90b   :  { %16640 = vmatpush3.bf16.msra.mxu1 %v20601_v45  ;;  %16619 = vmatprep.subr.bf16.mxu0 %v20602_v24 }
 0x90c   :  { %16641 = vmatprep.subr.bf16.mxu1 %v20603_v49 }
 0x90e   :  { %16620 = vmatpush3.bf16.msra.mxu0 %v20604_v36 }
 0x90f   :  { %16642 = vmatpush3.bf16.msra.mxu1 %v20605_v53  ;;  %16621 = vmatprep.subr.bf16.mxu0 %v20606_v7 }
 0x910   :  { %16643 = vmatprep.subr.bf16.mxu1 %v20607_v30 }
 0x912   :  { %16622 = vmatpush3.bf16.msra.mxu0 %v20608_v3 }
 0x913   :  { %16644 = vmatpush3.bf16.msra.mxu1 %v20609_v10  ;;  %19341 = vmatprep.subr.bf16.mxu0 %v24331_v63 }
 0x914   :  { %19361 = vmatprep.subr.bf16.mxu1 %v24331_v63 }
 0x915   :  { %13670 = vmatmul.mubr.bf16.vlgmr.msra.gmra.mrb[156].mxu0 %v12362_v33 }
 0x916   :  { %13710 = vmatmul.mubr.bf16.vlgmr.msra.gmra.mrb[156].mxu1 %v12364_v38  ;;  %19342 = vmatpush3.bf16.msra.mxu0 %v20610_v42 }
 0x917   :  { %19343 = vmatprep.subr.bf16.mxu0 %v24331_v63  ;;  %19357 = vmatprep.mubr.msk.bf16.mxu0 %vm20853_vm2, %v24331_v63 }
 0x918   :  { %19377 = vmatprep.mubr.msk.bf16.mxu1 %vm20853_vm2, %v24331_v63  ;;  %19362 = vmatpush3.bf16.msra.mxu1 %v20618_v32 }
 0x919   :  { %19363 = vmatprep.subr.bf16.mxu1 %v24331_v63 }
 0x91a   :  { %19344 = vmatpush3.bf16.msra.mxu0 %v20611_v52  ;;  %v20625_v52 = vld [vmem:[%s24429_s9 + $0x38] sm:$0xff]  }
 0x91b   :  { %19345 = vmatprep.subr.bf16.mxu0 %v24331_v63 }
 0x91c   :  { %19364 = vmatpush3.bf16.msra.mxu1 %v20619_v16  ;;  %v15130_v16 = vld [vmem:[%s24430_s10] ss:$0 sm:$0xff] }
 0x91d   :  { %19365 = vmatprep.subr.bf16.mxu1 %v24331_v63 }
 0x91e   :  { %19346 = vmatpush3.bf16.msra.mxu0 %v20612_v0  ;;  %v15121_v0 = vld [vmem:[%s24428_s8] ss:$0 sm:$0xff]  ;;  %s20828_s8 = scalar_lea.vmem %s13949_s15, 32 }
 0x91f   :  { %19347 = vmatprep.subr.bf16.mxu0 %v24331_v63  ;;  %p20829_p0 = scmp.ne.s32.totalorder %s13949_s15, %s20828_s8  ;;  %p20834_p2 = scmp.lt.s32.totalorder %s20828_s8, %s20828_s8 }
 0x920   :  { %19366 = vmatpush3.bf16.msra.mxu1 %v20620_v46 }
 0x921   :  { %19367 = vmatprep.subr.bf16.mxu1 %v24331_v63  ;;  %p20835_p3 = por %p20834_p2, %p20833_p1 }
 0x922   :  { %19348 = vmatpush3.bf16.msra.mxu0 %v20613_v57 }
 0x923   :  { %19349 = vmatprep.subr.bf16.mxu0 %v24331_v63  ;;  %p20836_p4 = pnand %p20835_p3, %p20829_p0 }
 0x924   :  { %19368 = vmatpush3.bf16.msra.mxu1 %v20621_v61 }
 0x925   :  { %19369 = vmatprep.subr.bf16.mxu1 %v24331_v63 }
 0x926   :  { %19350 = vmatpush3.bf16.msra.mxu0 %v20614_v56 }
 0x927   :  { %19351 = vmatprep.subr.bf16.mxu0 %v24331_v63 }
 0x928   :  { %19370 = vmatpush3.bf16.msra.mxu1 %v20622_v19 }
 0x929   :  { %19371 = vmatprep.subr.bf16.mxu1 %v24331_v63 }
 0x92a   :  { %19352 = vmatpush3.bf16.msra.mxu0 %v20615_v6 }
 0x92b   :  { %19353 = vmatprep.subr.bf16.mxu0 %v24331_v63 }
 0x92c   :  { %19372 = vmatpush3.bf16.msra.mxu1 %v20623_v1 }
 0x92d   :  { %19373 = vmatprep.subr.bf16.mxu1 %v24331_v63 }
 0x92e   :  { %19354 = vmatpush3.bf16.msra.mxu0 %v20616_v9 }
 0x92f   :  { %19355 = vmatprep.subr.bf16.mxu0 %v24331_v63 }
 0x930   :  { %19374 = vmatpush3.bf16.msra.mxu1 %v20624_v47 }
 0x931   :  { %19375 = vmatprep.subr.bf16.mxu1 %v24331_v63 }
 0x932   :  { %19356 = vmatpush3.bf16.msra.mxu0 %v20617_v4 }
 0x934   :  { %19376 = vmatpush3.bf16.msra.mxu1 %v20625_v52 }
 0x988   :  { %v16491_v35 = vpop.f32.mrb[144].mxu0  ;;  %v16513_v31 = vpop.f32.mrb[144].mxu1 }
 0x989   :  { %v16492_v2 = vpop.f32.mrb[145].mxu0  ;;  %v16514_v23 = vpop.f32.mrb[145].mxu1 }
 0x98a   :  { %v16493_v40 = vadd.f32 %v16492_v2, %v16491_v35  ;;  %v16515_v12 = vadd.f32 %v16514_v23, %v16513_v31  ;;  %v16494_v21 = vpop.f32.mrb[146].mxu0  ;;  %v16516_v39 = vpop.f32.mrb[146].mxu1 }
 0x98b   :  { %v16495_v18 = vpop.f32.mrb[147].mxu0  ;;  %v16517_v14 = vpop.f32.mrb[147].mxu1 }
 0x98c   :  { %v13432_v60 = vadd.f32 %v16493_v40, %v14992_v51 }
 0x98e   :  { %v13472_v25 = vadd.f32 %v16515_v12, %v13432_v60 }
 0x9a8   :  { %v16535_v37 = vpop.f32.mrb[148].mxu0  ;;  %v16557_v27 = vpop.f32.mrb[148].mxu1 }
 0x9a9   :  { %v16536_v8 = vpop.f32.mrb[149].mxu0  ;;  %v16558_v59 = vpop.f32.mrb[149].mxu1 }
 0x9aa   :  { %v16537_v29 = vadd.f32 %v16536_v8, %v16535_v37  ;;  %v16559_v48 = vadd.f32 %v16558_v59, %v16557_v27  ;;  %v16538_v28 = vpop.f32.mrb[150].mxu0  ;;  %v16560_v43 = vpop.f32.mrb[150].mxu1 }
 0x9ab   :  { %v16539_v62 = vpop.f32.mrb[151].mxu0  ;;  %v16561_v15 = vpop.f32.mrb[151].mxu1 }
 0x9ac   :  { %v13512_v55 = vadd.f32 %v16537_v29, %v13472_v25 }
 0x9ae   :  { %v13552_v54 = vadd.f32 %v16559_v48, %v13512_v55 }
 0x9c8   :  { %v16579_v44 = vpop.f32.mrb[152].mxu0 }
 0x9c9   :  { %v16601_v13 = vpop.f32.mrb[152].mxu1  ;;  %v16580_v34 = vpop.f32.mrb[153].mxu0 }
 0x9ca   :  { %v16581_v17 = vadd.f32 %v16580_v34, %v16579_v44  ;;  %v16602_v45 = vpop.f32.mrb[153].mxu1  ;;  %v16582_v24 = vpop.f32.mrb[154].mxu0 }
 0x9cb   :  { %v16603_v49 = vadd.f32 %v16602_v45, %v16601_v13  ;;  %v16604_v5 = vpop.f32.mrb[154].mxu1  ;;  %v16583_v36 = vpop.f32.mrb[155].mxu0 }
 0x9cc   :  { %v13592_v26 = vadd.f32 %v16581_v17, %v13552_v54  ;;  %v16605_v53 = vpop.f32.mrb[155].mxu1 }
 0x9ce   :  { %v13632_v7 = vadd.f32 %v16603_v49, %v13592_v26 }
 0x9e8   :  { %v16623_v30 = vpop.f32.mrb[156].mxu0 }
 0x9e9   :  { %v16645_v58 = vpop.f32.mrb[156].mxu1  ;;  %v16624_v41 = vpop.f32.mrb[157].mxu0 }
 0x9ea   :  { %v16625_v3 = vadd.f32 %v16624_v41, %v16623_v30  ;;  %v16646_v10 = vpop.f32.mrb[157].mxu1  ;;  %v16626_v11 = vpop.f32.mrb[158].mxu0 }
 0x9eb   :  { %v16647_v20 = vadd.f32 %v16646_v10, %v16645_v58  ;;  %v16648_v50 = vpop.f32.mrb[158].mxu1  ;;  %v16627_v22 = vpop.f32.mrb[159].mxu0 }
 0x9ec   :  { %v13672_v33 = vadd.f32 %v16625_v3, %v13632_v7  ;;  %v16649_v63 = vpop.f32.mrb[159].mxu1 }
 0x9ee   :  { %v13712_v38 = vadd.f32 %v16647_v20, %v13672_v33 }
 0x9f0   :  { %v13717_v42 = vpack.c.bf16 %v13712_v38, %v13712_v38 }
 0x9f2   :  { %19358 = vmatmul.mubr.bf16.vlgmr.msra.gmra.mrb[160].mxu0 %v13717_v42 }
 0xac5   :  { %v13823_v57 = vpop.f32.mrb[160].mxu0 }
 0xac6   :  { %v13824_v56 = vadd.f32 %v15121_v0, %v13823_v57  ;;  %v19359_v6 = vpop.f32.mrb[161].mxu0 }
 0xac7   :  { %v13826_v9 = vpop.f32.mrb[162].mxu0 }
 0xac8   :  { %v13829_v4 = vpack.c.bf16 %v13824_v56, %v13824_v56  ;;  %v19360_v32 = vpop.f32.mrb[163].mxu0 }
 0xaca   :  { %19378 = vmatmul.mubr.bf16.vlgmr.msra.gmra.mrb[160].mxu1 %v13829_v4 }
 0xb9d   :  { %v13935_v46 = vpop.f32.mrb[160].mxu1 }
 0xb9e   :  { %v13936_v61 = vadd.f32 %v15130_v16, %v13935_v46  ;;  %v19379_v19 = vpop.f32.mrb[161].mxu1 }
 0xb9f   :  { %v13938_v1 = vpop.f32.mrb[162].mxu1 }
 0xba0   :  { %13941 = vst [vmem:[#allocation4] sm:$0x3] %v13936_v61  ;;  %v19380_v35 = vpop.f32.mrb[163].mxu1 }
 0xba1   :  { %20839 = shalt.err (!%p20836_p4)
}
 0xba2   :  { %s20840_s10 = scalar_lea.hbm %s24431_s11, 32 }
 0xba3   :  { %p20841_p5 = scmp.ne.s32.totalorder %s24431_s11, %s20840_s10  ;;  %p20844_p6 = scmp.lt.u32.totalorder %s20840_s10, %s24431_s11 }
 0xba5   :  { %p20846_p7 = pnand %p20844_p6, %p20841_p5 }
 0xba7   :  { %20849 = shalt.err (!%p20846_p7)
}
 0xba8   :  { %13951 = dma.vmem_to_hbm [thread:$0]  %s13949_s15, 32, %s24431_s11, [#allocation5]  }
 0xba9   :  { %20850 = dma.done.wait [#allocation5], 32  }
 0xbaa   :  { %20851 = vsyncadd [#allocation5], 4294967264 }
 0xbab   :  { %13955 = vsyncpa [#allocation5], 1 }

</bundles_post_ra>
